<compile_context>
chip_gen: v6e
topology: v6e:2x2x1
jax: 0.10.0
libtpu: 0.0.40
codegen_flags: <defaults>
</compile_context>

<pallas_src>
import numpy as np
import jax
import jax.numpy as jnp
from jax.experimental import pallas as pl
from jax.experimental.pallas import tpu as pltpu

# --- module hyper-parameters (synthetic, small) ---
DIM = 32          # dim
NUM_HEADS = 4     # num_heads
HEAD_DIM = DIM // NUM_HEADS
WINDOW = 4        # window_size
SHIFT = 2         # shift_size
EPS = 1e-5        # nn.LayerNorm default eps
NEG_INF = -1e9    # cross-window / cross-batch logit penalty (exp -> exactly 0)


def _layernorm(x, g, b):
    mu = jnp.mean(x, axis=-1, keepdims=True)
    xc = x - mu
    var = jnp.mean(xc * xc, axis=-1, keepdims=True)
    return xc * jax.lax.rsqrt(var + EPS) * g + b


def _erf_poly(x):
    # Abramowitz & Stegun 7.1.26 (max abs err 1.5e-7); uses only exp (EUP)
    # and basic VPU ops, so it is guaranteed to lower in Mosaic.
    a1, a2, a3, a4, a5 = (0.254829592, -0.284496736, 1.421413741,
                          -1.453152027, 1.061405429)
    p = 0.3275911
    ax = jnp.abs(x)
    t = 1.0 / (1.0 + p * ax)
    poly = ((((a5 * t + a4) * t + a3) * t + a2) * t + a1) * t
    y = 1.0 - poly * jnp.exp(-(ax * ax))
    return jnp.where(x < 0.0, -y, y)


def _gelu_exact(x):
    # TODO(synk): jax.lax.erf has no guaranteed Mosaic lowering; the A&S
    # polynomial erf keeps torch nn.GELU's exact-erf semantics to ~1.5e-7.
    return 0.5 * x * (1.0 + _erf_poly(x * (2.0 ** -0.5)))


# ----------------------------- fused Pallas kernel --------------------------

def fused_swin_block_kernel(x_ref, perm_ref, permt_ref, mask_ref, vec_ref,
                            bb1_ref, wstack_ref, w1_ref, w2_ref, o_ref):
    # x_ref    : (M, C) tokens of the WHOLE batch, raster order, M = B*N
    # perm_ref : (M, M) 0/1 permutation (cyclic shift + window partition)
    # permt_ref: (M, M) its transpose (inverse permutation)
    # mask_ref : (M, M) block-diagonal window/batch attention mask
    # vec_ref  : (9, C) packed small vectors, see pack_kernel_params
    # bb1_ref  : (1, 4C) MLP fc1 bias
    # wstack_ref: (4, C, C) [wq*scale, wk, wv, wproj]
    x = x_ref[...]                                                   # (M, C)
    P = perm_ref[...]
    Pt = permt_ref[...]
    mask = mask_ref[...]

    g1 = vec_ref[0:1, :]
    b1 = vec_ref[1:2, :]
    bq = vec_ref[2:3, :]
    bk = vec_ref[3:4, :]
    bv = vec_ref[4:5, :]
    bp = vec_ref[5:6, :]
    g2 = vec_ref[6:7, :]
    b2 = vec_ref[7:8, :]
    bb2 = vec_ref[8:9, :]
    bb1 = bb1_ref[...]

    wq = wstack_ref[0]
    wk = wstack_ref[1]
    wv = wstack_ref[2]
    wp = wstack_ref[3]

    # --- cyclic shift + window partition as one exact 0/1 permutation matmul
    xp = jnp.dot(P, x, preferred_element_type=jnp.float32)          # (M, C)

    # --- norm1 + QKV (attention scale already folded into wq / bq host-side)
    xn = _layernorm(xp, g1, b1)
    q = jnp.dot(xn, wq, preferred_element_type=jnp.float32) + bq
    k = jnp.dot(xn, wk, preferred_element_type=jnp.float32) + bk
    v = jnp.dot(xn, wv, preferred_element_type=jnp.float32) + bv

    # --- window attention: all windows & batch elements batched via the
    # block-diagonal mask; per-head PARTIAL output projections accumulate in
    # registers (no VMEM scratch, no narrow stores).
    attn = None
    for h in range(NUM_HEADS):                                      # static unroll
        sl = slice(h * HEAD_DIM, (h + 1) * HEAD_DIM)
        qh, kh, vh = q[:, sl], k[:, sl], v[:, sl]                    # (M, hd)
        s = jax.lax.dot_general(qh, kh, (((1,), (1,)), ((), ())),
                                preferred_element_type=jnp.float32)  # (M, M)
        s = s + mask
        s = s - jnp.max(s, axis=-1, keepdims=True)
        p = jnp.exp(s)
        d = jnp.sum(p, axis=-1, keepdims=True)
        r = pl.reciprocal(d, approx=True)
        r = r * (2.0 - d * r)            # one Newton-Raphson step (~1e-8 rel err)
        p = p * r
        oh = jnp.dot(p, vh, preferred_element_type=jnp.float32)      # (M, hd)
        part = jnp.dot(oh, wp[sl, :],
                       preferred_element_type=jnp.float32)           # (M, C)
        attn = part if attn is None else attn + part
    attn = attn + bp

    # --- residual 1 + norm2 + MLP (fc1 -> exact GELU -> fc2) + residual 2.
    # Still in permuted order: every op here is per-token so it commutes with
    # the permutation; we only undo it once at the very end.
    x1 = xp + attn
    xn2 = _layernorm(x1, g2, b2)
    hmid = jnp.dot(xn2, w1_ref[...], preferred_element_type=jnp.float32) + bb1
    y = x1 + jnp.dot(_gelu_exact(hmid), w2_ref[...],
                     preferred_element_type=jnp.float32) + bb2

    # --- inverse permutation back to raster token order
    o_ref[...] = jnp.dot(Pt, y,
                         preferred_element_type=jnp.float32).astype(o_ref.dtype)


# ------------------------- host-side static tables --------------------------

def get_attn_mask_np(window_size, shift_size, H, W):
    img_mask = np.zeros((1, H, W, 1), np.float32)
    cnt = 0
    for h in (slice(None, -window_size), slice(-window_size, -shift_size),
              slice(-shift_size, None)):
        for w in (slice(None, -window_size), slice(-window_size, -shift_size),
                  slice(-shift_size, None)):
            img_mask[:, h, w, :] = cnt
            cnt += 1
    m = img_mask.reshape(1, H // window_size, window_size,
                         W // window_size, window_size, 1)
    m = m.transpose(0, 1, 3, 2, 4, 5).reshape(-1, window_size * window_size)
    attn_mask = m[:, None, :] - m[:, :, None]
    return np.where(attn_mask != 0, -100.0, 0.0).astype(np.float32)


def build_batched_mask_np(ws, ss, H, W, B):
    """Static (B*N, B*N) block-diagonal mask over window-major tokens."""
    nW = (H // ws) * (W // ws)
    Nw = ws * ws
    N = H * W
    if ss > 0:
        wm = get_attn_mask_np(ws, ss, H, W)                 # (nW, Nw, Nw)
    else:
        wm = np.zeros((nW, Nw, Nw), np.float32)
    blk = np.full((N, N), NEG_INF, np.float32)
    for i in range(nW):
        blk[i * Nw:(i + 1) * Nw, i * Nw:(i + 1) * Nw] = wm[i]
    full = np.full((B * N, B * N), NEG_INF, np.float32)
    for b in range(B):
        full[b * N:(b + 1) * N, b * N:(b + 1) * N] = blk
    return full


def build_perm_np(ws, ss, H, W, B):
    """(B*N, B*N) 0/1 permutation: raster tokens -> shifted window-major."""
    N = H * W
    nWw = W // ws
    perm = np.zeros(N, np.int64)
    for m in range(N):
        win, local = divmod(m, ws * ws)
        hw, ww = divmod(win, nWw)
        lr, lc = divmod(local, ws)
        h = hw * ws + lr
        w = ww * ws + lc
        perm[m] = ((h + ss) % H) * W + ((w + ss) % W)
    Pn = np.zeros((N, N), np.float32)
    Pn[np.arange(N), perm] = 1.0
    P = np.zeros((B * N, B * N), np.float32)
    for b in range(B):
        P[b * N:(b + 1) * N, b * N:(b + 1) * N] = Pn
    return P


def pack_kernel_params(params, B, H, W):
    """Pack raw params into the consolidated arrays the kernel consumes."""
    C = DIM
    scale = float(HEAD_DIM) ** (-0.5)
    wqkv, bqkv = params['wqkv'], params['bqkv']
    wq, wk, wv = wqkv[:, :C], wqkv[:, C:2 * C], wqkv[:, 2 * C:]
    bq, bk, bv = bqkv[:, :C], bqkv[:, C:2 * C], bqkv[:, 2 * C:]
    vec = jnp.concatenate([params['g1'], params['b1'], bq * scale, bk, bv,
                           params['bproj'], params['g2'], params['b2'],
                           params['bb2']], axis=0)               # (9, C)
    wstack = jnp.stack([wq * scale, wk, wv, params['wproj']], axis=0)  # (4,C,C)
    P = jnp.asarray(build_perm_np(WINDOW, SHIFT, H, W, B))
    return {
        'perm': P,
        'perm_t': P.T,
        'mask': jnp.asarray(build_batched_mask_np(WINDOW, SHIFT, H, W, B)),
        'vec': vec,
        'bb1': params['bb1'],                                    # (1, 4C)
        'wstack': wstack,
        'w1': params['w1'],
        'w2': params['w2'],
    }


# ----------------------------- JAX wrapper -----------------------------------

def swin_tf_block(x, kp):
    B, N, C = x.shape
    M = B * N
    xf = x.reshape(M, C)
    out = pl.pallas_call(
        fused_swin_block_kernel,
        out_shape=jax.ShapeDtypeStruct((M, C), x.dtype),
        grid=(1,),   # whole batch in one step (overhead-bound problem)
        in_specs=[
            pl.BlockSpec((M, C), lambda i: (0, 0)),            # x (raster order)
            pl.BlockSpec((M, M), lambda i: (0, 0)),            # perm
            pl.BlockSpec((M, M), lambda i: (0, 0)),            # perm^T
            pl.BlockSpec((M, M), lambda i: (0, 0)),            # mask
            pl.BlockSpec((9, C), lambda i: (0, 0)),            # packed vectors
            pl.BlockSpec((1, 4 * C), lambda i: (0, 0)),        # bb1
            pl.BlockSpec((4, C, C), lambda i: (0, 0, 0)),      # wq/wk/wv/wproj
            pl.BlockSpec((C, 4 * C), lambda i: (0, 0)),        # w1
            pl.BlockSpec((4 * C, C), lambda i: (0, 0)),        # w2
        ],
        out_specs=pl.BlockSpec((M, C), lambda i: (0, 0)),
        compiler_params=pltpu.CompilerParams(
            dimension_semantics=("arbitrary",)),
    )(xf, kp['perm'], kp['perm_t'], kp['mask'], kp['vec'], kp['bb1'],
      kp['wstack'], kp['w1'], kp['w2'])
    return out.reshape(B, N, C)


# -------------------- pure-JAX reference (for verification) ----------------

def window_partition(x, ws):
    B, H, W, C = x.shape
    x = x.reshape(B, H // ws, ws, W // ws, ws, C)
    return x.transpose(0, 1, 3, 2, 4, 5).reshape(-1, ws, ws, C)


def window_reverse(windows, ws, H, W):
    B = windows.shape[0] // ((H // ws) * (W // ws))
    x = windows.reshape(B, H // ws, W // ws, ws, ws, -1)
    return x.transpose(0, 1, 3, 2, 4, 5).reshape(B, H, W, -1)


def swin_tf_block_ref(x, params, H, W):
    B, N, C = x.shape
    ws, ss = WINDOW, SHIFT
    nW = (H // ws) * (W // ws)
    shortcut = x
    xn = _layernorm(x, params['g1'], params['b1']).reshape(B, H, W, C)
    if ss > 0:
        xn = jnp.roll(xn, shift=(-ss, -ss), axis=(1, 2))
    xw = window_partition(xn, ws).reshape(-1, ws * ws, C)
    Bw, Nw, _ = xw.shape
    qkv = xw @ params['wqkv'] + params['bqkv']
    qkv = qkv.reshape(Bw, Nw, 3, NUM_HEADS, HEAD_DIM).transpose(2, 0, 3, 1, 4)
    q, k, v = qkv[0], qkv[1], qkv[2]
    attn = jnp.einsum('bhnd,bhmd->bhnm', q, k) * (float(HEAD_DIM) ** -0.5)
    attn = attn.reshape(Bw // nW, nW, NUM_HEADS, Nw, Nw) + params['attn_mask'][None, :, None]
    attn = jax.nn.softmax(attn.reshape(Bw, NUM_HEADS, Nw, Nw), axis=-1)
    out = jnp.einsum('bhnm,bhmd->bhnd', attn, v).transpose(0, 2, 1, 3).reshape(Bw, Nw, C)
    out = out @ params['wproj'] + params['bproj']
    xr = window_reverse(out.reshape(-1, ws, ws, C), ws, H, W)
    if ss > 0:
        xr = jnp.roll(xr, shift=(ss, ss), axis=(1, 2))
    x1 = shortcut + xr.reshape(B, N, C)
    h = _layernorm(x1, params['g2'], params['b2']) @ params['w1'] + params['bb1']
    return x1 + jax.nn.gelu(h, approximate=False) @ params['w2'] + params['bb2']


# ----------------------------- setup / main --------------------------------

def init_params(key, dim, H, W, ws, ss):
    ks = jax.random.split(key, 12)
    s = 0.02
    nrm = lambda k, shp: (s * jax.random.normal(k, shp, jnp.float32))
    nW = (H // ws) * (W // ws)
    if ss > 0:
        mask = jnp.asarray(get_attn_mask_np(ws, ss, H, W))
    else:
        mask = jnp.zeros((nW, ws * ws, ws * ws), jnp.float32)
    return {
        'g1': 1.0 + nrm(ks[0], (1, dim)), 'b1': nrm(ks[1], (1, dim)),
        'wqkv': nrm(ks[2], (dim, 3 * dim)), 'bqkv': nrm(ks[3], (1, 3 * dim)),
        'wproj': nrm(ks[4], (dim, dim)), 'bproj': nrm(ks[5], (1, dim)),
        'g2': 1.0 + nrm(ks[6], (1, dim)), 'b2': nrm(ks[7], (1, dim)),
        'w1': nrm(ks[8], (dim, 4 * dim)), 'bb1': nrm(ks[9], (1, 4 * dim)),
        'w2': nrm(ks[10], (4 * dim, dim)), 'bb2': nrm(ks[11], (1, dim)),
        'attn_mask': mask,                                   # (nW, Nw, Nw) ref
    }


if __name__ == "__main__":
    B, H, W = 2, 8, 8
    N = H * W
    key = jax.random.PRNGKey(0)
    kx, kp_key = jax.random.split(key)
    x = jax.random.normal(kx, (B, N, DIM), jnp.float32)
    params = init_params(kp_key, DIM, H, W, WINDOW, SHIFT)
    kparams = pack_kernel_params(params, B, H, W)

    fwd = jax.jit(lambda xx: swin_tf_block(xx, kparams))
    out = jax.block_until_ready(fwd(x))
    assert out.shape == (B, N, DIM)

    ref = swin_tf_block_ref(x, params, H, W)
    np.testing.assert_allclose(np.asarray(out), np.asarray(ref),
                               rtol=2e-4, atol=2e-4)

    print("KERNEL_OK")
</pallas_src>

<mosaic_0001>
module attributes {stable_mosaic.version = 11 : i64} {
  func.func @fused_swin_block_kernel(%arg0: i32, %arg1: memref<128x32xf32, #tpu.memory_space<vmem>>, %arg2: memref<128x128xf32, #tpu.memory_space<vmem>>, %arg3: memref<128x128xf32, #tpu.memory_space<vmem>>, %arg4: memref<128x128xf32, #tpu.memory_space<vmem>>, %arg5: memref<9x32xf32, #tpu.memory_space<vmem>>, %arg6: memref<1x128xf32, #tpu.memory_space<vmem>>, %arg7: memref<4x32x32xf32, #tpu.memory_space<vmem>>, %arg8: memref<32x128xf32, #tpu.memory_space<vmem>>, %arg9: memref<128x32xf32, #tpu.memory_space<vmem>>, %arg10: memref<128x32xf32, #tpu.memory_space<vmem>>) attributes {dimension_semantics = [#tpu.dimension_semantics<arbitrary>], iteration_bounds = array<i64: 1>, scalar_prefetch = 0 : i64, scratch_operands = 0 : i64, tpu.core_type = #tpu.core_type<tc>, window_params = [{pipeline_mode = #tpu.pipeline_mode<synchronous>, transform_indices = @transform_0, window_bounds = array<i64: 128, 32>}, {pipeline_mode = #tpu.pipeline_mode<synchronous>, transform_indices = @transform_1, window_bounds = array<i64: 128, 128>}, {pipeline_mode = #tpu.pipeline_mode<synchronous>, transform_indices = @transform_2, window_bounds = array<i64: 128, 128>}, {pipeline_mode = #tpu.pipeline_mode<synchronous>, transform_indices = @transform_3, window_bounds = array<i64: 128, 128>}, {pipeline_mode = #tpu.pipeline_mode<synchronous>, transform_indices = @transform_4, window_bounds = array<i64: 9, 32>}, {pipeline_mode = #tpu.pipeline_mode<synchronous>, transform_indices = @transform_5, window_bounds = array<i64: 1, 128>}, {pipeline_mode = #tpu.pipeline_mode<synchronous>, transform_indices = @transform_6, window_bounds = array<i64: 4, 32, 32>}, {pipeline_mode = #tpu.pipeline_mode<synchronous>, transform_indices = @transform_7, window_bounds = array<i64: 32, 128>}, {pipeline_mode = #tpu.pipeline_mode<synchronous>, transform_indices = @transform_8, window_bounds = array<i64: 128, 32>}, {pipeline_mode = #tpu.pipeline_mode<synchronous>, transform_indices = @transform_9, window_bounds = array<i64: 128, 32>}]} {
    %c0 = arith.constant 0 : index
    %c0_0 = arith.constant 0 : index
    %0 = vector.load %arg1[%c0, %c0_0] : memref<128x32xf32, #tpu.memory_space<vmem>>, vector<128x32xf32>
    %c0_1 = arith.constant 0 : index
    %c0_2 = arith.constant 0 : index
    %1 = vector.load %arg2[%c0_1, %c0_2] : memref<128x128xf32, #tpu.memory_space<vmem>>, vector<128x128xf32>
    %c0_3 = arith.constant 0 : index
    %c0_4 = arith.constant 0 : index
    %2 = vector.load %arg3[%c0_3, %c0_4] : memref<128x128xf32, #tpu.memory_space<vmem>>, vector<128x128xf32>
    %c0_5 = arith.constant 0 : index
    %c0_6 = arith.constant 0 : index
    %3 = vector.load %arg4[%c0_5, %c0_6] : memref<128x128xf32, #tpu.memory_space<vmem>>, vector<128x128xf32>
    %c0_7 = arith.constant 0 : index
    %c0_8 = arith.constant 0 : index
    %4 = vector.load %arg5[%c0_7, %c0_8] : memref<9x32xf32, #tpu.memory_space<vmem>>, vector<1x32xf32>
    %c1 = arith.constant 1 : index
    %c0_9 = arith.constant 0 : index
    %5 = vector.load %arg5[%c1, %c0_9] : memref<9x32xf32, #tpu.memory_space<vmem>>, vector<1x32xf32>
    %c2 = arith.constant 2 : index
    %c0_10 = arith.constant 0 : index
    %6 = vector.load %arg5[%c2, %c0_10] : memref<9x32xf32, #tpu.memory_space<vmem>>, vector<1x32xf32>
    %c3 = arith.constant 3 : index
    %c0_11 = arith.constant 0 : index
    %7 = vector.load %arg5[%c3, %c0_11] : memref<9x32xf32, #tpu.memory_space<vmem>>, vector<1x32xf32>
    %c4 = arith.constant 4 : index
    %c0_12 = arith.constant 0 : index
    %8 = vector.load %arg5[%c4, %c0_12] : memref<9x32xf32, #tpu.memory_space<vmem>>, vector<1x32xf32>
    %c5 = arith.constant 5 : index
    %c0_13 = arith.constant 0 : index
    %9 = vector.load %arg5[%c5, %c0_13] : memref<9x32xf32, #tpu.memory_space<vmem>>, vector<1x32xf32>
    %c6 = arith.constant 6 : index
    %c0_14 = arith.constant 0 : index
    %10 = vector.load %arg5[%c6, %c0_14] : memref<9x32xf32, #tpu.memory_space<vmem>>, vector<1x32xf32>
    %c7 = arith.constant 7 : index
    %c0_15 = arith.constant 0 : index
    %11 = vector.load %arg5[%c7, %c0_15] : memref<9x32xf32, #tpu.memory_space<vmem>>, vector<1x32xf32>
    %c8 = arith.constant 8 : index
    %c0_16 = arith.constant 0 : index
    %12 = vector.load %arg5[%c8, %c0_16] : memref<9x32xf32, #tpu.memory_space<vmem>>, vector<1x32xf32>
    %c0_17 = arith.constant 0 : index
    %c0_18 = arith.constant 0 : index
    %13 = vector.load %arg6[%c0_17, %c0_18] : memref<1x128xf32, #tpu.memory_space<vmem>>, vector<1x128xf32>
    %c0_19 = arith.constant 0 : index
    %c0_20 = arith.constant 0 : index
    %c0_21 = arith.constant 0 : index
    %14 = vector.load %arg7[%c0_19, %c0_20, %c0_21] : memref<4x32x32xf32, #tpu.memory_space<vmem>>, vector<1x32x32xf32>
    %15 = vector.shape_cast %14 : vector<1x32x32xf32> to vector<32x32xf32>
    %c1_22 = arith.constant 1 : index
    %c0_23 = arith.constant 0 : index
    %c0_24 = arith.constant 0 : index
    %16 = vector.load %arg7[%c1_22, %c0_23, %c0_24] : memref<4x32x32xf32, #tpu.memory_space<vmem>>, vector<1x32x32xf32>
    %17 = vector.shape_cast %16 : vector<1x32x32xf32> to vector<32x32xf32>
    %c2_25 = arith.constant 2 : index
    %c0_26 = arith.constant 0 : index
    %c0_27 = arith.constant 0 : index
    %18 = vector.load %arg7[%c2_25, %c0_26, %c0_27] : memref<4x32x32xf32, #tpu.memory_space<vmem>>, vector<1x32x32xf32>
    %19 = vector.shape_cast %18 : vector<1x32x32xf32> to vector<32x32xf32>
    %c3_28 = arith.constant 3 : index
    %c0_29 = arith.constant 0 : index
    %c0_30 = arith.constant 0 : index
    %20 = vector.load %arg7[%c3_28, %c0_29, %c0_30] : memref<4x32x32xf32, #tpu.memory_space<vmem>>, vector<1x32x32xf32>
    %21 = vector.shape_cast %20 : vector<1x32x32xf32> to vector<32x32xf32>
    %cst = arith.constant dense<0.000000e+00> : vector<128x32xf32>
    %22 = tpu.matmul %1, %0, %cst {dimension_numbers = #tpu.dot_dimension_numbers<[1], [0], [0], [1], [0, 0, 1, 1], [], []>} : vector<128x128xf32>, vector<128x32xf32>, vector<128x32xf32> -> vector<128x32xf32>
    %cst_31 = arith.constant dense<0.000000e+00> : vector<128xf32>
    %23 = vector.multi_reduction <add>, %22, %cst_31 [1] : vector<128x32xf32> to vector<128xf32>
    %24 = vector.shape_cast %23 : vector<128xf32> to vector<128x1xf32>
    %cst_32 = arith.constant 3.200000e+01 : f32
    %25 = vector.broadcast %cst_32 : f32 to vector<128x1xf32>
    %26 = arith.divf %24, %25 : vector<128x1xf32>
    %27 = vector.broadcast %26 : vector<128x1xf32> to vector<128x32xf32>
    %28 = arith.subf %22, %27 : vector<128x32xf32>
    %29 = arith.mulf %28, %28 : vector<128x32xf32>
    %cst_33 = arith.constant dense<0.000000e+00> : vector<128xf32>
    %30 = vector.multi_reduction <add>, %29, %cst_33 [1] : vector<128x32xf32> to vector<128xf32>
    %31 = vector.shape_cast %30 : vector<128xf32> to vector<128x1xf32>
    %cst_34 = arith.constant 3.200000e+01 : f32
    %32 = vector.broadcast %cst_34 : f32 to vector<128x1xf32>
    %33 = arith.divf %31, %32 : vector<128x1xf32>
    %cst_35 = arith.constant 9.99999974E-6 : f32
    %34 = vector.broadcast %cst_35 : f32 to vector<128x1xf32>
    %35 = arith.addf %33, %34 : vector<128x1xf32>
    %36 = math.rsqrt %35 : vector<128x1xf32>
    %37 = vector.broadcast %36 : vector<128x1xf32> to vector<128x32xf32>
    %38 = arith.mulf %28, %37 : vector<128x32xf32>
    %39 = vector.broadcast %4 : vector<1x32xf32> to vector<128x32xf32>
    %40 = arith.mulf %38, %39 : vector<128x32xf32>
    %41 = vector.broadcast %5 : vector<1x32xf32> to vector<128x32xf32>
    %42 = arith.addf %40, %41 : vector<128x32xf32>
    %cst_36 = arith.constant dense<0.000000e+00> : vector<128x32xf32>
    %43 = tpu.matmul %42, %15, %cst_36 {dimension_numbers = #tpu.dot_dimension_numbers<[1], [0], [0], [1], [0, 0, 1, 1], [], []>} : vector<128x32xf32>, vector<32x32xf32>, vector<128x32xf32> -> vector<128x32xf32>
    %44 = vector.broadcast %6 : vector<1x32xf32> to vector<128x32xf32>
    %45 = arith.addf %43, %44 : vector<128x32xf32>
    %cst_37 = arith.constant dense<0.000000e+00> : vector<128x32xf32>
    %46 = tpu.matmul %42, %17, %cst_37 {dimension_numbers = #tpu.dot_dimension_numbers<[1], [0], [0], [1], [0, 0, 1, 1], [], []>} : vector<128x32xf32>, vector<32x32xf32>, vector<128x32xf32> -> vector<128x32xf32>
    %47 = vector.broadcast %7 : vector<1x32xf32> to vector<128x32xf32>
    %48 = arith.addf %46, %47 : vector<128x32xf32>
    %cst_38 = arith.constant dense<0.000000e+00> : vector<128x32xf32>
    %49 = tpu.matmul %42, %19, %cst_38 {dimension_numbers = #tpu.dot_dimension_numbers<[1], [0], [0], [1], [0, 0, 1, 1], [], []>} : vector<128x32xf32>, vector<32x32xf32>, vector<128x32xf32> -> vector<128x32xf32>
    %50 = vector.broadcast %8 : vector<1x32xf32> to vector<128x32xf32>
    %51 = arith.addf %49, %50 : vector<128x32xf32>
    %52 = vector.extract_strided_slice %45 {offsets = [0, 0], sizes = [128, 8], strides = [1, 1]} : vector<128x32xf32> to vector<128x8xf32>
    %53 = vector.extract_strided_slice %48 {offsets = [0, 0], sizes = [128, 8], strides = [1, 1]} : vector<128x32xf32> to vector<128x8xf32>
    %54 = vector.extract_strided_slice %51 {offsets = [0, 0], sizes = [128, 8], strides = [1, 1]} : vector<128x32xf32> to vector<128x8xf32>
    %cst_39 = arith.constant dense<0.000000e+00> : vector<128x128xf32>
    %55 = tpu.matmul %52, %53, %cst_39 {dimension_numbers = #tpu.dot_dimension_numbers<[1], [1], [0], [0], [0, 0, 1, 0], [], []>} : vector<128x8xf32>, vector<128x8xf32>, vector<128x128xf32> -> vector<128x128xf32>
    %56 = arith.addf %55, %3 : vector<128x128xf32>
    %cst_40 = arith.constant dense<0xFF800000> : vector<128xf32>
    %57 = vector.multi_reduction <maximumf>, %56, %cst_40 [1] : vector<128x128xf32> to vector<128xf32>
    %58 = vector.shape_cast %57 : vector<128xf32> to vector<128x1xf32>
    %59 = vector.broadcast %58 : vector<128x1xf32> to vector<128x128xf32>
    %60 = arith.subf %56, %59 : vector<128x128xf32>
    %61 = math.exp %60 : vector<128x128xf32>
    %cst_41 = arith.constant dense<0.000000e+00> : vector<128xf32>
    %62 = vector.multi_reduction <add>, %61, %cst_41 [1] : vector<128x128xf32> to vector<128xf32>
    %63 = vector.shape_cast %62 : vector<128xf32> to vector<128x1xf32>
    %64 = tpu.reciprocal %63 {approx = true} : vector<128x1xf32> -> vector<128x1xf32>
    %65 = arith.mulf %63, %64 : vector<128x1xf32>
    %cst_42 = arith.constant 2.000000e+00 : f32
    %66 = vector.broadcast %cst_42 : f32 to vector<128x1xf32>
    %67 = arith.subf %66, %65 : vector<128x1xf32>
    %68 = arith.mulf %64, %67 : vector<128x1xf32>
    %69 = vector.broadcast %68 : vector<128x1xf32> to vector<128x128xf32>
    %70 = arith.mulf %61, %69 : vector<128x128xf32>
    %cst_43 = arith.constant dense<0.000000e+00> : vector<128x8xf32>
    %71 = tpu.matmul %70, %54, %cst_43 {dimension_numbers = #tpu.dot_dimension_numbers<[1], [0], [0], [1], [0, 0, 1, 1], [], []>} : vector<128x128xf32>, vector<128x8xf32>, vector<128x8xf32> -> vector<128x8xf32>
    %72 = vector.extract_strided_slice %21 {offsets = [0, 0], sizes = [8, 32], strides = [1, 1]} : vector<32x32xf32> to vector<8x32xf32>
    %cst_44 = arith.constant dense<0.000000e+00> : vector<128x32xf32>
    %73 = tpu.matmul %71, %72, %cst_44 {dimension_numbers = #tpu.dot_dimension_numbers<[1], [0], [0], [1], [0, 0, 1, 1], [], []>} : vector<128x8xf32>, vector<8x32xf32>, vector<128x32xf32> -> vector<128x32xf32>
    %74 = vector.extract_strided_slice %45 {offsets = [0, 8], sizes = [128, 8], strides = [1, 1]} : vector<128x32xf32> to vector<128x8xf32>
    %75 = vector.extract_strided_slice %48 {offsets = [0, 8], sizes = [128, 8], strides = [1, 1]} : vector<128x32xf32> to vector<128x8xf32>
    %76 = vector.extract_strided_slice %51 {offsets = [0, 8], sizes = [128, 8], strides = [1, 1]} : vector<128x32xf32> to vector<128x8xf32>
    %cst_45 = arith.constant dense<0.000000e+00> : vector<128x128xf32>
    %77 = tpu.matmul %74, %75, %cst_45 {dimension_numbers = #tpu.dot_dimension_numbers<[1], [1], [0], [0], [0, 0, 1, 0], [], []>} : vector<128x8xf32>, vector<128x8xf32>, vector<128x128xf32> -> vector<128x128xf32>
    %78 = arith.addf %77, %3 : vector<128x128xf32>
    %cst_46 = arith.constant dense<0xFF800000> : vector<128xf32>
    %79 = vector.multi_reduction <maximumf>, %78, %cst_46 [1] : vector<128x128xf32> to vector<128xf32>
    %80 = vector.shape_cast %79 : vector<128xf32> to vector<128x1xf32>
    %81 = vector.broadcast %80 : vector<128x1xf32> to vector<128x128xf32>
    %82 = arith.subf %78, %81 : vector<128x128xf32>
    %83 = math.exp %82 : vector<128x128xf32>
    %cst_47 = arith.constant dense<0.000000e+00> : vector<128xf32>
    %84 = vector.multi_reduction <add>, %83, %cst_47 [1] : vector<128x128xf32> to vector<128xf32>
    %85 = vector.shape_cast %84 : vector<128xf32> to vector<128x1xf32>
    %86 = tpu.reciprocal %85 {approx = true} : vector<128x1xf32> -> vector<128x1xf32>
    %87 = arith.mulf %85, %86 : vector<128x1xf32>
    %cst_48 = arith.constant 2.000000e+00 : f32
    %88 = vector.broadcast %cst_48 : f32 to vector<128x1xf32>
    %89 = arith.subf %88, %87 : vector<128x1xf32>
    %90 = arith.mulf %86, %89 : vector<128x1xf32>
    %91 = vector.broadcast %90 : vector<128x1xf32> to vector<128x128xf32>
    %92 = arith.mulf %83, %91 : vector<128x128xf32>
    %cst_49 = arith.constant dense<0.000000e+00> : vector<128x8xf32>
    %93 = tpu.matmul %92, %76, %cst_49 {dimension_numbers = #tpu.dot_dimension_numbers<[1], [0], [0], [1], [0, 0, 1, 1], [], []>} : vector<128x128xf32>, vector<128x8xf32>, vector<128x8xf32> -> vector<128x8xf32>
    %94 = vector.extract_strided_slice %21 {offsets = [8, 0], sizes = [8, 32], strides = [1, 1]} : vector<32x32xf32> to vector<8x32xf32>
    %cst_50 = arith.constant dense<0.000000e+00> : vector<128x32xf32>
    %95 = tpu.matmul %93, %94, %cst_50 {dimension_numbers = #tpu.dot_dimension_numbers<[1], [0], [0], [1], [0, 0, 1, 1], [], []>} : vector<128x8xf32>, vector<8x32xf32>, vector<128x32xf32> -> vector<128x32xf32>
    %96 = arith.addf %73, %95 : vector<128x32xf32>
    %97 = vector.extract_strided_slice %45 {offsets = [0, 16], sizes = [128, 8], strides = [1, 1]} : vector<128x32xf32> to vector<128x8xf32>
    %98 = vector.extract_strided_slice %48 {offsets = [0, 16], sizes = [128, 8], strides = [1, 1]} : vector<128x32xf32> to vector<128x8xf32>
    %99 = vector.extract_strided_slice %51 {offsets = [0, 16], sizes = [128, 8], strides = [1, 1]} : vector<128x32xf32> to vector<128x8xf32>
    %cst_51 = arith.constant dense<0.000000e+00> : vector<128x128xf32>
    %100 = tpu.matmul %97, %98, %cst_51 {dimension_numbers = #tpu.dot_dimension_numbers<[1], [1], [0], [0], [0, 0, 1, 0], [], []>} : vector<128x8xf32>, vector<128x8xf32>, vector<128x128xf32> -> vector<128x128xf32>
    %101 = arith.addf %100, %3 : vector<128x128xf32>
    %cst_52 = arith.constant dense<0xFF800000> : vector<128xf32>
    %102 = vector.multi_reduction <maximumf>, %101, %cst_52 [1] : vector<128x128xf32> to vector<128xf32>
    %103 = vector.shape_cast %102 : vector<128xf32> to vector<128x1xf32>
    %104 = vector.broadcast %103 : vector<128x1xf32> to vector<128x128xf32>
    %105 = arith.subf %101, %104 : vector<128x128xf32>
    %106 = math.exp %105 : vector<128x128xf32>
    %cst_53 = arith.constant dense<0.000000e+00> : vector<128xf32>
    %107 = vector.multi_reduction <add>, %106, %cst_53 [1] : vector<128x128xf32> to vector<128xf32>
    %108 = vector.shape_cast %107 : vector<128xf32> to vector<128x1xf32>
    %109 = tpu.reciprocal %108 {approx = true} : vector<128x1xf32> -> vector<128x1xf32>
    %110 = arith.mulf %108, %109 : vector<128x1xf32>
    %cst_54 = arith.constant 2.000000e+00 : f32
    %111 = vector.broadcast %cst_54 : f32 to vector<128x1xf32>
    %112 = arith.subf %111, %110 : vector<128x1xf32>
    %113 = arith.mulf %109, %112 : vector<128x1xf32>
    %114 = vector.broadcast %113 : vector<128x1xf32> to vector<128x128xf32>
    %115 = arith.mulf %106, %114 : vector<128x128xf32>
    %cst_55 = arith.constant dense<0.000000e+00> : vector<128x8xf32>
    %116 = tpu.matmul %115, %99, %cst_55 {dimension_numbers = #tpu.dot_dimension_numbers<[1], [0], [0], [1], [0, 0, 1, 1], [], []>} : vector<128x128xf32>, vector<128x8xf32>, vector<128x8xf32> -> vector<128x8xf32>
    %117 = vector.extract_strided_slice %21 {offsets = [16, 0], sizes = [8, 32], strides = [1, 1]} : vector<32x32xf32> to vector<8x32xf32>
    %cst_56 = arith.constant dense<0.000000e+00> : vector<128x32xf32>
    %118 = tpu.matmul %116, %117, %cst_56 {dimension_numbers = #tpu.dot_dimension_numbers<[1], [0], [0], [1], [0, 0, 1, 1], [], []>} : vector<128x8xf32>, vector<8x32xf32>, vector<128x32xf32> -> vector<128x32xf32>
    %119 = arith.addf %96, %118 : vector<128x32xf32>
    %120 = vector.extract_strided_slice %45 {offsets = [0, 24], sizes = [128, 8], strides = [1, 1]} : vector<128x32xf32> to vector<128x8xf32>
    %121 = vector.extract_strided_slice %48 {offsets = [0, 24], sizes = [128, 8], strides = [1, 1]} : vector<128x32xf32> to vector<128x8xf32>
    %122 = vector.extract_strided_slice %51 {offsets = [0, 24], sizes = [128, 8], strides = [1, 1]} : vector<128x32xf32> to vector<128x8xf32>
    %cst_57 = arith.constant dense<0.000000e+00> : vector<128x128xf32>
    %123 = tpu.matmul %120, %121, %cst_57 {dimension_numbers = #tpu.dot_dimension_numbers<[1], [1], [0], [0], [0, 0, 1, 0], [], []>} : vector<128x8xf32>, vector<128x8xf32>, vector<128x128xf32> -> vector<128x128xf32>
    %124 = arith.addf %123, %3 : vector<128x128xf32>
    %cst_58 = arith.constant dense<0xFF800000> : vector<128xf32>
    %125 = vector.multi_reduction <maximumf>, %124, %cst_58 [1] : vector<128x128xf32> to vector<128xf32>
    %126 = vector.shape_cast %125 : vector<128xf32> to vector<128x1xf32>
    %127 = vector.broadcast %126 : vector<128x1xf32> to vector<128x128xf32>
    %128 = arith.subf %124, %127 : vector<128x128xf32>
    %129 = math.exp %128 : vector<128x128xf32>
    %cst_59 = arith.constant dense<0.000000e+00> : vector<128xf32>
    %130 = vector.multi_reduction <add>, %129, %cst_59 [1] : vector<128x128xf32> to vector<128xf32>
    %131 = vector.shape_cast %130 : vector<128xf32> to vector<128x1xf32>
    %132 = tpu.reciprocal %131 {approx = true} : vector<128x1xf32> -> vector<128x1xf32>
    %133 = arith.mulf %131, %132 : vector<128x1xf32>
    %cst_60 = arith.constant 2.000000e+00 : f32
    %134 = vector.broadcast %cst_60 : f32 to vector<128x1xf32>
    %135 = arith.subf %134, %133 : vector<128x1xf32>
    %136 = arith.mulf %132, %135 : vector<128x1xf32>
    %137 = vector.broadcast %136 : vector<128x1xf32> to vector<128x128xf32>
    %138 = arith.mulf %129, %137 : vector<128x128xf32>
    %cst_61 = arith.constant dense<0.000000e+00> : vector<128x8xf32>
    %139 = tpu.matmul %138, %122, %cst_61 {dimension_numbers = #tpu.dot_dimension_numbers<[1], [0], [0], [1], [0, 0, 1, 1], [], []>} : vector<128x128xf32>, vector<128x8xf32>, vector<128x8xf32> -> vector<128x8xf32>
    %140 = vector.extract_strided_slice %21 {offsets = [24, 0], sizes = [8, 32], strides = [1, 1]} : vector<32x32xf32> to vector<8x32xf32>
    %cst_62 = arith.constant dense<0.000000e+00> : vector<128x32xf32>
    %141 = tpu.matmul %139, %140, %cst_62 {dimension_numbers = #tpu.dot_dimension_numbers<[1], [0], [0], [1], [0, 0, 1, 1], [], []>} : vector<128x8xf32>, vector<8x32xf32>, vector<128x32xf32> -> vector<128x32xf32>
    %142 = arith.addf %119, %141 : vector<128x32xf32>
    %143 = vector.broadcast %9 : vector<1x32xf32> to vector<128x32xf32>
    %144 = arith.addf %142, %143 : vector<128x32xf32>
    %145 = arith.addf %22, %144 : vector<128x32xf32>
    %cst_63 = arith.constant dense<0.000000e+00> : vector<128xf32>
    %146 = vector.multi_reduction <add>, %145, %cst_63 [1] : vector<128x32xf32> to vector<128xf32>
    %147 = vector.shape_cast %146 : vector<128xf32> to vector<128x1xf32>
    %cst_64 = arith.constant 3.200000e+01 : f32
    %148 = vector.broadcast %cst_64 : f32 to vector<128x1xf32>
    %149 = arith.divf %147, %148 : vector<128x1xf32>
    %150 = vector.broadcast %149 : vector<128x1xf32> to vector<128x32xf32>
    %151 = arith.subf %145, %150 : vector<128x32xf32>
    %152 = arith.mulf %151, %151 : vector<128x32xf32>
    %cst_65 = arith.constant dense<0.000000e+00> : vector<128xf32>
    %153 = vector.multi_reduction <add>, %152, %cst_65 [1] : vector<128x32xf32> to vector<128xf32>
    %154 = vector.shape_cast %153 : vector<128xf32> to vector<128x1xf32>
    %cst_66 = arith.constant 3.200000e+01 : f32
    %155 = vector.broadcast %cst_66 : f32 to vector<128x1xf32>
    %156 = arith.divf %154, %155 : vector<128x1xf32>
    %cst_67 = arith.constant 9.99999974E-6 : f32
    %157 = vector.broadcast %cst_67 : f32 to vector<128x1xf32>
    %158 = arith.addf %156, %157 : vector<128x1xf32>
    %159 = math.rsqrt %158 : vector<128x1xf32>
    %160 = vector.broadcast %159 : vector<128x1xf32> to vector<128x32xf32>
    %161 = arith.mulf %151, %160 : vector<128x32xf32>
    %162 = vector.broadcast %10 : vector<1x32xf32> to vector<128x32xf32>
    %163 = arith.mulf %161, %162 : vector<128x32xf32>
    %164 = vector.broadcast %11 : vector<1x32xf32> to vector<128x32xf32>
    %165 = arith.addf %163, %164 : vector<128x32xf32>
    %c0_68 = arith.constant 0 : index
    %c0_69 = arith.constant 0 : index
    %166 = vector.load %arg8[%c0_68, %c0_69] : memref<32x128xf32, #tpu.memory_space<vmem>>, vector<32x128xf32>
    %cst_70 = arith.constant dense<0.000000e+00> : vector<128x128xf32>
    %167 = tpu.matmul %165, %166, %cst_70 {dimension_numbers = #tpu.dot_dimension_numbers<[1], [0], [0], [1], [0, 0, 1, 1], [], []>} : vector<128x32xf32>, vector<32x128xf32>, vector<128x128xf32> -> vector<128x128xf32>
    %168 = vector.broadcast %13 : vector<1x128xf32> to vector<128x128xf32>
    %169 = arith.addf %167, %168 : vector<128x128xf32>
    %cst_71 = arith.constant 5.000000e-01 : f32
    %170 = vector.broadcast %cst_71 : f32 to vector<128x128xf32>
    %171 = arith.mulf %170, %169 : vector<128x128xf32>
    %cst_72 = arith.constant 0.707106769 : f32
    %172 = vector.broadcast %cst_72 : f32 to vector<128x128xf32>
    %173 = arith.mulf %169, %172 : vector<128x128xf32>
    %174 = math.absf %173 : vector<128x128xf32>
    %cst_73 = arith.constant 0.327591091 : f32
    %175 = vector.broadcast %cst_73 : f32 to vector<128x128xf32>
    %176 = arith.mulf %175, %174 : vector<128x128xf32>
    %cst_74 = arith.constant 1.000000e+00 : f32
    %177 = vector.broadcast %cst_74 : f32 to vector<128x128xf32>
    %178 = arith.addf %177, %176 : vector<128x128xf32>
    %cst_75 = arith.constant 1.000000e+00 : f32
    %179 = vector.broadcast %cst_75 : f32 to vector<128x128xf32>
    %180 = arith.divf %179, %178 : vector<128x128xf32>
    %cst_76 = arith.constant 1.06140542 : f32
    %181 = vector.broadcast %cst_76 : f32 to vector<128x128xf32>
    %182 = arith.mulf %181, %180 : vector<128x128xf32>
    %cst_77 = arith.constant -1.45315206 : f32
    %183 = vector.broadcast %cst_77 : f32 to vector<128x128xf32>
    %184 = arith.addf %182, %183 : vector<128x128xf32>
    %185 = arith.mulf %184, %180 : vector<128x128xf32>
    %cst_78 = arith.constant 1.42141378 : f32
    %186 = vector.broadcast %cst_78 : f32 to vector<128x128xf32>
    %187 = arith.addf %185, %186 : vector<128x128xf32>
    %188 = arith.mulf %187, %180 : vector<128x128xf32>
    %cst_79 = arith.constant -0.284496725 : f32
    %189 = vector.broadcast %cst_79 : f32 to vector<128x128xf32>
    %190 = arith.addf %188, %189 : vector<128x128xf32>
    %191 = arith.mulf %190, %180 : vector<128x128xf32>
    %cst_80 = arith.constant 0.254829586 : f32
    %192 = vector.broadcast %cst_80 : f32 to vector<128x128xf32>
    %193 = arith.addf %191, %192 : vector<128x128xf32>
    %194 = arith.mulf %193, %180 : vector<128x128xf32>
    %195 = arith.mulf %174, %174 : vector<128x128xf32>
    %cst_81 = arith.constant 0.000000e+00 : f32
    %196 = vector.broadcast %cst_81 : f32 to vector<128x128xf32>
    %197 = arith.subf %196, %195 : vector<128x128xf32>
    %198 = math.exp %197 : vector<128x128xf32>
    %199 = arith.mulf %194, %198 : vector<128x128xf32>
    %cst_82 = arith.constant 1.000000e+00 : f32
    %200 = vector.broadcast %cst_82 : f32 to vector<128x128xf32>
    %201 = arith.subf %200, %199 : vector<128x128xf32>
    %cst_83 = arith.constant 0.000000e+00 : f32
    %202 = vector.broadcast %cst_83 : f32 to vector<128x128xf32>
    %203 = arith.cmpf olt, %173, %202 : vector<128x128xf32>
    %cst_84 = arith.constant 0.000000e+00 : f32
    %204 = vector.broadcast %cst_84 : f32 to vector<128x128xf32>
    %205 = arith.subf %204, %201 : vector<128x128xf32>
    %206 = arith.select %203, %205, %201 : vector<128x128xi1>, vector<128x128xf32>
    %cst_85 = arith.constant 1.000000e+00 : f32
    %207 = vector.broadcast %cst_85 : f32 to vector<128x128xf32>
    %208 = arith.addf %207, %206 : vector<128x128xf32>
    %209 = arith.mulf %171, %208 : vector<128x128xf32>
    %c0_86 = arith.constant 0 : index
    %c0_87 = arith.constant 0 : index
    %210 = vector.load %arg9[%c0_86, %c0_87] : memref<128x32xf32, #tpu.memory_space<vmem>>, vector<128x32xf32>
    %cst_88 = arith.constant dense<0.000000e+00> : vector<128x32xf32>
    %211 = tpu.matmul %209, %210, %cst_88 {dimension_numbers = #tpu.dot_dimension_numbers<[1], [0], [0], [1], [0, 0, 1, 1], [], []>} : vector<128x128xf32>, vector<128x32xf32>, vector<128x32xf32> -> vector<128x32xf32>
    %212 = arith.addf %145, %211 : vector<128x32xf32>
    %213 = vector.broadcast %12 : vector<1x32xf32> to vector<128x32xf32>
    %214 = arith.addf %212, %213 : vector<128x32xf32>
    %cst_89 = arith.constant dense<0.000000e+00> : vector<128x32xf32>
    %215 = tpu.matmul %2, %214, %cst_89 {dimension_numbers = #tpu.dot_dimension_numbers<[1], [0], [0], [1], [0, 0, 1, 1], [], []>} : vector<128x128xf32>, vector<128x32xf32>, vector<128x32xf32> -> vector<128x32xf32>
    %c0_90 = arith.constant 0 : index
    %c0_91 = arith.constant 0 : index
    %216 = vector.load %arg10[%c0_90, %c0_91] : memref<128x32xf32, #tpu.memory_space<vmem>>, vector<128x32xf32>
    tpu.vector_store %arg10[%c0_90, %c0_91], %215 {strides = array<i32>} : memref<128x32xf32, #tpu.memory_space<vmem>>, vector<128x32xf32>,
    return
  }
  func.func @transform_0(%arg0: i32) -> (i32, i32) {
    %c0_i32 = arith.constant 0 : i32
    %c0_i32_0 = arith.constant 0 : i32
    %c0_i32_1 = arith.constant 0 : i32
    return %c0_i32, %c0_i32_0 : i32, i32
  }
  func.func @transform_1(%arg0: i32) -> (i32, i32) {
    %c0_i32 = arith.constant 0 : i32
    %c0_i32_0 = arith.constant 0 : i32
    %c0_i32_1 = arith.constant 0 : i32
    return %c0_i32, %c0_i32_0 : i32, i32
  }
  func.func @transform_2(%arg0: i32) -> (i32, i32) {
    %c0_i32 = arith.constant 0 : i32
    %c0_i32_0 = arith.constant 0 : i32
    %c0_i32_1 = arith.constant 0 : i32
    return %c0_i32, %c0_i32_0 : i32, i32
  }
  func.func @transform_3(%arg0: i32) -> (i32, i32) {
    %c0_i32 = arith.constant 0 : i32
    %c0_i32_0 = arith.constant 0 : i32
    %c0_i32_1 = arith.constant 0 : i32
    return %c0_i32, %c0_i32_0 : i32, i32
  }
  func.func @transform_4(%arg0: i32) -> (i32, i32) {
    %c0_i32 = arith.constant 0 : i32
    %c0_i32_0 = arith.constant 0 : i32
    %c0_i32_1 = arith.constant 0 : i32
    return %c0_i32, %c0_i32_0 : i32, i32
  }
  func.func @transform_5(%arg0: i32) -> (i32, i32) {
    %c0_i32 = arith.constant 0 : i32
    %c0_i32_0 = arith.constant 0 : i32
    %c0_i32_1 = arith.constant 0 : i32
    return %c0_i32, %c0_i32_0 : i32, i32
  }
  func.func @transform_6(%arg0: i32) -> (i32, i32, i32) {
    %c0_i32 = arith.constant 0 : i32
    %c0_i32_0 = arith.constant 0 : i32
    %c0_i32_1 = arith.constant 0 : i32
    %c0_i32_2 = arith.constant 0 : i32
    return %c0_i32, %c0_i32_0, %c0_i32_1 : i32, i32, i32
  }
  func.func @transform_7(%arg0: i32) -> (i32, i32) {
    %c0_i32 = arith.constant 0 : i32
    %c0_i32_0 = arith.constant 0 : i32
    %c0_i32_1 = arith.constant 0 : i32
    return %c0_i32, %c0_i32_0 : i32, i32
  }
  func.func @transform_8(%arg0: i32) -> (i32, i32) {
    %c0_i32 = arith.constant 0 : i32
    %c0_i32_0 = arith.constant 0 : i32
    %c0_i32_1 = arith.constant 0 : i32
    return %c0_i32, %c0_i32_0 : i32, i32
  }
  func.func @transform_9(%arg0: i32) -> (i32, i32) {
    %c0_i32 = arith.constant 0 : i32
    %c0_i32_0 = arith.constant 0 : i32
    %c0_i32_1 = arith.constant 0 : i32
    return %c0_i32, %c0_i32_0 : i32, i32
  }
}

</mosaic_0001>

<bundles_post_ra>
// kernel: _lambda_.1
= control target key start
LH: loop header
LB: loop body
LE: loop exit
PB: predicated region body
PF: predicated region fallthrough
CT: control target
= control target key end

     0   :  { %14 = vsyncpa [#allocation3], 0  ;;  %s11115_s0 = inlined_call_operand.vmem [shape: f32[128,32], index: 0, kind: input, shape index: {}]   ;;  %s11116_s1 = inlined_call_operand.hbm [shape: f32[128,128], index: 1, kind: input, shape index: {}]   ;;  %s11117_s2 = inlined_call_operand.hbm [shape: f32[128,128], index: 2, kind: input, shape index: {}]   ;;  %s11118_s3 = inlined_call_operand.hbm [shape: f32[128,128], index: 3, kind: input, shape index: {}]   ;;  %s11119_s4 = inlined_call_operand.vmem [shape: f32[9,32], index: 4, kind: input, shape index: {}]   ;;  %s11120_s5 = inlined_call_operand.vmem [shape: f32[1,128], index: 5, kind: input, shape index: {}]   ;;  %s11121_s6 = inlined_call_operand.hbm [shape: f32[4,32,32], index: 6, kind: input, shape index: {}]   ;;  %s11122_s7 = inlined_call_operand.vmem [shape: f32[32,128], index: 7, kind: input, shape index: {}]   ;;  %s11123_s8 = inlined_call_operand.vmem [shape: f32[128,32], index: 8, kind: input, shape index: {}]   ;;  %s11124_s9 = inlined_call_operand.vmem [shape: f32[128,32], index: 9, kind: output, shape index: {}]  }
   0x1   :  { %15 = vsyncpa [#allocation5], 0 }
   0x2   :  { %16 = vsyncpa [#allocation8], 0  ;;  %s7868_s30 = smov [#allocation4]   ;;  %s7869_s11 = smov [#allocation2]  }
   0x3   :  { %s36_s10 = sshll.u32 %s7868_s30, 4  ;;  %s24_s12 = sshll.u32 %s7869_s11, 4  ;;  %s37_s10 = int_to_ptr.vmem [resolvable:$true] %s36_s10  ;;  %s25_s12 = int_to_ptr.vmem [resolvable:$true] %s24_s12 }
   0x4   :  { %s7790_s13 = scalar_lea.vmem %s37_s10, 2048  ;;  %p7795_p1 = scmp.lt.s32.totalorder %s37_s10, %s37_s10 }
   0x5   :  { %p7791_p0 = scmp.ne.s32.totalorder %s37_s10, %s7790_s13  ;;  %p7796_p2 = scmp.lt.s32.totalorder %s7790_s13, %s7790_s13 }
   0x7   :  { %p7797_p3 = por %p7796_p2, %p7795_p1 }
   0x9   :  { %p7798_p4 = pnand %p7797_p3, %p7791_p0 }
   0xb   :  { %7801 = shalt.err (!%p7798_p4)
}
   0xc   :  { %s7870_s14 = smov 128   ;;  %s7871_s15 = smov 8  }
   0xd   :  { %42 = dma.hbm_to_vmem [thread:$0]  %s11117_s2, 2048, %s37_s10, [#allocation5], %s7870_s14, %s7870_s14, %s7871_s15  }
   0xe   :  { %s7810_s18 = scalar_lea.vmem %s25_s12, 2048  ;;  %p7815_p6 = scmp.lt.s32.totalorder %s25_s12, %s25_s12 }
   0xf   :  { %p7811_p5 = scmp.ne.s32.totalorder %s25_s12, %s7810_s18  ;;  %p7816_p7 = scmp.lt.s32.totalorder %s7810_s18, %s7810_s18 }
  0x11   :  { %p7817_p8 = por %p7816_p7, %p7815_p6 }
  0x13   :  { %p7818_p9 = pnand %p7817_p8, %p7811_p5 }
  0x15   :  { %7821 = shalt.err (!%p7818_p9)
}
  0x16   :  { %30 = dma.hbm_to_vmem [thread:$0]  %s11116_s1, 2048, %s25_s12, [#allocation3], %s7870_s14, %s7870_s14, %s7871_s15  }
  0x17   :  { %s7872_s21 = smov [#allocation6]   ;;  %s7873_s23 = smov [#allocation7]  }
  0x18   :  { %s48_s22 = sshll.u32 %s7872_s21, 4  ;;  %s64_s24 = sshll.u32 %s7873_s23, 4  ;;  %s49_s22 = int_to_ptr.vmem [resolvable:$true] %s48_s22  ;;  %s65_s24 = int_to_ptr.vmem [resolvable:$true] %s64_s24 }
  0x19   :  { %s7830_s2 = scalar_lea.vmem %s49_s22, 2048  ;;  %p7835_p11 = scmp.lt.s32.totalorder %s49_s22, %s49_s22 }
  0x1a   :  { %p7831_p10 = scmp.ne.s32.totalorder %s49_s22, %s7830_s2  ;;  %p7836_p12 = scmp.lt.s32.totalorder %s7830_s2, %s7830_s2 }
  0x1c   :  { %p7837_p13 = por %p7836_p12, %p7835_p11 }
  0x1e   :  { %p7838_p0 = pnand %p7837_p13, %p7831_p10 }
  0x20   :  { %7841 = shalt.err (!%p7838_p0)
}
  0x21   :  { %54 = dma.hbm_to_vmem [thread:$0]  %s11118_s3, 2048, %s49_s22, [#allocation5], %s7870_s14, %s7870_s14, %s7871_s15  }
  0x22   :  { %s7850_s1 = scalar_lea.vmem %s65_s24, 2048  ;;  %p7855_p2 = scmp.lt.s32.totalorder %s65_s24, %s65_s24 }
  0x23   :  { %p7851_p1 = scmp.ne.s32.totalorder %s65_s24, %s7850_s1  ;;  %p7856_p3 = scmp.lt.s32.totalorder %s7850_s1, %s7850_s1 }
  0x25   :  { %p7857_p4 = por %p7856_p3, %p7855_p2 }
  0x27   :  { %p7858_p5 = pnand %p7857_p4, %p7851_p1 }
  0x29   :  { %7861 = shalt.err (!%p7858_p5)
}
  0x2a   :  { %70 = dma.hbm_to_vmem [thread:$0]  %s11121_s6, 2048, %s65_s24, [#allocation8], %s7870_s14, %s7870_s14, %s7871_s15  }
  0x2b   :  { %7862 = dma.done.wait [#allocation3], 2048  }
  0x2c   :  { %7863 = vsyncadd [#allocation3], 4294965248 }
  0x2d   :  { %7864 = dma.done.wait [#allocation5], 4096  }
  0x2e   :  { %7865 = vsyncadd [#allocation5], 4294963200 }
  0x2f   :  { %7866 = dma.done.wait [#allocation8], 2048  }
  0x30   :  { %7867 = vsyncadd [#allocation8], 4294965248  ;;  %v102_v0 = vld [vmem:[%s11115_s0 + $0x78] sm:$0xff]  ;;  %v101_v1 = vld [vmem:[%s11115_s0 + $0x70] sm:$0xff]  ;;  %vm325_vm0 = vcmask 261120   ;;  %vm1070_vm1 = vcmask 64512  }
  0x31   :  { %6493 = vmatprep.subr.mxu0 %v102_v0  ;;  %v100_v2 = vld [vmem:[%s11115_s0 + $0x68] sm:$0xff]  ;;  %v99_v3 = vld [vmem:[%s11115_s0 + $0x60] sm:$0xff]  ;;  %v98_v5 = vld [vmem:[%s11115_s0 + $0x58] sm:$0xff]  ;;  %s7874_s22 = smov 120   ;;  %s7875_s23 = smov 112  }
  0x32   :  { %6494 = vmatpush3.msra.mxu0 %v102_v0  ;;  %v103_v4 = vld [vmem:[#allocation2] sm:$0xff]  ;;  %v97_v6 = vld [vmem:[%s11115_s0 + $0x50] sm:$0xff]  ;;  %v96_v7 = vld [vmem:[%s11115_s0 + $0x48] sm:$0xff]  ;;  %s7876_s24 = smov 104  }
  0x33   :  { %6495 = vmatprep.subr.mxu0 %v101_v1  ;;  %6525 = vmatprep.mubr.f32.mxu0 %v103_v4  ;;  %v95_v8 = vld [vmem:[%s11115_s0 + $0x40] sm:$0xff]  ;;  %v94_v9 = vld [vmem:[%s11115_s0 + $0x38] sm:$0xff]  ;;  %v93_v10 = vld [vmem:[%s11115_s0 + $0x30] sm:$0xff] }
  0x34   :  { %6496 = vmatpush3.msra.mxu0 %v101_v1  ;;  %v92_v11 = vld [vmem:[%s11115_s0 + $0x28] sm:$0xff]  ;;  %v91_v12 = vld [vmem:[%s11115_s0 + $0x20] sm:$0xff]  ;;  %v90_v13 = vld [vmem:[%s11115_s0 + $0x18] sm:$0xff] }
  0x35   :  { %6497 = vmatprep.subr.mxu0 %v100_v2  ;;  %v89_v14 = vld [vmem:[%s11115_s0 + $0x10] sm:$0xff]  ;;  %v88_v15 = vld [vmem:[%s11115_s0 + $0x8] sm:$0xff]  ;;  %v87_v16 = vld [vmem:[%s11115_s0] sm:$0xff] }
  0x36   :  { %6498 = vmatpush3.msra.mxu0 %v100_v2  ;;  %v104_v17 = vld [vmem:[#allocation2 + $0x8] sm:$0xff]  ;;  %v105_v18 = vld [vmem:[#allocation2 + $0x10] sm:$0xff]  ;;  %v106_v19 = vld [vmem:[#allocation2 + $0x18] sm:$0xff] }
  0x37   :  { %6499 = vmatprep.subr.mxu0 %v99_v3  ;;  %v107_v20 = vld [vmem:[#allocation2 + $0x20] sm:$0xff]  ;;  %v108_v21 = vld [vmem:[#allocation2 + $0x28] sm:$0xff]  ;;  %v109_v22 = vld [vmem:[#allocation2 + $0x30] sm:$0xff] }
  0x38   :  { %6500 = vmatpush3.msra.mxu0 %v99_v3  ;;  %v110_v23 = vld [vmem:[#allocation2 + $0x38] sm:$0xff]  ;;  %v111_v24 = vld [vmem:[#allocation2 + $0x40] sm:$0xff]  ;;  %v112_v25 = vld [vmem:[#allocation2 + $0x48] sm:$0xff] }
  0x39   :  { %6501 = vmatprep.subr.mxu0 %v98_v5  ;;  %v113_v26 = vld [vmem:[#allocation2 + $0x50] sm:$0xff]  ;;  %v114_v27 = vld [vmem:[#allocation2 + $0x58] sm:$0xff]  ;;  %v115_v28 = vld [vmem:[#allocation2 + $0x60] sm:$0xff] }
  0x3a   :  { %6502 = vmatpush3.msra.mxu0 %v98_v5  ;;  %v116_v29 = vld [vmem:[#allocation2 + $0x68] sm:$0xff]  ;;  %v117_v30 = vld [vmem:[#allocation2 + $0x70] sm:$0xff]  ;;  %v118_v31 = vld [vmem:[#allocation2 + $0x78] sm:$0xff] }
  0x3b   :  { %6503 = vmatprep.subr.mxu0 %v97_v6 }
  0x3c   :  { %6504 = vmatpush3.msra.mxu0 %v97_v6 }
  0x3d   :  { %6505 = vmatprep.subr.mxu0 %v96_v7 }
  0x3e   :  { %6506 = vmatpush3.msra.mxu0 %v96_v7 }
  0x3f   :  { %6507 = vmatprep.subr.mxu0 %v95_v8 }
  0x40   :  { %6508 = vmatpush3.msra.mxu0 %v95_v8 }
  0x41   :  { %6509 = vmatprep.subr.mxu0 %v94_v9 }
  0x42   :  { %6510 = vmatpush3.msra.mxu0 %v94_v9 }
  0x43   :  { %6511 = vmatprep.subr.mxu0 %v93_v10 }
  0x44   :  { %6512 = vmatpush3.msra.mxu0 %v93_v10 }
  0x45   :  { %6513 = vmatprep.subr.mxu0 %v92_v11 }
  0x46   :  { %6514 = vmatpush3.msra.mxu0 %v92_v11 }
  0x47   :  { %6515 = vmatprep.subr.mxu0 %v91_v12 }
  0x48   :  { %6516 = vmatpush3.msra.mxu0 %v91_v12 }
  0x49   :  { %6517 = vmatprep.subr.mxu0 %v90_v13 }
  0x4a   :  { %6518 = vmatpush3.msra.mxu0 %v90_v13 }
  0x4b   :  { %6519 = vmatprep.subr.mxu0 %v89_v14 }
  0x4c   :  { %6520 = vmatpush3.msra.mxu0 %v89_v14 }
  0x4d   :  { %6521 = vmatprep.subr.mxu0 %v88_v15 }
  0x4e   :  { %6522 = vmatpush3.msra.mxu0 %v88_v15 }
  0x4f   :  { %6523 = vmatprep.subr.mxu0 %v87_v16 }
  0x50   :  { %6524 = vmatpush3.msra.mxu0 %v87_v16 }
  0x51   :  { %6526 = vmatmul.mubr.f32.vlgmr.msra.gmra.mxu0 %v104_v17 }
  0x52   :  { %6528 = vmatprep.mubr.f32.mxu0 %v105_v18 }
  0x55   :  { %6529 = vmatmul.mubr.f32.gmra.mxu0 %v106_v19 }
  0x56   :  { %6531 = vmatprep.mubr.f32.mxu0 %v107_v20 }
  0x59   :  { %6532 = vmatmul.mubr.f32.gmra.mxu0 %v108_v21 }
  0x5a   :  { %6534 = vmatprep.mubr.f32.mxu0 %v109_v22 }
  0x5d   :  { %6535 = vmatmul.mubr.f32.gmra.mxu0 %v110_v23 }
  0x5e   :  { %6537 = vmatprep.mubr.f32.mxu0 %v111_v24 }
  0x61   :  { %6538 = vmatmul.mubr.f32.gmra.mxu0 %v112_v25 }
  0x62   :  { %6540 = vmatprep.mubr.f32.mxu0 %v113_v26 }
  0x65   :  { %6541 = vmatmul.mubr.f32.gmra.mxu0 %v114_v27 }
  0x66   :  { %6543 = vmatprep.mubr.f32.mxu0 %v115_v28 }
  0x69   :  { %6544 = vmatmul.mubr.f32.gmra.mxu0 %v116_v29 }
  0x6a   :  { %6546 = vmatprep.mubr.f32.mxu0 %v117_v30 }
  0x6d   :  { %6547 = vmatmul.mubr.f32.gmra.mxu0 %v118_v31 }
 0x111   :  { %v7999_v32 = vpop.f32.mrf.mxu0 }
 0x112   :  { %11242 = vst [vmem:[#allocation12_spill] sm:$0xff] %v7999_v32  ;;  %v329_v37 = vsel %vm325_vm0, %v7999_v32, 0.0 }
 0x113   :  { %v8001_v33 = vpop.f32.mrf.mxu0 }
 0x114   :  { %11243 = vst [vmem:[#allocation13_spill] sm:$0xff] %v8001_v33  ;;  %v326_v34 = vsel %vm325_vm0, %v8001_v33, 0.0 }
 0x115   :  { %327 = vadd.xlane.f32.xlu0 %v326_v34  ;;  %v8005_v35 = vpop.f32.mrf.mxu0 }
 0x116   :  { %11244 = vst [vmem:[#allocation14_spill] sm:$0xff] %v8005_v35  ;;  %v335_v41 = vsel %vm325_vm0, %v8005_v35, 0.0 }
 0x117   :  { %v8007_v36 = vpop.f32.mrf.mxu0 }
 0x118   :  { %11245 = vst [vmem:[#allocation15_spill] sm:$0xff] %v8007_v36  ;;  %v332_v38 = vsel %vm325_vm0, %v8007_v36, 0.0 }
 0x119   :  { %330 = vadd.xlane.f32.xlu0 %v329_v37  ;;  %333 = vadd.xlane.f32.xlu1 %v332_v38  ;;  %v8013_v39 = vpop.f32.mrf.mxu0 }
 0x11a   :  { %11246 = vst [vmem:[#allocation16_spill] sm:$0xff] %v8013_v39  ;;  %v341_v45 = vsel %vm325_vm0, %v8013_v39, 0.0 }
 0x11b   :  { %v8015_v40 = vpop.f32.mrf.mxu0 }
 0x11c   :  { %11247 = vst [vmem:[#allocation17_spill] sm:$0xff] %v8015_v40  ;;  %v338_v42 = vsel %vm325_vm0, %v8015_v40, 0.0 }
 0x11d   :  { %336 = vadd.xlane.f32.xlu1 %v335_v41  ;;  %339 = vadd.xlane.f32.xlu0 %v338_v42  ;;  %v8021_v43 = vpop.f32.mrf.mxu0 }
 0x11e   :  { %11248 = vst [vmem:[#allocation18_spill] sm:$0xff] %v8021_v43  ;;  %v347_v49 = vsel %vm325_vm0, %v8021_v43, 0.0 }
 0x11f   :  { %v8023_v44 = vpop.f32.mrf.mxu0 }
 0x120   :  { %11249 = vst [vmem:[#allocation19_spill] sm:$0xff] %v8023_v44  ;;  %v344_v46 = vsel %vm325_vm0, %v8023_v44, 0.0 }
 0x121   :  { %342 = vadd.xlane.f32.xlu1 %v341_v45  ;;  %345 = vadd.xlane.f32.xlu0 %v344_v46  ;;  %v8029_v47 = vpop.f32.mrf.mxu0 }
 0x122   :  { %11250 = vst [vmem:[#allocation20_spill] sm:$0xff] %v8029_v47  ;;  %v353_v53 = vsel %vm325_vm0, %v8029_v47, 0.0 }
 0x123   :  { %v8031_v48 = vpop.f32.mrf.mxu0 }
 0x124   :  { %11251 = vst [vmem:[#allocation21_spill] sm:$0xff] %v8031_v48  ;;  %v350_v50 = vsel %vm325_vm0, %v8031_v48, 0.0 }
 0x125   :  { %348 = vadd.xlane.f32.xlu1 %v347_v49  ;;  %351 = vadd.xlane.f32.xlu0 %v350_v50  ;;  %v8037_v51 = vpop.f32.mrf.mxu0 }
 0x126   :  { %11252 = vst [vmem:[#allocation22_spill] sm:$0xff] %v8037_v51  ;;  %v359_v57 = vsel %vm325_vm0, %v8037_v51, 0.0 }
 0x127   :  { %v8039_v52 = vpop.f32.mrf.mxu0 }
 0x128   :  { %11253 = vst [vmem:[#allocation23_spill] sm:$0xff] %v8039_v52  ;;  %v356_v54 = vsel %vm325_vm0, %v8039_v52, 0.0 }
 0x129   :  { %354 = vadd.xlane.f32.xlu1 %v353_v53  ;;  %357 = vadd.xlane.f32.xlu0 %v356_v54  ;;  %v8045_v55 = vpop.f32.mrf.mxu0 }
 0x12a   :  { %11254 = vst [vmem:[#allocation24_spill] sm:$0xff] %v8045_v55  ;;  %v365_v61 = vsel %vm325_vm0, %v8045_v55, 0.0 }
 0x12b   :  { %v8047_v56 = vpop.f32.mrf.mxu0 }
 0x12c   :  { %11255 = vst [vmem:[#allocation25_spill] sm:$0xff] %v8047_v56  ;;  %v362_v58 = vsel %vm325_vm0, %v8047_v56, 0.0 }
 0x12d   :  { %360 = vadd.xlane.f32.xlu1 %v359_v57  ;;  %363 = vadd.xlane.f32.xlu0 %v362_v58  ;;  %v8053_v59 = vpop.f32.mrf.mxu0 }
 0x12e   :  { %11256 = vst [vmem:[#allocation26_spill] sm:$0xff] %v8053_v59  ;;  %v371_v63 = vsel %vm325_vm0, %v8053_v59, 0.0 }
 0x12f   :  { %v8055_v60 = vpop.f32.mrf.mxu0 }
 0x130   :  { %11257 = vst [vmem:[#allocation27_spill] sm:$0xff] %v8055_v60  ;;  %v368_v62 = vsel %vm325_vm0, %v8055_v60, 0.0 }
 0x131   :  { %366 = vadd.xlane.f32.xlu1 %v365_v61  ;;  %369 = vadd.xlane.f32.xlu0 %v368_v62 }
 0x135   :  { %372 = vadd.xlane.f32.xlu1 %v371_v63 }
 0x19e   :  { %v328_v0 = vpop.xlane.xlu0 %327 }
 0x19f   :  { %v375_v1 = vmul.f32 0.03125, %v328_v0 }
 0x1a1   :  { %v8064_v2 = vsub.f32 %v8001_v33, %v375_v1 }
 0x1a2   :  { %v331_v3 = vpop.xlane.xlu0 %330  ;;  %v334_v4 = vpop.xlane.xlu1 %333 }
 0x1a3   :  { %v376_v5 = vmul.f32 0.03125, %v331_v3  ;;  %v377_v6 = vmul.f32 0.03125, %v334_v4  ;;  %v407_v7 = vmul.f32 %v8064_v2, %v8064_v2 }
 0x1a5   :  { %v8069_v8 = vsub.f32 %v7999_v32, %v376_v5  ;;  %v8072_v9 = vsub.f32 %v8007_v36, %v377_v6  ;;  %v423_v10 = vsel %vm325_vm0, %v407_v7, 0.0 }
 0x1a6   :  { %v337_v11 = vpop.xlane.xlu1 %336  ;;  %v340_v12 = vpop.xlane.xlu0 %339  ;;  %424 = vadd.xlane.f32.xlu0 %v423_v10 }
 0x1a7   :  { %v378_v13 = vmul.f32 0.03125, %v337_v11  ;;  %v379_v14 = vmul.f32 0.03125, %v340_v12  ;;  %v408_v15 = vmul.f32 %v8069_v8, %v8069_v8  ;;  %v409_v16 = vmul.f32 %v8072_v9, %v8072_v9 }
 0x1a9   :  { %v8080_v17 = vsub.f32 %v8005_v35, %v378_v13  ;;  %v8083_v18 = vsub.f32 %v8015_v40, %v379_v14  ;;  %v426_v19 = vsel %vm325_vm0, %v408_v15, 0.0  ;;  %v429_v20 = vsel %vm325_vm0, %v409_v16, 0.0 }
 0x1aa   :  { %v343_v21 = vpop.xlane.xlu1 %342  ;;  %v346_v22 = vpop.xlane.xlu0 %345  ;;  %427 = vadd.xlane.f32.xlu1 %v426_v19  ;;  %430 = vadd.xlane.f32.xlu0 %v429_v20 }
 0x1ab   :  { %v380_v23 = vmul.f32 0.03125, %v343_v21  ;;  %v381_v24 = vmul.f32 0.03125, %v346_v22  ;;  %v410_v25 = vmul.f32 %v8080_v17, %v8080_v17  ;;  %v411_v26 = vmul.f32 %v8083_v18, %v8083_v18 }
 0x1ad   :  { %v8092_v27 = vsub.f32 %v8013_v39, %v380_v23  ;;  %v8095_v28 = vsub.f32 %v8023_v44, %v381_v24  ;;  %v432_v29 = vsel %vm325_vm0, %v410_v25, 0.0  ;;  %v435_v30 = vsel %vm325_vm0, %v411_v26, 0.0 }
 0x1ae   :  { %v349_v31 = vpop.xlane.xlu1 %348  ;;  %v352_v34 = vpop.xlane.xlu0 %351  ;;  %433 = vadd.xlane.f32.xlu1 %v432_v29  ;;  %436 = vadd.xlane.f32.xlu0 %v435_v30 }
 0x1af   :  { %v382_v37 = vmul.f32 0.03125, %v349_v31  ;;  %v383_v38 = vmul.f32 0.03125, %v352_v34  ;;  %v412_v41 = vmul.f32 %v8092_v27, %v8092_v27  ;;  %v413_v42 = vmul.f32 %v8095_v28, %v8095_v28 }
 0x1b1   :  { %v8104_v45 = vsub.f32 %v8021_v43, %v382_v37  ;;  %v8107_v46 = vsub.f32 %v8031_v48, %v383_v38  ;;  %v438_v49 = vsel %vm325_vm0, %v412_v41, 0.0  ;;  %v441_v50 = vsel %vm325_vm0, %v413_v42, 0.0 }
 0x1b2   :  { %v355_v53 = vpop.xlane.xlu1 %354  ;;  %v358_v54 = vpop.xlane.xlu0 %357  ;;  %439 = vadd.xlane.f32.xlu1 %v438_v49  ;;  %442 = vadd.xlane.f32.xlu0 %v441_v50  ;;  %v164_v50 = vld [vmem:[#allocation7 + $0x18] sm:$0xff] }
 0x1b3   :  { %v384_v57 = vmul.f32 0.03125, %v355_v53  ;;  %v385_v58 = vmul.f32 0.03125, %v358_v54  ;;  %v414_v61 = vmul.f32 %v8104_v45, %v8104_v45  ;;  %v415_v62 = vmul.f32 %v8107_v46, %v8107_v46  ;;  %v174_v53 = vld [vmem:[#allocation7 + $0x58] sm:$0xff]  ;;  %6549 = vmatprep.subr.mxu1 %v164_v50 }
 0x1b4   :  { %6613 = vmatprep.subr.mxu0 %v174_v53  ;;  %6550 = vmatpush3.msra.mxu1 %v164_v50 }
 0x1b5   :  { %v8116_v63 = vsub.f32 %v8029_v47, %v384_v57  ;;  %v8119_v0 = vsub.f32 %v8039_v52, %v385_v58  ;;  %v444_v1 = vsel %vm325_vm0, %v414_v61, 0.0  ;;  %v447_v3 = vsel %vm325_vm0, %v415_v62, 0.0  ;;  %v163_v57 = vld [vmem:[#allocation7 + $0x10] sm:$0xff]  ;;  %6614 = vmatpush3.msra.mxu0 %v174_v53  ;;  %v162_v61 = vld [vmem:[#allocation7 + $0x8] sm:$0xff]  ;;  %v8680_v47 = vld [vmem:[#allocation6] sm:$0xff] }
 0x1b6   :  { %v361_v4 = vpop.xlane.xlu1 %360  ;;  %v364_v5 = vpop.xlane.xlu0 %363  ;;  %445 = vadd.xlane.f32.xlu1 %v444_v1  ;;  %448 = vadd.xlane.f32.xlu0 %v447_v3  ;;  %v173_v58 = vld [vmem:[#allocation7 + $0x50] sm:$0xff]  ;;  %v172_v62 = vld [vmem:[#allocation7 + $0x48] sm:$0xff]  ;;  %v161_v1 = vld [vmem:[#allocation7] sm:$0xff]  ;;  %11287 = vst [vmem:[#allocation57_spill] sm:$0xff] %v8680_v47 }
 0x1b7   :  { %v386_v6 = vmul.f32 0.03125, %v361_v4  ;;  %v387_v7 = vmul.f32 0.03125, %v364_v5  ;;  %v416_v10 = vmul.f32 %v8116_v63, %v8116_v63  ;;  %v417_v11 = vmul.f32 %v8119_v0, %v8119_v0  ;;  %6551 = vmatprep.subr.mxu1 %v163_v57  ;;  %6615 = vmatprep.subr.mxu0 %v173_v58  ;;  %v171_v3 = vld [vmem:[#allocation7 + $0x40] sm:$0xff]  ;;  %v8159_v4 = vld [vmem:[#allocation7 + $0x38] sm:$0xff] }
 0x1b8   :  { %6552 = vmatpush3.msra.mxu1 %v163_v57  ;;  %6616 = vmatpush3.msra.mxu0 %v173_v58  ;;  %v8165_v58 = vld [vmem:[%s11119_s4] ss:$0 sm:$0xff] }
 0x1b9   :  { %v8128_v12 = vsub.f32 %v8037_v51, %v386_v6  ;;  %v8131_v13 = vsub.f32 %v8047_v56, %v387_v7  ;;  %v450_v14 = vsel %vm325_vm0, %v416_v10, 0.0  ;;  %v453_v15 = vsel %vm325_vm0, %v417_v11, 0.0  ;;  %6553 = vmatprep.subr.mxu1 %v162_v61  ;;  %6617 = vmatprep.subr.mxu0 %v172_v62 }
 0x1ba   :  { %v367_v16 = vpop.xlane.xlu1 %366  ;;  %451 = vadd.xlane.f32.xlu1 %v450_v14  ;;  %454 = vadd.xlane.f32.xlu0 %v453_v15  ;;  %v370_v19 = vpop.xlane.xlu0 %369 }
 0x1bb   :  { %v388_v20 = vmul.f32 0.03125, %v367_v16  ;;  %v389_v21 = vmul.f32 0.03125, %v370_v19  ;;  %v418_v22 = vmul.f32 %v8128_v12, %v8128_v12  ;;  %v419_v23 = vmul.f32 %v8131_v13, %v8131_v13  ;;  %6554 = vmatpush3.msra.mxu1 %v162_v61  ;;  %6618 = vmatpush3.msra.mxu0 %v172_v62 }
 0x1bc   :  { %6555 = vmatprep.subr.mxu1 %v161_v1  ;;  %6619 = vmatprep.subr.mxu0 %v171_v3 }
 0x1bd   :  { %v8140_v24 = vsub.f32 %v8045_v55, %v388_v20  ;;  %v8143_v25 = vsub.f32 %v8055_v60, %v389_v21  ;;  %v456_v26 = vsel %vm325_vm0, %v418_v22, 0.0  ;;  %v459_v29 = vsel %vm325_vm0, %v419_v23, 0.0  ;;  %6556 = vmatpush3.msra.mxu1 %v161_v1  ;;  %6620 = vmatpush3.msra.mxu0 %v171_v3 }
 0x1be   :  { %457 = vadd.xlane.f32.xlu1 %v456_v26  ;;  %v373_v30 = vpop.xlane.xlu1 %372  ;;  %460 = vadd.xlane.f32.xlu0 %v459_v29 }
 0x1bf   :  { %v390_v31 = vmul.f32 0.03125, %v373_v30  ;;  %v420_v34 = vmul.f32 %v8140_v24, %v8140_v24  ;;  %v421_v37 = vmul.f32 %v8143_v25, %v8143_v25  ;;  %6581 = vmatprep.subr.mxu1 %v8159_v4 }
 0x1c1   :  { %v8152_v38 = vsub.f32 %v8053_v59, %v390_v31  ;;  %v462_v41 = vsel %vm325_vm0, %v420_v34, 0.0  ;;  %v465_v42 = vsel %vm325_vm0, %v421_v37, 0.0 }
 0x1c2   :  { %463 = vadd.xlane.f32.xlu1 %v462_v41  ;;  %466 = vadd.xlane.f32.xlu0 %v465_v42 }
 0x1c3   :  { %v422_v49 = vmul.f32 %v8152_v38, %v8152_v38 }
 0x1c5   :  { %v468_v54 = vsel %vm325_vm0, %v422_v49, 0.0 }
 0x1c6   :  { %469 = vadd.xlane.f32.xlu1 %v468_v54 }
 0x22f   :  { %v425_v5 = vpop.xlane.xlu0 %424 }
 0x230   :  { %v471_v6 = vmul.f32 0.03125, %v425_v5 }
 0x232   :  { %v487_v7 = vadd.f32 1e-05, %v471_v6  ;;  %v8171_v6 = vld [vmem:[%s11119_s4 + $0x1] ss:$0 sm:$0xff] }
 0x233   :  { %v428_v10 = vpop.xlane.xlu1 %427  ;;  %v431_v11 = vpop.xlane.xlu0 %430 }
 0x234   :  { %7382 = vrsqrt.f32 %v487_v7  ;;  %v472_v14 = vmul.f32 0.03125, %v428_v10  ;;  %v473_v15 = vmul.f32 0.03125, %v431_v11 }
 0x236   :  { %v488_v16 = vadd.f32 1e-05, %v472_v14  ;;  %v489_v19 = vadd.f32 1e-05, %v473_v15 }
 0x237   :  { %v434_v20 = vpop.xlane.xlu1 %433  ;;  %v437_v21 = vpop.xlane.xlu0 %436 }
 0x238   :  { %7384 = vrsqrt.f32 %v488_v16  ;;  %v474_v22 = vmul.f32 0.03125, %v434_v20  ;;  %v475_v23 = vmul.f32 0.03125, %v437_v21 }
 0x239   :  { %7386 = vrsqrt.f32 %v489_v19 }
 0x23a   :  { %v490_v26 = vadd.f32 1e-05, %v474_v22  ;;  %v491_v29 = vadd.f32 1e-05, %v475_v23 }
 0x23b   :  { %v440_v30 = vpop.xlane.xlu1 %439  ;;  %v443_v31 = vpop.xlane.xlu0 %442 }
 0x23c   :  { %7388 = vrsqrt.f32 %v490_v26  ;;  %v476_v34 = vmul.f32 0.03125, %v440_v30  ;;  %v477_v37 = vmul.f32 0.03125, %v443_v31 }
 0x23d   :  { %7390 = vrsqrt.f32 %v491_v29 }
 0x23e   :  { %v492_v41 = vadd.f32 1e-05, %v476_v34  ;;  %v493_v42 = vadd.f32 1e-05, %v477_v37 }
 0x23f   :  { %v446_v49 = vpop.xlane.xlu1 %445  ;;  %v449_v50 = vpop.xlane.xlu0 %448 }
 0x240   :  { %7392 = vrsqrt.f32 %v492_v41  ;;  %v478_v53 = vmul.f32 0.03125, %v446_v49  ;;  %v479_v54 = vmul.f32 0.03125, %v449_v50 }
 0x241   :  { %v7383_v57 = vpop.eup %7382  ;;  %7394 = vrsqrt.f32 %v493_v42 }
 0x242   :  { %v494_v61 = vadd.f32 1e-05, %v478_v53  ;;  %v495_v62 = vadd.f32 1e-05, %v479_v54  ;;  %v519_v1 = vmul.f32 %v7383_v57, %v8064_v2  ;;  %v168_v57 = vld [vmem:[#allocation7 + $0x30] sm:$0xff] }
 0x243   :  { %v452_v3 = vpop.xlane.xlu1 %451  ;;  %v455_v5 = vpop.xlane.xlu0 %454 }
 0x244   :  { %7396 = vrsqrt.f32 %v494_v61  ;;  %v480_v7 = vmul.f32 0.03125, %v452_v3  ;;  %v481_v10 = vmul.f32 0.03125, %v455_v5  ;;  %v539_v11 = vmul.f32 %v8165_v58, %v519_v1 }
 0x245   :  { %v7385_v14 = vpop.eup %7384  ;;  %7398 = vrsqrt.f32 %v495_v62 }
 0x246   :  { %v7387_v15 = vpop.eup %7386  ;;  %v496_v16 = vadd.f32 1e-05, %v480_v7  ;;  %v497_v19 = vadd.f32 1e-05, %v481_v10  ;;  %v8175_v20 = vadd.f32 %v8171_v6, %v539_v11  ;;  %v520_v2 = vmul.f32 %v7385_v14, %v8069_v8 }
 0x247   :  { %v458_v21 = vpop.xlane.xlu1 %457  ;;  %v461_v22 = vpop.xlane.xlu0 %460  ;;  %v521_v23 = vmul.f32 %v7387_v15, %v8072_v9 }
 0x248   :  { %7400 = vrsqrt.f32 %v496_v16  ;;  %v482_v26 = vmul.f32 0.03125, %v458_v21  ;;  %v483_v29 = vmul.f32 0.03125, %v461_v22  ;;  %6557 = vmatprep.mubr.msk.f32.mxu1 %vm325_vm0, %v8175_v20  ;;  %6621 = vmatprep.mubr.msk.f32.mxu0 %vm325_vm0, %v8175_v20  ;;  %v540_v30 = vmul.f32 %v8165_v58, %v520_v2  ;;  %v167_v16 = vld [vmem:[#allocation7 + $0x28] sm:$0xff] }
 0x249   :  { %v7389_v31 = vpop.eup %7388  ;;  %7402 = vrsqrt.f32 %v497_v19  ;;  %v541_v34 = vmul.f32 %v8165_v58, %v521_v23 }
 0x24a   :  { %v7391_v8 = vpop.eup %7390  ;;  %v498_v37 = vadd.f32 1e-05, %v482_v26  ;;  %v499_v41 = vadd.f32 1e-05, %v483_v29  ;;  %v8186_v9 = vadd.f32 %v8171_v6, %v540_v30  ;;  %v522_v42 = vmul.f32 %v7389_v31, %v8080_v17  ;;  %v166_v31 = vld [vmem:[#allocation7 + $0x20] sm:$0xff] }
 0x24b   :  { %v464_v49 = vpop.xlane.xlu1 %463  ;;  %v467_v50 = vpop.xlane.xlu0 %466  ;;  %v8190_v53 = vadd.f32 %v8171_v6, %v541_v34  ;;  %v523_v54 = vmul.f32 %v7391_v8, %v8083_v18 }
 0x24c   :  { %7404 = vrsqrt.f32 %v498_v37  ;;  %v484_v61 = vmul.f32 0.03125, %v464_v49  ;;  %v485_v62 = vmul.f32 0.03125, %v467_v50  ;;  %6558 = vmatmul.mubr.msk.f32.vlgmr.msra.gmra.mxu1 %vm325_vm0, %v8186_v9  ;;  %6622 = vmatmul.mubr.msk.f32.vlgmr.msra.gmra.mxu0 %vm325_vm0, %v8186_v9  ;;  %v542_v1 = vmul.f32 %v8165_v58, %v522_v42 }
 0x24d   :  { %v7393_v17 = vpop.eup %7392  ;;  %7406 = vrsqrt.f32 %v499_v41  ;;  %6560 = vmatprep.mubr.msk.f32.mxu1 %vm325_vm0, %v8190_v53  ;;  %6582 = vmatpush3.msra.mxu1 %v8159_v4  ;;  %v543_v18 = vmul.f32 %v8165_v58, %v523_v54 }
 0x24e   :  { %v7395_v3 = vpop.eup %7394  ;;  %v500_v5 = vadd.f32 1e-05, %v484_v61  ;;  %v501_v7 = vadd.f32 1e-05, %v485_v62  ;;  %6624 = vmatprep.mubr.msk.f32.mxu0 %vm325_vm0, %v8190_v53  ;;  %v8205_v10 = vadd.f32 %v8171_v6, %v542_v1  ;;  %v524_v11 = vmul.f32 %v7393_v17, %v8092_v27  ;;  %6583 = vmatprep.subr.mxu1 %v168_v57 }
 0x24f   :  { %v470_v14 = vpop.xlane.xlu1 %469  ;;  %v8209_v15 = vadd.f32 %v8171_v6, %v543_v18  ;;  %v525_v4 = vmul.f32 %v7395_v3, %v8095_v28  ;;  %6584 = vmatpush3.msra.mxu1 %v168_v57 }
 0x250   :  { %7408 = vrsqrt.f32 %v500_v5  ;;  %v486_v19 = vmul.f32 0.03125, %v470_v14  ;;  %6561 = vmatmul.mubr.msk.f32.gmra.mxu1 %vm325_vm0, %v8205_v10  ;;  %6625 = vmatmul.mubr.msk.f32.gmra.mxu0 %vm325_vm0, %v8205_v10  ;;  %v544_v2 = vmul.f32 %v8165_v58, %v524_v11 }
 0x251   :  { %v7397_v27 = vpop.eup %7396  ;;  %7410 = vrsqrt.f32 %v501_v7  ;;  %6563 = vmatprep.mubr.msk.f32.mxu1 %vm325_vm0, %v8209_v15  ;;  %6627 = vmatprep.mubr.msk.f32.mxu0 %vm325_vm0, %v8209_v15  ;;  %v545_v28 = vmul.f32 %v8165_v58, %v525_v4 }
 0x252   :  { %v7399_v21 = vpop.eup %7398  ;;  %v502_v22 = vadd.f32 1e-05, %v486_v19  ;;  %v8223_v23 = vadd.f32 %v8171_v6, %v544_v2  ;;  %v526_v26 = vmul.f32 %v7397_v27, %v8104_v45  ;;  %6585 = vmatprep.subr.mxu1 %v167_v16 }
 0x253   :  { %v8227_v29 = vadd.f32 %v8171_v6, %v545_v28  ;;  %v527_v30 = vmul.f32 %v7399_v21, %v8107_v46  ;;  %6586 = vmatpush3.msra.mxu1 %v167_v16 }
 0x254   :  { %7412 = vrsqrt.f32 %v502_v22  ;;  %6564 = vmatmul.mubr.msk.f32.gmra.mxu1 %vm325_vm0, %v8223_v23  ;;  %6628 = vmatmul.mubr.msk.f32.gmra.mxu0 %vm325_vm0, %v8223_v23  ;;  %v546_v34 = vmul.f32 %v8165_v58, %v526_v26 }
 0x255   :  { %v7401_v8 = vpop.eup %7400  ;;  %6566 = vmatprep.mubr.msk.f32.mxu1 %vm325_vm0, %v8227_v29  ;;  %6630 = vmatprep.mubr.msk.f32.mxu0 %vm325_vm0, %v8227_v29  ;;  %v547_v45 = vmul.f32 %v8165_v58, %v527_v30 }
 0x256   :  { %v7403_v46 = vpop.eup %7402  ;;  %v566_v37 = vadd.f32 %v8171_v6, %v546_v34  ;;  %v528_v41 = vmul.f32 %v7401_v8, %v8116_v63  ;;  %6587 = vmatprep.subr.mxu1 %v166_v31 }
 0x257   :  { %v567_v42 = vadd.f32 %v8171_v6, %v547_v45  ;;  %v529_v49 = vmul.f32 %v7403_v46, %v8119_v0  ;;  %6588 = vmatpush3.msra.mxu1 %v166_v31 }
 0x258   :  { %6567 = vmatmul.mubr.msk.f32.gmra.mxu1 %vm325_vm0, %v566_v37  ;;  %6631 = vmatmul.mubr.msk.f32.gmra.mxu0 %vm325_vm0, %v566_v37  ;;  %v548_v50 = vmul.f32 %v8165_v58, %v528_v41 }
 0x259   :  { %v7405_v54 = vpop.eup %7404  ;;  %6569 = vmatprep.mubr.msk.f32.mxu1 %vm325_vm0, %v567_v42  ;;  %6633 = vmatprep.mubr.msk.f32.mxu0 %vm325_vm0, %v567_v42  ;;  %v549_v57 = vmul.f32 %v8165_v58, %v529_v49 }
 0x25a   :  { %v7407_v63 = vpop.eup %7406  ;;  %v568_v61 = vadd.f32 %v8171_v6, %v548_v50  ;;  %v530_v62 = vmul.f32 %v7405_v54, %v8128_v12 }
 0x25b   :  { %v569_v0 = vadd.f32 %v8171_v6, %v549_v57  ;;  %v531_v1 = vmul.f32 %v7407_v63, %v8131_v13 }
 0x25c   :  { %6570 = vmatmul.mubr.msk.f32.gmra.mxu1 %vm325_vm0, %v568_v61  ;;  %6634 = vmatmul.mubr.msk.f32.gmra.mxu0 %vm325_vm0, %v568_v61  ;;  %v550_v17 = vmul.f32 %v8165_v58, %v530_v62 }
 0x25d   :  { %v7409_v18 = vpop.eup %7408  ;;  %6572 = vmatprep.mubr.msk.f32.mxu1 %vm325_vm0, %v569_v0  ;;  %6636 = vmatprep.mubr.msk.f32.mxu0 %vm325_vm0, %v569_v0  ;;  %v551_v3 = vmul.f32 %v8165_v58, %v531_v1 }
 0x25e   :  { %v7411_v5 = vpop.eup %7410  ;;  %v570_v12 = vadd.f32 %v8171_v6, %v550_v17  ;;  %v532_v7 = vmul.f32 %v7409_v18, %v8140_v24 }
 0x25f   :  { %v571_v13 = vadd.f32 %v8171_v6, %v551_v3  ;;  %v533_v11 = vmul.f32 %v7411_v5, %v8143_v25 }
 0x260   :  { %6573 = vmatmul.mubr.msk.f32.gmra.mxu1 %vm325_vm0, %v570_v12  ;;  %6637 = vmatmul.mubr.msk.f32.gmra.mxu0 %vm325_vm0, %v570_v12  ;;  %v552_v14 = vmul.f32 %v8165_v58, %v532_v7  ;;  %v8362_v7 = vld [vmem:[%s11119_s4 + $0x4] ss:$0 sm:$0xff] }
 0x261   :  { %v7413_v4 = vpop.eup %7412  ;;  %6575 = vmatprep.mubr.msk.f32.mxu1 %vm325_vm0, %v571_v13  ;;  %6639 = vmatprep.mubr.msk.f32.mxu0 %vm325_vm0, %v571_v13  ;;  %v553_v16 = vmul.f32 %v8165_v58, %v533_v11 }
 0x262   :  { %v572_v19 = vadd.f32 %v8171_v6, %v552_v14  ;;  %v534_v24 = vmul.f32 %v7413_v4, %v8152_v38  ;;  %v8307_v38 = vld [vmem:[%s11119_s4 + $0x2] ss:$0 sm:$0xff] }
 0x263   :  { %v573_v2 = vadd.f32 %v8171_v6, %v553_v16 }
 0x264   :  { %6576 = vmatmul.mubr.msk.f32.gmra.mxu1 %vm325_vm0, %v572_v19  ;;  %6640 = vmatmul.mubr.msk.f32.gmra.mxu0 %vm325_vm0, %v572_v19  ;;  %v554_v25 = vmul.f32 %v8165_v58, %v534_v24  ;;  %v8375_v24 = vld [vmem:[%s11119_s4 + $0x3] ss:$0 sm:$0xff] }
 0x265   :  { %6578 = vmatprep.mubr.msk.f32.mxu1 %vm325_vm0, %v573_v2  ;;  %6642 = vmatprep.mubr.msk.f32.mxu0 %vm325_vm0, %v573_v2 }
 0x266   :  { %v574_v27 = vadd.f32 %v8171_v6, %v554_v25 }
 0x268   :  { %6579 = vmatmul.mubr.msk.f32.gmra.mxu1 %vm325_vm0, %v574_v27  ;;  %6643 = vmatmul.mubr.msk.f32.gmra.mxu0 %vm325_vm0, %v574_v27 }
 0x269   :  { %6589 = vmatprep.mubr.msk.f32.mxu1 %vm325_vm0, %v8175_v20 }
 0x26c   :  { %6590 = vmatmul.mubr.msk.f32.vlgmr.msra.gmra.mxu1 %vm325_vm0, %v8186_v9 }
 0x26d   :  { %6592 = vmatprep.mubr.msk.f32.mxu1 %vm325_vm0, %v8190_v53 }
 0x270   :  { %6593 = vmatmul.mubr.msk.f32.gmra.mxu1 %vm325_vm0, %v8205_v10 }
 0x271   :  { %6595 = vmatprep.mubr.msk.f32.mxu1 %vm325_vm0, %v8209_v15 }
 0x274   :  { %6596 = vmatmul.mubr.msk.f32.gmra.mxu1 %vm325_vm0, %v8223_v23 }
 0x275   :  { %6598 = vmatprep.mubr.msk.f32.mxu1 %vm325_vm0, %v8227_v29 }
 0x278   :  { %6599 = vmatmul.mubr.msk.f32.gmra.mxu1 %vm325_vm0, %v566_v37 }
 0x279   :  { %6601 = vmatprep.mubr.msk.f32.mxu1 %vm325_vm0, %v567_v42 }
 0x27c   :  { %6602 = vmatmul.mubr.msk.f32.gmra.mxu1 %vm325_vm0, %v568_v61 }
 0x27d   :  { %6604 = vmatprep.mubr.msk.f32.mxu1 %vm325_vm0, %v569_v0 }
 0x280   :  { %6605 = vmatmul.mubr.msk.f32.gmra.mxu1 %vm325_vm0, %v570_v12 }
 0x281   :  { %6607 = vmatprep.mubr.msk.f32.mxu1 %vm325_vm0, %v571_v13 }
 0x284   :  { %6608 = vmatmul.mubr.msk.f32.gmra.mxu1 %vm325_vm0, %v572_v19 }
 0x285   :  { %6610 = vmatprep.mubr.msk.f32.mxu1 %vm325_vm0, %v573_v2 }
 0x288   :  { %6611 = vmatmul.mubr.msk.f32.gmra.mxu1 %vm325_vm0, %v574_v27 }
 0x30c   :  { %v6559_v58 = vpop.f32.mrf.mxu1  ;;  %v8309_v6 = vpop.f32.mrf.mxu0 }
 0x30d   :  { %v8312_v20 = vadd.f32 %v6559_v58, %v8307_v38 }
 0x30e   :  { %v693_v9 = vpop.f32.mrf.mxu1  ;;  %v8314_v53 = vpop.f32.mrf.mxu0 }
 0x30f   :  { %v8317_v10 = vadd.f32 %v8307_v38, %v693_v9 }
 0x310   :  { %v6562_v15 = vpop.f32.mrf.mxu1  ;;  %v8319_v28 = vpop.f32.mrf.mxu0 }
 0x311   :  { %v8322_v21 = vadd.f32 %v6562_v15, %v8307_v38  ;;  %6677 = vmatprep.mubr.msk.f32.mxu1 %vm1070_vm1, %v8317_v10 }
 0x312   :  { %v8326_v22 = vpop.f32.mrf.mxu1  ;;  %v8328_v23 = vpop.f32.mrf.mxu0 }
 0x314   :  { %v6565_v26 = vpop.f32.mrf.mxu1  ;;  %v8330_v29 = vpop.f32.mrf.mxu0 }
 0x315   :  { %v8333_v30 = vadd.f32 %v6565_v26, %v8307_v38 }
 0x316   :  { %v8335_v31 = vpop.f32.mrf.mxu1  ;;  %v8337_v34 = vpop.f32.mrf.mxu0 }
 0x318   :  { %v6568_v8 = vpop.f32.mrf.mxu1  ;;  %v6632_v45 = vpop.f32.mrf.mxu0 }
 0x319   :  { %v8340_v46 = vadd.f32 %v6568_v8, %v8307_v38 }
 0x31a   :  { %v8342_v37 = vpop.f32.mrf.mxu1  ;;  %v1021_v41 = vpop.f32.mrf.mxu0 }
 0x31c   :  { %v6571_v42 = vpop.f32.mrf.mxu1  ;;  %v6635_v49 = vpop.f32.mrf.mxu0 }
 0x31d   :  { %v8345_v50 = vadd.f32 %v6571_v42, %v8307_v38 }
 0x31e   :  { %v8347_v54 = vpop.f32.mrf.mxu1  ;;  %v1031_v57 = vpop.f32.mrf.mxu0 }
 0x320   :  { %v6574_v63 = vpop.f32.mrf.mxu1  ;;  %v6638_v61 = vpop.f32.mrf.mxu0 }
 0x321   :  { %v8350_v62 = vadd.f32 %v6574_v63, %v8307_v38  ;;  %v8400_v8 = vadd.f32 %v6638_v61, %v8362_v7 }
 0x322   :  { %v8352_v0 = vpop.f32.mrf.mxu1  ;;  %v1041_v1 = vpop.f32.mrf.mxu0 }
 0x323   :  { %11262 = vst [vmem:[#allocation32_spill] sm:$0xff] %v8400_v8  ;;  %v8407_v63 = vadd.f32 %v8362_v7, %v1041_v1 }
 0x324   :  { %v6577_v17 = vpop.f32.mrf.mxu1  ;;  %v6641_v18 = vpop.f32.mrf.mxu0 }
 0x325   :  { %v8355_v3 = vadd.f32 %v6577_v17, %v8307_v38  ;;  %v8383_v27 = vadd.f32 %v6641_v18, %v8362_v7  ;;  %11263 = vst [vmem:[#allocation33_spill] sm:$0xff] %v8407_v63  ;;  %v8414_v18 = vadd.f32 %v6635_v49, %v8362_v7 }
 0x326   :  { %v8357_v5 = vpop.f32.mrf.mxu1  ;;  %v1051_v12 = vpop.f32.mrf.mxu0 }
 0x327   :  { %11260 = vst [vmem:[#allocation30_spill] sm:$0xff] %v8383_v27  ;;  %v8393_v15 = vadd.f32 %v8362_v7, %v1051_v12  ;;  %11264 = vst [vmem:[#allocation34_spill] sm:$0xff] %v8414_v18  ;;  %v8421_v12 = vadd.f32 %v8362_v7, %v1031_v57 }
 0x328   :  { %v6580_v13 = vpop.f32.mrf.mxu1  ;;  %v6644_v11 = vpop.f32.mrf.mxu0 }
 0x329   :  { %v8365_v14 = vadd.f32 %v6580_v13, %v8307_v38  ;;  %v8368_v4 = vadd.f32 %v6644_v11, %v8362_v7  ;;  %11261 = vst [vmem:[#allocation31_spill] sm:$0xff] %v8393_v15  ;;  %11265 = vst [vmem:[#allocation35_spill] sm:$0xff] %v8421_v12  ;;  %v8428_v13 = vadd.f32 %v6632_v45, %v8362_v7 }
 0x32a   :  { %v8370_v16 = vpop.f32.mrf.mxu1  ;;  %v1061_v19 = vpop.f32.mrf.mxu0  ;;  %v8433_v11 = vadd.f32 %v8362_v7, %v1021_v41  ;;  %v8448_v41 = vadd.f32 %v8362_v7, %v8337_v34 }
 0x32b   :  { %11258 = vst [vmem:[#allocation28_spill] sm:$0xff] %v8368_v4  ;;  %v8378_v2 = vadd.f32 %v8362_v7, %v1061_v19  ;;  %6701 = vmatprep.subr.mxu0 %v8368_v4  ;;  %11266 = vst [vmem:[#allocation36_spill] sm:$0xff] %v8428_v13  ;;  %v8439_v19 = vadd.f32 %v8330_v29, %v8362_v7 }
 0x32c   :  { %v6591_v25 = vpop.f32.mrf.mxu1  ;;  %6702 = vmatpush3.msra.mxu0 %v8368_v4  ;;  %11267 = vst [vmem:[#allocation37_spill] sm:$0xff] %v8433_v11  ;;  %11270 = vst [vmem:[#allocation40_spill] sm:$0xff] %v8448_v41 }
 0x32d   :  { %11259 = vst [vmem:[#allocation29_spill] sm:$0xff] %v8378_v2  ;;  %v8386_v58 = vadd.f32 %v6591_v25, %v8375_v24  ;;  %6703 = vmatprep.subr.mxu0 %v8378_v2  ;;  %11268 = vst [vmem:[#allocation38_spill] sm:$0xff] %v8439_v19 }
 0x32e   :  { %v8389_v9 = vpop.f32.mrf.mxu1  ;;  %6704 = vmatpush3.msra.mxu0 %v8378_v2 }
 0x32f   :  { %6705 = vmatprep.subr.mxu0 %v8383_v27 }
 0x330   :  { %v8396_v26 = vpop.f32.mrf.mxu1  ;;  %6706 = vmatpush3.msra.mxu0 %v8383_v27 }
 0x331   :  { %6707 = vmatprep.subr.mxu0 %v8393_v15 }
 0x332   :  { %v8403_v42 = vpop.f32.mrf.mxu1  ;;  %6708 = vmatpush3.msra.mxu0 %v8393_v15 }
 0x333   :  { %6709 = vmatprep.subr.mxu0 %v8400_v8 }
 0x334   :  { %v8410_v17 = vpop.f32.mrf.mxu1  ;;  %6710 = vmatpush3.msra.mxu0 %v8400_v8 }
 0x335   :  { %6711 = vmatprep.subr.mxu0 %v8407_v63 }
 0x336   :  { %v8417_v61 = vpop.f32.mrf.mxu1  ;;  %6712 = vmatpush3.msra.mxu0 %v8407_v63 }
 0x337   :  { %6713 = vmatprep.subr.mxu0 %v8414_v18 }
 0x338   :  { %v8424_v1 = vpop.f32.mrf.mxu1  ;;  %6714 = vmatpush3.msra.mxu0 %v8414_v18 }
 0x339   :  { %6715 = vmatprep.subr.mxu0 %v8421_v12 }
 0x33a   :  { %v872_v49 = vpop.f32.mrf.mxu1  ;;  %6716 = vmatpush3.msra.mxu0 %v8421_v12 }
 0x33b   :  { %6717 = vmatprep.subr.mxu0 %v8428_v13 }
 0x33c   :  { %v6603_v57 = vpop.f32.mrf.mxu1  ;;  %6718 = vmatpush3.msra.mxu0 %v8428_v13 }
 0x33d   :  { %v8442_v45 = vadd.f32 %v6603_v57, %v8375_v24  ;;  %6719 = vmatprep.subr.mxu0 %v8433_v11  ;;  %v8459_v57 = vadd.f32 %v8319_v28, %v8362_v7  ;;  %v8476_v28 = vadd.f32 %v8309_v6, %v8362_v7 }
 0x33e   :  { %v882_v25 = vpop.f32.mrf.mxu1  ;;  %6720 = vmatpush3.msra.mxu0 %v8433_v11 }
 0x33f   :  { %11269 = vst [vmem:[#allocation39_spill] sm:$0xff] %v8442_v45  ;;  %v8451_v60 = vadd.f32 %v8375_v24, %v882_v25  ;;  %6721 = vmatprep.subr.mxu0 %v8439_v19  ;;  %1699 = vrot.lane.b32.xlu1 %v8442_v45, %s7874_s22  ;;  %11272 = vst [vmem:[#allocation42_spill] sm:$0xff] %v8459_v57  ;;  %v8467_v25 = vadd.f32 %v8362_v7, %v8328_v23 }
 0x340   :  { %v6606_v29 = vpop.f32.mrf.mxu1  ;;  %6722 = vmatpush3.msra.mxu0 %v8439_v19  ;;  %11275 = vst [vmem:[#allocation45_spill] sm:$0xff] %v8476_v28  ;;  %v8484_v23 = vadd.f32 %v8362_v7, %v8314_v53  ;;  %v8552_v7 = vadd.f32 %v8424_v1, %v8375_v24  ;;  %v8572_v1 = vadd.f32 %v8375_v24, %v8417_v61 }
 0x341   :  { %11271 = vst [vmem:[#allocation41_spill] sm:$0xff] %v8451_v60  ;;  %6723 = vmatprep.subr.mxu0 %v8448_v41  ;;  %1697 = vrot.lane.b32.xlu0 %v8451_v60, %s7874_s22  ;;  %11273 = vst [vmem:[#allocation43_spill] sm:$0xff] %v8467_v25  ;;  %v8470_v59 = vadd.f32 %v6606_v29, %v8375_v24  ;;  %v8588_v61 = vadd.f32 %v8375_v24, %v8403_v42 }
 0x342   :  { %v892_v34 = vpop.f32.mrf.mxu1  ;;  %6724 = vmatpush3.msra.mxu0 %v8448_v41  ;;  %11276 = vst [vmem:[#allocation46_spill] sm:$0xff] %v8484_v23  ;;  %11283 = vst [vmem:[#allocation53_spill] sm:$0xff] %v8552_v7  ;;  %v8610_v42 = vadd.f32 %v8307_v38, %v8326_v22  ;;  %v8626_v22 = vadd.f32 %v8307_v38, %v8342_v37  ;;  %v8642_v37 = vadd.f32 %v8307_v38, %v8352_v0 }
 0x343   :  { %11274 = vst [vmem:[#allocation44_spill] sm:$0xff] %v8470_v59  ;;  %6725 = vmatprep.subr.mxu0 %v8459_v57  ;;  %v8491_v6 = vadd.f32 %v8375_v24, %v892_v34  ;;  %11285 = vst [vmem:[#allocation55_spill] sm:$0xff] %v8572_v1  ;;  %v8658_v0 = vadd.f32 %v8307_v38, %v8370_v16 }
 0x344   :  { %v6609_v56 = vpop.f32.mrf.mxu1  ;;  %6726 = vmatpush3.msra.mxu0 %v8459_v57  ;;  %v8731_v57 = vld [vmem:[#allocation6 + $0x40] sm:$0xff] }
 0x345   :  { %6727 = vmatprep.subr.mxu0 %v8467_v25  ;;  %1703 = vrot.lane.b32.xlu0 %v8470_v59, %s7874_s22  ;;  %11278 = vst [vmem:[#allocation48_spill] sm:$0xff] %v8491_v6  ;;  %11295 = vst [vmem:[#allocation65_spill] sm:$0xff] %v8731_v57 }
 0x346   :  { %v902_v55 = vpop.f32.mrf.mxu1  ;;  %6728 = vmatpush3.msra.mxu0 %v8467_v25 }
 0x347   :  { %v8487_v29 = vadd.f32 %v8375_v24, %v902_v55  ;;  %6729 = vmatprep.subr.mxu0 %v8476_v28 }
 0x348   :  { %v6612_v52 = vpop.f32.mrf.mxu1  ;;  %6730 = vmatpush3.msra.mxu0 %v8476_v28 }
 0x349   :  { %11277 = vst [vmem:[#allocation47_spill] sm:$0xff] %v8487_v29  ;;  %v8495_v51 = vadd.f32 %v6612_v52, %v8375_v24  ;;  %6731 = vmatprep.subr.mxu0 %v8484_v23  ;;  %1705 = vrot.lane.b32.xlu1 %v8487_v29, %s7874_s22  ;;  %v8509_v52 = vadd.f32 %v6609_v56, %v8375_v24 }
 0x34a   :  { %1701 = vrot.lane.b32.xlu0 %v8491_v6, %s7874_s22  ;;  %v912_v55 = vpop.f32.mrf.mxu1  ;;  %6732 = vmatpush3.msra.mxu0 %v8484_v23  ;;  %v8526_v56 = vadd.f32 %v8375_v24, %v872_v49  ;;  %v8564_v49 = vadd.f32 %v8410_v17, %v8375_v24  ;;  %v8580_v17 = vadd.f32 %v8396_v26, %v8375_v24  ;;  %v8725_v23 = vld [vmem:[#allocation6 + $0x48] sm:$0xff] }
 0x34b   :  { %11279 = vst [vmem:[#allocation49_spill] sm:$0xff] %v8495_v51  ;;  %v8504_v53 = vadd.f32 %v8375_v24, %v912_v55  ;;  %6645 = vmatprep.subr.msk.mxu1 %vm1070_vm1, %v8495_v51  ;;  %11281 = vst [vmem:[#allocation51_spill] sm:$0xff] %v8509_v52  ;;  %v8600_v26 = vadd.f32 %v8375_v24, %v8389_v9  ;;  %v8618_v24 = vadd.f32 %v8307_v38, %v8335_v31 }
 0x34c   :  { %6646 = vmatpush3.xpose.msk.msra.mxu1 %vm1070_vm1, %v8495_v51  ;;  %11282 = vst [vmem:[#allocation52_spill] sm:$0xff] %v8526_v56  ;;  %11284 = vst [vmem:[#allocation54_spill] sm:$0xff] %v8564_v49  ;;  %v8634_v31 = vadd.f32 %v8307_v38, %v8347_v54  ;;  %v8650_v54 = vadd.f32 %v8307_v38, %v8357_v5  ;;  %v8678_v38 = vld [vmem:[#allocation6 + $0x8] sm:$0xff] }
 0x34d   :  { %11280 = vst [vmem:[#allocation50_spill] sm:$0xff] %v8504_v53  ;;  %6647 = vmatprep.subr.msk.mxu1 %vm1070_vm1, %v8504_v53  ;;  %1709 = vrot.lane.b32.xlu1 %v8504_v53, %s7874_s22  ;;  %11286 = vst [vmem:[#allocation56_spill] sm:$0xff] %v8678_v38 }
 0x34e   :  { %1707 = vrot.lane.b32.xlu0 %v8509_v52, %s7874_s22  ;;  %11294 = vst [vmem:[#allocation64_spill] sm:$0xff] %v8725_v23 }
 0x350   :  { %6648 = vmatpush3.xpose.msk.msra.mxu1 %vm1070_vm1, %v8504_v53  ;;  %v8719_v53 = vld [vmem:[#allocation6 + $0x30] sm:$0xff] }
 0x351   :  { %6649 = vmatprep.subr.msk.mxu1 %vm1070_vm1, %v8509_v52  ;;  %11293 = vst [vmem:[#allocation63_spill] sm:$0xff] %v8719_v53 }
 0x352   :  { %1711 = vrot.lane.b32.xlu0 %v8495_v51, %s7874_s22  ;;  %v8701_v51 = vld [vmem:[#allocation6 + $0x28] sm:$0xff] }
 0x353   :  { %11290 = vst [vmem:[#allocation60_spill] sm:$0xff] %v8701_v51 }
 0x354   :  { %6650 = vmatpush3.xpose.msk.msra.mxu1 %vm1070_vm1, %v8509_v52  ;;  %v8713_v52 = vld [vmem:[#allocation6 + $0x38] sm:$0xff] }
 0x355   :  { %6651 = vmatprep.subr.msk.mxu1 %vm1070_vm1, %v8487_v29  ;;  %11292 = vst [vmem:[#allocation62_spill] sm:$0xff] %v8713_v52 }
 0x356   :  { %1693 = vrot.lane.b32.xlu0 %v8526_v56, %s7874_s22 }
 0x358   :  { %6652 = vmatpush3.xpose.msk.msra.mxu1 %vm1070_vm1, %v8487_v29 }
 0x359   :  { %6653 = vmatprep.subr.msk.mxu1 %vm1070_vm1, %v8470_v59 }
 0x35c   :  { %6654 = vmatpush3.xpose.msk.msra.mxu1 %vm1070_vm1, %v8470_v59 }
 0x35d   :  { %6655 = vmatprep.subr.msk.mxu1 %vm1070_vm1, %v8491_v6 }
 0x360   :  { %6656 = vmatpush3.xpose.msk.msra.mxu1 %vm1070_vm1, %v8491_v6 }
 0x361   :  { %6657 = vmatprep.subr.msk.mxu1 %vm1070_vm1, %v8442_v45 }
 0x364   :  { %6658 = vmatpush3.xpose.msk.msra.mxu1 %vm1070_vm1, %v8442_v45 }
 0x365   :  { %6659 = vmatprep.subr.msk.mxu1 %vm1070_vm1, %v8451_v60 }
 0x368   :  { %6660 = vmatpush3.xpose.msk.msra.mxu1 %vm1070_vm1, %v8451_v60 }
 0x369   :  { %6661 = vmatprep.subr.msk.mxu1 %vm1070_vm1, %v8552_v7 }
 0x36c   :  { %6662 = vmatpush3.xpose.msk.msra.mxu1 %vm1070_vm1, %v8552_v7 }
 0x36d   :  { %6663 = vmatprep.subr.msk.mxu1 %vm1070_vm1, %v8526_v56 }
 0x370   :  { %6664 = vmatpush3.xpose.msk.msra.mxu1 %vm1070_vm1, %v8526_v56  ;;  %v8694_v56 = vld [vmem:[#allocation6 + $0x18] sm:$0xff] }
 0x371   :  { %6665 = vmatprep.subr.msk.mxu1 %vm1070_vm1, %v8564_v49  ;;  %11288 = vst [vmem:[#allocation58_spill] sm:$0xff] %v8694_v56 }
 0x374   :  { %6666 = vmatpush3.xpose.msk.msra.mxu1 %vm1070_vm1, %v8564_v49 }
 0x375   :  { %6667 = vmatprep.subr.msk.mxu1 %vm1070_vm1, %v8572_v1 }
 0x378   :  { %6668 = vmatpush3.xpose.msk.msra.mxu1 %vm1070_vm1, %v8572_v1 }
 0x379   :  { %6669 = vmatprep.subr.msk.mxu1 %vm1070_vm1, %v8580_v17 }
 0x37c   :  { %6670 = vmatpush3.xpose.msk.msra.mxu1 %vm1070_vm1, %v8580_v17 }
 0x37d   :  { %6671 = vmatprep.subr.msk.mxu1 %vm1070_vm1, %v8588_v61 }
 0x380   :  { %6672 = vmatpush3.xpose.msk.msra.mxu1 %vm1070_vm1, %v8588_v61 }
 0x381   :  { %6673 = vmatprep.subr.msk.mxu1 %vm1070_vm1, %v8386_v58 }
 0x384   :  { %6674 = vmatpush3.xpose.msk.msra.mxu1 %vm1070_vm1, %v8386_v58 }
 0x385   :  { %6675 = vmatprep.subr.msk.mxu1 %vm1070_vm1, %v8600_v26 }
 0x388   :  { %6676 = vmatpush3.xpose.msk.msra.mxu1 %vm1070_vm1, %v8600_v26 }
 0x38b   :  { %6678 = vmatmul.mubr.msk.f32.vlgmr.msra.gmra.mxu1 %vm1070_vm1, %v8312_v20 }
 0x38c   :  { %6680 = vmatprep.mubr.msk.f32.mxu1 %vm1070_vm1, %v8610_v42 }
 0x38f   :  { %6681 = vmatmul.mubr.msk.f32.gmra.mxu1 %vm1070_vm1, %v8322_v21 }
 0x390   :  { %6683 = vmatprep.mubr.msk.f32.mxu1 %vm1070_vm1, %v8618_v24 }
 0x393   :  { %6684 = vmatmul.mubr.msk.f32.gmra.mxu1 %vm1070_vm1, %v8333_v30 }
 0x394   :  { %6686 = vmatprep.mubr.msk.f32.mxu1 %vm1070_vm1, %v8626_v22 }
 0x397   :  { %6687 = vmatmul.mubr.msk.f32.gmra.mxu1 %vm1070_vm1, %v8340_v46 }
 0x398   :  { %6689 = vmatprep.mubr.msk.f32.mxu1 %vm1070_vm1, %v8634_v31 }
 0x39b   :  { %6690 = vmatmul.mubr.msk.f32.gmra.mxu1 %vm1070_vm1, %v8345_v50 }
 0x39c   :  { %6692 = vmatprep.mubr.msk.f32.mxu1 %vm1070_vm1, %v8642_v37 }
 0x39f   :  { %6693 = vmatmul.mubr.msk.f32.gmra.mxu1 %vm1070_vm1, %v8350_v62 }
 0x3a0   :  { %6695 = vmatprep.mubr.msk.f32.mxu1 %vm1070_vm1, %v8650_v54 }
 0x3a3   :  { %6696 = vmatmul.mubr.msk.f32.gmra.mxu1 %vm1070_vm1, %v8355_v3 }
 0x3a4   :  { %6698 = vmatprep.mubr.msk.f32.mxu1 %vm1070_vm1, %v8658_v0 }
 0x3a7   :  { %6699 = vmatmul.mubr.msk.f32.gmra.mxu1 %vm1070_vm1, %v8365_v14 }
 0x3b3   :  { %v8666_v5 = vpop.permute.xlu0 %1697 }
 0x3b7   :  { %v8668_v9 = vpop.permute.xlu0 %1703 }
 0x3bc   :  { %v8670_v34 = vpop.permute.xlu0 %1701 }
 0x3c0   :  { %v8672_v55 = vpop.permute.xlu0 %1707 }
 0x3c4   :  { %v8674_v48 = vpop.permute.xlu0 %1711 }
 0x3c5   :  { %6757 = vmatprep.subr.msk.mxu0 %vm1070_vm1, %v8674_v48 }
 0x44b   :  { %v6679_v16 = vpop.f32.mrf.mxu1 }
 0x44c   :  { %v8683_v44 = vadd.f32 %v6679_v16, %v8678_v38 }
 0x44d   :  { %v1233_v43 = vpop.f32.mrf.mxu1 }
 0x44e   :  { %v8686_v40 = vadd.f32 %v1233_v43, %v8680_v47  ;;  %1314 = vmax.xlane.f32.xlu1 %v8683_v44  ;;  %v8696_v43 = vld [vmem:[#allocation6 + $0x10] sm:$0xff] }
 0x44f   :  { %v6682_v39 = vpop.f32.mrf.mxu1  ;;  %11289 = vst [vmem:[#allocation59_spill] sm:$0xff] %v8696_v43 }
 0x450   :  { %1312 = vmax.xlane.f32.xlu0 %v8686_v40  ;;  %v8699_v60 = vadd.f32 %v6682_v39, %v8694_v56 }
 0x451   :  { %v1243_v36 = vpop.f32.mrf.mxu1 }
 0x453   :  { %v6685_v35 = vpop.f32.mrf.mxu1 }
 0x454   :  { %v8710_v29 = vadd.f32 %v6685_v35, %v8701_v51  ;;  %v8761_v51 = vld [vmem:[#allocation6 + $0x78] sm:$0xff] }
 0x455   :  { %v1253_v33 = vpop.f32.mrf.mxu1  ;;  %11300 = vst [vmem:[#allocation70_spill] sm:$0xff] %v8761_v51 }
 0x457   :  { %v6688_v16 = vpop.f32.mrf.mxu1 }
 0x458   :  { %v8722_v28 = vadd.f32 %v6688_v16, %v8713_v52  ;;  %v8743_v52 = vld [vmem:[#allocation6 + $0x50] sm:$0xff] }
 0x459   :  { %v1263_v32 = vpop.f32.mrf.mxu1  ;;  %11297 = vst [vmem:[#allocation67_spill] sm:$0xff] %v8743_v52 }
 0x45a   :  { %v8728_v35 = vadd.f32 %v1263_v32, %v8719_v53 }
 0x45b   :  { %v6691_v45 = vpop.f32.mrf.mxu1 }
 0x45c   :  { %v8734_v25 = vadd.f32 %v6691_v45, %v8725_v23  ;;  %v8755_v23 = vld [vmem:[#allocation6 + $0x60] sm:$0xff] }
 0x45d   :  { %v1273_v59 = vpop.f32.mrf.mxu1  ;;  %11299 = vst [vmem:[#allocation69_spill] sm:$0xff] %v8755_v23 }
 0x45e   :  { %v8740_v16 = vadd.f32 %v1273_v59, %v8731_v57 }
 0x45f   :  { %1695 = vrot.lane.b32.xlu1 %v8552_v7, %s7874_s22  ;;  %v8704_v7 = vadd.f32 %v1243_v36, %v8696_v43  ;;  %v6694_v6 = vpop.f32.mrf.mxu1  ;;  %v8749_v43 = vld [vmem:[#allocation6 + $0x68] sm:$0xff] }
 0x460   :  { %11298 = vst [vmem:[#allocation68_spill] sm:$0xff] %v8749_v43 }
 0x461   :  { %v1283_v36 = vpop.f32.mrf.mxu1 }
 0x462   :  { %v8752_v45 = vadd.f32 %v1283_v36, %v8743_v52  ;;  %v8767_v36 = vld [vmem:[#allocation6 + $0x70] sm:$0xff] }
 0x463   :  { %11301 = vst [vmem:[#allocation71_spill] sm:$0xff] %v8767_v36 }
 0x466   :  { %1691 = vrot.lane.b32.xlu0 %v8564_v49, %s7874_s22  ;;  %v8707_v49 = vld [vmem:[#allocation6 + $0x20] sm:$0xff] }
 0x467   :  { %11291 = vst [vmem:[#allocation61_spill] sm:$0xff] %v8707_v49  ;;  %v8716_v39 = vadd.f32 %v1253_v33, %v8707_v49  ;;  %v6697_v33 = vpop.f32.mrf.mxu1  ;;  %v8737_v49 = vld [vmem:[#allocation6 + $0x58] sm:$0xff] }
 0x468   :  { %11296 = vst [vmem:[#allocation66_spill] sm:$0xff] %v8737_v49  ;;  %v8746_v53 = vadd.f32 %v6694_v6, %v8737_v49  ;;  %v8758_v57 = vadd.f32 %v6697_v33, %v8749_v43 }
 0x469   :  { %v1293_v32 = vpop.f32.mrf.mxu1 }
 0x46a   :  { %v8764_v6 = vadd.f32 %v1293_v32, %v8755_v23  ;;  %v8780_v32 = vpop.permute.xlu1 %1699 }
 0x46b   :  { %v6700_v59 = vpop.f32.mrf.mxu1 }
 0x46c   :  { %v8770_v52 = vadd.f32 %v6700_v59, %v8761_v51  ;;  %v8786_v59 = vpop.permute.xlu0 %1693 }
 0x46d   :  { %v1303_v49 = vpop.f32.mrf.mxu1  ;;  %11302 = vst [vmem:[#allocation72_spill] sm:$0xff] %v8786_v59 }
 0x46e   :  { %v8774_v33 = vadd.f32 %v1303_v49, %v8767_v36  ;;  %v8782_v23 = vpop.permute.xlu1 %1705 }
 0x472   :  { %v8784_v43 = vpop.permute.xlu1 %1709 }
 0x483   :  { %1318 = vmax.xlane.f32.xlu1 %v8699_v60 }
 0x485   :  { %1316 = vmax.xlane.f32.xlu0 %v8704_v7 }
 0x487   :  { %1322 = vmax.xlane.f32.xlu1 %v8710_v29 }
 0x489   :  { %1320 = vmax.xlane.f32.xlu0 %v8716_v39 }
 0x48b   :  { %1326 = vmax.xlane.f32.xlu1 %v8722_v28 }
 0x48d   :  { %1324 = vmax.xlane.f32.xlu0 %v8728_v35 }
 0x48f   :  { %1330 = vmax.xlane.f32.xlu1 %v8734_v25 }
 0x491   :  { %1328 = vmax.xlane.f32.xlu0 %v8740_v16 }
 0x493   :  { %1334 = vmax.xlane.f32.xlu1 %v8746_v53 }
 0x495   :  { %1332 = vmax.xlane.f32.xlu0 %v8752_v45 }
 0x497   :  { %1338 = vmax.xlane.f32.xlu1 %v8758_v57 }
 0x499   :  { %1336 = vmax.xlane.f32.xlu0 %v8764_v6 }
 0x49b   :  { %1342 = vmax.xlane.f32.xlu1 %v8770_v52 }
 0x49d   :  { %1340 = vmax.xlane.f32.xlu0 %v8774_v33 }
 0x4b3   :  { %1689 = vrot.lane.b32.xlu0 %v8572_v1, %s7874_s22 }
 0x4d7   :  { %v1315_v51 = vpop.xlane.xlu1 %1314 }
 0x4d8   :  { %v1345_v56 = vsub.f32 %v8683_v44, %v1315_v51 }
 0x4d9   :  { %v1313_v49 = vpop.xlane.xlu0 %1312 }
 0x4da   :  { %v1362_v36 = vmul.f32 1.442695, %v1345_v56  ;;  %v1344_v47 = vsub.f32 %v8686_v40, %v1313_v49 }
 0x4db   :  { %v8796_v11 = vpop.permute.xlu1 %1695 }
 0x4dc   :  { %7414 = vpow2.f32 %v1362_v36  ;;  %v1360_v38 = vmul.f32 1.442695, %v1344_v47 }
 0x4dd   :  { %v8798_v12 = vpop.permute.xlu0 %1691 }
 0x4de   :  { %7416 = vpow2.f32 %v1360_v38  ;;  %11303 = vst [vmem:[#allocation73_spill] sm:$0xff] %v8798_v12 }
 0x4e9   :  { %v8790_v41 = vpop.eup %7414 }
 0x4ea   :  { %1394 = vadd.xlane.f32.xlu1 %v8790_v41 }
 0x4eb   :  { %v8793_v1 = vpop.eup %7416 }
 0x4ec   :  { %1392 = vadd.xlane.f32.xlu0 %v8793_v1 }
 0x50c   :  { %v1319_v44 = vpop.xlane.xlu1 %1318 }
 0x50d   :  { %v1347_v51 = vsub.f32 %v8699_v60, %v1319_v44 }
 0x50e   :  { %v1317_v56 = vpop.xlane.xlu0 %1316 }
 0x50f   :  { %v1366_v40 = vmul.f32 1.442695, %v1347_v51  ;;  %v1346_v47 = vsub.f32 %v8704_v7, %v1317_v56 }
 0x510   :  { %v1323_v38 = vpop.xlane.xlu1 %1322 }
 0x511   :  { %7418 = vpow2.f32 %v1366_v40  ;;  %v1364_v36 = vmul.f32 1.442695, %v1346_v47  ;;  %v1349_v49 = vsub.f32 %v8710_v29, %v1323_v38 }
 0x512   :  { %v1321_v63 = vpop.xlane.xlu0 %1320 }
 0x513   :  { %v1348_v15 = vsub.f32 %v8716_v39, %v1321_v63  ;;  %7420 = vpow2.f32 %v1364_v36  ;;  %v1370_v59 = vmul.f32 1.442695, %v1349_v49 }
 0x514   :  { %v1327_v19 = vpop.xlane.xlu1 %1326 }
 0x515   :  { %v1368_v27 = vmul.f32 1.442695, %v1348_v15  ;;  %v1351_v12 = vsub.f32 %v8722_v28, %v1327_v19 }
 0x516   :  { %v1325_v13 = vpop.xlane.xlu0 %1324 }
 0x517   :  { %7422 = vpow2.f32 %v1368_v27  ;;  %v1374_v60 = vmul.f32 1.442695, %v1351_v12  ;;  %v1350_v7 = vsub.f32 %v8728_v35, %v1325_v13 }
 0x518   :  { %7424 = vpow2.f32 %v1370_v59  ;;  %v1331_v44 = vpop.xlane.xlu1 %1330 }
 0x519   :  { %7426 = vpow2.f32 %v1374_v60  ;;  %v1372_v29 = vmul.f32 1.442695, %v1350_v7  ;;  %v1353_v63 = vsub.f32 %v8734_v25, %v1331_v44 }
 0x51a   :  { %v1329_v51 = vpop.xlane.xlu0 %1328 }
 0x51b   :  { %v1352_v56 = vsub.f32 %v8740_v16, %v1329_v51  ;;  %v1378_v27 = vmul.f32 1.442695, %v1353_v63 }
 0x51c   :  { %v1335_v16 = vpop.xlane.xlu1 %1334 }
 0x51d   :  { %v1376_v39 = vmul.f32 1.442695, %v1352_v56  ;;  %v1355_v7 = vsub.f32 %v8746_v53, %v1335_v16 }
 0x51e   :  { %v8808_v40 = vpop.eup %7418  ;;  %v1333_v36 = vpop.xlane.xlu0 %1332 }
 0x51f   :  { %7428 = vpow2.f32 %v1376_v39  ;;  %1398 = vadd.xlane.f32.xlu1 %v8808_v40  ;;  %v1382_v56 = vmul.f32 1.442695, %v1355_v7 }
 0x520   :  { %7430 = vpow2.f32 %v1372_v29  ;;  %v8811_v15 = vpop.eup %7420  ;;  %v1339_v59 = vpop.xlane.xlu1 %1338  ;;  %v1354_v29 = vsub.f32 %v8752_v45, %v1333_v36 }
 0x521   :  { %7432 = vpow2.f32 %v1378_v27  ;;  %v1357_v47 = vsub.f32 %v8758_v57, %v1339_v59 }
 0x522   :  { %v1337_v51 = vpop.xlane.xlu0 %1336  ;;  %v1380_v63 = vmul.f32 1.442695, %v1354_v29 }
 0x523   :  { %1396 = vadd.xlane.f32.xlu1 %v8811_v15  ;;  %v1386_v49 = vmul.f32 1.442695, %v1357_v47  ;;  %v1356_v39 = vsub.f32 %v8764_v6, %v1337_v51 }
 0x524   :  { %v8814_v12 = vpop.eup %7422  ;;  %v1343_v38 = vpop.xlane.xlu1 %1342 }
 0x525   :  { %1400 = vadd.xlane.f32.xlu0 %v8814_v12  ;;  %v8817_v13 = vpop.eup %7424  ;;  %v1359_v60 = vsub.f32 %v8770_v52, %v1343_v38  ;;  %7434 = vpow2.f32 %v1386_v49  ;;  %v1384_v57 = vmul.f32 1.442695, %v1356_v39 }
 0x526   :  { %v8820_v19 = vpop.eup %7426  ;;  %v1341_v27 = vpop.xlane.xlu0 %1340 }
 0x527   :  { %1402 = vadd.xlane.f32.xlu1 %v8817_v13  ;;  %v1390_v44 = vmul.f32 1.442695, %v1359_v60  ;;  %v1358_v59 = vsub.f32 %v8774_v33, %v1341_v27 }
 0x529   :  { %7436 = vpow2.f32 %v1390_v44  ;;  %v1388_v53 = vmul.f32 1.442695, %v1358_v59  ;;  %v11310_v59 = vld [vmem:[#allocation33_spill] sm:$0xff] }
 0x52a   :  { %7438 = vpow2.f32 %v1382_v56  ;;  %v8857_v16 = vpop.permute.xlu0 %1689 }
 0x52b   :  { %1406 = vadd.xlane.f32.xlu1 %v8820_v19  ;;  %7440 = vpow2.f32 %v1380_v63 }
 0x52c   :  { %v8823_v25 = vpop.eup %7428  ;;  %7442 = vpow2.f32 %v1384_v57 }
 0x52d   :  { %1408 = vadd.xlane.f32.xlu0 %v8823_v25  ;;  %v8826_v28 = vpop.eup %7430  ;;  %7444 = vpow2.f32 %v1388_v53 }
 0x52e   :  { %v8829_v35 = vpop.eup %7432 }
 0x52f   :  { %1404 = vadd.xlane.f32.xlu1 %v8826_v28 }
 0x532   :  { %v8842_v47 = vpop.eup %7434 }
 0x533   :  { %1410 = vadd.xlane.f32.xlu1 %v8829_v35 }
 0x536   :  { %v8845_v52 = vpop.eup %7436 }
 0x537   :  { %v8848_v45 = vpop.eup %7438 }
 0x538   :  { %v8851_v6 = vpop.eup %7440 }
 0x539   :  { %v8854_v33 = vpop.eup %7442 }
 0x53a   :  { %v8859_v38 = vpop.eup %7444 }
 0x543   :  { %1687 = vrot.lane.b32.xlu0 %v8580_v17, %s7874_s22 }
 0x544   :  { %1685 = vrot.lane.b32.xlu1 %v8588_v61, %s7874_s22 }
 0x562   :  { %1418 = vadd.xlane.f32.xlu0 %v8842_v47 }
 0x566   :  { %1422 = vadd.xlane.f32.xlu0 %v8845_v52 }
 0x568   :  { %1414 = vadd.xlane.f32.xlu1 %v8848_v45 }
 0x56c   :  { %1412 = vadd.xlane.f32.xlu1 %v8851_v6 }
 0x570   :  { %1416 = vadd.xlane.f32.xlu1 %v8854_v33 }
 0x573   :  { %v1395_v36 = vpop.xlane.xlu1 %1394 }
 0x574   :  { %7446 = vrcp.f32 %v1395_v36  ;;  %1420 = vadd.xlane.f32.xlu1 %v8859_v38 }
 0x575   :  { %v1393_v49 = vpop.xlane.xlu0 %1392 }
 0x576   :  { %7448 = vrcp.f32 %v1393_v49 }
 0x57c   :  { %1683 = vrot.lane.b32.xlu0 %v8386_v58, %s7874_s22 }
 0x580   :  { %1649 = vrot.lane.b32.xlu0 %v8317_v10, %s7874_s22 }
 0x581   :  { %v7447_v60 = vpop.eup %7446 }
 0x582   :  { %v1441_v7 = vmul.f32 %v7447_v60, %v1395_v36 }
 0x583   :  { %v7449_v44 = vpop.eup %7448 }
 0x584   :  { %v1457_v51 = vsub.f32 2.0, %v1441_v7  ;;  %v1440_v56 = vmul.f32 %v7449_v44, %v1393_v49  ;;  %1653 = vrot.lane.b32.xlu0 %v8610_v42, %s7874_s22  ;;  %v11311_v7 = vld [vmem:[#allocation35_spill] sm:$0xff] }
 0x585   :  { %1681 = vrot.lane.b32.xlu1 %v8600_v26, %s7874_s22 }
 0x586   :  { %v1456_v29 = vsub.f32 2.0, %v1440_v56  ;;  %v1473_v63 = vmul.f32 %v7447_v60, %v1457_v51 }
 0x588   :  { %1657 = vrot.lane.b32.xlu0 %v8618_v24, %s7874_s22  ;;  %v1472_v39 = vmul.f32 %v7449_v44, %v1456_v29  ;;  %v1489_v57 = vmul.f32 %v8790_v41, %v1473_v63 }
 0x589   :  { %1651 = vrot.lane.b32.xlu1 %v8312_v20, %s7874_s22 }
 0x58a   :  { %v1488_v27 = vmul.f32 %v8793_v1, %v1472_v39  ;;  %v11305_v1 = vld [vmem:[#allocation30_spill] sm:$0xff] }
 0x58c   :  { %1661 = vrot.lane.b32.xlu0 %v8626_v22, %s7874_s22  ;;  %6733 = vmatprep.mubr.f32.mxu0 %v1488_v27 }
 0x58d   :  { %1655 = vrot.lane.b32.xlu1 %v8322_v21, %s7874_s22  ;;  %6734 = vmatmul.mubr.f32.vlgmr.msra.gmra.mxu0 %v1489_v57 }
 0x58e   :  { %6758 = vmatpush3.xpose.msk.msra.mxu0 %vm1070_vm1, %v8674_v48 }
 0x58f   :  { %6759 = vmatprep.subr.msk.mxu0 %vm1070_vm1, %v8784_v43 }
 0x590   :  { %1665 = vrot.lane.b32.xlu0 %v8634_v31, %s7874_s22 }
 0x591   :  { %1659 = vrot.lane.b32.xlu1 %v8333_v30, %s7874_s22 }
 0x592   :  { %6760 = vmatpush3.xpose.msk.msra.mxu0 %vm1070_vm1, %v8784_v43  ;;  %v11308_v43 = vld [vmem:[#allocation31_spill] sm:$0xff] }
 0x593   :  { %6761 = vmatprep.subr.msk.mxu0 %vm1070_vm1, %v8672_v55 }
 0x594   :  { %1669 = vrot.lane.b32.xlu0 %v8642_v37, %s7874_s22 }
 0x595   :  { %1663 = vrot.lane.b32.xlu1 %v8340_v46, %s7874_s22 }
 0x596   :  { %6762 = vmatpush3.xpose.msk.msra.mxu0 %vm1070_vm1, %v8672_v55  ;;  %v11307_v55 = vld [vmem:[#allocation38_spill] sm:$0xff] }
 0x597   :  { %6763 = vmatprep.subr.msk.mxu0 %vm1070_vm1, %v8782_v23 }
 0x598   :  { %1673 = vrot.lane.b32.xlu0 %v8650_v54, %s7874_s22 }
 0x599   :  { %1667 = vrot.lane.b32.xlu1 %v8345_v50, %s7874_s22 }
 0x59a   :  { %6764 = vmatpush3.xpose.msk.msra.mxu0 %vm1070_vm1, %v8782_v23  ;;  %v11304_v23 = vld [vmem:[#allocation36_spill] sm:$0xff] }
 0x59b   :  { %6765 = vmatprep.subr.msk.mxu0 %vm1070_vm1, %v8668_v9 }
 0x59c   :  { %1677 = vrot.lane.b32.xlu0 %v8658_v0, %s7874_s22 }
 0x59d   :  { %1671 = vrot.lane.b32.xlu1 %v8350_v62, %s7874_s22 }
 0x59e   :  { %6766 = vmatpush3.xpose.msk.msra.mxu0 %vm1070_vm1, %v8668_v9 }
 0x59f   :  { %6767 = vmatprep.subr.msk.mxu0 %vm1070_vm1, %v8670_v34 }
 0x5a0   :  { %2160 = vrot.lane.b32.xlu0 %v8368_v4, %s7874_s22 }
 0x5a1   :  { %1675 = vrot.lane.b32.xlu1 %v8355_v3, %s7874_s22 }
 0x5a2   :  { %6768 = vmatpush3.xpose.msk.msra.mxu0 %vm1070_vm1, %v8670_v34  ;;  %v11306_v34 = vld [vmem:[#allocation72_spill] sm:$0xff] }
 0x5a3   :  { %6769 = vmatprep.subr.msk.mxu0 %vm1070_vm1, %v8780_v32 }
 0x5a4   :  { %2152 = vrot.lane.b32.xlu0 %v8400_v8, %s7874_s22 }
 0x5a5   :  { %1679 = vrot.lane.b32.xlu1 %v8365_v14, %s7874_s22 }
 0x5a6   :  { %6770 = vmatpush3.xpose.msk.msra.mxu0 %vm1070_vm1, %v8780_v32  ;;  %v11309_v32 = vld [vmem:[#allocation73_spill] sm:$0xff] }
 0x5a7   :  { %6771 = vmatprep.subr.msk.mxu0 %vm1070_vm1, %v8666_v5 }
 0x5a8   :  { %v1399_v48 = vpop.xlane.xlu1 %1398  ;;  %2148 = vrot.lane.b32.xlu0 %v8414_v18, %s7874_s22 }
 0x5a9   :  { %7450 = vrcp.f32 %v1399_v48  ;;  %2158 = vrot.lane.b32.xlu1 %v8378_v2, %s7874_s22 }
 0x5aa   :  { %6772 = vmatpush3.xpose.msk.msra.mxu0 %vm1070_vm1, %v8666_v5 }
 0x5ab   :  { %6773 = vmatprep.subr.msk.mxu0 %vm1070_vm1, %v8796_v11 }
 0x5ac   :  { %v1397_v41 = vpop.xlane.xlu1 %1396  ;;  %2144 = vrot.lane.b32.xlu0 %v11304_v23, %s7874_s22 }
 0x5ad   :  { %7452 = vrcp.f32 %v1397_v41  ;;  %2156 = vrot.lane.b32.xlu1 %v11305_v1, %s7874_s22 }
 0x5ae   :  { %6774 = vmatpush3.xpose.msk.msra.mxu0 %vm1070_vm1, %v8796_v11  ;;  %v1401_v9 = vpop.xlane.xlu0 %1400 }
 0x5af   :  { %6775 = vmatprep.subr.msk.mxu0 %vm1070_vm1, %v11306_v34  ;;  %7454 = vrcp.f32 %v1401_v9 }
 0x5b0   :  { %v1403_v5 = vpop.xlane.xlu1 %1402  ;;  %2140 = vrot.lane.b32.xlu0 %v11307_v55, %s7874_s22 }
 0x5b1   :  { %7456 = vrcp.f32 %v1403_v5  ;;  %2154 = vrot.lane.b32.xlu1 %v11308_v43, %s7874_s22 }
 0x5b2   :  { %6776 = vmatpush3.xpose.msk.msra.mxu0 %vm1070_vm1, %v11306_v34 }
 0x5b3   :  { %6777 = vmatprep.subr.msk.mxu0 %vm1070_vm1, %v11309_v32 }
 0x5b4   :  { %v1407_v11 = vpop.xlane.xlu1 %1406 }
 0x5b5   :  { %7458 = vrcp.f32 %v1407_v11  ;;  %2150 = vrot.lane.b32.xlu1 %v11310_v59, %s7874_s22 }
 0x5b6   :  { %v7451_v53 = vpop.eup %7450  ;;  %6778 = vmatpush3.xpose.msk.msra.mxu0 %vm1070_vm1, %v11309_v32  ;;  %v1409_v36 = vpop.xlane.xlu0 %1408 }
 0x5b7   :  { %v1443_v49 = vmul.f32 %v7451_v53, %v1399_v48  ;;  %6779 = vmatprep.subr.msk.mxu0 %vm1070_vm1, %v8857_v16  ;;  %7460 = vrcp.f32 %v1409_v36  ;;  %v11312_v48 = vld [vmem:[#allocation37_spill] sm:$0xff] }
 0x5b8   :  { %v1405_v60 = vpop.xlane.xlu1 %1404 }
 0x5b9   :  { %7462 = vrcp.f32 %v1405_v60  ;;  %2146 = vrot.lane.b32.xlu1 %v11311_v7, %s7874_s22  ;;  %v1459_v51 = vsub.f32 2.0, %v1443_v49 }
 0x5ba   :  { %v7453_v44 = vpop.eup %7452  ;;  %6780 = vmatpush3.xpose.msk.msra.mxu0 %vm1070_vm1, %v8857_v16  ;;  %v1688_v56 = vpop.permute.xlu0 %1687 }
 0x5bb   :  { %v1442_v29 = vmul.f32 %v7453_v44, %v1397_v41  ;;  %6781 = vmatprep.subr.msk.mxu0 %vm1070_vm1, %v1688_v56  ;;  %v1475_v32 = vmul.f32 %v7451_v53, %v1459_v51  ;;  %v11313_v41 = vld [vmem:[#allocation40_spill] sm:$0xff] }
 0x5bc   :  { %v7455_v63 = vpop.eup %7454  ;;  %v1411_v39 = vpop.xlane.xlu1 %1410 }
 0x5bd   :  { %v1458_v27 = vsub.f32 2.0, %v1442_v29  ;;  %v1444_v57 = vmul.f32 %v7455_v63, %v1401_v9  ;;  %7464 = vrcp.f32 %v1411_v39  ;;  %2142 = vrot.lane.b32.xlu1 %v11312_v48, %s7874_s22  ;;  %v1491_v48 = vmul.f32 %v8808_v40, %v1475_v32 }
 0x5be   :  { %v7457_v34 = vpop.eup %7456  ;;  %6782 = vmatpush3.xpose.msk.msra.mxu0 %vm1070_vm1, %v1688_v56 }
 0x5bf   :  { %v1460_v49 = vsub.f32 2.0, %v1444_v57  ;;  %v1445_v7 = vmul.f32 %v7457_v34, %v1403_v5  ;;  %v1474_v59 = vmul.f32 %v7453_v44, %v1458_v27 }
 0x5c0   :  { %v1686_v16 = vpop.permute.xlu1 %1685 }
 0x5c1   :  { %v1461_v55 = vsub.f32 2.0, %v1445_v7  ;;  %2138 = vrot.lane.b32.xlu1 %v11313_v41, %s7874_s22  ;;  %6783 = vmatprep.subr.msk.mxu0 %vm1070_vm1, %v1686_v16  ;;  %v1490_v9 = vmul.f32 %v8811_v15, %v1474_v59  ;;  %v1476_v29 = vmul.f32 %v7455_v63, %v1460_v49 }
 0x5c2   :  { %v7459_v43 = vpop.eup %7458  ;;  %6784 = vmatpush3.xpose.msk.msra.mxu0 %vm1070_vm1, %v1686_v16 }
 0x5c3   :  { %v1447_v56 = vmul.f32 %v7459_v43, %v1407_v11  ;;  %6736 = vmatprep.mubr.f32.mxu0 %v1490_v9  ;;  %v1492_v5 = vmul.f32 %v8814_v12, %v1476_v29  ;;  %v1477_v53 = vmul.f32 %v7457_v34, %v1461_v55 }
 0x5c4   :  { %v7461_v44 = vpop.eup %7460  ;;  %6737 = vmatmul.mubr.f32.gmra.mxu0 %v1491_v48 }
 0x5c5   :  { %v1448_v7 = vmul.f32 %v7461_v44, %v1409_v36  ;;  %6739 = vmatprep.mubr.f32.mxu0 %v1492_v5  ;;  %v1493_v51 = vmul.f32 %v8817_v13, %v1477_v53  ;;  %v1463_v57 = vsub.f32 2.0, %v1447_v56 }
 0x5c6   :  { %v7463_v27 = vpop.eup %7462 }
 0x5c7   :  { %v1464_v15 = vsub.f32 2.0, %v1448_v7  ;;  %v1446_v59 = vmul.f32 %v7463_v27, %v1405_v60  ;;  %v1479_v16 = vmul.f32 %v7459_v43, %v1463_v57 }
 0x5c8   :  { %6740 = vmatmul.mubr.f32.gmra.mxu0 %v1493_v51 }
 0x5c9   :  { %v1462_v63 = vsub.f32 2.0, %v1446_v59  ;;  %v1480_v32 = vmul.f32 %v7461_v44, %v1464_v15  ;;  %v1495_v55 = vmul.f32 %v8820_v19, %v1479_v16 }
 0x5ca   :  { %v7465_v49 = vpop.eup %7464 }
 0x5cb   :  { %v1449_v40 = vmul.f32 %v7465_v49, %v1411_v39  ;;  %v1478_v11 = vmul.f32 %v7463_v27, %v1462_v63  ;;  %v1496_v36 = vmul.f32 %v8823_v25, %v1480_v32 }
 0x5cd   :  { %v1465_v9 = vsub.f32 2.0, %v1449_v40  ;;  %v1494_v12 = vmul.f32 %v8826_v28, %v1478_v11 }
 0x5cf   :  { %6742 = vmatprep.mubr.f32.mxu0 %v1494_v12  ;;  %v1481_v13 = vmul.f32 %v7465_v49, %v1465_v9 }
 0x5d0   :  { %6743 = vmatmul.mubr.f32.gmra.mxu0 %v1495_v55 }
 0x5d1   :  { %6745 = vmatprep.mubr.f32.mxu0 %v1496_v36  ;;  %v1497_v60 = vmul.f32 %v8829_v35, %v1481_v13 }
 0x5d4   :  { %6746 = vmatmul.mubr.f32.gmra.mxu0 %v1497_v60 }
 0x5eb   :  { %v1419_v48 = vpop.xlane.xlu0 %1418 }
 0x5ef   :  { %v1423_v34 = vpop.xlane.xlu0 %1422 }
 0x5f1   :  { %v1415_v43 = vpop.xlane.xlu1 %1414 }
 0x5f2   :  { %7466 = vrcp.f32 %v1415_v43 }
 0x5f3   :  { %7468 = vrcp.f32 %v1419_v48  ;;  %v1684_v39 = vpop.permute.xlu0 %1683 }
 0x5f4   :  { %6785 = vmatprep.subr.msk.mxu0 %vm1070_vm1, %v1684_v39 }
 0x5f5   :  { %v1413_v28 = vpop.xlane.xlu1 %1412  ;;  %6786 = vmatpush3.xpose.msk.msra.mxu0 %vm1070_vm1, %v1684_v39 }
 0x5f6   :  { %7470 = vrcp.f32 %v1413_v28 }
 0x5f7   :  { %7472 = vrcp.f32 %v1423_v34  ;;  %v1650_v19 = vpop.permute.xlu0 %1649 }
 0x5f9   :  { %v1417_v25 = vpop.xlane.xlu1 %1416 }
 0x5fa   :  { %7474 = vrcp.f32 %v1417_v25 }
 0x5fb   :  { %v1654_v29 = vpop.permute.xlu0 %1653 }
 0x5fd   :  { %v1421_v56 = vpop.xlane.xlu1 %1420 }
 0x5fe   :  { %7476 = vrcp.f32 %v1421_v56 }
 0x5ff   :  { %v7467_v35 = vpop.eup %7466  ;;  %v1658_v5 = vpop.permute.xlu0 %1657 }
 0x600   :  { %v7469_v53 = vpop.eup %7468  ;;  %v1451_v44 = vmul.f32 %v7467_v35, %v1415_v43 }
 0x601   :  { %v1682_v7 = vpop.permute.xlu1 %1681  ;;  %v1453_v27 = vmul.f32 %v7469_v53, %v1419_v48 }
 0x602   :  { %6787 = vmatprep.subr.msk.mxu0 %vm1070_vm1, %v1682_v7  ;;  %v1467_v57 = vsub.f32 2.0, %v1451_v44 }
 0x603   :  { %v7471_v51 = vpop.eup %7470  ;;  %6788 = vmatpush3.xpose.msk.msra.mxu0 %vm1070_vm1, %v1682_v7  ;;  %v1662_v15 = vpop.permute.xlu0 %1661  ;;  %v1469_v11 = vsub.f32 2.0, %v1453_v27 }
 0x604   :  { %v7473_v59 = vpop.eup %7472  ;;  %v1450_v63 = vmul.f32 %v7471_v51, %v1413_v28  ;;  %v1483_v12 = vmul.f32 %v7467_v35, %v1467_v57 }
 0x605   :  { %v1652_v49 = vpop.permute.xlu1 %1651  ;;  %v1455_v32 = vmul.f32 %v7473_v59, %v1423_v34  ;;  %v1485_v41 = vmul.f32 %v7469_v53, %v1469_v11 }
 0x606   :  { %v1466_v16 = vsub.f32 2.0, %v1450_v63  ;;  %v1499_v7 = vmul.f32 %v8848_v45, %v1483_v12 }
 0x607   :  { %v7475_v40 = vpop.eup %7474  ;;  %v1666_v9 = vpop.permute.xlu0 %1665  ;;  %v1471_v39 = vsub.f32 2.0, %v1455_v32 }
 0x608   :  { %v1452_v55 = vmul.f32 %v7475_v40, %v1417_v25  ;;  %v1482_v36 = vmul.f32 %v7471_v51, %v1466_v16  ;;  %v1501_v51 = vmul.f32 %v8842_v47, %v1485_v41 }
 0x609   :  { %v1656_v13 = vpop.permute.xlu1 %1655  ;;  %v1487_v27 = vmul.f32 %v7473_v59, %v1471_v39 }
 0x60a   :  { %v1468_v60 = vsub.f32 2.0, %v1452_v55  ;;  %v1498_v43 = vmul.f32 %v8851_v6, %v1482_v36 }
 0x60b   :  { %v7477_v48 = vpop.eup %7476  ;;  %v1670_v44 = vpop.permute.xlu0 %1669 }
 0x60c   :  { %v1454_v28 = vmul.f32 %v7477_v48, %v1421_v56  ;;  %6748 = vmatprep.mubr.f32.mxu0 %v1498_v43  ;;  %v1484_v63 = vmul.f32 %v7475_v40, %v1468_v60  ;;  %v1503_v56 = vmul.f32 %v8845_v52, %v1487_v27  ;;  %v11327_v27 = vld [vmem:[#allocation56_spill] sm:$0xff] }
 0x60d   :  { %v1660_v23 = vpop.permute.xlu1 %1659  ;;  %6749 = vmatmul.mubr.f32.gmra.mxu0 %v1499_v7 }
 0x60e   :  { %v1470_v34 = vsub.f32 2.0, %v1454_v28  ;;  %v1500_v35 = vmul.f32 %v8854_v33, %v1484_v63 }
 0x60f   :  { %v1674_v25 = vpop.permute.xlu0 %1673 }
 0x610   :  { %6751 = vmatprep.mubr.f32.mxu0 %v1500_v35  ;;  %v1486_v6 = vmul.f32 %v7477_v48, %v1470_v34 }
 0x611   :  { %v1664_v57 = vpop.permute.xlu1 %1663  ;;  %6752 = vmatmul.mubr.f32.gmra.mxu0 %v1501_v51 }
 0x612   :  { %v1502_v16 = vmul.f32 %v8859_v38, %v1486_v6 }
 0x613   :  { %v1678_v45 = vpop.permute.xlu0 %1677 }
 0x614   :  { %6754 = vmatprep.mubr.f32.mxu0 %v1502_v16  ;;  %v11328_v16 = vld [vmem:[#allocation57_spill] sm:$0xff] }
 0x615   :  { %v1668_v53 = vpop.permute.xlu1 %1667  ;;  %6755 = vmatmul.mubr.f32.gmra.mxu0 %v1503_v56 }
 0x616   :  { %6789 = vmatprep.mubr.msk.f32.mxu0 %vm1070_vm1, %v1650_v19 }
 0x617   :  { %v2161_v40 = vpop.permute.xlu0 %2160 }
 0x618   :  { %6813 = vmatprep.subr.mxu0 %v2161_v40  ;;  %7341 = vmatprep.subr.mxu1 %v2161_v40 }
 0x619   :  { %v1672_v33 = vpop.permute.xlu1 %1671  ;;  %6790 = vmatmul.mubr.msk.f32.vlgmr.msra.gmra.mxu0 %vm1070_vm1, %v1652_v49  ;;  %7357 = vmatpush3.msra.mxu1 %v2161_v40 }
 0x61a   :  { %6814 = vmatpush3.msra.mxu0 %v2161_v40  ;;  %6792 = vmatprep.mubr.msk.f32.mxu0 %vm1070_vm1, %v1654_v29  ;;  %v11329_v40 = vld [vmem:[#allocation58_spill] sm:$0xff] }
 0x61b   :  { %v2153_v19 = vpop.permute.xlu0 %2152 }
 0x61d   :  { %v1676_v47 = vpop.permute.xlu1 %1675  ;;  %6793 = vmatmul.mubr.msk.f32.gmra.mxu0 %vm1070_vm1, %v1656_v13 }
 0x61e   :  { %6795 = vmatprep.mubr.msk.f32.mxu0 %vm1070_vm1, %v1658_v5 }
 0x61f   :  { %v2149_v29 = vpop.permute.xlu0 %2148 }
 0x621   :  { %v1680_v52 = vpop.permute.xlu1 %1679  ;;  %6796 = vmatmul.mubr.msk.f32.gmra.mxu0 %vm1070_vm1, %v1660_v23 }
 0x622   :  { %6798 = vmatprep.mubr.msk.f32.mxu0 %vm1070_vm1, %v1662_v15 }
 0x623   :  { %v2145_v59 = vpop.permute.xlu0 %2144 }
 0x625   :  { %v2159_v38 = vpop.permute.xlu1 %2158  ;;  %6799 = vmatmul.mubr.msk.f32.gmra.mxu0 %vm1070_vm1, %v1664_v57 }
 0x626   :  { %6801 = vmatprep.mubr.msk.f32.mxu0 %vm1070_vm1, %v1666_v9  ;;  %6815 = vmatprep.subr.mxu0 %v2159_v38 }
 0x627   :  { %7342 = vmatprep.subr.mxu1 %v2159_v38  ;;  %6816 = vmatpush3.msra.mxu0 %v2159_v38  ;;  %v2141_v11 = vpop.permute.xlu0 %2140 }
 0x628   :  { %7358 = vmatpush3.msra.mxu1 %v2159_v38 }
 0x629   :  { %v2157_v41 = vpop.permute.xlu1 %2156  ;;  %6802 = vmatmul.mubr.msk.f32.gmra.mxu0 %vm1070_vm1, %v1668_v53 }
 0x62a   :  { %6804 = vmatprep.mubr.msk.f32.mxu0 %vm1070_vm1, %v1670_v44  ;;  %6817 = vmatprep.subr.mxu0 %v2157_v41 }
 0x62b   :  { %7343 = vmatprep.subr.mxu1 %v2157_v41  ;;  %6818 = vmatpush3.msra.mxu0 %v2157_v41 }
 0x62c   :  { %7359 = vmatpush3.msra.mxu1 %v2157_v41 }
 0x62d   :  { %v2155_v23 = vpop.permute.xlu1 %2154  ;;  %6805 = vmatmul.mubr.msk.f32.gmra.mxu0 %vm1070_vm1, %v1672_v33 }
 0x62e   :  { %6807 = vmatprep.mubr.msk.f32.mxu0 %vm1070_vm1, %v1674_v25  ;;  %6819 = vmatprep.subr.mxu0 %v2155_v23 }
 0x62f   :  { %7344 = vmatprep.subr.mxu1 %v2155_v23  ;;  %6820 = vmatpush3.msra.mxu0 %v2155_v23 }
 0x630   :  { %7360 = vmatpush3.msra.mxu1 %v2155_v23  ;;  %6821 = vmatprep.subr.mxu0 %v2153_v19 }
 0x631   :  { %7345 = vmatprep.subr.mxu1 %v2153_v19  ;;  %v2151_v5 = vpop.permute.xlu1 %2150  ;;  %6808 = vmatmul.mubr.msk.f32.gmra.mxu0 %vm1070_vm1, %v1676_v47 }
 0x632   :  { %6822 = vmatpush3.msra.mxu0 %v2153_v19  ;;  %7361 = vmatpush3.msra.mxu1 %v2153_v19  ;;  %v11331_v19 = vld [vmem:[#allocation59_spill] sm:$0xff] }
 0x633   :  { %6810 = vmatprep.mubr.msk.f32.mxu0 %vm1070_vm1, %v1678_v45  ;;  %6823 = vmatprep.subr.mxu0 %v2151_v5 }
 0x634   :  { %7346 = vmatprep.subr.mxu1 %v2151_v5  ;;  %6824 = vmatpush3.msra.mxu0 %v2151_v5 }
 0x635   :  { %7362 = vmatpush3.msra.mxu1 %v2151_v5  ;;  %6825 = vmatprep.subr.mxu0 %v2149_v29  ;;  %v2147_v15 = vpop.permute.xlu1 %2146  ;;  %v11332_v5 = vld [vmem:[#allocation62_spill] sm:$0xff] }
 0x636   :  { %7347 = vmatprep.subr.mxu1 %v2149_v29  ;;  %6811 = vmatmul.mubr.msk.f32.gmra.mxu0 %vm1070_vm1, %v1680_v52  ;;  %v11330_v52 = vld [vmem:[#allocation60_spill] sm:$0xff] }
 0x637   :  { %6826 = vmatpush3.msra.mxu0 %v2149_v29  ;;  %7363 = vmatpush3.msra.mxu1 %v2149_v29 }
 0x638   :  { %6827 = vmatprep.subr.mxu0 %v2147_v15  ;;  %7348 = vmatprep.subr.mxu1 %v2147_v15 }
 0x639   :  { %6828 = vmatpush3.msra.mxu0 %v2147_v15  ;;  %7364 = vmatpush3.msra.mxu1 %v2147_v15  ;;  %v2143_v49 = vpop.permute.xlu1 %2142 }
 0x63a   :  { %6829 = vmatprep.subr.mxu0 %v2145_v59  ;;  %7349 = vmatprep.subr.mxu1 %v2145_v59 }
 0x63b   :  { %6830 = vmatpush3.msra.mxu0 %v2145_v59  ;;  %7365 = vmatpush3.msra.mxu1 %v2145_v59 }
 0x63c   :  { %6831 = vmatprep.subr.mxu0 %v2143_v49  ;;  %7350 = vmatprep.subr.mxu1 %v2143_v49 }
 0x63d   :  { %6832 = vmatpush3.msra.mxu0 %v2143_v49  ;;  %7366 = vmatpush3.msra.mxu1 %v2143_v49  ;;  %v2139_v32 = vpop.permute.xlu1 %2138  ;;  %v11333_v49 = vld [vmem:[#allocation61_spill] sm:$0xff] }
 0x63e   :  { %6833 = vmatprep.subr.mxu0 %v2141_v11  ;;  %7351 = vmatprep.subr.mxu1 %v2141_v11 }
 0x63f   :  { %6834 = vmatpush3.msra.mxu0 %v2141_v11  ;;  %7367 = vmatpush3.msra.mxu1 %v2141_v11 }
 0x640   :  { %6835 = vmatprep.subr.mxu0 %v2139_v32  ;;  %7352 = vmatprep.subr.mxu1 %v2139_v32 }
 0x641   :  { %6836 = vmatpush3.msra.mxu0 %v2139_v32  ;;  %7368 = vmatpush3.msra.mxu1 %v2139_v32 }
 0x64d   :  { %v9008_v9 = vpop.f32.mrf.mxu0 }
 0x64f   :  { %v9010_v12 = vpop.f32.mrf.mxu0 }
 0x684   :  { %v9012_v55 = vpop.f32.mrf.mxu0 }
 0x685   :  { %11314 = vst [vmem:[#allocation72_spill] sm:$0xff] %v9012_v55 }
 0x686   :  { %v9014_v36 = vpop.f32.mrf.mxu0 }
 0x688   :  { %v9016_v13 = vpop.f32.mrf.mxu0 }
 0x689   :  { %11315 = vst [vmem:[#allocation73_spill] sm:$0xff] %v9016_v13 }
 0x68a   :  { %v9018_v60 = vpop.f32.mrf.mxu0 }
 0x68b   :  { %11316 = vst [vmem:[#allocation74_spill] sm:$0xff] %v9018_v60 }
 0x690   :  { %v9020_v43 = vpop.f32.mrf.mxu0 }
 0x691   :  { %11317 = vst [vmem:[#allocation75_spill] sm:$0xff] %v9020_v43 }
 0x692   :  { %v9022_v48 = vpop.f32.mrf.mxu0 }
 0x693   :  { %11318 = vst [vmem:[#allocation76_spill] sm:$0xff] %v9022_v48 }
 0x694   :  { %v9024_v39 = vpop.f32.mrf.mxu0 }
 0x695   :  { %11319 = vst [vmem:[#allocation77_spill] sm:$0xff] %v9024_v39 }
 0x696   :  { %v9026_v44 = vpop.f32.mrf.mxu0 }
 0x697   :  { %11320 = vst [vmem:[#allocation78_spill] sm:$0xff] %v9026_v44 }
 0x6cd   :  { %v9028_v7 = vpop.f32.mrf.mxu0 }
 0x6ce   :  { %11321 = vst [vmem:[#allocation79_spill] sm:$0xff] %v9028_v7 }
 0x6cf   :  { %v9030_v28 = vpop.f32.mrf.mxu0 }
 0x6d0   :  { %11322 = vst [vmem:[#allocation80_spill] sm:$0xff] %v9030_v28  ;;  %v11346_v28 = vld [vmem:[#allocation45_spill] sm:$0xff] }
 0x6d1   :  { %v9032_v63 = vpop.f32.mrf.mxu0 }
 0x6d2   :  { %11323 = vst [vmem:[#allocation81_spill] sm:$0xff] %v9032_v63 }
 0x6d3   :  { %v9034_v34 = vpop.f32.mrf.mxu0 }
 0x6d4   :  { %11324 = vst [vmem:[#allocation82_spill] sm:$0xff] %v9034_v34 }
 0x6d5   :  { %v9036_v35 = vpop.f32.mrf.mxu0 }
 0x6d6   :  { %11325 = vst [vmem:[#allocation83_spill] sm:$0xff] %v9036_v35 }
 0x6d7   :  { %v9038_v25 = vpop.f32.mrf.mxu0 }
 0x6d8   :  { %11326 = vst [vmem:[#allocation84_spill] sm:$0xff] %v9038_v25 }
 0x6d9   :  { %v6791_v51 = vpop.f32.mrf.mxu0 }
 0x6da   :  { %v1849_v6 = vadd.f32 %v6791_v51, %v11327_v27  ;;  %v11334_v51 = vld [vmem:[#allocation64_spill] sm:$0xff] }
 0x6db   :  { %v1843_v57 = vpop.f32.mrf.mxu0 }
 0x6dc   :  { %v1844_v45 = vadd.f32 %v1843_v57, %v11328_v16  ;;  %1924 = vmax.xlane.f32.xlu1 %v1849_v6  ;;  %v11335_v16 = vld [vmem:[#allocation63_spill] sm:$0xff] }
 0x6dd   :  { %v6794_v56 = vpop.f32.mrf.mxu0 }
 0x6de   :  { %1922 = vmax.xlane.f32.xlu0 %v1844_v45  ;;  %v9043_v33 = vadd.f32 %v6794_v56, %v11329_v40  ;;  %v11336_v40 = vld [vmem:[#allocation66_spill] sm:$0xff] }
 0x6df   :  { %v1853_v53 = vpop.f32.mrf.mxu0 }
 0x6e0   :  { %v9050_v23 = vadd.f32 %v1853_v53, %v11331_v19 }
 0x6e1   :  { %v6797_v47 = vpop.f32.mrf.mxu0 }
 0x6e2   :  { %v9046_v38 = vadd.f32 %v6797_v47, %v11330_v52  ;;  %1928 = vmax.xlane.f32.xlu0 %v9043_v33 }
 0x6e3   :  { %v1863_v41 = vpop.f32.mrf.mxu0 }
 0x6e4   :  { %1932 = vmax.xlane.f32.xlu1 %v9046_v38  ;;  %v9058_v11 = vadd.f32 %v1863_v41, %v11333_v49  ;;  %v11337_v41 = vld [vmem:[#allocation65_spill] sm:$0xff] }
 0x6e5   :  { %v6800_v29 = vpop.f32.mrf.mxu0 }
 0x6e6   :  { %v9054_v15 = vadd.f32 %v6800_v29, %v11332_v5  ;;  %1926 = vmax.xlane.f32.xlu0 %v9050_v23  ;;  %v11338_v5 = vld [vmem:[#allocation68_spill] sm:$0xff] }
 0x6e7   :  { %v1873_v59 = vpop.f32.mrf.mxu0 }
 0x6e8   :  { %1936 = vmax.xlane.f32.xlu1 %v9054_v15  ;;  %v9066_v56 = vadd.f32 %v1873_v59, %v11335_v16 }
 0x6e9   :  { %v6803_v32 = vpop.f32.mrf.mxu0 }
 0x6ea   :  { %v9062_v27 = vadd.f32 %v6803_v32, %v11334_v51  ;;  %1930 = vmax.xlane.f32.xlu0 %v9058_v11  ;;  %v11339_v32 = vld [vmem:[#allocation67_spill] sm:$0xff] }
 0x6eb   :  { %v1883_v57 = vpop.f32.mrf.mxu0 }
 0x6ec   :  { %1940 = vmax.xlane.f32.xlu1 %v9062_v27  ;;  %v9074_v19 = vadd.f32 %v1883_v57, %v11337_v41 }
 0x6ed   :  { %v6806_v53 = vpop.f32.mrf.mxu0 }
 0x6ee   :  { %v9070_v47 = vadd.f32 %v6806_v53, %v11336_v40  ;;  %1934 = vmax.xlane.f32.xlu0 %v9066_v56  ;;  %v11340_v53 = vld [vmem:[#allocation70_spill] sm:$0xff]  ;;  %v11341_v40 = vld [vmem:[#allocation69_spill] sm:$0xff] }
 0x6ef   :  { %v1893_v52 = vpop.f32.mrf.mxu0 }
 0x6f0   :  { %1944 = vmax.xlane.f32.xlu1 %v9070_v47  ;;  %v9082_v51 = vadd.f32 %v1893_v52, %v11339_v32  ;;  %v11343_v52 = vld [vmem:[#allocation43_spill] sm:$0xff]  ;;  %v11344_v32 = vld [vmem:[#allocation42_spill] sm:$0xff] }
 0x6f1   :  { %v6809_v29 = vpop.f32.mrf.mxu0 }
 0x6f2   :  { %v9078_v49 = vadd.f32 %v6809_v29, %v11338_v5  ;;  %1938 = vmax.xlane.f32.xlu0 %v9074_v19  ;;  %v11342_v29 = vld [vmem:[#allocation71_spill] sm:$0xff] }
 0x6f3   :  { %v1903_v59 = vpop.f32.mrf.mxu0 }
 0x6f4   :  { %1948 = vmax.xlane.f32.xlu1 %v9078_v49  ;;  %v9090_v41 = vadd.f32 %v1903_v59, %v11341_v40 }
 0x6f6   :  { %v6812_v16 = vpop.f32.mrf.mxu0  ;;  %1942 = vmax.xlane.f32.xlu0 %v9082_v51 }
 0x6f7   :  { %v9087_v57 = vadd.f32 %v6812_v16, %v11340_v53 }
 0x6f8   :  { %v1913_v1 = vpop.f32.mrf.mxu0 }
 0x6f9   :  { %1952 = vmax.xlane.f32.xlu1 %v9087_v57  ;;  %v9095_v5 = vadd.f32 %v1913_v1, %v11342_v29 }
 0x6fa   :  { %1946 = vmax.xlane.f32.xlu0 %v9090_v41 }
 0x6fe   :  { %1950 = vmax.xlane.f32.xlu0 %v9095_v5 }
 0x70a   :  { %2134 = vrot.lane.b32.xlu1 %v11343_v52, %s7874_s22 }
 0x714   :  { %2136 = vrot.lane.b32.xlu0 %v11344_v32, %s7874_s22 }
 0x765   :  { %v1925_v16 = vpop.xlane.xlu1 %1924 }
 0x766   :  { %v1955_v53 = vsub.f32 %v1849_v6, %v1925_v16 }
 0x767   :  { %v1923_v59 = vpop.xlane.xlu0 %1922 }
 0x768   :  { %v1972_v40 = vmul.f32 1.442695, %v1955_v53  ;;  %v1954_v18 = vsub.f32 %v1844_v45, %v1923_v59 }
 0x76a   :  { %7478 = vpow2.f32 %v1972_v40  ;;  %v1970_v4 = vmul.f32 1.442695, %v1954_v18  ;;  %v11345_v40 = vld [vmem:[#allocation46_spill] sm:$0xff] }
 0x76b   :  { %v1929_v8 = vpop.xlane.xlu0 %1928 }
 0x76c   :  { %7480 = vpow2.f32 %v1970_v4  ;;  %v1957_v39 = vsub.f32 %v9043_v33, %v1929_v8 }
 0x76d   :  { %v1933_v2 = vpop.xlane.xlu1 %1932 }
 0x76e   :  { %v1976_v43 = vmul.f32 1.442695, %v1957_v39  ;;  %v1959_v48 = vsub.f32 %v9046_v38, %v1933_v2 }
 0x76f   :  { %v1927_v1 = vpop.xlane.xlu0 %1926 }
 0x770   :  { %v1956_v44 = vsub.f32 %v9050_v23, %v1927_v1  ;;  %7482 = vpow2.f32 %v1976_v43  ;;  %v1980_v55 = vmul.f32 1.442695, %v1959_v48 }
 0x771   :  { %v1937_v29 = vpop.xlane.xlu1 %1936 }
 0x772   :  { %v1974_v13 = vmul.f32 1.442695, %v1956_v44 }
 0x773   :  { %v1931_v35 = vpop.xlane.xlu0 %1930 }
 0x774   :  { %7484 = vpow2.f32 %v1974_v13 }
 0x775   :  { %v1941_v25 = vpop.xlane.xlu1 %1940 }
 0x777   :  { %v9102_v63 = vpop.eup %7478  ;;  %v1935_v52 = vpop.xlane.xlu0 %1934 }
 0x778   :  { %2004 = vadd.xlane.f32.xlu1 %v9102_v63  ;;  %v1960_v39 = vsub.f32 %v9066_v56, %v1935_v52 }
 0x779   :  { %v9105_v32 = vpop.eup %7480  ;;  %v1945_v6 = vpop.xlane.xlu1 %1944 }
 0x77a   :  { %2002 = vadd.xlane.f32.xlu0 %v9105_v32  ;;  %v1965_v8 = vsub.f32 %v9070_v47, %v1945_v6  ;;  %v1982_v43 = vmul.f32 1.442695, %v1960_v39  ;;  %v11357_v39 = vld [vmem:[#allocation53_spill] sm:$0xff] }
 0x77b   :  { %v1939_v45 = vpop.xlane.xlu0 %1938 }
 0x77c   :  { %v1992_v23 = vmul.f32 1.442695, %v1965_v8  ;;  %v1962_v44 = vsub.f32 %v9074_v19, %v1939_v45  ;;  %v11355_v8 = vld [vmem:[#allocation39_spill] sm:$0xff] }
 0x77d   :  { %v1949_v18 = vpop.xlane.xlu1 %1948 }
 0x77e   :  { %v1967_v2 = vsub.f32 %v9078_v49, %v1949_v18  ;;  %v11348_v18 = vld [vmem:[#allocation51_spill] sm:$0xff] }
 0x77f   :  { %v1943_v16 = vpop.xlane.xlu0 %1942 }
 0x780   :  { %v1996_v13 = vmul.f32 1.442695, %v1967_v2 }
 0x782   :  { %v1953_v4 = vpop.xlane.xlu1 %1952 }
 0x783   :  { %v1947_v53 = vpop.xlane.xlu0 %1946  ;;  %v1969_v48 = vsub.f32 %v9087_v57, %v1953_v4  ;;  %v11350_v4 = vld [vmem:[#allocation48_spill] sm:$0xff] }
 0x786   :  { %v2135_v7 = vpop.permute.xlu1 %2134 }
 0x787   :  { %v9108_v59 = vpop.xlane.xlu0 %1950 }
 0x788   :  { %v1968_v19 = vsub.f32 %v9095_v5, %v9108_v59  ;;  %v11351_v59 = vld [vmem:[#allocation49_spill] sm:$0xff] }
 0x789   :  { %2130 = vrot.lane.b32.xlu1 %v11345_v40, %s7874_s22  ;;  %v1961_v40 = vsub.f32 %v9054_v15, %v1937_v29 }
 0x78a   :  { %v1998_v57 = vmul.f32 1.442695, %v1968_v19 }
 0x78b   :  { %v2137_v34 = vpop.permute.xlu0 %2136  ;;  %v1984_v60 = vmul.f32 1.442695, %v1961_v40  ;;  %v11352_v40 = vld [vmem:[#allocation41_spill] sm:$0xff] }
 0x78c   :  { %6837 = vmatprep.subr.mxu0 %v2137_v34  ;;  %7353 = vmatprep.subr.mxu1 %v2137_v34 }
 0x78d   :  { %6838 = vmatpush3.msra.mxu0 %v2137_v34  ;;  %7369 = vmatpush3.msra.mxu1 %v2137_v34  ;;  %v1963_v34 = vsub.f32 %v9062_v27, %v1941_v25  ;;  %7486 = vpow2.f32 %v1984_v60  ;;  %v9125_v60 = vpop.eup %7482  ;;  %v2000_v25 = vmul.f32 1.442695, %v1969_v48  ;;  %v176_v48 = vld [vmem:[#allocation7 + $0x60] sm:$0xff] }
 0x78e   :  { %6839 = vmatprep.subr.mxu0 %v2135_v7  ;;  %7354 = vmatprep.subr.mxu1 %v2135_v7  ;;  %7488 = vpow2.f32 %v1980_v55  ;;  %v1964_v55 = vsub.f32 %v9082_v51, %v1943_v16  ;;  %v11347_v16 = vld [vmem:[#allocation50_spill] sm:$0xff] }
 0x78f   :  { %6840 = vmatpush3.msra.mxu0 %v2135_v7  ;;  %7370 = vmatpush3.msra.mxu1 %v2135_v7  ;;  %v1958_v7 = vsub.f32 %v9058_v11, %v1931_v35  ;;  %v1986_v35 = vmul.f32 1.442695, %v1962_v44  ;;  %v1966_v11 = vsub.f32 %v9090_v41, %v1947_v53  ;;  %v11349_v53 = vld [vmem:[#allocation47_spill] sm:$0xff] }
 0x790   :  { %2132 = vrot.lane.b32.xlu0 %v11346_v28, %s7874_s22  ;;  %v1988_v28 = vmul.f32 1.442695, %v1963_v34  ;;  %v1990_v15 = vmul.f32 1.442695, %v1964_v55  ;;  %v11353_v34 = vld [vmem:[#allocation44_spill] sm:$0xff] }
 0x791   :  { %v1978_v33 = vmul.f32 1.442695, %v1958_v7  ;;  %v1994_v47 = vmul.f32 1.442695, %v1966_v11  ;;  %v11354_v7 = vld [vmem:[#allocation52_spill] sm:$0xff] }
 0x792   :  { %7490 = vpow2.f32 %v1988_v28  ;;  %v9129_v28 = vpop.eup %7484 }
 0x793   :  { %7492 = vpow2.f32 %v1978_v33  ;;  %v11356_v33 = vld [vmem:[#allocation55_spill] sm:$0xff] }
 0x794   :  { %7494 = vpow2.f32 %v1992_v23  ;;  %v11358_v23 = vld [vmem:[#allocation54_spill] sm:$0xff] }
 0x795   :  { %7496 = vpow2.f32 %v1982_v43 }
 0x796   :  { %7498 = vpow2.f32 %v1996_v13 }
 0x797   :  { %7500 = vpow2.f32 %v1986_v35  ;;  %v9223_v35 = vld [vmem:[#allocation7 + $0x68] sm:$0xff] }
 0x798   :  { %7502 = vpow2.f32 %v2000_v25 }
 0x799   :  { %7504 = vpow2.f32 %v1990_v15 }
 0x79a   :  { %v9132_v38 = vpop.eup %7486  ;;  %7506 = vpow2.f32 %v1994_v47 }
 0x79b   :  { %v9136_v27 = vpop.eup %7488  ;;  %7508 = vpow2.f32 %v1998_v57 }
 0x79f   :  { %v9139_v56 = vpop.eup %7490 }
 0x7a0   :  { %v9144_v49 = vpop.eup %7492 }
 0x7a1   :  { %v9147_v51 = vpop.eup %7494 }
 0x7a2   :  { %v9150_v41 = vpop.eup %7496 }
 0x7a3   :  { %v9153_v52 = vpop.eup %7498 }
 0x7a4   :  { %v9156_v5 = vpop.eup %7500 }
 0x7a5   :  { %v9159_v1 = vpop.eup %7502 }
 0x7a6   :  { %v9162_v29 = vpop.eup %7504 }
 0x7a7   :  { %v9165_v6 = vpop.eup %7506 }
 0x7a8   :  { %v9168_v45 = vpop.eup %7508 }
 0x7ad   :  { %2008 = vadd.xlane.f32.xlu1 %v9125_v60 }
 0x7af   :  { %2006 = vadd.xlane.f32.xlu0 %v9129_v28 }
 0x7b1   :  { %2016 = vadd.xlane.f32.xlu1 %v9132_v38 }
 0x7b3   :  { %2012 = vadd.xlane.f32.xlu0 %v9136_v27 }
 0x7b5   :  { %2020 = vadd.xlane.f32.xlu1 %v9139_v56 }
 0x7b7   :  { %2010 = vadd.xlane.f32.xlu0 %v9144_v49 }
 0x7b9   :  { %2024 = vadd.xlane.f32.xlu1 %v9147_v51 }
 0x7bb   :  { %2014 = vadd.xlane.f32.xlu0 %v9150_v41 }
 0x7bd   :  { %2028 = vadd.xlane.f32.xlu1 %v9153_v52 }
 0x7bf   :  { %2018 = vadd.xlane.f32.xlu0 %v9156_v5 }
 0x7c1   :  { %2032 = vadd.xlane.f32.xlu1 %v9159_v1 }
 0x7c3   :  { %2022 = vadd.xlane.f32.xlu0 %v9162_v29 }
 0x7c7   :  { %2026 = vadd.xlane.f32.xlu0 %v9165_v6 }
 0x7cb   :  { %2030 = vadd.xlane.f32.xlu0 %v9168_v45 }
 0x7d2   :  { %2769 = vrot.lane.b32.xlu1 %v11347_v16, %s7875_s23 }
 0x7d6   :  { %2767 = vrot.lane.b32.xlu1 %v11348_v18, %s7875_s23 }
 0x7da   :  { %2765 = vrot.lane.b32.xlu1 %v11349_v53, %s7875_s23 }
 0x7de   :  { %2761 = vrot.lane.b32.xlu1 %v11350_v4, %s7875_s23 }
 0x7e1   :  { %2771 = vrot.lane.b32.xlu0 %v11351_v59, %s7875_s23 }
 0x7e2   :  { %2757 = vrot.lane.b32.xlu1 %v11352_v40, %s7875_s23 }
 0x7e5   :  { %2763 = vrot.lane.b32.xlu0 %v11353_v34, %s7875_s23 }
 0x7e6   :  { %2753 = vrot.lane.b32.xlu1 %v11354_v7, %s7875_s23 }
 0x7e9   :  { %2759 = vrot.lane.b32.xlu0 %v11355_v8, %s7875_s23 }
 0x7ea   :  { %2749 = vrot.lane.b32.xlu1 %v11356_v33, %s7875_s23 }
 0x7ed   :  { %2755 = vrot.lane.b32.xlu0 %v11357_v39, %s7875_s23 }
 0x7ee   :  { %2745 = vrot.lane.b32.xlu1 %v8588_v61, %s7875_s23 }
 0x7f1   :  { %2751 = vrot.lane.b32.xlu0 %v11358_v23, %s7875_s23 }
 0x7f2   :  { %2741 = vrot.lane.b32.xlu1 %v8600_v26, %s7875_s23 }
 0x7f5   :  { %2747 = vrot.lane.b32.xlu0 %v8580_v17, %s7875_s23 }
 0x7f6   :  { %2711 = vrot.lane.b32.xlu1 %v8312_v20, %s7875_s23 }
 0x7f9   :  { %2743 = vrot.lane.b32.xlu0 %v8386_v58, %s7875_s23 }
 0x7fa   :  { %2715 = vrot.lane.b32.xlu1 %v8322_v21, %s7875_s23 }
 0x7fd   :  { %2709 = vrot.lane.b32.xlu0 %v8317_v10, %s7875_s23 }
 0x7fe   :  { %2719 = vrot.lane.b32.xlu1 %v8333_v30, %s7875_s23 }
 0x801   :  { %v2005_v2 = vpop.xlane.xlu1 %2004  ;;  %2713 = vrot.lane.b32.xlu0 %v8610_v42, %s7875_s23 }
 0x802   :  { %7510 = vrcp.f32 %v2005_v2  ;;  %2723 = vrot.lane.b32.xlu1 %v8340_v46, %s7875_s23 }
 0x803   :  { %v2003_v43 = vpop.xlane.xlu0 %2002 }
 0x804   :  { %7512 = vrcp.f32 %v2003_v43 }
 0x805   :  { %2717 = vrot.lane.b32.xlu0 %v8618_v24, %s7875_s23  ;;  %v2131_v13 = vpop.permute.xlu1 %2130 }
 0x806   :  { %2727 = vrot.lane.b32.xlu1 %v8345_v50, %s7875_s23 }
 0x807   :  { %v2133_v44 = vpop.permute.xlu0 %2132 }
 0x808   :  { %6841 = vmatprep.subr.mxu0 %v2133_v44  ;;  %7355 = vmatprep.subr.mxu1 %v2133_v44 }
 0x809   :  { %2721 = vrot.lane.b32.xlu0 %v8626_v22, %s7875_s23  ;;  %6842 = vmatpush3.msra.mxu0 %v2133_v44 }
 0x80a   :  { %7371 = vmatpush3.msra.mxu1 %v2133_v44  ;;  %2731 = vrot.lane.b32.xlu1 %v8350_v62, %s7875_s23 }
 0x80b   :  { %6843 = vmatprep.subr.mxu0 %v2131_v13  ;;  %7356 = vmatprep.subr.mxu1 %v2131_v13 }
 0x80c   :  { %6844 = vmatpush3.msra.mxu0 %v2131_v13  ;;  %7372 = vmatpush3.msra.mxu1 %v2131_v13 }
 0x80d   :  { %2725 = vrot.lane.b32.xlu0 %v8634_v31, %s7875_s23  ;;  %6895 = vmatprep.subr.mxu0 %v176_v48 }
 0x80e   :  { %2735 = vrot.lane.b32.xlu1 %v8355_v3, %s7875_s23  ;;  %6869 = vmatprep.subr.mxu1 %v9223_v35 }
 0x80f   :  { %v7511_v55 = vpop.eup %7510 }
 0x810   :  { %v2051_v25 = vmul.f32 %v7511_v55, %v2005_v2 }
 0x811   :  { %v7513_v15 = vpop.eup %7512  ;;  %2729 = vrot.lane.b32.xlu0 %v8642_v37, %s7875_s23 }
 0x812   :  { %v2067_v11 = vsub.f32 2.0, %v2051_v25  ;;  %v2050_v47 = vmul.f32 %v7513_v15, %v2003_v43  ;;  %2739 = vrot.lane.b32.xlu1 %v8365_v14, %s7875_s23 }
 0x814   :  { %v2066_v19 = vsub.f32 2.0, %v2050_v47  ;;  %v2083_v57 = vmul.f32 %v7511_v55, %v2067_v11 }
 0x815   :  { %2733 = vrot.lane.b32.xlu0 %v8650_v54, %s7875_s23 }
 0x816   :  { %3636 = vrot.lane.b32.xlu1 %v11347_v16, %s7876_s24  ;;  %v2082_v44 = vmul.f32 %v7513_v15, %v2066_v19  ;;  %v2099_v13 = vmul.f32 %v9102_v63, %v2083_v57  ;;  %v11360_v63 = vld [vmem:[#allocation74_spill] sm:$0xff] }
 0x817   :  { %v11364_v16 = vld [vmem:[#allocation78_spill] sm:$0xff] }
 0x818   :  { %v2098_v2 = vmul.f32 %v9105_v32, %v2082_v44  ;;  %v11363_v32 = vld [vmem:[#allocation75_spill] sm:$0xff] }
 0x819   :  { %2737 = vrot.lane.b32.xlu0 %v8658_v0, %s7875_s23 }
 0x81a   :  { %3632 = vrot.lane.b32.xlu1 %v11349_v53, %s7876_s24  ;;  %6845 = vmatprep.mubr.f32.mxu0 %v2098_v2  ;;  %v11366_v53 = vld [vmem:[#allocation80_spill] sm:$0xff] }
 0x81b   :  { %6846 = vmatmul.mubr.f32.vlgmr.msra.gmra.mxu0 %v2099_v13 }
 0x81c   :  { %6897 = vmatprep.mubr.msk.f32.mxu0 %vm1070_vm1, %v9010_v12  ;;  %6896 = vmatpush3.msra.mxu0 %v176_v48  ;;  %v11359_v12 = vld [vmem:[#allocation72_spill] sm:$0xff] }
 0x81d   :  { %3638 = vrot.lane.b32.xlu0 %v11351_v59, %s7876_s24  ;;  %v11368_v59 = vld [vmem:[#allocation82_spill] sm:$0xff] }
 0x81e   :  { %3628 = vrot.lane.b32.xlu1 %v11350_v4, %s7876_s24  ;;  %v11367_v4 = vld [vmem:[#allocation79_spill] sm:$0xff] }
 0x81f   :  { %6898 = vmatmul.mubr.msk.f32.vlgmr.msra.gmra.mxu0 %vm1070_vm1, %v9008_v9  ;;  %v11361_v9 = vld [vmem:[#allocation73_spill] sm:$0xff] }
 0x820   :  { %6900 = vmatprep.mubr.msk.f32.mxu0 %vm1070_vm1, %v9014_v36  ;;  %v11362_v36 = vld [vmem:[#allocation76_spill] sm:$0xff] }
 0x821   :  { %3634 = vrot.lane.b32.xlu0 %v11348_v18, %s7876_s24  ;;  %v11365_v18 = vld [vmem:[#allocation77_spill] sm:$0xff] }
 0x822   :  { %3624 = vrot.lane.b32.xlu1 %v11352_v40, %s7876_s24  ;;  %v11369_v40 = vld [vmem:[#allocation81_spill] sm:$0xff] }
 0x823   :  { %6901 = vmatmul.mubr.msk.f32.gmra.mxu0 %vm1070_vm1, %v11359_v12 }
 0x824   :  { %6903 = vmatprep.mubr.msk.f32.mxu0 %vm1070_vm1, %v11360_v63 }
 0x825   :  { %3630 = vrot.lane.b32.xlu0 %v11353_v34, %s7876_s24  ;;  %v11370_v34 = vld [vmem:[#allocation84_spill] sm:$0xff] }
 0x826   :  { %3620 = vrot.lane.b32.xlu1 %v11354_v7, %s7876_s24  ;;  %v11371_v7 = vld [vmem:[#allocation83_spill] sm:$0xff] }
 0x827   :  { %6904 = vmatmul.mubr.msk.f32.gmra.mxu0 %vm1070_vm1, %v11361_v9 }
 0x828   :  { %6906 = vmatprep.mubr.msk.f32.mxu0 %vm1070_vm1, %v11362_v36 }
 0x829   :  { %3626 = vrot.lane.b32.xlu0 %v11355_v8, %s7876_s24 }
 0x82a   :  { %3616 = vrot.lane.b32.xlu1 %v11356_v33, %s7876_s24 }
 0x82b   :  { %6907 = vmatmul.mubr.msk.f32.gmra.mxu0 %vm1070_vm1, %v11363_v32 }
 0x82c   :  { %6909 = vmatprep.mubr.msk.f32.mxu0 %vm1070_vm1, %v11364_v16 }
 0x82d   :  { %3622 = vrot.lane.b32.xlu0 %v11357_v39, %s7876_s24 }
 0x82e   :  { %3612 = vrot.lane.b32.xlu1 %v8588_v61, %s7876_s24 }
 0x82f   :  { %6910 = vmatmul.mubr.msk.f32.gmra.mxu0 %vm1070_vm1, %v11365_v18 }
 0x830   :  { %6912 = vmatprep.mubr.msk.f32.mxu0 %vm1070_vm1, %v11366_v53 }
 0x831   :  { %3618 = vrot.lane.b32.xlu0 %v11358_v23, %s7876_s24 }
 0x832   :  { %3608 = vrot.lane.b32.xlu1 %v8600_v26, %s7876_s24 }
 0x833   :  { %6913 = vmatmul.mubr.msk.f32.gmra.mxu0 %vm1070_vm1, %v11367_v4 }
 0x834   :  { %6915 = vmatprep.mubr.msk.f32.mxu0 %vm1070_vm1, %v11368_v59 }
 0x835   :  { %3614 = vrot.lane.b32.xlu0 %v8580_v17, %s7876_s24 }
 0x836   :  { %3578 = vrot.lane.b32.xlu1 %v8312_v20, %s7876_s24  ;;  %v2009_v61 = vpop.xlane.xlu1 %2008 }
 0x837   :  { %7514 = vrcp.f32 %v2009_v61  ;;  %6916 = vmatmul.mubr.msk.f32.gmra.mxu0 %vm1070_vm1, %v11369_v40 }
 0x838   :  { %6918 = vmatprep.mubr.msk.f32.mxu0 %vm1070_vm1, %v11370_v34  ;;  %v2007_v26 = vpop.xlane.xlu0 %2006 }
 0x839   :  { %7516 = vrcp.f32 %v2007_v26  ;;  %3610 = vrot.lane.b32.xlu0 %v8386_v58, %s7876_s24 }
 0x83a   :  { %3582 = vrot.lane.b32.xlu1 %v8322_v21, %s7876_s24  ;;  %v2017_v17 = vpop.xlane.xlu1 %2016 }
 0x83b   :  { %6919 = vmatmul.mubr.msk.f32.gmra.mxu0 %vm1070_vm1, %v11371_v7 }
 0x83c   :  { %v2013_v20 = vpop.xlane.xlu0 %2012 }
 0x83d   :  { %7518 = vrcp.f32 %v2013_v20  ;;  %3576 = vrot.lane.b32.xlu0 %v8317_v10, %s7876_s24 }
 0x83e   :  { %7520 = vrcp.f32 %v2017_v17  ;;  %3586 = vrot.lane.b32.xlu1 %v8333_v30, %s7876_s24  ;;  %v2021_v8 = vpop.xlane.xlu1 %2020 }
 0x840   :  { %v2011_v33 = vpop.xlane.xlu0 %2010 }
 0x841   :  { %7522 = vrcp.f32 %v2011_v33  ;;  %3580 = vrot.lane.b32.xlu0 %v8610_v42, %s7876_s24 }
 0x842   :  { %7524 = vrcp.f32 %v2021_v8  ;;  %3590 = vrot.lane.b32.xlu1 %v8340_v46, %s7876_s24  ;;  %v2025_v21 = vpop.xlane.xlu1 %2024 }
 0x844   :  { %v7515_v58 = vpop.eup %7514  ;;  %v2015_v39 = vpop.xlane.xlu0 %2014 }
 0x845   :  { %v2053_v23 = vmul.f32 %v7515_v58, %v2009_v61  ;;  %7526 = vrcp.f32 %v2015_v39  ;;  %3584 = vrot.lane.b32.xlu0 %v8618_v24, %s7876_s24 }
 0x846   :  { %v7517_v10 = vpop.eup %7516  ;;  %7528 = vrcp.f32 %v2025_v21  ;;  %3594 = vrot.lane.b32.xlu1 %v8345_v50, %s7876_s24  ;;  %v9320_v30 = vpop.xlane.xlu1 %2028 }
 0x847   :  { %v2069_v42 = vsub.f32 2.0, %v2053_v23  ;;  %v2052_v43 = vmul.f32 %v7517_v10, %v2007_v26 }
 0x848   :  { %v2019_v48 = vpop.xlane.xlu0 %2018 }
 0x849   :  { %v2068_v55 = vsub.f32 2.0, %v2052_v43  ;;  %7530 = vrcp.f32 %v2019_v48  ;;  %3588 = vrot.lane.b32.xlu0 %v8626_v22, %s7876_s24  ;;  %v2085_v50 = vmul.f32 %v7515_v58, %v2069_v42  ;;  %v11373_v58 = vld [vmem:[#allocation32_spill] sm:$0xff] }
 0x84a   :  { %v7519_v46 = vpop.eup %7518  ;;  %7532 = vrcp.f32 %v9320_v30  ;;  %3598 = vrot.lane.b32.xlu1 %v8350_v62, %s7876_s24  ;;  %v9327_v24 = vpop.xlane.xlu1 %2032 }
 0x84b   :  { %v7521_v25 = vpop.eup %7520  ;;  %v2055_v15 = vmul.f32 %v7519_v46, %v2013_v20  ;;  %v2084_v47 = vmul.f32 %v7517_v10, %v2068_v55  ;;  %v2101_v13 = vmul.f32 %v9125_v60, %v2085_v50  ;;  %v11374_v55 = vld [vmem:[#allocation28_spill] sm:$0xff] }
 0x84c   :  { %v2023_v11 = vpop.xlane.xlu0 %2022  ;;  %v2057_v57 = vmul.f32 %v7521_v25, %v2017_v17 }
 0x84d   :  { %7534 = vrcp.f32 %v2023_v11  ;;  %3592 = vrot.lane.b32.xlu0 %v8634_v31, %s7876_s24  ;;  %v2071_v22 = vsub.f32 2.0, %v2055_v15  ;;  %v2100_v44 = vmul.f32 %v9129_v28, %v2084_v47 }
 0x84e   :  { %v7523_v19 = vpop.eup %7522  ;;  %7536 = vrcp.f32 %v9327_v24  ;;  %3602 = vrot.lane.b32.xlu1 %v8355_v3, %s7876_s24  ;;  %v9334_v62 = vpop.permute.xlu1 %2769  ;;  %v2073_v36 = vsub.f32 2.0, %v2057_v57 }
 0x84f   :  { %v7525_v2 = vpop.eup %7524  ;;  %v2054_v12 = vmul.f32 %v7523_v19, %v2011_v33  ;;  %6848 = vmatprep.mubr.f32.mxu1 %v2100_v44  ;;  %v2087_v28 = vmul.f32 %v7519_v46, %v2071_v22 }
 0x850   :  { %v2027_v63 = vpop.xlane.xlu0 %2026  ;;  %6849 = vmatmul.mubr.f32.vlgmr.msra.gmra.mxu1 %v2101_v13  ;;  %v2059_v32 = vmul.f32 %v7525_v2, %v2021_v8  ;;  %v2089_v26 = vmul.f32 %v7521_v25, %v2073_v36 }
 0x851   :  { %v2070_v9 = vsub.f32 2.0, %v2054_v12  ;;  %7538 = vrcp.f32 %v2027_v63  ;;  %3596 = vrot.lane.b32.xlu0 %v8642_v37, %s7876_s24  ;;  %6870 = vmatpush3.msra.mxu1 %v9223_v35  ;;  %v2103_v35 = vmul.f32 %v9136_v27, %v2087_v28  ;;  %v11377_v12 = vld [vmem:[#allocation36_spill] sm:$0xff] }
 0x852   :  { %v7527_v31 = vpop.eup %7526  ;;  %3604 = vrot.lane.b32.xlu1 %v8658_v0, %s7876_s24  ;;  %v9342_v3 = vpop.permute.xlu1 %2767  ;;  %v2075_v61 = vsub.f32 2.0, %v2059_v32  ;;  %v11372_v0 = vld [vmem:[#allocation29_spill] sm:$0xff]  ;;  %v2105_v23 = vmul.f32 %v9132_v38, %v2089_v26  ;;  %v11375_v38 = vld [vmem:[#allocation34_spill] sm:$0xff] }
 0x853   :  { %v7529_v60 = vpop.eup %7528  ;;  %v2056_v16 = vmul.f32 %v7527_v31, %v2015_v39  ;;  %v2086_v18 = vmul.f32 %v7523_v19, %v2070_v9 }
 0x854   :  { %v2031_v53 = vpop.xlane.xlu0 %2030  ;;  %v2061_v40 = vmul.f32 %v7529_v60, %v2025_v21  ;;  %v2091_v10 = vmul.f32 %v7525_v2, %v2075_v61 }
 0x855   :  { %v2072_v4 = vsub.f32 2.0, %v2056_v16  ;;  %7540 = vrcp.f32 %v2031_v53  ;;  %3600 = vrot.lane.b32.xlu0 %v8650_v54, %s7876_s24  ;;  %v2102_v37 = vmul.f32 %v9144_v49, %v2086_v18  ;;  %v11379_v16 = vld [vmem:[#allocation38_spill] sm:$0xff] }
 0x856   :  { %v7531_v59 = vpop.eup %7530  ;;  %3202 = vrot.lane.b32.xlu1 %v11372_v0, %s7875_s23  ;;  %v9350_v34 = vpop.permute.xlu1 %2765  ;;  %v2077_v21 = vsub.f32 2.0, %v2061_v40 }
 0x857   :  { %v7533_v17 = vpop.eup %7532  ;;  %v2058_v7 = vmul.f32 %v7531_v59, %v2019_v48  ;;  %6851 = vmatprep.mubr.f32.mxu1 %v2102_v37  ;;  %v2088_v20 = vmul.f32 %v7527_v31, %v2072_v4 }
 0x858   :  { %6852 = vmatmul.mubr.f32.gmra.mxu1 %v2103_v35  ;;  %v9353_v8 = vpop.permute.xlu0 %2771  ;;  %v2063_v27 = vmul.f32 %v7533_v17, %v9320_v30  ;;  %v2093_v47 = vmul.f32 %v7529_v60, %v2077_v21  ;;  %v11378_v60 = vld [vmem:[#allocation31_spill] sm:$0xff] }
 0x859   :  { %v2074_v54 = vsub.f32 2.0, %v2058_v7  ;;  %3606 = vrot.lane.b32.xlu0 %v8365_v14, %s7876_s24  ;;  %6921 = vmatprep.subr.msk.mxu1 %vm1070_vm1, %v9353_v8  ;;  %v2104_v49 = vmul.f32 %v9150_v41, %v2088_v20  ;;  %v11382_v7 = vld [vmem:[#allocation37_spill] sm:$0xff] }
 0x85a   :  { %v7535_v33 = vpop.eup %7534  ;;  %3196 = vrot.lane.b32.xlu1 %v11373_v58, %s7875_s23  ;;  %v9363_v39 = vpop.permute.xlu1 %2761  ;;  %v2079_v25 = vsub.f32 2.0, %v2063_v27 }
 0x85b   :  { %v7537_v42 = vpop.eup %7536  ;;  %v2060_v43 = vmul.f32 %v7535_v33, %v2023_v11  ;;  %6854 = vmatprep.mubr.f32.mxu1 %v2104_v49  ;;  %v2090_v14 = vmul.f32 %v7531_v59, %v2074_v54  ;;  %v2107_v11 = vmul.f32 %v9139_v56, %v2091_v10  ;;  %v2109_v56 = vmul.f32 %v9147_v51, %v2093_v47  ;;  %v11380_v59 = vld [vmem:[#allocation33_spill] sm:$0xff] }
 0x85c   :  { %6855 = vmatmul.mubr.f32.gmra.mxu1 %v2105_v23  ;;  %v9366_v48 = vpop.permute.xlu0 %2763  ;;  %v2065_v50 = vmul.f32 %v7537_v42, %v9327_v24 }
 0x85d   :  { %v2076_v41 = vsub.f32 2.0, %v2060_v43  ;;  %3204 = vrot.lane.b32.xlu0 %v11374_v55, %s7875_s23  ;;  %v2106_v30 = vmul.f32 %v9156_v5, %v2090_v14  ;;  %v11376_v5 = vld [vmem:[#allocation30_spill] sm:$0xff] }
 0x85e   :  { %v7539_v46 = vpop.eup %7538  ;;  %3192 = vrot.lane.b32.xlu1 %v11375_v38, %s7875_s23  ;;  %v9374_v15 = vpop.permute.xlu1 %2757  ;;  %v2081_v13 = vsub.f32 2.0, %v2065_v50 }
 0x85f   :  { %v2062_v19 = vmul.f32 %v7539_v46, %v2027_v63  ;;  %6857 = vmatprep.mubr.f32.mxu1 %v2106_v30  ;;  %v2092_v57 = vmul.f32 %v7535_v33, %v2076_v41  ;;  %v2095_v63 = vmul.f32 %v7533_v17, %v2079_v25 }
 0x860   :  { %6858 = vmatmul.mubr.f32.gmra.mxu1 %v2107_v11  ;;  %v9377_v22 = vpop.permute.xlu0 %2759  ;;  %v2097_v4 = vmul.f32 %v7537_v42, %v2081_v13 }
 0x861   :  { %v2078_v44 = vsub.f32 2.0, %v2062_v19  ;;  %3200 = vrot.lane.b32.xlu0 %v11376_v5, %s7875_s23  ;;  %v2108_v24 = vmul.f32 %v9162_v29, %v2092_v57  ;;  %v2111_v51 = vmul.f32 %v9153_v52, %v2095_v63  ;;  %v11381_v52 = vld [vmem:[#allocation35_spill] sm:$0xff] }
 0x862   :  { %v7541_v2 = vpop.eup %7540  ;;  %3188 = vrot.lane.b32.xlu1 %v11377_v12, %s7875_s23  ;;  %v9384_v9 = vpop.permute.xlu1 %2753 }
 0x863   :  { %v2064_v31 = vmul.f32 %v7541_v2, %v2031_v53  ;;  %6860 = vmatprep.mubr.f32.mxu1 %v2108_v24  ;;  %v2094_v36 = vmul.f32 %v7539_v46, %v2078_v44 }
 0x864   :  { %6861 = vmatmul.mubr.f32.gmra.mxu1 %v2109_v56  ;;  %v9387_v32 = vpop.permute.xlu0 %2755 }
 0x865   :  { %v2080_v28 = vsub.f32 2.0, %v2064_v31  ;;  %3198 = vrot.lane.b32.xlu0 %v11378_v60, %s7875_s23  ;;  %v2110_v29 = vmul.f32 %v9165_v6, %v2094_v36  ;;  %v2113_v6 = vmul.f32 %v9159_v1, %v2097_v4 }
 0x866   :  { %3184 = vrot.lane.b32.xlu1 %v11379_v16, %s7875_s23  ;;  %v9394_v18 = vpop.permute.xlu1 %2749 }
 0x867   :  { %6863 = vmatprep.mubr.f32.mxu1 %v2110_v29  ;;  %v2096_v53 = vmul.f32 %v7541_v2, %v2080_v28 }
 0x868   :  { %6864 = vmatmul.mubr.f32.gmra.mxu1 %v2111_v51  ;;  %v9397_v37 = vpop.permute.xlu0 %2751 }
 0x869   :  { %3194 = vrot.lane.b32.xlu0 %v11380_v59, %s7875_s23  ;;  %v2112_v61 = vmul.f32 %v9168_v45, %v2096_v53 }
 0x86a   :  { %v9402_v40 = vpop.permute.xlu1 %2745 }
 0x86b   :  { %6866 = vmatprep.mubr.f32.mxu1 %v2112_v61 }
 0x86c   :  { %6867 = vmatmul.mubr.f32.gmra.mxu1 %v2113_v6  ;;  %v9405_v35 = vpop.permute.xlu0 %2747 }
 0x86d   :  { %3190 = vrot.lane.b32.xlu0 %v11381_v52, %s7875_s23 }
 0x86e   :  { %v9409_v26 = vpop.permute.xlu1 %2741 }
 0x870   :  { %v9411_v17 = vpop.permute.xlu0 %2743 }
 0x871   :  { %3186 = vrot.lane.b32.xlu0 %v11382_v7, %s7875_s23 }
 0x872   :  { %v9415_v20 = vpop.permute.xlu1 %2711 }
 0x874   :  { %v9417_v45 = vpop.permute.xlu0 %2709 }
 0x876   :  { %v9419_v54 = vpop.permute.xlu1 %2715 }
 0x878   :  { %v9421_v1 = vpop.permute.xlu0 %2713 }
 0x87a   :  { %v9423_v49 = vpop.permute.xlu1 %2719 }
 0x87c   :  { %v9425_v33 = vpop.permute.xlu0 %2717 }
 0x87e   :  { %v9427_v21 = vpop.permute.xlu1 %2723 }
 0x880   :  { %v9429_v27 = vpop.permute.xlu0 %2721 }
 0x882   :  { %v9431_v23 = vpop.permute.xlu1 %2727 }
 0x884   :  { %v9433_v10 = vpop.permute.xlu0 %2725 }
 0x886   :  { %v9435_v42 = vpop.permute.xlu1 %2731 }
 0x888   :  { %v9437_v43 = vpop.permute.xlu0 %2729 }
 0x88a   :  { %v9439_v14 = vpop.permute.xlu1 %2735 }
 0x88c   :  { %v9441_v41 = vpop.permute.xlu0 %2733 }
 0x88e   :  { %v9443_v30 = vpop.permute.xlu1 %2739 }
 0x890   :  { %v9445_v46 = vpop.permute.xlu0 %2737 }
 0x892   :  { %v9447_v25 = vpop.permute.xlu1 %3636 }
 0x894   :  { %v9449_v50 = vpop.permute.xlu0 %3638 }
 0x896   :  { %v9451_v11 = vpop.permute.xlu1 %3632 }
 0x898   :  { %v9453_v47 = vpop.permute.xlu0 %3634 }
 0x89a   :  { %v9455_v19 = vpop.permute.xlu1 %3628 }
 0x89c   :  { %v9457_v57 = vpop.permute.xlu0 %3630 }
 0x89e   :  { %v9459_v44 = vpop.permute.xlu1 %3624 }
 0x8a0   :  { %v9461_v24 = vpop.permute.xlu0 %3626 }
 0x8a2   :  { %v9463_v2 = vpop.permute.xlu1 %3620 }
 0x8a4   :  { %v9465_v13 = vpop.permute.xlu0 %3622 }
 0x8a6   :  { %v9467_v56 = vpop.permute.xlu1 %3616 }
 0x8a8   :  { %v9469_v63 = vpop.permute.xlu0 %3618 }
 0x8aa   :  { %v9471_v31 = vpop.permute.xlu1 %3612 }
 0x8ac   :  { %v9473_v36 = vpop.permute.xlu0 %3614 }
 0x8ae   :  { %v9475_v28 = vpop.permute.xlu1 %3608 }
 0x8b0   :  { %v9477_v29 = vpop.permute.xlu0 %3610 }
 0x8b2   :  { %v9479_v51 = vpop.permute.xlu1 %3578 }
 0x8b4   :  { %v9481_v4 = vpop.permute.xlu0 %3576 }
 0x8b6   :  { %v9483_v53 = vpop.permute.xlu1 %3582 }
 0x8b8   :  { %v9485_v61 = vpop.permute.xlu0 %3580 }
 0x8ba   :  { %v9487_v6 = vpop.permute.xlu1 %3586 }
 0x8bb   :  { %11383 = vst [vmem:[#allocation56_spill] sm:$0xff] %v9487_v6 }
 0x8bc   :  { %v9489_v16 = vpop.permute.xlu0 %3584 }
 0x8be   :  { %v9491_v12 = vpop.permute.xlu1 %3590 }
 0x8bf   :  { %11384 = vst [vmem:[#allocation57_spill] sm:$0xff] %v9491_v12 }
 0x8c0   :  { %v9493_v7 = vpop.permute.xlu0 %3588 }
 0x8c1   :  { %11385 = vst [vmem:[#allocation58_spill] sm:$0xff] %v9493_v7 }
 0x8c2   :  { %v9495_v38 = vpop.permute.xlu1 %3594 }
 0x8c3   :  { %11386 = vst [vmem:[#allocation60_spill] sm:$0xff] %v9495_v38 }
 0x8c4   :  { %v9497_v52 = vpop.permute.xlu0 %3592 }
 0x8c5   :  { %11387 = vst [vmem:[#allocation59_spill] sm:$0xff] %v9497_v52 }
 0x8c6   :  { %v9499_v58 = vpop.permute.xlu1 %3598 }
 0x8c7   :  { %11388 = vst [vmem:[#allocation62_spill] sm:$0xff] %v9499_v58 }
 0x8c8   :  { %v9501_v59 = vpop.permute.xlu0 %3596 }
 0x8c9   :  { %11389 = vst [vmem:[#allocation61_spill] sm:$0xff] %v9501_v59 }
 0x8ca   :  { %v9503_v0 = vpop.permute.xlu1 %3602 }
 0x8cb   :  { %11390 = vst [vmem:[#allocation64_spill] sm:$0xff] %v9503_v0 }
 0x8cc   :  { %v9505_v60 = vpop.permute.xlu0 %3600 }
 0x8ce   :  { %v9507_v5 = vpop.permute.xlu1 %3604 }
 0x8d0   :  { %v9509_v55 = vpop.permute.xlu0 %3606 }
 0x8d2   :  { %v3203_v6 = vpop.permute.xlu1 %3202 }
 0x8d4   :  { %v3205_v12 = vpop.permute.xlu0 %3204 }
 0x8d5   :  { %6977 = vmatprep.subr.mxu0 %v3205_v12 }
 0x8d6   :  { %6978 = vmatpush3.msra.mxu0 %v3205_v12  ;;  %v3197_v38 = vpop.permute.xlu1 %3196 }
 0x8d7   :  { %6979 = vmatprep.subr.mxu0 %v3203_v6 }
 0x8d8   :  { %6980 = vmatpush3.msra.mxu0 %v3203_v6  ;;  %v3201_v52 = vpop.permute.xlu0 %3200  ;;  %v9785_v6 = vld [vmem:[#allocation6 + $0x30] sm:$0xff] }
 0x8d9   :  { %6981 = vmatprep.subr.mxu0 %v3201_v52 }
 0x8da   :  { %6982 = vmatpush3.msra.mxu0 %v3201_v52  ;;  %v3193_v0 = vpop.permute.xlu1 %3192 }
 0x8db   :  { %v6847_v58 = vpop.f32.mrf.mxu0 }
 0x8dc   :  { %v3199_v59 = vpop.permute.xlu0 %3198 }
 0x8dd   :  { %v2244_v7 = vpop.f32.mrf.mxu0  ;;  %6983 = vmatprep.subr.mxu0 %v3199_v59 }
 0x8de   :  { %6871 = vmatprep.mubr.msk.f32.mxu1 %vm1070_vm1, %v2244_v7  ;;  %6984 = vmatpush3.msra.mxu0 %v3199_v59  ;;  %v3189_v52 = vpop.permute.xlu1 %3188  ;;  %v11394_v7 = vld [vmem:[#allocation59_spill] sm:$0xff] }
 0x8df   :  { %6872 = vmatmul.mubr.msk.f32.vlgmr.msra.gmra.mxu1 %vm1070_vm1, %v6847_v58  ;;  %6985 = vmatprep.subr.mxu0 %v3197_v38 }
 0x8e0   :  { %6922 = vmatpush3.xpose.msk.msra.mxu1 %vm1070_vm1, %v9353_v8  ;;  %6986 = vmatpush3.msra.mxu0 %v3197_v38  ;;  %v3195_v12 = vpop.permute.xlu0 %3194 }
 0x8e1   :  { %6923 = vmatprep.subr.msk.mxu1 %vm1070_vm1, %v9334_v62  ;;  %6987 = vmatprep.subr.mxu0 %v3195_v12 }
 0x8e2   :  { %6988 = vmatpush3.msra.mxu0 %v3195_v12  ;;  %v3185_v58 = vpop.permute.xlu1 %3184 }
 0x8e3   :  { %6989 = vmatprep.subr.mxu0 %v3193_v0 }
 0x8e4   :  { %6924 = vmatpush3.xpose.msk.msra.mxu1 %vm1070_vm1, %v9334_v62  ;;  %6990 = vmatpush3.msra.mxu0 %v3193_v0  ;;  %v3191_v59 = vpop.permute.xlu0 %3190 }
 0x8e5   :  { %6925 = vmatprep.subr.msk.mxu1 %vm1070_vm1, %v9342_v3  ;;  %6991 = vmatprep.subr.mxu0 %v3191_v59 }
 0x8e6   :  { %6992 = vmatpush3.msra.mxu0 %v3191_v59  ;;  %v9791_v59 = vld [vmem:[#allocation6 + $0x48] sm:$0xff] }
 0x8e7   :  { %6993 = vmatprep.subr.mxu0 %v3189_v52 }
 0x8e8   :  { %6926 = vmatpush3.xpose.msk.msra.mxu1 %vm1070_vm1, %v9342_v3  ;;  %6994 = vmatpush3.msra.mxu0 %v3189_v52  ;;  %v3187_v8 = vpop.permute.xlu0 %3186 }
 0x8e9   :  { %6927 = vmatprep.subr.msk.mxu1 %vm1070_vm1, %v9350_v34  ;;  %6995 = vmatprep.subr.mxu0 %v3187_v8 }
 0x8ea   :  { %6996 = vmatpush3.msra.mxu0 %v3187_v8 }
 0x8eb   :  { %6997 = vmatprep.subr.mxu0 %v3185_v58 }
 0x8ec   :  { %6928 = vmatpush3.xpose.msk.msra.mxu1 %vm1070_vm1, %v9350_v34  ;;  %6998 = vmatpush3.msra.mxu0 %v3185_v58 }
 0x8ed   :  { %6929 = vmatprep.subr.msk.mxu1 %vm1070_vm1, %v9366_v48 }
 0x8f0   :  { %6930 = vmatpush3.xpose.msk.msra.mxu1 %vm1070_vm1, %v9366_v48 }
 0x8f1   :  { %6931 = vmatprep.subr.msk.mxu1 %vm1070_vm1, %v9363_v39 }
 0x8f4   :  { %6932 = vmatpush3.xpose.msk.msra.mxu1 %vm1070_vm1, %v9363_v39 }
 0x8f5   :  { %6933 = vmatprep.subr.msk.mxu1 %vm1070_vm1, %v9377_v22 }
 0x8f8   :  { %6934 = vmatpush3.xpose.msk.msra.mxu1 %vm1070_vm1, %v9377_v22 }
 0x8f9   :  { %6935 = vmatprep.subr.msk.mxu1 %vm1070_vm1, %v9374_v15 }
 0x8fc   :  { %6936 = vmatpush3.xpose.msk.msra.mxu1 %vm1070_vm1, %v9374_v15 }
 0x8fd   :  { %6937 = vmatprep.subr.msk.mxu1 %vm1070_vm1, %v9387_v32 }
 0x900   :  { %6938 = vmatpush3.xpose.msk.msra.mxu1 %vm1070_vm1, %v9387_v32 }
 0x901   :  { %6939 = vmatprep.subr.msk.mxu1 %vm1070_vm1, %v9384_v9 }
 0x904   :  { %6940 = vmatpush3.xpose.msk.msra.mxu1 %vm1070_vm1, %v9384_v9 }
 0x905   :  { %6941 = vmatprep.subr.msk.mxu1 %vm1070_vm1, %v9397_v37 }
 0x908   :  { %6942 = vmatpush3.xpose.msk.msra.mxu1 %vm1070_vm1, %v9397_v37 }
 0x909   :  { %6943 = vmatprep.subr.msk.mxu1 %vm1070_vm1, %v9394_v18 }
 0x90c   :  { %6944 = vmatpush3.xpose.msk.msra.mxu1 %vm1070_vm1, %v9394_v18 }
 0x90d   :  { %6945 = vmatprep.subr.msk.mxu1 %vm1070_vm1, %v9405_v35 }
 0x910   :  { %6946 = vmatpush3.xpose.msk.msra.mxu1 %vm1070_vm1, %v9405_v35  ;;  %v6850_v62 = vpop.f32.mrf.mxu1  ;;  %v11391_v35 = vld [vmem:[#allocation56_spill] sm:$0xff] }
 0x911   :  { %6947 = vmatprep.subr.msk.mxu1 %vm1070_vm1, %v9402_v40 }
 0x912   :  { %v2254_v3 = vpop.f32.mrf.mxu1 }
 0x913   :  { %6874 = vmatprep.mubr.msk.f32.mxu1 %vm1070_vm1, %v2254_v3  ;;  %v9799_v3 = vld [vmem:[#allocation6 + $0x40] sm:$0xff] }
 0x914   :  { %6948 = vmatpush3.xpose.msk.msra.mxu1 %vm1070_vm1, %v9402_v40 }
 0x915   :  { %6875 = vmatmul.mubr.msk.f32.gmra.mxu1 %vm1070_vm1, %v6850_v62  ;;  %6949 = vmatprep.subr.msk.mxu1 %vm1070_vm1, %v9411_v17  ;;  %v11415_v62 = vld [vmem:[#allocation40_spill] sm:$0xff] }
 0x918   :  { %6950 = vmatpush3.xpose.msk.msra.mxu1 %vm1070_vm1, %v9411_v17  ;;  %v6853_v0 = vpop.f32.mrf.mxu1  ;;  %v11393_v17 = vld [vmem:[#allocation57_spill] sm:$0xff] }
 0x919   :  { %6951 = vmatprep.subr.msk.mxu1 %vm1070_vm1, %v9409_v26 }
 0x91a   :  { %v2264_v34 = vpop.f32.mrf.mxu1 }
 0x91b   :  { %6877 = vmatprep.mubr.msk.f32.mxu1 %vm1070_vm1, %v2264_v34 }
 0x91c   :  { %6952 = vmatpush3.xpose.msk.msra.mxu1 %vm1070_vm1, %v9409_v26  ;;  %v6856_v39 = vpop.f32.mrf.mxu1  ;;  %v11392_v26 = vld [vmem:[#allocation58_spill] sm:$0xff] }
 0x91d   :  { %6878 = vmatmul.mubr.msk.f32.gmra.mxu1 %vm1070_vm1, %v6853_v0  ;;  %7059 = vmatprep.subr.msk.mxu1 %vm1070_vm1, %v9449_v50 }
 0x91e   :  { %v2274_v48 = vpop.f32.mrf.mxu1 }
 0x91f   :  { %6880 = vmatprep.mubr.msk.f32.mxu1 %vm1070_vm1, %v2274_v48 }
 0x920   :  { %v6859_v38 = vpop.f32.mrf.mxu1 }
 0x921   :  { %6881 = vmatmul.mubr.msk.f32.gmra.mxu1 %vm1070_vm1, %v6856_v39  ;;  %v9805_v39 = vld [vmem:[#allocation6 + $0x58] sm:$0xff] }
 0x922   :  { %v2284_v15 = vpop.f32.mrf.mxu1 }
 0x923   :  { %6883 = vmatprep.mubr.msk.f32.mxu1 %vm1070_vm1, %v2284_v15  ;;  %v9811_v15 = vld [vmem:[#allocation6 + $0x50] sm:$0xff] }
 0x924   :  { %v6862_v22 = vpop.f32.mrf.mxu1 }
 0x925   :  { %6884 = vmatmul.mubr.msk.f32.gmra.mxu1 %vm1070_vm1, %v6859_v38 }
 0x926   :  { %v2294_v9 = vpop.f32.mrf.mxu1 }
 0x927   :  { %6886 = vmatprep.mubr.msk.f32.mxu1 %vm1070_vm1, %v2294_v9 }
 0x928   :  { %v6865_v32 = vpop.f32.mrf.mxu1 }
 0x929   :  { %6887 = vmatmul.mubr.msk.f32.gmra.mxu1 %vm1070_vm1, %v6862_v22 }
 0x92a   :  { %v2304_v18 = vpop.f32.mrf.mxu1 }
 0x92b   :  { %6889 = vmatprep.mubr.msk.f32.mxu1 %vm1070_vm1, %v2304_v18 }
 0x92c   :  { %v6868_v37 = vpop.f32.mrf.mxu1 }
 0x92d   :  { %6890 = vmatmul.mubr.msk.f32.gmra.mxu1 %vm1070_vm1, %v6865_v32  ;;  %v9817_v32 = vld [vmem:[#allocation6 + $0x68] sm:$0xff] }
 0x92e   :  { %v2314_v40 = vpop.f32.mrf.mxu1 }
 0x92f   :  { %6892 = vmatprep.mubr.msk.f32.mxu1 %vm1070_vm1, %v2314_v40  ;;  %v9823_v40 = vld [vmem:[#allocation6 + $0x60] sm:$0xff] }
 0x931   :  { %6893 = vmatmul.mubr.msk.f32.gmra.mxu1 %vm1070_vm1, %v6868_v37 }
 0x932   :  { %6953 = vmatprep.mubr.msk.f32.mxu1 %vm1070_vm1, %v9417_v45  ;;  %v11396_v45 = vld [vmem:[#allocation61_spill] sm:$0xff] }
 0x935   :  { %6954 = vmatmul.mubr.msk.f32.vlgmr.msra.gmra.mxu1 %vm1070_vm1, %v9415_v20  ;;  %v11395_v20 = vld [vmem:[#allocation60_spill] sm:$0xff] }
 0x936   :  { %7060 = vmatpush3.xpose.msk.msra.mxu1 %vm1070_vm1, %v9449_v50  ;;  %6956 = vmatprep.mubr.msk.f32.mxu1 %vm1070_vm1, %v9421_v1  ;;  %v9749_v50 = vld [vmem:[#allocation6 + $0x8] sm:$0xff] }
 0x937   :  { %7061 = vmatprep.subr.msk.mxu1 %vm1070_vm1, %v9447_v25 }
 0x939   :  { %6957 = vmatmul.mubr.msk.f32.gmra.mxu1 %vm1070_vm1, %v9419_v54  ;;  %v11397_v54 = vld [vmem:[#allocation62_spill] sm:$0xff] }
 0x93a   :  { %7062 = vmatpush3.xpose.msk.msra.mxu1 %vm1070_vm1, %v9447_v25  ;;  %6959 = vmatprep.mubr.msk.f32.mxu1 %vm1070_vm1, %v9425_v33 }
 0x93b   :  { %7063 = vmatprep.subr.msk.mxu1 %vm1070_vm1, %v9453_v47 }
 0x93d   :  { %6960 = vmatmul.mubr.msk.f32.gmra.mxu1 %vm1070_vm1, %v9423_v49 }
 0x93e   :  { %7064 = vmatpush3.xpose.msk.msra.mxu1 %vm1070_vm1, %v9453_v47  ;;  %6962 = vmatprep.mubr.msk.f32.mxu1 %vm1070_vm1, %v9429_v27 }
 0x93f   :  { %7065 = vmatprep.subr.msk.mxu1 %vm1070_vm1, %v9451_v11 }
 0x941   :  { %6963 = vmatmul.mubr.msk.f32.gmra.mxu1 %vm1070_vm1, %v9427_v21 }
 0x942   :  { %7066 = vmatpush3.xpose.msk.msra.mxu1 %vm1070_vm1, %v9451_v11  ;;  %6965 = vmatprep.mubr.msk.f32.mxu1 %vm1070_vm1, %v9433_v10 }
 0x943   :  { %7067 = vmatprep.subr.msk.mxu1 %vm1070_vm1, %v9457_v57 }
 0x945   :  { %6966 = vmatmul.mubr.msk.f32.gmra.mxu1 %vm1070_vm1, %v9431_v23 }
 0x946   :  { %7068 = vmatpush3.xpose.msk.msra.mxu1 %vm1070_vm1, %v9457_v57  ;;  %6968 = vmatprep.mubr.msk.f32.mxu1 %vm1070_vm1, %v9437_v43 }
 0x947   :  { %7069 = vmatprep.subr.msk.mxu1 %vm1070_vm1, %v9455_v19 }
 0x949   :  { %6969 = vmatmul.mubr.msk.f32.gmra.mxu1 %vm1070_vm1, %v9435_v42 }
 0x94a   :  { %7070 = vmatpush3.xpose.msk.msra.mxu1 %vm1070_vm1, %v9455_v19  ;;  %6971 = vmatprep.mubr.msk.f32.mxu1 %vm1070_vm1, %v9441_v41  ;;  %v9754_v19 = vld [vmem:[#allocation6] sm:$0xff] }
 0x94b   :  { %7071 = vmatprep.subr.msk.mxu1 %vm1070_vm1, %v9461_v24 }
 0x94d   :  { %6972 = vmatmul.mubr.msk.f32.gmra.mxu1 %vm1070_vm1, %v9439_v14 }
 0x94e   :  { %7072 = vmatpush3.xpose.msk.msra.mxu1 %vm1070_vm1, %v9461_v24  ;;  %6974 = vmatprep.mubr.msk.f32.mxu1 %vm1070_vm1, %v9445_v46  ;;  %v9760_v24 = vld [vmem:[#allocation6 + $0x18] sm:$0xff] }
 0x94f   :  { %7073 = vmatprep.subr.msk.mxu1 %vm1070_vm1, %v9459_v44 }
 0x951   :  { %6975 = vmatmul.mubr.msk.f32.gmra.mxu1 %vm1070_vm1, %v9443_v30 }
 0x952   :  { %7074 = vmatpush3.xpose.msk.msra.mxu1 %vm1070_vm1, %v9459_v44  ;;  %7091 = vmatprep.mubr.msk.f32.mxu1 %vm1070_vm1, %v9481_v4  ;;  %v9779_v4 = vld [vmem:[#allocation6 + $0x38] sm:$0xff] }
 0x953   :  { %7075 = vmatprep.subr.msk.mxu1 %vm1070_vm1, %v9465_v13 }
 0x956   :  { %7076 = vmatpush3.xpose.msk.msra.mxu1 %vm1070_vm1, %v9465_v13 }
 0x957   :  { %7077 = vmatprep.subr.msk.mxu1 %vm1070_vm1, %v9463_v2 }
 0x95a   :  { %7078 = vmatpush3.xpose.msk.msra.mxu1 %vm1070_vm1, %v9463_v2 }
 0x95b   :  { %7079 = vmatprep.subr.msk.mxu1 %vm1070_vm1, %v9469_v63 }
 0x95e   :  { %7080 = vmatpush3.xpose.msk.msra.mxu1 %vm1070_vm1, %v9469_v63  ;;  %v9767_v63 = vld [vmem:[#allocation6 + $0x10] sm:$0xff] }
 0x95f   :  { %7081 = vmatprep.subr.msk.mxu1 %vm1070_vm1, %v9467_v56 }
 0x962   :  { %7082 = vmatpush3.xpose.msk.msra.mxu1 %vm1070_vm1, %v9467_v56 }
 0x963   :  { %7083 = vmatprep.subr.msk.mxu1 %vm1070_vm1, %v9473_v36 }
 0x966   :  { %7084 = vmatpush3.xpose.msk.msra.mxu1 %vm1070_vm1, %v9473_v36 }
 0x967   :  { %7085 = vmatprep.subr.msk.mxu1 %vm1070_vm1, %v9471_v31 }
 0x96a   :  { %7086 = vmatpush3.xpose.msk.msra.mxu1 %vm1070_vm1, %v9471_v31 }
 0x96b   :  { %7087 = vmatprep.subr.msk.mxu1 %vm1070_vm1, %v9477_v29 }
 0x96e   :  { %7088 = vmatpush3.xpose.msk.msra.mxu1 %vm1070_vm1, %v9477_v29 }
 0x96f   :  { %7089 = vmatprep.subr.msk.mxu1 %vm1070_vm1, %v9475_v28 }
 0x972   :  { %7090 = vmatpush3.xpose.msk.msra.mxu1 %vm1070_vm1, %v9475_v28  ;;  %v9773_v28 = vld [vmem:[#allocation6 + $0x20] sm:$0xff] }
 0x975   :  { %7092 = vmatmul.mubr.msk.f32.vlgmr.msra.gmra.mxu1 %vm1070_vm1, %v9479_v51 }
 0x976   :  { %7094 = vmatprep.mubr.msk.f32.mxu1 %vm1070_vm1, %v9485_v61 }
 0x979   :  { %7095 = vmatmul.mubr.msk.f32.gmra.mxu1 %vm1070_vm1, %v9483_v53 }
 0x97a   :  { %7097 = vmatprep.mubr.msk.f32.mxu1 %vm1070_vm1, %v9489_v16  ;;  %v11398_v16 = vld [vmem:[#allocation64_spill] sm:$0xff] }
 0x97d   :  { %7098 = vmatmul.mubr.msk.f32.gmra.mxu1 %vm1070_vm1, %v11391_v35 }
 0x97e   :  { %7100 = vmatprep.mubr.msk.f32.mxu1 %vm1070_vm1, %v11392_v26 }
 0x981   :  { %7101 = vmatmul.mubr.msk.f32.gmra.mxu1 %vm1070_vm1, %v11393_v17  ;;  %v9829_v17 = vld [vmem:[#allocation6 + $0x78] sm:$0xff] }
 0x982   :  { %7103 = vmatprep.mubr.msk.f32.mxu1 %vm1070_vm1, %v11394_v7 }
 0x985   :  { %7104 = vmatmul.mubr.msk.f32.gmra.mxu1 %vm1070_vm1, %v11395_v20  ;;  %v9835_v20 = vld [vmem:[#allocation6 + $0x28] sm:$0xff] }
 0x986   :  { %7106 = vmatprep.mubr.msk.f32.mxu1 %vm1070_vm1, %v11396_v45 }
 0x989   :  { %7107 = vmatmul.mubr.msk.f32.gmra.mxu1 %vm1070_vm1, %v11397_v54 }
 0x98a   :  { %7109 = vmatprep.mubr.msk.f32.mxu1 %vm1070_vm1, %v9505_v60 }
 0x98d   :  { %7110 = vmatmul.mubr.msk.f32.gmra.mxu1 %vm1070_vm1, %v11398_v16  ;;  %v9841_v16 = vld [vmem:[#allocation6 + $0x70] sm:$0xff] }
 0x98e   :  { %7112 = vmatprep.mubr.msk.f32.mxu1 %vm1070_vm1, %v9507_v5 }
 0x991   :  { %7113 = vmatmul.mubr.msk.f32.gmra.mxu1 %vm1070_vm1, %v9509_v55 }
 0x99f   :  { %v9717_v1 = vpop.f32.mrf.mxu1 }
 0x9a0   :  { %11399 = vst [vmem:[#allocation63_spill] sm:$0xff] %v9717_v1 }
 0x9a1   :  { %v9719_v49 = vpop.f32.mrf.mxu1 }
 0x9a2   :  { %11400 = vst [vmem:[#allocation66_spill] sm:$0xff] %v9719_v49 }
 0x9d5   :  { %v9721_v33 = vpop.f32.mrf.mxu1 }
 0x9d6   :  { %11401 = vst [vmem:[#allocation65_spill] sm:$0xff] %v9721_v33 }
 0x9d7   :  { %v9723_v21 = vpop.f32.mrf.mxu1 }
 0x9d8   :  { %11402 = vst [vmem:[#allocation68_spill] sm:$0xff] %v9723_v21 }
 0x9dd   :  { %v9725_v27 = vpop.f32.mrf.mxu1 }
 0x9de   :  { %11403 = vst [vmem:[#allocation67_spill] sm:$0xff] %v9725_v27 }
 0x9df   :  { %v9727_v60 = vpop.f32.mrf.mxu1 }
 0x9e0   :  { %11404 = vst [vmem:[#allocation70_spill] sm:$0xff] %v9727_v60 }
 0x9e1   :  { %v9729_v23 = vpop.f32.mrf.mxu1 }
 0x9e2   :  { %11405 = vst [vmem:[#allocation69_spill] sm:$0xff] %v9729_v23 }
 0x9e3   :  { %v9731_v10 = vpop.f32.mrf.mxu1 }
 0x9e4   :  { %11406 = vst [vmem:[#allocation71_spill] sm:$0xff] %v9731_v10 }
 0x9e5   :  { %v9733_v5 = vpop.f32.mrf.mxu1 }
 0x9e6   :  { %11407 = vst [vmem:[#allocation50_spill] sm:$0xff] %v9733_v5 }
 0x9e7   :  { %v9735_v42 = vpop.f32.mrf.mxu1 }
 0x9e8   :  { %11408 = vst [vmem:[#allocation51_spill] sm:$0xff] %v9735_v42 }
 0x9e9   :  { %v9737_v55 = vpop.f32.mrf.mxu1 }
 0x9ea   :  { %11409 = vst [vmem:[#allocation47_spill] sm:$0xff] %v9737_v55 }
 0x9eb   :  { %v9739_v43 = vpop.f32.mrf.mxu1 }
 0x9ec   :  { %11410 = vst [vmem:[#allocation48_spill] sm:$0xff] %v9739_v43 }
 0x9ed   :  { %v9741_v14 = vpop.f32.mrf.mxu1 }
 0x9ee   :  { %11411 = vst [vmem:[#allocation49_spill] sm:$0xff] %v9741_v14 }
 0x9ef   :  { %v9743_v41 = vpop.f32.mrf.mxu1 }
 0x9f0   :  { %11412 = vst [vmem:[#allocation41_spill] sm:$0xff] %v9743_v41 }
 0x9f1   :  { %v9745_v30 = vpop.f32.mrf.mxu1 }
 0x9f2   :  { %11413 = vst [vmem:[#allocation44_spill] sm:$0xff] %v9745_v30 }
 0x9f3   :  { %v9747_v46 = vpop.f32.mrf.mxu1 }
 0x9f4   :  { %11414 = vst [vmem:[#allocation52_spill] sm:$0xff] %v9747_v46 }
 0x9f5   :  { %v6955_v25 = vpop.f32.mrf.mxu1 }
 0x9f6   :  { %v9752_v11 = vadd.f32 %v9749_v50, %v6955_v25 }
 0x9f7   :  { %v2903_v47 = vpop.f32.mrf.mxu1 }
 0x9f8   :  { %v9757_v57 = vadd.f32 %v9754_v19, %v2903_v47  ;;  %2984 = vmax.xlane.f32.xlu1 %v9752_v11  ;;  %v11416_v47 = vld [vmem:[#allocation42_spill] sm:$0xff] }
 0x9f9   :  { %v6958_v44 = vpop.f32.mrf.mxu1 }
 0x9fa   :  { %v9763_v2 = vadd.f32 %v9760_v24, %v6958_v44  ;;  %2982 = vmax.xlane.f32.xlu0 %v9757_v57  ;;  %v11417_v44 = vld [vmem:[#allocation43_spill] sm:$0xff] }
 0x9fb   :  { %v2913_v13 = vpop.f32.mrf.mxu1 }
 0x9fc   :  { %2988 = vmax.xlane.f32.xlu1 %v9763_v2  ;;  %v9770_v31 = vadd.f32 %v9767_v63, %v2913_v13 }
 0x9fd   :  { %v6961_v56 = vpop.f32.mrf.mxu1 }
 0x9fe   :  { %v9838_v45 = vadd.f32 %v9835_v20, %v6961_v56 }
 0x9ff   :  { %v2923_v36 = vpop.f32.mrf.mxu1 }
 0xa00   :  { %2986 = vmax.xlane.f32.xlu1 %v9770_v31  ;;  %v9776_v29 = vadd.f32 %v9773_v28, %v2923_v36 }
 0xa01   :  { %v6964_v51 = vpop.f32.mrf.mxu1 }
 0xa02   :  { %v9782_v53 = vadd.f32 %v9779_v4, %v6964_v51 }
 0xa03   :  { %v2933_v61 = vpop.f32.mrf.mxu1 }
 0xa04   :  { %2990 = vmax.xlane.f32.xlu1 %v9776_v29  ;;  %v9788_v12 = vadd.f32 %v9785_v6, %v2933_v61 }
 0xa05   :  { %v6967_v52 = vpop.f32.mrf.mxu1 }
 0xa06   :  { %v9794_v8 = vadd.f32 %v9791_v59, %v6967_v52 }
 0xa07   :  { %v2943_v58 = vpop.f32.mrf.mxu1 }
 0xa08   :  { %2996 = vmax.xlane.f32.xlu1 %v9782_v53  ;;  %v9802_v0 = vadd.f32 %v9799_v3, %v2943_v58 }
 0xa09   :  { %v6970_v34 = vpop.f32.mrf.mxu1 }
 0xa0a   :  { %v9808_v48 = vadd.f32 %v9805_v39, %v6970_v34 }
 0xa0b   :  { %v2953_v38 = vpop.f32.mrf.mxu1 }
 0xa0c   :  { %2994 = vmax.xlane.f32.xlu1 %v9788_v12  ;;  %v9814_v22 = vadd.f32 %v9811_v15, %v2953_v38 }
 0xa0d   :  { %v6973_v9 = vpop.f32.mrf.mxu1 }
 0xa0e   :  { %v9820_v18 = vadd.f32 %v9817_v32, %v6973_v9 }
 0xa0f   :  { %v2963_v37 = vpop.f32.mrf.mxu1 }
 0xa10   :  { %3182 = vrot.lane.b32.xlu0 %v11415_v62, %s7875_s23  ;;  %3000 = vmax.xlane.f32.xlu1 %v9794_v8  ;;  %v9826_v35 = vadd.f32 %v9823_v40, %v2963_v37 }
 0xa11   :  { %v6976_v26 = vpop.f32.mrf.mxu1 }
 0xa12   :  { %v9832_v7 = vadd.f32 %v9829_v17, %v6976_v26 }
 0xa13   :  { %v2973_v54 = vpop.f32.mrf.mxu1 }
 0xa14   :  { %2998 = vmax.xlane.f32.xlu1 %v9802_v0  ;;  %v9844_v25 = vadd.f32 %v9841_v16, %v2973_v54 }
 0xa18   :  { %3004 = vmax.xlane.f32.xlu1 %v9808_v48 }
 0xa1c   :  { %3002 = vmax.xlane.f32.xlu1 %v9814_v22 }
 0xa20   :  { %3008 = vmax.xlane.f32.xlu1 %v9820_v18 }
 0xa24   :  { %3006 = vmax.xlane.f32.xlu1 %v9826_v35 }
 0xa28   :  { %3012 = vmax.xlane.f32.xlu1 %v9832_v7 }
 0xa2f   :  { %2992 = vmax.xlane.f32.xlu0 %v9838_v45 }
 0xa33   :  { %3010 = vmax.xlane.f32.xlu0 %v9844_v25 }
 0xa39   :  { %3180 = vrot.lane.b32.xlu1 %v11416_v47, %s7875_s23 }
 0xa49   :  { %3178 = vrot.lane.b32.xlu0 %v11417_v44, %s7875_s23 }
 0xa81   :  { %v2985_v13 = vpop.xlane.xlu1 %2984 }
 0xa82   :  { %v3015_v56 = vsub.f32 %v9752_v11, %v2985_v13 }
 0xa83   :  { %v2983_v36 = vpop.xlane.xlu0 %2982 }
 0xa84   :  { %v3032_v51 = vmul.f32 1.442695, %v3015_v56  ;;  %v3014_v61 = vsub.f32 %v9757_v57, %v2983_v36 }
 0xa85   :  { %v2989_v52 = vpop.xlane.xlu1 %2988 }
 0xa86   :  { %7542 = vpow2.f32 %v3032_v51  ;;  %v3030_v58 = vmul.f32 1.442695, %v3014_v61  ;;  %v3017_v34 = vsub.f32 %v9763_v2, %v2989_v52 }
 0xa87   :  { %v3183_v38 = vpop.permute.xlu0 %3182 }
 0xa88   :  { %7544 = vpow2.f32 %v3030_v58  ;;  %v3036_v9 = vmul.f32 1.442695, %v3017_v34  ;;  %6999 = vmatprep.subr.mxu0 %v3183_v38 }
 0xa89   :  { %v2987_v37 = vpop.xlane.xlu1 %2986  ;;  %7000 = vmatpush3.msra.mxu0 %v3183_v38 }
 0xa8a   :  { %7546 = vpow2.f32 %v3036_v9  ;;  %v3016_v26 = vsub.f32 %v9770_v31, %v2987_v37 }
 0xa8c   :  { %v3034_v54 = vmul.f32 1.442695, %v3016_v26 }
 0xa8d   :  { %v2991_v11 = vpop.xlane.xlu1 %2990 }
 0xa8e   :  { %7548 = vpow2.f32 %v3034_v54  ;;  %v3018_v13 = vsub.f32 %v9776_v29, %v2991_v11 }
 0xa90   :  { %v3038_v57 = vmul.f32 1.442695, %v3018_v13 }
 0xa91   :  { %v2997_v56 = vpop.xlane.xlu1 %2996 }
 0xa92   :  { %7550 = vpow2.f32 %v3038_v57 }
 0xa93   :  { %v9856_v36 = vpop.eup %7542 }
 0xa94   :  { %3064 = vadd.xlane.f32.xlu1 %v9856_v36 }
 0xa95   :  { %v9859_v2 = vpop.eup %7544  ;;  %v2995_v51 = vpop.xlane.xlu1 %2994 }
 0xa96   :  { %v3020_v61 = vsub.f32 %v9788_v12, %v2995_v51  ;;  %3062 = vadd.xlane.f32.xlu0 %v9859_v2 }
 0xa97   :  { %v9863_v31 = vpop.eup %7546 }
 0xa98   :  { %v3042_v52 = vmul.f32 1.442695, %v3020_v61  ;;  %3068 = vadd.xlane.f32.xlu1 %v9863_v31 }
 0xa99   :  { %v3001_v29 = vpop.xlane.xlu1 %3000 }
 0xa9a   :  { %7552 = vpow2.f32 %v3042_v52 }
 0xa9b   :  { %v9866_v58 = vpop.eup %7548 }
 0xa9c   :  { %3066 = vadd.xlane.f32.xlu1 %v9866_v58 }
 0xa9d   :  { %v2999_v34 = vpop.xlane.xlu1 %2998 }
 0xa9e   :  { %v3022_v38 = vsub.f32 %v9802_v0, %v2999_v34 }
 0xa9f   :  { %v9870_v9 = vpop.eup %7550 }
 0xaa0   :  { %v3046_v37 = vmul.f32 1.442695, %v3022_v38  ;;  %3070 = vadd.xlane.f32.xlu0 %v9870_v9 }
 0xaa1   :  { %v3005_v12 = vpop.xlane.xlu1 %3004 }
 0xaa2   :  { %7554 = vpow2.f32 %v3046_v37  ;;  %v3021_v37 = vsub.f32 %v9782_v53, %v2997_v56 }
 0xaa5   :  { %v3003_v26 = vpop.xlane.xlu1 %3002 }
 0xaa6   :  { %v3024_v54 = vsub.f32 %v9814_v22, %v3003_v26 }
 0xaa7   :  { %v9874_v11 = vpop.eup %7552 }
 0xaa8   :  { %v3050_v13 = vmul.f32 1.442695, %v3024_v54  ;;  %3074 = vadd.xlane.f32.xlu0 %v9874_v11 }
 0xaa9   :  { %v3009_v57 = vpop.xlane.xlu1 %3008 }
 0xaaa   :  { %7556 = vpow2.f32 %v3050_v13  ;;  %v3044_v13 = vmul.f32 1.442695, %v3021_v37 }
 0xaad   :  { %v3007_v51 = vpop.xlane.xlu1 %3006 }
 0xaae   :  { %v3026_v0 = vsub.f32 %v9826_v35, %v3007_v51 }
 0xaaf   :  { %v9878_v61 = vpop.eup %7554 }
 0xab0   :  { %v3054_v52 = vmul.f32 1.442695, %v3026_v0  ;;  %3078 = vadd.xlane.f32.xlu0 %v9878_v61  ;;  %v3023_v0 = vsub.f32 %v9794_v8, %v3001_v29  ;;  %v3027_v8 = vsub.f32 %v9820_v18, %v3009_v57  ;;  %v7093_v57 = vpop.f32.mrf.mxu1 }
 0xab1   :  { %v3013_v34 = vpop.xlane.xlu1 %3012 }
 0xab2   :  { %7558 = vpow2.f32 %v3054_v52  ;;  %v3048_v56 = vmul.f32 1.442695, %v3023_v0  ;;  %v3056_v29 = vmul.f32 1.442695, %v3027_v8  ;;  %v9920_v8 = vadd.f32 %v9749_v50, %v7093_v57 }
 0xab5   :  { %v3181_v38 = vpop.permute.xlu1 %3180 }
 0xab6   :  { %7001 = vmatprep.subr.mxu0 %v3181_v38 }
 0xab7   :  { %v9881_v22 = vpop.eup %7556  ;;  %7002 = vmatpush3.msra.mxu0 %v3181_v38  ;;  %v3025_v38 = vsub.f32 %v9808_v48, %v3005_v12 }
 0xab8   :  { %3082 = vadd.xlane.f32.xlu0 %v9881_v22  ;;  %v2993_v26 = vpop.xlane.xlu0 %2992 }
 0xab9   :  { %v3019_v54 = vsub.f32 %v9838_v45, %v2993_v26  ;;  %v3052_v45 = vmul.f32 1.442695, %v3025_v38 }
 0xabb   :  { %v3040_v35 = vmul.f32 1.442695, %v3019_v54 }
 0xabc   :  { %v3011_v51 = vpop.xlane.xlu0 %3010 }
 0xabd   :  { %7560 = vpow2.f32 %v3040_v35  ;;  %v3028_v52 = vsub.f32 %v9844_v25, %v3011_v51  ;;  %v3029_v25 = vsub.f32 %v9832_v7, %v3013_v34  ;;  %v3770_v34 = vpop.f32.mrf.mxu1  ;;  %v11418_v35 = vld [vmem:[#allocation46_spill] sm:$0xff] }
 0xabe   :  { %7562 = vpow2.f32 %v3044_v13  ;;  %v9936_v57 = vadd.f32 %v9754_v19, %v3770_v34 }
 0xabf   :  { %v9888_v46 = vpop.eup %7558  ;;  %v3058_v30 = vmul.f32 1.442695, %v3028_v52  ;;  %v3060_v54 = vmul.f32 1.442695, %v3029_v25  ;;  %v7096_v13 = vpop.f32.mrf.mxu1  ;;  %v11419_v52 = vld [vmem:[#allocation45_spill] sm:$0xff] }
 0xac0   :  { %3086 = vadd.xlane.f32.xlu0 %v9888_v46  ;;  %v3179_v53 = vpop.permute.xlu0 %3178 }
 0xac1   :  { %7564 = vpow2.f32 %v3058_v30  ;;  %7003 = vmatprep.subr.mxu0 %v3179_v53  ;;  %v3780_v51 = vpop.f32.mrf.mxu1 }
 0xac2   :  { %7004 = vmatpush3.msra.mxu0 %v3179_v53  ;;  %7566 = vpow2.f32 %v3048_v56  ;;  %v9924_v25 = vadd.f32 %v9767_v63, %v3780_v51 }
 0xac3   :  { %7568 = vpow2.f32 %v3052_v45  ;;  %v7099_v0 = vpop.f32.mrf.mxu1 }
 0xac4   :  { %7570 = vpow2.f32 %v3056_v29  ;;  %v9952_v19 = vadd.f32 %v9835_v20, %v7099_v0 }
 0xac5   :  { %7572 = vpow2.f32 %v3060_v54  ;;  %v3790_v53 = vpop.f32.mrf.mxu1 }
 0xac6   :  { %v9928_v41 = vadd.f32 %v9773_v28, %v3790_v53  ;;  %v9944_v28 = vadd.f32 %v9760_v24, %v7096_v13 }
 0xac7   :  { %v7102_v56 = vpop.f32.mrf.mxu1 }
 0xac8   :  { %v9960_v24 = vadd.f32 %v9779_v4, %v7102_v56 }
 0xac9   :  { %v3800_v38 = vpop.f32.mrf.mxu1 }
 0xaca   :  { %v9894_v37 = vpop.eup %7560  ;;  %v9932_v43 = vadd.f32 %v9785_v6, %v3800_v38 }
 0xacb   :  { %3072 = vadd.xlane.f32.xlu1 %v9894_v37  ;;  %v9897_v26 = vpop.eup %7562  ;;  %v7105_v45 = vpop.f32.mrf.mxu1 }
 0xacd   :  { %v3810_v29 = vpop.f32.mrf.mxu1 }
 0xace   :  { %v9899_v48 = vpop.eup %7564  ;;  %v9939_v63 = vadd.f32 %v9799_v3, %v3810_v29  ;;  %v11426_v29 = vld [vmem:[#allocation33_spill] sm:$0xff] }
 0xacf   :  { %3076 = vadd.xlane.f32.xlu1 %v9897_v26  ;;  %3090 = vadd.xlane.f32.xlu0 %v9899_v48  ;;  %v9903_v30 = vpop.eup %7566  ;;  %v7108_v54 = vpop.f32.mrf.mxu1 }
 0xad0   :  { %v9906_v18 = vpop.eup %7568  ;;  %v9972_v20 = vadd.f32 %v9805_v39, %v7108_v54  ;;  %v11422_v39 = vld [vmem:[#allocation28_spill] sm:$0xff] }
 0xad1   :  { %v9909_v7 = vpop.eup %7570  ;;  %v3820_v14 = vpop.f32.mrf.mxu1 }
 0xad2   :  { %v9912_v12 = vpop.eup %7572  ;;  %v9947_v6 = vadd.f32 %v9811_v15, %v3820_v14 }
 0xad3   :  { %3080 = vadd.xlane.f32.xlu1 %v9903_v30  ;;  %v7111_v50 = vpop.f32.mrf.mxu1 }
 0xad4   :  { %v9976_v4 = vadd.f32 %v9817_v32, %v7111_v50  ;;  %v11423_v32 = vld [vmem:[#allocation30_spill] sm:$0xff]  ;;  %v11427_v50 = vld [vmem:[#allocation32_spill] sm:$0xff] }
 0xad5   :  { %v3830_v51 = vpop.f32.mrf.mxu1 }
 0xad6   :  { %v9955_v3 = vadd.f32 %v9823_v40, %v3830_v51  ;;  %v9968_v40 = vadd.f32 %v9791_v59, %v7105_v45  ;;  %11420 = vst [vmem:[#allocation39_spill] sm:$0xff] %v9976_v4  ;;  %v11424_v45 = vld [vmem:[#allocation31_spill] sm:$0xff]  ;;  %v11429_v51 = vld [vmem:[#allocation34_spill] sm:$0xff] }
 0xad7   :  { %3084 = vadd.xlane.f32.xlu1 %v9906_v18  ;;  %v7114_v53 = vpop.f32.mrf.mxu1 }
 0xad8   :  { %v9980_v13 = vadd.f32 %v9829_v17, %v7114_v53  ;;  %v11425_v17 = vld [vmem:[#allocation29_spill] sm:$0xff] }
 0xad9   :  { %v3840_v34 = vpop.f32.mrf.mxu1 }
 0xada   :  { %v9963_v14 = vadd.f32 %v9841_v16, %v3840_v34  ;;  %11421 = vst [vmem:[#allocation55_spill] sm:$0xff] %v9980_v13  ;;  %v11430_v34 = vld [vmem:[#allocation37_spill] sm:$0xff] }
 0xadb   :  { %3088 = vadd.xlane.f32.xlu1 %v9909_v7 }
 0xadf   :  { %3092 = vadd.xlane.f32.xlu1 %v9912_v12 }
 0xae5   :  { %3174 = vrot.lane.b32.xlu0 %v11418_v35, %s7875_s23  ;;  %v178_v35 = vld [vmem:[#allocation7 + $0x70] sm:$0xff] }
 0xaf0   :  { %3176 = vrot.lane.b32.xlu1 %v11419_v52, %s7875_s23 }
 0xb04   :  { %3851 = vmax.xlane.f32.xlu0 %v9920_v8 }
 0xb08   :  { %3853 = vmax.xlane.f32.xlu0 %v9924_v25 }
 0xb0c   :  { %3857 = vmax.xlane.f32.xlu0 %v9928_v41 }
 0xb10   :  { %3861 = vmax.xlane.f32.xlu0 %v9932_v43 }
 0xb14   :  { %3849 = vmax.xlane.f32.xlu1 %v9936_v57  ;;  %3865 = vmax.xlane.f32.xlu0 %v9939_v63 }
 0xb18   :  { %3855 = vmax.xlane.f32.xlu1 %v9944_v28  ;;  %3869 = vmax.xlane.f32.xlu0 %v9947_v6 }
 0xb1c   :  { %3859 = vmax.xlane.f32.xlu1 %v9952_v19  ;;  %3873 = vmax.xlane.f32.xlu0 %v9955_v3 }
 0xb1d   :  { %v3065_v54 = vpop.xlane.xlu1 %3064 }
 0xb1f   :  { %v3063_v15 = vpop.xlane.xlu0 %3062 }
 0xb20   :  { %7574 = vrcp.f32 %v3063_v15  ;;  %3863 = vmax.xlane.f32.xlu1 %v9960_v24  ;;  %3877 = vmax.xlane.f32.xlu0 %v9963_v14 }
 0xb21   :  { %v3069_v53 = vpop.xlane.xlu1 %3068  ;;  %7576 = vrcp.f32 %v3065_v54 }
 0xb24   :  { %3867 = vmax.xlane.f32.xlu1 %v9968_v40 }
 0xb28   :  { %3871 = vmax.xlane.f32.xlu1 %v9972_v20 }
 0xb2c   :  { %3875 = vmax.xlane.f32.xlu1 %v9976_v4 }
 0xb2d   :  { %v7575_v16 = vpop.eup %7574 }
 0xb2e   :  { %v3110_v0 = vmul.f32 %v7575_v16, %v3063_v15  ;;  %v11431_v15 = vld [vmem:[#allocation36_spill] sm:$0xff] }
 0xb30   :  { %v3126_v56 = vsub.f32 2.0, %v3110_v0  ;;  %3879 = vmax.xlane.f32.xlu1 %v9980_v13  ;;  %v11432_v0 = vld [vmem:[#allocation38_spill] sm:$0xff] }
 0xb32   :  { %v3142_v59 = vmul.f32 %v7575_v16, %v3126_v56  ;;  %v3067_v16 = vpop.xlane.xlu1 %3066  ;;  %v3071_v56 = vpop.xlane.xlu0 %3070 }
 0xb33   :  { %7578 = vrcp.f32 %v3067_v16 }
 0xb34   :  { %v3158_v38 = vmul.f32 %v9859_v2, %v3142_v59  ;;  %v11428_v2 = vld [vmem:[#allocation35_spill] sm:$0xff]  ;;  %7580 = vrcp.f32 %v3069_v53 }
 0xb35   :  { %7582 = vrcp.f32 %v3071_v56 }
 0xb36   :  { %4071 = vrot.lane.b32.xlu0 %v11422_v39, %s7876_s24  ;;  %7009 = vmatprep.mubr.f32.mxu0 %v3158_v38  ;;  %v3075_v38 = vpop.xlane.xlu0 %3074 }
 0xb3a   :  { %4067 = vrot.lane.b32.xlu0 %v11423_v32, %s7876_s24 }
 0xb3e   :  { %4065 = vrot.lane.b32.xlu0 %v11424_v45, %s7876_s24  ;;  %v7577_v45 = vpop.eup %7576 }
 0xb41   :  { %4069 = vrot.lane.b32.xlu1 %v11425_v17, %s7876_s24 }
 0xb42   :  { %4061 = vrot.lane.b32.xlu0 %v11426_v29, %s7876_s24 }
 0xb45   :  { %4063 = vrot.lane.b32.xlu1 %v11427_v50, %s7876_s24  ;;  %v3111_v50 = vmul.f32 %v7577_v45, %v3065_v54 }
 0xb46   :  { %4057 = vrot.lane.b32.xlu0 %v11428_v2, %s7876_s24 }
 0xb49   :  { %4059 = vrot.lane.b32.xlu1 %v11429_v51, %s7876_s24 }
 0xb4a   :  { %4053 = vrot.lane.b32.xlu0 %v11430_v34, %s7876_s24 }
 0xb4d   :  { %4055 = vrot.lane.b32.xlu1 %v11431_v15, %s7876_s24 }
 0xb4e   :  { %4049 = vrot.lane.b32.xlu0 %v11415_v62, %s7876_s24  ;;  %v3079_v62 = vpop.xlane.xlu0 %3078 }
 0xb51   :  { %4051 = vrot.lane.b32.xlu1 %v11432_v0, %s7876_s24  ;;  %v3127_v0 = vsub.f32 2.0, %v3111_v50 }
 0xb52   :  { %4045 = vrot.lane.b32.xlu0 %v11417_v44, %s7876_s24  ;;  %v3083_v17 = vpop.xlane.xlu0 %3082  ;;  %v7579_v44 = vpop.eup %7578 }
 0xb53   :  { %v7581_v2 = vpop.eup %7580  ;;  %v3112_v51 = vmul.f32 %v7579_v44, %v3067_v16  ;;  %v3143_v60 = vmul.f32 %v7577_v45, %v3127_v0 }
 0xb54   :  { %v3073_v59 = vpop.xlane.xlu1 %3072  ;;  %v7583_v15 = vpop.eup %7582  ;;  %v3113_v55 = vmul.f32 %v7581_v2, %v3069_v53 }
 0xb55   :  { %4047 = vrot.lane.b32.xlu1 %v11416_v47, %s7876_s24  ;;  %7584 = vrcp.f32 %v3073_v59  ;;  %v3128_v5 = vsub.f32 2.0, %v3112_v51  ;;  %v3114_v10 = vmul.f32 %v7583_v15, %v3071_v56  ;;  %v3159_v1 = vmul.f32 %v9856_v36, %v3143_v60 }
 0xb56   :  { %7586 = vrcp.f32 %v3075_v38  ;;  %v10014_v47 = vpop.xlane.xlu0 %3086  ;;  %v3129_v27 = vsub.f32 2.0, %v3113_v55 }
 0xb57   :  { %v3144_v50 = vmul.f32 %v7579_v44, %v3128_v5  ;;  %v3130_v53 = vsub.f32 2.0, %v3114_v10 }
 0xb58   :  { %v3077_v39 = vpop.xlane.xlu1 %3076  ;;  %v3145_v13 = vmul.f32 %v7581_v2, %v3129_v27 }
 0xb59   :  { %7588 = vrcp.f32 %v3077_v39  ;;  %v3146_v5 = vmul.f32 %v7583_v15, %v3130_v53  ;;  %v3160_v44 = vmul.f32 %v9866_v58, %v3144_v50 }
 0xb5a   :  { %7590 = vrcp.f32 %v3079_v62  ;;  %v10020_v23 = vpop.xlane.xlu0 %3090 }
 0xb5c   :  { %v3081_v32 = vpop.xlane.xlu1 %3080 }
 0xb5d   :  { %7592 = vrcp.f32 %v3081_v32 }
 0xb5e   :  { %7594 = vrcp.f32 %v3083_v17  ;;  %v3175_v52 = vpop.permute.xlu0 %3174 }
 0xb60   :  { %v10012_v29 = vpop.xlane.xlu1 %3084 }
 0xb61   :  { %7596 = vrcp.f32 %v10012_v29 }
 0xb62   :  { %v7585_v42 = vpop.eup %7584  ;;  %7598 = vrcp.f32 %v10014_v47 }
 0xb63   :  { %v7587_v16 = vpop.eup %7586  ;;  %v3115_v21 = vmul.f32 %v7585_v42, %v3073_v59 }
 0xb64   :  { %v10016_v34 = vpop.xlane.xlu1 %3088  ;;  %v3116_v49 = vmul.f32 %v7587_v16, %v3075_v38 }
 0xb65   :  { %7600 = vrcp.f32 %v10016_v34  ;;  %v3131_v45 = vsub.f32 2.0, %v3115_v21  ;;  %v3161_v21 = vmul.f32 %v9863_v31, %v3145_v13 }
 0xb66   :  { %v7589_v33 = vpop.eup %7588  ;;  %7602 = vrcp.f32 %v10020_v23  ;;  %v3132_v10 = vsub.f32 2.0, %v3116_v49  ;;  %v3162_v49 = vmul.f32 %v9870_v9, %v3146_v5 }
 0xb67   :  { %v7591_v56 = vpop.eup %7590  ;;  %v3117_v55 = vmul.f32 %v7589_v33, %v3077_v39  ;;  %v3147_v60 = vmul.f32 %v7585_v42, %v3131_v45 }
 0xb68   :  { %v10022_v54 = vpop.xlane.xlu1 %3092  ;;  %v3118_v38 = vmul.f32 %v7591_v56, %v3079_v62  ;;  %v3148_v2 = vmul.f32 %v7587_v16, %v3132_v10 }
 0xb69   :  { %7604 = vrcp.f32 %v10022_v54  ;;  %v3133_v36 = vsub.f32 2.0, %v3117_v55 }
 0xb6a   :  { %v7593_v59 = vpop.eup %7592  ;;  %v3164_v13 = vmul.f32 %v9874_v11, %v3148_v2 }
 0xb6b   :  { %v7595_v0 = vpop.eup %7594  ;;  %v3119_v27 = vmul.f32 %v7593_v59, %v3081_v32  ;;  %v3149_v58 = vmul.f32 %v7589_v33, %v3133_v36 }
 0xb6c   :  { %v3177_v51 = vpop.permute.xlu1 %3176  ;;  %v3120_v4 = vmul.f32 %v7595_v0, %v3083_v17 }
 0xb6d   :  { %7005 = vmatprep.subr.mxu0 %v3177_v51  ;;  %v3165_v33 = vmul.f32 %v9897_v26, %v3149_v58 }
 0xb6e   :  { %7006 = vmatpush3.msra.mxu0 %v3177_v51  ;;  %v7597_v39 = vpop.eup %7596  ;;  %v3134_v51 = vsub.f32 2.0, %v3118_v38  ;;  %v3136_v32 = vsub.f32 2.0, %v3120_v4 }
 0xb6f   :  { %7007 = vmatprep.subr.mxu0 %v3175_v52  ;;  %v7599_v62 = vpop.eup %7598 }
 0xb70   :  { %7008 = vmatpush3.msra.mxu0 %v3175_v52  ;;  %v3135_v52 = vsub.f32 2.0, %v3119_v27  ;;  %v3150_v15 = vmul.f32 %v7591_v56, %v3134_v51  ;;  %v3122_v31 = vmul.f32 %v7599_v62, %v10014_v47 }
 0xb71   :  { %7010 = vmatmul.mubr.f32.vlgmr.msra.gmra.mxu0 %v3159_v1  ;;  %7033 = vmatprep.subr.mxu0 %v178_v35  ;;  %v3121_v1 = vmul.f32 %v7597_v39, %v10012_v29  ;;  %v3152_v29 = vmul.f32 %v7595_v0, %v3136_v32 }
 0xb72   :  { %7012 = vmatprep.mubr.f32.mxu0 %v3160_v44  ;;  %7034 = vmatpush3.msra.mxu0 %v178_v35  ;;  %v3163_v35 = vmul.f32 %v9894_v37, %v3147_v60  ;;  %v7601_v42 = vpop.eup %7600  ;;  %v3151_v9 = vmul.f32 %v7593_v59, %v3135_v52  ;;  %v3138_v45 = vsub.f32 2.0, %v3122_v31  ;;  %v3166_v4 = vmul.f32 %v9878_v61, %v3150_v15 }
 0xb73   :  { %v7603_v16 = vpop.eup %7602  ;;  %v3137_v17 = vsub.f32 2.0, %v3121_v1  ;;  %v3123_v50 = vmul.f32 %v7601_v42, %v10016_v34  ;;  %v3168_v34 = vmul.f32 %v9881_v22, %v3152_v29 }
 0xb74   :  { %v3124_v37 = vmul.f32 %v7603_v16, %v10020_v23  ;;  %v3167_v55 = vmul.f32 %v9903_v30, %v3151_v9  ;;  %v3154_v59 = vmul.f32 %v7599_v62, %v3138_v45 }
 0xb75   :  { %7013 = vmatmul.mubr.f32.gmra.mxu0 %v3161_v21  ;;  %v3153_v47 = vmul.f32 %v7597_v39, %v3137_v17  ;;  %v3139_v11 = vsub.f32 2.0, %v3123_v50 }
 0xb76   :  { %7015 = vmatprep.mubr.f32.mxu0 %v3162_v49  ;;  %v7605_v53 = vpop.eup %7604  ;;  %v3140_v5 = vsub.f32 2.0, %v3124_v37  ;;  %v3170_v61 = vmul.f32 %v9888_v46, %v3154_v59 }
 0xb77   :  { %v3125_v56 = vmul.f32 %v7605_v53, %v10022_v54  ;;  %v3155_v26 = vmul.f32 %v7601_v42, %v3139_v11  ;;  %v3169_v23 = vmul.f32 %v9906_v18, %v3153_v47 }
 0xb78   :  { %v3156_v38 = vmul.f32 %v7603_v16, %v3140_v5 }
 0xb79   :  { %7016 = vmatmul.mubr.f32.gmra.mxu0 %v3163_v35  ;;  %v3141_v10 = vsub.f32 2.0, %v3125_v56  ;;  %v3171_v54 = vmul.f32 %v9909_v7, %v3155_v26  ;;  %v11433_v56 = vld [vmem:[#allocation39_spill] sm:$0xff] }
 0xb7a   :  { %7018 = vmatprep.mubr.f32.mxu0 %v3164_v13  ;;  %v3172_v30 = vmul.f32 %v9899_v48, %v3156_v38  ;;  %v11434_v26 = vld [vmem:[#allocation55_spill] sm:$0xff] }
 0xb7b   :  { %v3157_v44 = vmul.f32 %v7605_v53, %v3141_v10 }
 0xb7d   :  { %7019 = vmatmul.mubr.f32.gmra.mxu0 %v3165_v33  ;;  %v3173_v22 = vmul.f32 %v9912_v12, %v3157_v44 }
 0xb7e   :  { %7021 = vmatprep.mubr.f32.mxu0 %v3166_v4 }
 0xb81   :  { %7022 = vmatmul.mubr.f32.gmra.mxu0 %v3167_v55 }
 0xb82   :  { %7024 = vmatprep.mubr.f32.mxu0 %v3168_v34 }
 0xb85   :  { %7025 = vmatmul.mubr.f32.gmra.mxu0 %v3169_v23 }
 0xb86   :  { %7027 = vmatprep.mubr.f32.mxu0 %v3170_v61 }
 0xb89   :  { %7028 = vmatmul.mubr.f32.gmra.mxu0 %v3171_v54 }
 0xb8a   :  { %7030 = vmatprep.mubr.f32.mxu0 %v3172_v30 }
 0xb8d   :  { %7031 = vmatmul.mubr.f32.gmra.mxu0 %v3173_v22  ;;  %v3852_v0 = vpop.xlane.xlu0 %3851 }
 0xb8e   :  { %v3882_v60 = vsub.f32 %v9920_v8, %v3852_v0 }
 0xb90   :  { %v3899_v36 = vmul.f32 1.442695, %v3882_v60 }
 0xb91   :  { %v3854_v18 = vpop.xlane.xlu0 %3853 }
 0xb92   :  { %7606 = vpow2.f32 %v3899_v36  ;;  %v3883_v12 = vsub.f32 %v9924_v25, %v3854_v18  ;;  %v11435_v18 = vld [vmem:[#allocation46_spill] sm:$0xff] }
 0xb94   :  { %v3901_v1 = vmul.f32 1.442695, %v3883_v12 }
 0xb95   :  { %v3858_v27 = vpop.xlane.xlu0 %3857 }
 0xb96   :  { %v3885_v21 = vsub.f32 %v9928_v41, %v3858_v27  ;;  %v11436_v27 = vld [vmem:[#allocation45_spill] sm:$0xff] }
 0xb98   :  { %v3905_v49 = vmul.f32 1.442695, %v3885_v21 }
 0xb99   :  { %v3862_v46 = vpop.xlane.xlu0 %3861 }
 0xb9a   :  { %v3887_v58 = vsub.f32 %v9932_v43, %v3862_v46  ;;  %v10118_v46 = vpop.f32.mrf.mxu0 }
 0xb9c   :  { %v3909_v15 = vmul.f32 1.442695, %v3887_v58  ;;  %v10120_v21 = vpop.f32.mrf.mxu0 }
 0xb9d   :  { %v3850_v39 = vpop.xlane.xlu1 %3849  ;;  %v3866_v2 = vpop.xlane.xlu0 %3865 }
 0xb9e   :  { %v3881_v7 = vsub.f32 %v9936_v57, %v3850_v39  ;;  %v3889_v57 = vsub.f32 %v9939_v63, %v3866_v2  ;;  %v10122_v39 = vpop.f32.mrf.mxu0 }
 0xb9f   :  { %v10050_v48 = vpop.eup %7606 }
 0xba0   :  { %v3897_v51 = vmul.f32 1.442695, %v3881_v7  ;;  %3931 = vadd.xlane.f32.xlu1 %v10050_v48  ;;  %v3913_v25 = vmul.f32 1.442695, %v3889_v57  ;;  %v10124_v2 = vpop.f32.mrf.mxu0 }
 0xba1   :  { %v3856_v8 = vpop.xlane.xlu1 %3855  ;;  %v3870_v62 = vpop.xlane.xlu0 %3869 }
 0xba2   :  { %7608 = vpow2.f32 %v3897_v51  ;;  %v3884_v52 = vsub.f32 %v9944_v28, %v3856_v8  ;;  %v3891_v31 = vsub.f32 %v9947_v6, %v3870_v62  ;;  %v10126_v7 = vpop.f32.mrf.mxu0 }
 0xba3   :  { %7610 = vpow2.f32 %v3905_v49 }
 0xba4   :  { %v3903_v41 = vmul.f32 1.442695, %v3884_v52  ;;  %v3917_v9 = vmul.f32 1.442695, %v3891_v31  ;;  %v10128_v51 = vpop.f32.mrf.mxu0 }
 0xba5   :  { %v3860_v35 = vpop.xlane.xlu1 %3859  ;;  %v3874_v42 = vpop.xlane.xlu0 %3873 }
 0xba6   :  { %7612 = vpow2.f32 %v3903_v41  ;;  %v3886_v32 = vsub.f32 %v9952_v19, %v3860_v35  ;;  %v3893_v63 = vsub.f32 %v9955_v3, %v3874_v42  ;;  %v10130_v12 = vpop.f32.mrf.mxu0 }
 0xba7   :  { %7614 = vpow2.f32 %v3901_v1 }
 0xba8   :  { %7616 = vpow2.f32 %v3909_v15  ;;  %v3907_v16 = vmul.f32 1.442695, %v3886_v32  ;;  %v3921_v53 = vmul.f32 1.442695, %v3893_v63  ;;  %v10132_v49 = vpop.f32.mrf.mxu0 }
 0xba9   :  { %v3864_v13 = vpop.xlane.xlu1 %3863  ;;  %v3878_v43 = vpop.xlane.xlu0 %3877  ;;  %7618 = vpow2.f32 %v3913_v25 }
 0xbaa   :  { %v3888_v28 = vsub.f32 %v9960_v24, %v3864_v13  ;;  %7620 = vpow2.f32 %v3907_v16  ;;  %v3895_v24 = vsub.f32 %v9963_v14, %v3878_v43  ;;  %v10134_v62 = vpop.f32.mrf.mxu0 }
 0xbab   :  { %7622 = vpow2.f32 %v3917_v9 }
 0xbac   :  { %v3911_v33 = vmul.f32 1.442695, %v3888_v28  ;;  %v10136_v52 = vpop.f32.mrf.mxu0 }
 0xbad   :  { %v3868_v17 = vpop.xlane.xlu1 %3867  ;;  %v10061_v50 = vpop.permute.xlu0 %4071 }
 0xbae   :  { %v3890_v19 = vsub.f32 %v9968_v40, %v3868_v17  ;;  %7115 = vmatprep.subr.mxu0 %v10061_v50  ;;  %7624 = vpow2.f32 %v3911_v33  ;;  %v3925_v40 = vmul.f32 1.442695, %v3895_v24  ;;  %v10138_v1 = vpop.f32.mrf.mxu0 }
 0xbaf   :  { %v10065_v6 = vpop.eup %7608  ;;  %7626 = vpow2.f32 %v3921_v53 }
 0xbb0   :  { %3929 = vadd.xlane.f32.xlu0 %v10065_v6  ;;  %v10069_v45 = vpop.eup %7610  ;;  %v3915_v3 = vmul.f32 1.442695, %v3890_v19  ;;  %v10140_v42 = vpop.f32.mrf.mxu0 }
 0xbb1   :  { %v3872_v29 = vpop.xlane.xlu1 %3871  ;;  %v4068_v8 = vpop.permute.xlu0 %4067 }
 0xbb2   :  { %v3892_v37 = vsub.f32 %v9972_v20, %v3872_v29  ;;  %7628 = vpow2.f32 %v3915_v3  ;;  %v10142_v32 = vpop.f32.mrf.mxu0 }
 0xbb3   :  { %v10072_v4 = vpop.eup %7612  ;;  %7630 = vpow2.f32 %v3925_v40 }
 0xbb4   :  { %3935 = vadd.xlane.f32.xlu1 %v10072_v4  ;;  %3937 = vadd.xlane.f32.xlu0 %v10069_v45  ;;  %v10076_v11 = vpop.eup %7614  ;;  %v3919_v14 = vmul.f32 1.442695, %v3892_v37  ;;  %v10144_v31 = vpop.f32.mrf.mxu0 }
 0xbb5   :  { %v3876_v47 = vpop.xlane.xlu1 %3875  ;;  %v10079_v59 = vpop.eup %7616 }
 0xbb6   :  { %v3894_v55 = vsub.f32 %v11433_v56, %v3876_v47  ;;  %v10083_v5 = vpop.eup %7618  ;;  %7632 = vpow2.f32 %v3919_v14  ;;  %v4066_v41 = vpop.permute.xlu0 %4065 }
 0xbb7   :  { %v10086_v23 = vpop.eup %7620  ;;  %v10146_v16 = vpop.f32.mrf.mxu0 }
 0xbb8   :  { %3933 = vadd.xlane.f32.xlu1 %v10076_v11  ;;  %3941 = vadd.xlane.f32.xlu0 %v10079_v59  ;;  %v3923_v34 = vmul.f32 1.442695, %v3894_v55  ;;  %v10090_v38 = vpop.eup %7622 }
 0xbb9   :  { %v3880_v20 = vpop.xlane.xlu1 %3879  ;;  %v10150_v9 = vpop.f32.mrf.mxu0 }
 0xbba   :  { %v3896_v10 = vsub.f32 %v11434_v26, %v3880_v20  ;;  %7634 = vpow2.f32 %v3923_v34  ;;  %v4062_v35 = vpop.permute.xlu0 %4061 }
 0xbbb   :  { %v10092_v44 = vpop.eup %7624 }
 0xbbc   :  { %3939 = vadd.xlane.f32.xlu1 %v10086_v23  ;;  %3945 = vadd.xlane.f32.xlu0 %v10083_v5  ;;  %v3927_v61 = vmul.f32 1.442695, %v3896_v10  ;;  %v10096_v54 = vpop.eup %7626 }
 0xbbd   :  { %v4070_v58 = vpop.permute.xlu1 %4069 }
 0xbbe   :  { %7636 = vpow2.f32 %v3927_v61  ;;  %v4058_v25 = vpop.permute.xlu0 %4057 }
 0xbbf   :  { %v10098_v30 = vpop.eup %7628 }
 0xbc0   :  { %3943 = vadd.xlane.f32.xlu1 %v10092_v44  ;;  %3949 = vadd.xlane.f32.xlu0 %v10090_v38  ;;  %v10102_v22 = vpop.eup %7630 }
 0xbc1   :  { %v4064_v57 = vpop.permute.xlu1 %4063 }
 0xbc2   :  { %v4054_v43 = vpop.permute.xlu0 %4053 }
 0xbc3   :  { %v10104_v0 = vpop.eup %7632 }
 0xbc4   :  { %3947 = vadd.xlane.f32.xlu1 %v10098_v30  ;;  %3953 = vadd.xlane.f32.xlu0 %v10096_v54 }
 0xbc5   :  { %v4060_v15 = vpop.permute.xlu1 %4059 }
 0xbc6   :  { %v10152_v63 = vpop.permute.xlu0 %4049 }
 0xbc7   :  { %v10108_v60 = vpop.eup %7634 }
 0xbc8   :  { %3951 = vadd.xlane.f32.xlu1 %v10104_v0  ;;  %3957 = vadd.xlane.f32.xlu0 %v10102_v22 }
 0xbc9   :  { %v4056_v13 = vpop.permute.xlu1 %4055 }
 0xbca   :  { %v10157_v53 = vpop.permute.xlu0 %4045 }
 0xbcb   :  { %v10111_v36 = vpop.eup %7636 }
 0xbcc   :  { %3955 = vadd.xlane.f32.xlu1 %v10108_v60 }
 0xbcd   :  { %v10148_v28 = vpop.permute.xlu1 %4051 }
 0xbd0   :  { %3959 = vadd.xlane.f32.xlu1 %v10111_v36 }
 0xbd1   :  { %v10154_v19 = vpop.permute.xlu1 %4047 }
 0xbde   :  { %4041 = vrot.lane.b32.xlu0 %v11435_v18, %s7876_s24 }
 0xbe1   :  { %4043 = vrot.lane.b32.xlu1 %v11436_v27, %s7876_s24 }
 0xc29   :  { %v10161_v3 = vpop.xlane.xlu1 %3931 }
 0xc31   :  { %v7011_v17 = vpop.f32.mrf.mxu0 }
 0xc33   :  { %v3288_v33 = vpop.f32.mrf.mxu0 }
 0xc34   :  { %7035 = vmatprep.mubr.msk.f32.mxu0 %vm1070_vm1, %v3288_v33 }
 0xc35   :  { %v7014_v24 = vpop.f32.mrf.mxu0  ;;  %7036 = vmatmul.mubr.msk.f32.vlgmr.msra.gmra.mxu0 %vm1070_vm1, %v7011_v17 }
 0xc36   :  { %7116 = vmatpush3.msra.mxu0 %v10061_v50 }
 0xc37   :  { %7117 = vmatprep.subr.mxu0 %v4070_v58  ;;  %v3298_v29 = vpop.f32.mrf.mxu0 }
 0xc38   :  { %7118 = vmatpush3.msra.mxu0 %v4070_v58  ;;  %7038 = vmatprep.mubr.msk.f32.mxu0 %vm1070_vm1, %v3298_v29 }
 0xc39   :  { %7119 = vmatprep.subr.mxu0 %v4068_v8  ;;  %v7017_v37 = vpop.f32.mrf.mxu0  ;;  %7039 = vmatmul.mubr.msk.f32.gmra.mxu0 %vm1070_vm1, %v7014_v24  ;;  %v3930_v40 = vpop.xlane.xlu0 %3929 }
 0xc3a   :  { %7120 = vmatpush3.msra.mxu0 %v4068_v8  ;;  %7638 = vrcp.f32 %v3930_v40 }
 0xc3b   :  { %7121 = vmatprep.subr.mxu0 %v4066_v41  ;;  %v3308_v47 = vpop.f32.mrf.mxu0  ;;  %7640 = vrcp.f32 %v10161_v3 }
 0xc3c   :  { %7122 = vmatpush3.msra.mxu0 %v4066_v41  ;;  %7041 = vmatprep.mubr.msk.f32.mxu0 %vm1070_vm1, %v3308_v47 }
 0xc3d   :  { %7123 = vmatprep.subr.mxu0 %v4064_v57  ;;  %v7020_v50 = vpop.f32.mrf.mxu0  ;;  %7042 = vmatmul.mubr.msk.f32.gmra.mxu0 %vm1070_vm1, %v7017_v37  ;;  %v10167_v14 = vpop.xlane.xlu1 %3935 }
 0xc3e   :  { %7124 = vmatpush3.msra.mxu0 %v4064_v57  ;;  %v10169_v56 = vpop.xlane.xlu0 %3937 }
 0xc3f   :  { %7125 = vmatprep.subr.mxu0 %v4062_v35  ;;  %v3318_v55 = vpop.f32.mrf.mxu0 }
 0xc40   :  { %7126 = vmatpush3.msra.mxu0 %v4062_v35  ;;  %7044 = vmatprep.mubr.msk.f32.mxu0 %vm1070_vm1, %v3318_v55 }
 0xc41   :  { %7127 = vmatprep.subr.mxu0 %v4060_v15  ;;  %v7023_v20 = vpop.f32.mrf.mxu0  ;;  %7045 = vmatmul.mubr.msk.f32.gmra.mxu0 %vm1070_vm1, %v7020_v50  ;;  %v3934_v34 = vpop.xlane.xlu1 %3933 }
 0xc42   :  { %7128 = vmatpush3.msra.mxu0 %v4060_v15  ;;  %v10173_v26 = vpop.xlane.xlu0 %3941  ;;  %7642 = vrcp.f32 %v3934_v34 }
 0xc43   :  { %7129 = vmatprep.subr.mxu0 %v4058_v25  ;;  %v3328_v10 = vpop.f32.mrf.mxu0  ;;  %7644 = vrcp.f32 %v10167_v14 }
 0xc44   :  { %7130 = vmatpush3.msra.mxu0 %v4058_v25  ;;  %7047 = vmatprep.mubr.msk.f32.mxu0 %vm1070_vm1, %v3328_v10  ;;  %7646 = vrcp.f32 %v10169_v56 }
 0xc45   :  { %7131 = vmatprep.subr.mxu0 %v4056_v13  ;;  %v7026_v61 = vpop.f32.mrf.mxu0  ;;  %7048 = vmatmul.mubr.msk.f32.gmra.mxu0 %vm1070_vm1, %v7023_v20  ;;  %v3940_v18 = vpop.xlane.xlu1 %3939 }
 0xc46   :  { %7132 = vmatpush3.msra.mxu0 %v4056_v13  ;;  %v10178_v27 = vpop.xlane.xlu0 %3945  ;;  %7648 = vrcp.f32 %v3940_v18 }
 0xc47   :  { %v7639_v8 = vpop.eup %7638  ;;  %7133 = vmatprep.subr.mxu0 %v4054_v43  ;;  %v3338_v58 = vpop.f32.mrf.mxu0  ;;  %7650 = vrcp.f32 %v10173_v26 }
 0xc48   :  { %v3977_v41 = vmul.f32 %v7639_v8, %v3930_v40  ;;  %7134 = vmatpush3.msra.mxu0 %v4054_v43  ;;  %7050 = vmatprep.mubr.msk.f32.mxu0 %vm1070_vm1, %v3338_v58  ;;  %v7641_v24 = vpop.eup %7640 }
 0xc49   :  { %7135 = vmatprep.subr.mxu0 %v10148_v28  ;;  %v7029_v57 = vpop.f32.mrf.mxu0  ;;  %7051 = vmatmul.mubr.msk.f32.gmra.mxu0 %vm1070_vm1, %v7026_v61  ;;  %v10185_v35 = vpop.xlane.xlu1 %3943 }
 0xc4a   :  { %v3993_v15 = vsub.f32 2.0, %v3977_v41  ;;  %7136 = vmatpush3.msra.mxu0 %v10148_v28  ;;  %v10189_v43 = vpop.xlane.xlu0 %3949  ;;  %7652 = vrcp.f32 %v10185_v35 }
 0xc4b   :  { %7137 = vmatprep.subr.mxu0 %v10152_v63  ;;  %v3348_v25 = vpop.f32.mrf.mxu0  ;;  %7654 = vrcp.f32 %v10178_v27 }
 0xc4c   :  { %v4009_v13 = vmul.f32 %v7639_v8, %v3993_v15  ;;  %7138 = vmatpush3.msra.mxu0 %v10152_v63  ;;  %7053 = vmatprep.mubr.msk.f32.mxu0 %vm1070_vm1, %v3348_v25 }
 0xc4d   :  { %7139 = vmatprep.subr.mxu0 %v10154_v19  ;;  %v7032_v17 = vpop.f32.mrf.mxu0  ;;  %7054 = vmatmul.mubr.msk.f32.gmra.mxu0 %vm1070_vm1, %v7029_v57  ;;  %v10196_v33 = vpop.xlane.xlu1 %3947 }
 0xc4e   :  { %7140 = vmatpush3.msra.mxu0 %v10154_v19  ;;  %v4025_v63 = vmul.f32 %v10065_v6, %v4009_v13  ;;  %v3978_v19 = vmul.f32 %v7641_v24, %v10161_v3  ;;  %v10209_v40 = vpop.xlane.xlu0 %3953  ;;  %7656 = vrcp.f32 %v10196_v33 }
 0xc4f   :  { %7141 = vmatprep.subr.mxu0 %v10157_v53  ;;  %v3358_v28 = vpop.f32.mrf.mxu0  ;;  %v7643_v37 = vpop.eup %7642  ;;  %7658 = vrcp.f32 %v10189_v43 }
 0xc50   :  { %7142 = vmatpush3.msra.mxu0 %v10157_v53  ;;  %7056 = vmatprep.mubr.msk.f32.mxu0 %vm1070_vm1, %v3358_v28  ;;  %v7645_v47 = vpop.eup %7644  ;;  %v3979_v53 = vmul.f32 %v7643_v37, %v3934_v34  ;;  %v3994_v55 = vsub.f32 2.0, %v3978_v19 }
 0xc51   :  { %7057 = vmatmul.mubr.msk.f32.gmra.mxu0 %vm1070_vm1, %v7032_v17  ;;  %v10206_v29 = vpop.xlane.xlu1 %3951  ;;  %v7647_v6 = vpop.eup %7646  ;;  %v3980_v20 = vmul.f32 %v7645_v47, %v10167_v14 }
 0xc52   :  { %7147 = vmatprep.mubr.f32.mxu0 %v4025_v63  ;;  %7660 = vrcp.f32 %v10206_v29  ;;  %v3981_v61 = vmul.f32 %v7647_v6, %v10169_v56  ;;  %v3995_v3 = vsub.f32 2.0, %v3979_v53  ;;  %v10219_v8 = vpop.xlane.xlu0 %3957  ;;  %v4010_v41 = vmul.f32 %v7641_v24, %v3994_v55 }
 0xc53   :  { %v7649_v10 = vpop.eup %7648  ;;  %7662 = vrcp.f32 %v10209_v40  ;;  %v3996_v57 = vsub.f32 2.0, %v3980_v20 }
 0xc54   :  { %v7651_v34 = vpop.eup %7650  ;;  %v3982_v15 = vmul.f32 %v7649_v10, %v3940_v18  ;;  %v3997_v14 = vsub.f32 2.0, %v3981_v61  ;;  %v4011_v13 = vmul.f32 %v7643_v37, %v3995_v3  ;;  %v4026_v63 = vmul.f32 %v10050_v48, %v4010_v41 }
 0xc55   :  { %v10213_v50 = vpop.xlane.xlu1 %3955  ;;  %v3983_v17 = vmul.f32 %v7651_v34, %v10173_v26  ;;  %v4012_v53 = vmul.f32 %v7645_v47, %v3996_v57 }
 0xc56   :  { %7664 = vrcp.f32 %v10213_v50  ;;  %v4042_v19 = vpop.permute.xlu0 %4041  ;;  %v3998_v24 = vsub.f32 2.0, %v3982_v15  ;;  %v4013_v37 = vmul.f32 %v7647_v6, %v3997_v14  ;;  %v4027_v61 = vmul.f32 %v10076_v11, %v4011_v13 }
 0xc57   :  { %v7653_v25 = vpop.eup %7652  ;;  %7666 = vrcp.f32 %v10219_v8  ;;  %v3999_v20 = vsub.f32 2.0, %v3983_v17  ;;  %v4028_v48 = vmul.f32 %v10072_v4, %v4012_v53 }
 0xc58   :  { %v7655_v28 = vpop.eup %7654  ;;  %v3984_v18 = vmul.f32 %v7653_v25, %v10185_v35  ;;  %v4014_v47 = vmul.f32 %v7649_v10, %v3998_v24  ;;  %v4029_v14 = vmul.f32 %v10069_v45, %v4013_v37 }
 0xc59   :  { %v10221_v58 = vpop.xlane.xlu1 %3959  ;;  %v3985_v26 = vmul.f32 %v7655_v28, %v10178_v27  ;;  %v4015_v15 = vmul.f32 %v7651_v34, %v3999_v20 }
 0xc5a   :  { %7668 = vrcp.f32 %v10221_v58  ;;  %v4000_v41 = vsub.f32 2.0, %v3984_v18  ;;  %v4030_v11 = vmul.f32 %v10086_v23, %v4014_v47 }
 0xc5b   :  { %v7657_v55 = vpop.eup %7656  ;;  %v4031_v34 = vmul.f32 %v10079_v59, %v4015_v15 }
 0xc5c   :  { %v7659_v3 = vpop.eup %7658  ;;  %v3986_v35 = vmul.f32 %v7657_v55, %v10196_v33  ;;  %v4016_v13 = vmul.f32 %v7653_v25, %v4000_v41  ;;  %v179_v41 = vld [vmem:[#allocation7 + $0x78] sm:$0xff] }
 0xc5d   :  { %v4044_v56 = vpop.permute.xlu1 %4043  ;;  %v3987_v6 = vmul.f32 %v7659_v3, %v10189_v43 }
 0xc5e   :  { %7143 = vmatprep.subr.mxu0 %v4044_v56  ;;  %v4002_v17 = vsub.f32 2.0, %v3986_v35  ;;  %v4032_v45 = vmul.f32 %v10092_v44, %v4016_v13 }
 0xc5f   :  { %7144 = vmatpush3.msra.mxu0 %v4044_v56  ;;  %v7661_v57 = vpop.eup %7660  ;;  %v4001_v56 = vsub.f32 2.0, %v3985_v26 }
 0xc60   :  { %7145 = vmatprep.subr.mxu0 %v4042_v19  ;;  %v7663_v27 = vpop.eup %7662  ;;  %v3988_v4 = vmul.f32 %v7661_v57, %v10206_v29  ;;  %v4018_v43 = vmul.f32 %v7657_v55, %v4002_v17 }
 0xc61   :  { %7146 = vmatpush3.msra.mxu0 %v4042_v19  ;;  %v4003_v19 = vsub.f32 2.0, %v3987_v6  ;;  %v3989_v33 = vmul.f32 %v7663_v27, %v10209_v40  ;;  %v11439_v6 = vld [vmem:[#allocation65_spill] sm:$0xff] }
 0xc62   :  { %7148 = vmatmul.mubr.f32.vlgmr.msra.gmra.mxu0 %v4026_v63  ;;  %v4017_v63 = vmul.f32 %v7655_v28, %v4001_v56  ;;  %v4004_v24 = vsub.f32 2.0, %v3988_v4  ;;  %v4034_v59 = vmul.f32 %v10098_v30, %v4018_v43  ;;  %7171 = vmatprep.subr.mxu0 %v179_v41  ;;  %v11444_v43 = vld [vmem:[#allocation71_spill] sm:$0xff] }
 0xc63   :  { %7150 = vmatprep.mubr.f32.mxu0 %v4027_v61  ;;  %v7665_v10 = vpop.eup %7664  ;;  %v4019_v18 = vmul.f32 %v7659_v3, %v4003_v19  ;;  %v4005_v37 = vsub.f32 2.0, %v3989_v33  ;;  %7172 = vmatpush3.msra.mxu0 %v179_v41  ;;  %v11452_v41 = vld [vmem:[#allocation52_spill] sm:$0xff] }
 0xc64   :  { %v7667_v53 = vpop.eup %7666  ;;  %v3990_v23 = vmul.f32 %v7665_v10, %v10213_v50  ;;  %v4033_v28 = vmul.f32 %v10083_v5, %v4017_v63  ;;  %v4020_v40 = vmul.f32 %v7661_v57, %v4004_v24  ;;  %v11442_v63 = vld [vmem:[#allocation70_spill] sm:$0xff]  ;;  %v2661_v24 = vadd.f32 %v10132_v49, %v11444_v43 }
 0xc65   :  { %v3991_v29 = vmul.f32 %v7667_v53, %v10219_v8  ;;  %v4021_v44 = vmul.f32 %v7663_v27, %v4005_v37  ;;  %v4035_v61 = vmul.f32 %v10090_v38, %v4019_v18  ;;  %v11440_v27 = vld [vmem:[#allocation68_spill] sm:$0xff]  ;;  %v2651_v19 = vadd.f32 %v10128_v51, %v11442_v63 }
 0xc66   :  { %7151 = vmatmul.mubr.f32.gmra.mxu0 %v4028_v48  ;;  %v4006_v20 = vsub.f32 2.0, %v3990_v23  ;;  %v4036_v50 = vmul.f32 %v10104_v0, %v4020_v40  ;;  %v11437_v0 = vld [vmem:[#allocation63_spill] sm:$0xff] }
 0xc67   :  { %7153 = vmatprep.mubr.f32.mxu0 %v4029_v14  ;;  %v7669_v25 = vpop.eup %7668  ;;  %v4007_v55 = vsub.f32 2.0, %v3991_v29  ;;  %v4037_v5 = vmul.f32 %v10096_v54, %v4021_v44  ;;  %v2636_v35 = vadd.f32 %v10118_v46, %v11437_v0  ;;  %v11438_v54 = vld [vmem:[#allocation66_spill] sm:$0xff]  ;;  %v11441_v46 = vld [vmem:[#allocation67_spill] sm:$0xff]  ;;  %v11448_v44 = vld [vmem:[#allocation48_spill] sm:$0xff]  ;;  %v2701_v0 = vadd.f32 %v10150_v9, %v11452_v41 }
 0xc68   :  { %v3992_v26 = vmul.f32 %v7669_v25, %v10221_v58  ;;  %v4022_v3 = vmul.f32 %v7665_v10, %v4006_v20  ;;  %v2631_v15 = vadd.f32 %v10120_v21, %v11438_v54  ;;  %v2656_v4 = vadd.f32 %v10126_v7, %v11441_v46  ;;  %v11446_v29 = vld [vmem:[#allocation51_spill] sm:$0xff] }
 0xc69   :  { %v4023_v48 = vmul.f32 %v7667_v53, %v4007_v55  ;;  %v11447_v40 = vld [vmem:[#allocation47_spill] sm:$0xff]  ;;  %v2681_v55 = vadd.f32 %v10140_v42, %v11448_v44 }
 0xc6a   :  { %7154 = vmatmul.mubr.f32.gmra.mxu0 %v4030_v11  ;;  %v4008_v8 = vsub.f32 2.0, %v3992_v26  ;;  %v4038_v30 = vmul.f32 %v10108_v60, %v4022_v3  ;;  %v2641_v11 = vadd.f32 %v10124_v2, %v11440_v27  ;;  %v2686_v20 = vadd.f32 %v10138_v1, %v11447_v40 }
 0xc6b   :  { %7156 = vmatprep.mubr.f32.mxu0 %v4031_v34  ;;  %v4039_v58 = vmul.f32 %v10102_v22, %v4023_v48  ;;  %v2646_v22 = vadd.f32 %v10122_v39, %v11439_v6  ;;  %v11443_v34 = vld [vmem:[#allocation69_spill] sm:$0xff] }
 0xc6c   :  { %v4024_v47 = vmul.f32 %v7669_v25, %v4008_v8  ;;  %v2666_v53 = vadd.f32 %v10130_v12, %v11443_v34  ;;  %v11445_v25 = vld [vmem:[#allocation50_spill] sm:$0xff]  ;;  %v11450_v48 = vld [vmem:[#allocation41_spill] sm:$0xff] }
 0xc6d   :  { %v2676_v18 = vadd.f32 %v10134_v62, %v11445_v25 }
 0xc6e   :  { %7157 = vmatmul.mubr.f32.gmra.mxu0 %v4032_v45  ;;  %v4040_v38 = vmul.f32 %v10111_v36, %v4024_v47  ;;  %v11451_v47 = vld [vmem:[#allocation44_spill] sm:$0xff] }
 0xc6f   :  { %7159 = vmatprep.mubr.f32.mxu0 %v4033_v28  ;;  %v2671_v28 = vadd.f32 %v10136_v52, %v11446_v29 }
 0xc72   :  { %7160 = vmatmul.mubr.f32.gmra.mxu0 %v4034_v59 }
 0xc73   :  { %7162 = vmatprep.mubr.f32.mxu0 %v4035_v61 }
 0xc76   :  { %7163 = vmatmul.mubr.f32.gmra.mxu0 %v4036_v50  ;;  %v11449_v50 = vld [vmem:[#allocation49_spill] sm:$0xff] }
 0xc77   :  { %7165 = vmatprep.mubr.f32.mxu0 %v4037_v5  ;;  %v2696_v3 = vadd.f32 %v10142_v32, %v11449_v50  ;;  %v2691_v5 = vadd.f32 %v10144_v31, %v11450_v48 }
 0xc7a   :  { %7166 = vmatmul.mubr.f32.gmra.mxu0 %v4038_v30 }
 0xc7b   :  { %7168 = vmatprep.mubr.f32.mxu0 %v4039_v58  ;;  %v2706_v58 = vadd.f32 %v10146_v16, %v11451_v47  ;;  %v11461_v47 = vld [vmem:[#allocation16_spill] sm:$0xff] }
 0xc7e   :  { %7169 = vmatmul.mubr.f32.gmra.mxu0 %v4040_v38 }
 0xcf5   :  { %v7037_v57 = vpop.f32.mrf.mxu0 }
 0xcf6   :  { %v10255_v56 = vadd.f32 %v7037_v57, %v2636_v35 }
 0xcf7   :  { %v3481_v60 = vpop.f32.mrf.mxu0 }
 0xcf8   :  { %v10259_v14 = vadd.f32 %v3481_v60, %v2631_v15 }
 0xcf9   :  { %v7040_v36 = vpop.f32.mrf.mxu0 }
 0xcfa   :  { %v10263_v13 = vadd.f32 %v7040_v36, %v2646_v22 }
 0xcfb   :  { %v3491_v17 = vpop.f32.mrf.mxu0 }
 0xcfc   :  { %v10267_v10 = vadd.f32 %v3491_v17, %v2641_v11 }
 0xcfd   :  { %v7043_v21 = vpop.f32.mrf.mxu0 }
 0xcfe   :  { %v10271_v33 = vadd.f32 %v7043_v21, %v2656_v4 }
 0xcff   :  { %v3501_v39 = vpop.f32.mrf.mxu0 }
 0xd00   :  { %v10275_v45 = vadd.f32 %v3501_v39, %v2651_v19  ;;  %v10334_v19 = vld [vmem:[%s11119_s4 + $0x5] ss:$0 sm:$0xff] }
 0xd01   :  { %v7046_v2 = vpop.f32.mrf.mxu0 }
 0xd02   :  { %v10279_v23 = vadd.f32 %v7046_v2, %v2666_v53 }
 0xd03   :  { %v3511_v7 = vpop.f32.mrf.mxu0 }
 0xd04   :  { %v10283_v37 = vadd.f32 %v3511_v7, %v2661_v24  ;;  %v11453_v7 = vld [vmem:[#allocation12_spill] sm:$0xff] }
 0xd05   :  { %v7049_v51 = vpop.f32.mrf.mxu0 }
 0xd06   :  { %v10287_v59 = vadd.f32 %v7049_v51, %v2676_v18 }
 0xd07   :  { %v3521_v12 = vpop.f32.mrf.mxu0 }
 0xd08   :  { %v10291_v26 = vadd.f32 %v3521_v12, %v2671_v28  ;;  %v11455_v28 = vld [vmem:[#allocation13_spill] sm:$0xff] }
 0xd09   :  { %v7052_v49 = vpop.f32.mrf.mxu0 }
 0xd0a   :  { %v10295_v61 = vadd.f32 %v7052_v49, %v2686_v20  ;;  %v11457_v49 = vld [vmem:[#allocation14_spill] sm:$0xff] }
 0xd0b   :  { %v3531_v62 = vpop.f32.mrf.mxu0 }
 0xd0c   :  { %v10299_v8 = vadd.f32 %v3531_v62, %v2681_v55 }
 0xd0d   :  { %v7055_v52 = vpop.f32.mrf.mxu0 }
 0xd0e   :  { %v10303_v30 = vadd.f32 %v7055_v52, %v2696_v3  ;;  %v11459_v3 = vld [vmem:[#allocation15_spill] sm:$0xff] }
 0xd0f   :  { %v3541_v1 = vpop.f32.mrf.mxu0 }
 0xd10   :  { %v10307_v38 = vadd.f32 %v3541_v1, %v2691_v5 }
 0xd11   :  { %v7058_v42 = vpop.f32.mrf.mxu0 }
 0xd12   :  { %v10311_v35 = vadd.f32 %v7058_v42, %v2706_v58 }
 0xd13   :  { %v3551_v32 = vpop.f32.mrf.mxu0 }
 0xd14   :  { %v10313_v57 = vadd.f32 %v3551_v32, %v2701_v0  ;;  %v11463_v32 = vld [vmem:[#allocation17_spill] sm:$0xff] }
 0xd22   :  { %v7149_v54 = vpop.f32.mrf.mxu0 }
 0xd24   :  { %v4155_v15 = vpop.f32.mrf.mxu0 }
 0xd25   :  { %7173 = vmatprep.mubr.msk.f32.mxu0 %vm1070_vm1, %v4155_v15 }
 0xd26   :  { %v7152_v31 = vpop.f32.mrf.mxu0  ;;  %7174 = vmatmul.mubr.msk.f32.vlgmr.msra.gmra.mxu0 %vm1070_vm1, %v7149_v54 }
 0xd28   :  { %v4165_v60 = vpop.f32.mrf.mxu0 }
 0xd29   :  { %7176 = vmatprep.mubr.msk.f32.mxu0 %vm1070_vm1, %v4165_v60 }
 0xd2a   :  { %v7155_v16 = vpop.f32.mrf.mxu0  ;;  %7177 = vmatmul.mubr.msk.f32.gmra.mxu0 %vm1070_vm1, %v7152_v31 }
 0xd2c   :  { %v4175_v6 = vpop.f32.mrf.mxu0 }
 0xd2d   :  { %7179 = vmatprep.mubr.msk.f32.mxu0 %vm1070_vm1, %v4175_v6 }
 0xd2e   :  { %v7158_v9 = vpop.f32.mrf.mxu0  ;;  %7180 = vmatmul.mubr.msk.f32.gmra.mxu0 %vm1070_vm1, %v7155_v16  ;;  %v11465_v16 = vld [vmem:[#allocation18_spill] sm:$0xff] }
 0xd30   :  { %v4185_v22 = vpop.f32.mrf.mxu0 }
 0xd31   :  { %7182 = vmatprep.mubr.msk.f32.mxu0 %vm1070_vm1, %v4185_v22 }
 0xd32   :  { %v7161_v36 = vpop.f32.mrf.mxu0  ;;  %7183 = vmatmul.mubr.msk.f32.gmra.mxu0 %vm1070_vm1, %v7158_v9 }
 0xd34   :  { %v4195_v27 = vpop.f32.mrf.mxu0 }
 0xd35   :  { %7185 = vmatprep.mubr.msk.f32.mxu0 %vm1070_vm1, %v4195_v27  ;;  %v11467_v27 = vld [vmem:[#allocation19_spill] sm:$0xff] }
 0xd36   :  { %v7164_v11 = vpop.f32.mrf.mxu0  ;;  %7186 = vmatmul.mubr.msk.f32.gmra.mxu0 %vm1070_vm1, %v7161_v36 }
 0xd38   :  { %v4205_v17 = vpop.f32.mrf.mxu0 }
 0xd39   :  { %7188 = vmatprep.mubr.msk.f32.mxu0 %vm1070_vm1, %v4205_v17 }
 0xd3a   :  { %v7167_v46 = vpop.f32.mrf.mxu0  ;;  %7189 = vmatmul.mubr.msk.f32.gmra.mxu0 %vm1070_vm1, %v7164_v11 }
 0xd3c   :  { %v4215_v4 = vpop.f32.mrf.mxu0 }
 0xd3d   :  { %7191 = vmatprep.mubr.msk.f32.mxu0 %vm1070_vm1, %v4215_v4 }
 0xd3e   :  { %v7170_v21 = vpop.f32.mrf.mxu0  ;;  %7192 = vmatmul.mubr.msk.f32.gmra.mxu0 %vm1070_vm1, %v7167_v46 }
 0xd40   :  { %v4225_v63 = vpop.f32.mrf.mxu0 }
 0xd41   :  { %7194 = vmatprep.mubr.msk.f32.mxu0 %vm1070_vm1, %v4225_v63 }
 0xd42   :  { %7195 = vmatmul.mubr.msk.f32.gmra.mxu0 %vm1070_vm1, %v7170_v21  ;;  %v11469_v21 = vld [vmem:[#allocation20_spill] sm:$0xff] }
 0xde6   :  { %v7175_v39 = vpop.f32.mrf.mxu0 }
 0xde7   :  { %v4428_v34 = vadd.f32 %v7175_v39, %v10255_v56 }
 0xde8   :  { %v4348_v53 = vpop.f32.mrf.mxu0 }
 0xde9   :  { %v4448_v2 = vadd.f32 %v10334_v19, %v4428_v34  ;;  %v4427_v43 = vadd.f32 %v4348_v53, %v10259_v14 }
 0xdea   :  { %v7178_v24 = vpop.f32.mrf.mxu0 }
 0xdeb   :  { %v10340_v25 = vadd.f32 %v11453_v7, %v4448_v2  ;;  %v4447_v18 = vadd.f32 %v10334_v19, %v4427_v43  ;;  %v4430_v51 = vadd.f32 %v7178_v24, %v10263_v13  ;;  %v11471_v2 = vld [vmem:[#allocation21_spill] sm:$0xff] }
 0xdec   :  { %v4358_v29 = vpop.f32.mrf.mxu0 }
 0xded   :  { %11454 = vst [vmem:[#allocation53_spill] sm:$0xff] %v10340_v25  ;;  %v10345_v12 = vadd.f32 %v4447_v18, %v11455_v28  ;;  %v4450_v40 = vadd.f32 %v10334_v19, %v4430_v51  ;;  %v4429_v56 = vadd.f32 %v4358_v29, %v10267_v10  ;;  %v4482_v20 = vsel %vm325_vm0, %v10340_v25, 0.0  ;;  %v11473_v51 = vld [vmem:[#allocation22_spill] sm:$0xff] }
 0xdee   :  { %4483 = vadd.xlane.f32.xlu0 %v4482_v20  ;;  %v7181_v14 = vpop.f32.mrf.mxu0  ;;  %v11475_v20 = vld [vmem:[#allocation23_spill] sm:$0xff] }
 0xdef   :  { %11456 = vst [vmem:[#allocation54_spill] sm:$0xff] %v10345_v12  ;;  %v10352_v44 = vadd.f32 %v11457_v49, %v4450_v40  ;;  %v4449_v55 = vadd.f32 %v10334_v19, %v4429_v56  ;;  %v4432_v13 = vadd.f32 %v7181_v14, %v10271_v33  ;;  %v4479_v62 = vsel %vm325_vm0, %v10345_v12, 0.0 }
 0xdf0   :  { %4480 = vadd.xlane.f32.xlu1 %v4479_v62  ;;  %v4368_v50 = vpop.f32.mrf.mxu0  ;;  %v11477_v62 = vld [vmem:[#allocation24_spill] sm:$0xff] }
 0xdf1   :  { %11458 = vst [vmem:[#allocation72_spill] sm:$0xff] %v10352_v44  ;;  %v10359_v52 = vadd.f32 %v4449_v55, %v11459_v3  ;;  %v4452_v10 = vadd.f32 %v10334_v19, %v4432_v13  ;;  %v4431_v48 = vadd.f32 %v4368_v50, %v10275_v45  ;;  %v4488_v1 = vsel %vm325_vm0, %v10352_v44, 0.0 }
 0xdf2   :  { %v7184_v5 = vpop.f32.mrf.mxu0 }
 0xdf3   :  { %11460 = vst [vmem:[#allocation74_spill] sm:$0xff] %v10359_v52  ;;  %v10366_v58 = vadd.f32 %v11461_v47, %v4452_v10  ;;  %v4451_v33 = vadd.f32 %v10334_v19, %v4431_v48  ;;  %v4434_v42 = vadd.f32 %v7184_v5, %v10279_v23  ;;  %v4485_v41 = vsel %vm325_vm0, %v10359_v52, 0.0  ;;  %v11479_v5 = vld [vmem:[#allocation25_spill] sm:$0xff] }
 0xdf4   :  { %4489 = vadd.xlane.f32.xlu1 %v4488_v1  ;;  %4486 = vadd.xlane.f32.xlu0 %v4485_v41  ;;  %v4378_v0 = vpop.f32.mrf.mxu0 }
 0xdf5   :  { %11462 = vst [vmem:[#allocation73_spill] sm:$0xff] %v10366_v58  ;;  %v10373_v54 = vadd.f32 %v4451_v33, %v11463_v32  ;;  %v4454_v45 = vadd.f32 %v10334_v19, %v4434_v42  ;;  %v4433_v15 = vadd.f32 %v4378_v0, %v10283_v37  ;;  %v4494_v60 = vsel %vm325_vm0, %v10366_v58, 0.0  ;;  %v11481_v33 = vld [vmem:[#allocation26_spill] sm:$0xff]  ;;  %v11483_v32 = vld [vmem:[#allocation27_spill] sm:$0xff] }
 0xdf6   :  { %v7187_v31 = vpop.f32.mrf.mxu0 }
 0xdf7   :  { %11464 = vst [vmem:[#allocation76_spill] sm:$0xff] %v10373_v54  ;;  %v10380_v6 = vadd.f32 %v11465_v16, %v4454_v45  ;;  %v4453_v23 = vadd.f32 %v10334_v19, %v4433_v15  ;;  %v4436_v9 = vadd.f32 %v7187_v31, %v10287_v59  ;;  %v4491_v22 = vsel %vm325_vm0, %v10373_v54, 0.0 }
 0xdf8   :  { %4495 = vadd.xlane.f32.xlu1 %v4494_v60  ;;  %4492 = vadd.xlane.f32.xlu0 %v4491_v22  ;;  %v4388_v36 = vpop.f32.mrf.mxu0 }
 0xdf9   :  { %11466 = vst [vmem:[#allocation75_spill] sm:$0xff] %v10380_v6  ;;  %v10387_v11 = vadd.f32 %v4453_v23, %v11467_v27  ;;  %v4456_v37 = vadd.f32 %v10334_v19, %v4436_v9  ;;  %v4435_v17 = vadd.f32 %v4388_v36, %v10291_v26  ;;  %v4500_v4 = vsel %vm325_vm0, %v10380_v6, 0.0 }
 0xdfa   :  { %v7190_v46 = vpop.f32.mrf.mxu0 }
 0xdfb   :  { %11468 = vst [vmem:[#allocation78_spill] sm:$0xff] %v10387_v11  ;;  %v10394_v63 = vadd.f32 %v11469_v21, %v4456_v37  ;;  %v4455_v59 = vadd.f32 %v10334_v19, %v4435_v17  ;;  %v4438_v39 = vadd.f32 %v7190_v46, %v10295_v61  ;;  %v4497_v34 = vsel %vm325_vm0, %v10387_v11, 0.0 }
 0xdfc   :  { %4501 = vadd.xlane.f32.xlu1 %v4500_v4  ;;  %4498 = vadd.xlane.f32.xlu0 %v4497_v34  ;;  %v4398_v53 = vpop.f32.mrf.mxu0 }
 0xdfd   :  { %11470 = vst [vmem:[#allocation77_spill] sm:$0xff] %v10394_v63  ;;  %v10401_v43 = vadd.f32 %v4455_v59, %v11471_v2  ;;  %v4458_v26 = vadd.f32 %v10334_v19, %v4438_v39  ;;  %v4437_v24 = vadd.f32 %v4398_v53, %v10299_v8  ;;  %v4506_v18 = vsel %vm325_vm0, %v10394_v63, 0.0 }
 0xdfe   :  { %v7193_v7 = vpop.f32.mrf.mxu0 }
 0xdff   :  { %11472 = vst [vmem:[#allocation80_spill] sm:$0xff] %v10401_v43  ;;  %v10408_v29 = vadd.f32 %v11473_v51, %v4458_v26  ;;  %v4457_v61 = vadd.f32 %v10334_v19, %v4437_v24  ;;  %v4440_v28 = vadd.f32 %v7193_v7, %v10303_v30  ;;  %v4503_v40 = vsel %vm325_vm0, %v10401_v43, 0.0 }
 0xe00   :  { %4507 = vadd.xlane.f32.xlu1 %v4506_v18  ;;  %4504 = vadd.xlane.f32.xlu0 %v4503_v40  ;;  %v4408_v56 = vpop.f32.mrf.mxu0 }
 0xe01   :  { %11474 = vst [vmem:[#allocation79_spill] sm:$0xff] %v10408_v29  ;;  %v10415_v14 = vadd.f32 %v4457_v61, %v11475_v20  ;;  %v4460_v8 = vadd.f32 %v10334_v19, %v4440_v28  ;;  %v4439_v49 = vadd.f32 %v4408_v56, %v10307_v38  ;;  %v4512_v13 = vsel %vm325_vm0, %v10408_v29, 0.0 }
 0xe02   :  { %v7196_v55 = vpop.f32.mrf.mxu0 }
 0xe03   :  { %11476 = vst [vmem:[#allocation82_spill] sm:$0xff] %v10415_v14  ;;  %v10422_v50 = vadd.f32 %v11477_v62, %v4460_v8  ;;  %v4459_v30 = vadd.f32 %v10334_v19, %v4439_v49  ;;  %v4442_v3 = vadd.f32 %v7196_v55, %v10311_v35  ;;  %v4509_v10 = vsel %vm325_vm0, %v10415_v14, 0.0 }
 0xe04   :  { %4513 = vadd.xlane.f32.xlu1 %v4512_v13  ;;  %4510 = vadd.xlane.f32.xlu0 %v4509_v10  ;;  %v4418_v48 = vpop.f32.mrf.mxu0 }
 0xe05   :  { %11478 = vst [vmem:[#allocation81_spill] sm:$0xff] %v10422_v50  ;;  %v10429_v1 = vadd.f32 %v4459_v30, %v11479_v5  ;;  %v4462_v38 = vadd.f32 %v10334_v19, %v4442_v3  ;;  %v4441_v47 = vadd.f32 %v4418_v48, %v10313_v57  ;;  %v4518_v35 = vsel %vm325_vm0, %v10422_v50, 0.0 }
 0xe07   :  { %11480 = vst [vmem:[#allocation84_spill] sm:$0xff] %v10429_v1  ;;  %v10434_v42 = vadd.f32 %v11481_v33, %v4462_v38  ;;  %v4461_v41 = vadd.f32 %v10334_v19, %v4441_v47  ;;  %v4515_v0 = vsel %vm325_vm0, %v10429_v1, 0.0  ;;  %v4730_v19 = vld [vmem:[%s11122_s7 + $0x18] sm:$0xff] }
 0xe08   :  { %4519 = vadd.xlane.f32.xlu1 %v4518_v35  ;;  %4516 = vadd.xlane.f32.xlu0 %v4515_v0 }
 0xe09   :  { %11482 = vst [vmem:[#allocation83_spill] sm:$0xff] %v10434_v42  ;;  %v10442_v45 = vadd.f32 %v4461_v41, %v11483_v32  ;;  %v4524_v15 = vsel %vm325_vm0, %v10434_v42, 0.0  ;;  %7197 = vmatprep.subr.mxu1 %v4730_v19 }
 0xe0a   :  { %7198 = vmatpush3.msra.mxu1 %v4730_v19 }
 0xe0b   :  { %11484 = vst [vmem:[#allocation56_spill] sm:$0xff] %v10442_v45  ;;  %v4521_v57 = vsel %vm325_vm0, %v10442_v45, 0.0 }
 0xe0c   :  { %4525 = vadd.xlane.f32.xlu1 %v4524_v15  ;;  %4522 = vadd.xlane.f32.xlu0 %v4521_v57 }
 0xe77   :  { %v4484_v31 = vpop.xlane.xlu0 %4483 }
 0xe78   :  { %v4528_v60 = vmul.f32 0.03125, %v4484_v31 }
 0xe79   :  { %v4481_v16 = vpop.xlane.xlu1 %4480 }
 0xe7a   :  { %v10452_v23 = vsub.f32 %v10340_v25, %v4528_v60  ;;  %v4527_v9 = vmul.f32 0.03125, %v4481_v16 }
 0xe7c   :  { %v10455_v22 = vsub.f32 %v10345_v12, %v4527_v9  ;;  %v4560_v36 = vmul.f32 %v10452_v23, %v10452_v23 }
 0xe7d   :  { %v4490_v27 = vpop.xlane.xlu1 %4489  ;;  %v4487_v37 = vpop.xlane.xlu0 %4486 }
 0xe7e   :  { %v4530_v17 = vmul.f32 0.03125, %v4490_v27  ;;  %v4529_v46 = vmul.f32 0.03125, %v4487_v37  ;;  %v4578_v4 = vsel %vm325_vm0, %v4560_v36, 0.0  ;;  %v4559_v21 = vmul.f32 %v10455_v22, %v10455_v22 }
 0xe7f   :  { %4579 = vadd.xlane.f32.xlu1 %v4578_v4 }
 0xe80   :  { %v10463_v59 = vsub.f32 %v10352_v44, %v4530_v17  ;;  %v10466_v39 = vsub.f32 %v10359_v52, %v4529_v46  ;;  %v4575_v34 = vsel %vm325_vm0, %v4559_v21, 0.0 }
 0xe81   :  { %v4496_v53 = vpop.xlane.xlu1 %4495  ;;  %v4493_v2 = vpop.xlane.xlu0 %4492  ;;  %4576 = vadd.xlane.f32.xlu0 %v4575_v34 }
 0xe82   :  { %v4532_v26 = vmul.f32 0.03125, %v4496_v53  ;;  %v4531_v24 = vmul.f32 0.03125, %v4493_v2  ;;  %v4562_v7 = vmul.f32 %v10463_v59, %v10463_v59  ;;  %v4561_v18 = vmul.f32 %v10466_v39, %v10466_v39 }
 0xe84   :  { %v10474_v51 = vsub.f32 %v10366_v58, %v4532_v26  ;;  %v10477_v61 = vsub.f32 %v10373_v54, %v4531_v24  ;;  %v4584_v28 = vsel %vm325_vm0, %v4562_v7, 0.0  ;;  %v4581_v40 = vsel %vm325_vm0, %v4561_v18, 0.0 }
 0xe85   :  { %v4502_v56 = vpop.xlane.xlu1 %4501  ;;  %v4499_v20 = vpop.xlane.xlu0 %4498  ;;  %4585 = vadd.xlane.f32.xlu1 %v4584_v28  ;;  %4582 = vadd.xlane.f32.xlu0 %v4581_v40 }
 0xe86   :  { %v4534_v8 = vmul.f32 0.03125, %v4502_v56  ;;  %v4533_v49 = vmul.f32 0.03125, %v4499_v20  ;;  %v4564_v55 = vmul.f32 %v10474_v51, %v10474_v51  ;;  %v4563_v13 = vmul.f32 %v10477_v61, %v10477_v61 }
 0xe88   :  { %v10486_v62 = vsub.f32 %v10380_v6, %v4534_v8  ;;  %v10489_v30 = vsub.f32 %v10387_v11, %v4533_v49  ;;  %v4590_v3 = vsel %vm325_vm0, %v4564_v55, 0.0  ;;  %v4587_v10 = vsel %vm325_vm0, %v4563_v13, 0.0 }
 0xe89   :  { %v4508_v48 = vpop.xlane.xlu1 %4507  ;;  %v4505_v5 = vpop.xlane.xlu0 %4504  ;;  %4591 = vadd.xlane.f32.xlu1 %v4590_v3  ;;  %4588 = vadd.xlane.f32.xlu0 %v4587_v10 }
 0xe8a   :  { %v4536_v38 = vmul.f32 0.03125, %v4508_v48  ;;  %v4535_v47 = vmul.f32 0.03125, %v4505_v5  ;;  %v4566_v33 = vmul.f32 %v10486_v62, %v10486_v62  ;;  %v4565_v41 = vmul.f32 %v10489_v30, %v10489_v30 }
 0xe8c   :  { %v10498_v35 = vsub.f32 %v10394_v63, %v4536_v38  ;;  %v10501_v0 = vsub.f32 %v10401_v43, %v4535_v47  ;;  %v4596_v32 = vsel %vm325_vm0, %v4566_v33, 0.0  ;;  %v4593_v15 = vsel %vm325_vm0, %v4565_v41, 0.0  ;;  %v4729_v33 = vld [vmem:[%s11122_s7 + $0x10] sm:$0xff]  ;;  %v4728_v41 = vld [vmem:[%s11122_s7 + $0x8] sm:$0xff] }
 0xe8d   :  { %v4514_v57 = vpop.xlane.xlu1 %4513  ;;  %v4511_v19 = vpop.xlane.xlu0 %4510  ;;  %4597 = vadd.xlane.f32.xlu1 %v4596_v32  ;;  %4594 = vadd.xlane.f32.xlu0 %v4593_v15  ;;  %v4727_v32 = vld [vmem:[%s11122_s7] sm:$0xff] }
 0xe8e   :  { %v4538_v31 = vmul.f32 0.03125, %v4514_v57  ;;  %v4537_v60 = vmul.f32 0.03125, %v4511_v19  ;;  %v4568_v16 = vmul.f32 %v10498_v35, %v10498_v35  ;;  %v4567_v9 = vmul.f32 %v10501_v0, %v10501_v0  ;;  %7199 = vmatprep.subr.mxu1 %v4729_v33 }
 0xe8f   :  { %7200 = vmatpush3.msra.mxu1 %v4729_v33 }
 0xe90   :  { %v10510_v36 = vsub.f32 %v10408_v29, %v4538_v31  ;;  %v10513_v27 = vsub.f32 %v10415_v14, %v4537_v60  ;;  %v4602_v37 = vsel %vm325_vm0, %v4568_v16, 0.0  ;;  %v4599_v17 = vsel %vm325_vm0, %v4567_v9, 0.0  ;;  %7201 = vmatprep.subr.mxu1 %v4728_v41 }
 0xe91   :  { %v4520_v46 = vpop.xlane.xlu1 %4519  ;;  %v4517_v4 = vpop.xlane.xlu0 %4516  ;;  %4603 = vadd.xlane.f32.xlu1 %v4602_v37  ;;  %4600 = vadd.xlane.f32.xlu0 %v4599_v17 }
 0xe92   :  { %v4540_v21 = vmul.f32 0.03125, %v4520_v46  ;;  %v4539_v34 = vmul.f32 0.03125, %v4517_v4  ;;  %v4570_v53 = vmul.f32 %v10510_v36, %v10510_v36  ;;  %v4569_v2 = vmul.f32 %v10513_v27, %v10513_v27  ;;  %7202 = vmatpush3.msra.mxu1 %v4728_v41 }
 0xe93   :  { %7203 = vmatprep.subr.mxu1 %v4727_v32 }
 0xe94   :  { %v10522_v26 = vsub.f32 %v10422_v50, %v4540_v21  ;;  %v10525_v24 = vsub.f32 %v10429_v1, %v4539_v34  ;;  %v4608_v7 = vsel %vm325_vm0, %v4570_v53, 0.0  ;;  %v4605_v18 = vsel %vm325_vm0, %v4569_v2, 0.0  ;;  %7204 = vmatpush3.msra.mxu1 %v4727_v32 }
 0xe95   :  { %4609 = vadd.xlane.f32.xlu1 %v4608_v7  ;;  %v4526_v28 = vpop.xlane.xlu1 %4525  ;;  %4606 = vadd.xlane.f32.xlu0 %v4605_v18  ;;  %v4523_v40 = vpop.xlane.xlu0 %4522 }
 0xe96   :  { %v4542_v56 = vmul.f32 0.03125, %v4526_v28  ;;  %v4541_v20 = vmul.f32 0.03125, %v4523_v40  ;;  %v4572_v8 = vmul.f32 %v10522_v26, %v10522_v26  ;;  %v4571_v49 = vmul.f32 %v10525_v24, %v10525_v24 }
 0xe98   :  { %v10534_v55 = vsub.f32 %v10434_v42, %v4542_v56  ;;  %v10537_v13 = vsub.f32 %v10442_v45, %v4541_v20  ;;  %v4614_v3 = vsel %vm325_vm0, %v4572_v8, 0.0  ;;  %v4611_v10 = vsel %vm325_vm0, %v4571_v49, 0.0 }
 0xe99   :  { %4615 = vadd.xlane.f32.xlu1 %v4614_v3  ;;  %4612 = vadd.xlane.f32.xlu0 %v4611_v10 }
 0xe9a   :  { %v4574_v48 = vmul.f32 %v10534_v55, %v10534_v55  ;;  %v4573_v5 = vmul.f32 %v10537_v13, %v10537_v13 }
 0xe9c   :  { %v4620_v38 = vsel %vm325_vm0, %v4574_v48, 0.0  ;;  %v4617_v47 = vsel %vm325_vm0, %v4573_v5, 0.0 }
 0xe9d   :  { %4621 = vadd.xlane.f32.xlu1 %v4620_v38  ;;  %4618 = vadd.xlane.f32.xlu0 %v4617_v47  ;;  %v10559_v38 = vld [vmem:[%s11119_s4 + $0x6] ss:$0 sm:$0xff] }
 0xf08   :  { %v4580_v15 = vpop.xlane.xlu1 %4579 }
 0xf09   :  { %v4624_v57 = vmul.f32 0.03125, %v4580_v15 }
 0xf0a   :  { %v4577_v19 = vpop.xlane.xlu0 %4576 }
 0xf0b   :  { %v4640_v31 = vadd.f32 1e-05, %v4624_v57  ;;  %v4623_v60 = vmul.f32 0.03125, %v4577_v19 }
 0xf0d   :  { %7670 = vrsqrt.f32 %v4640_v31  ;;  %v4639_v16 = vadd.f32 1e-05, %v4623_v60 }
 0xf0e   :  { %v4586_v9 = vpop.xlane.xlu1 %4585  ;;  %v4583_v37 = vpop.xlane.xlu0 %4582 }
 0xf0f   :  { %7672 = vrsqrt.f32 %v4639_v16  ;;  %v4626_v17 = vmul.f32 0.03125, %v4586_v9  ;;  %v4625_v46 = vmul.f32 0.03125, %v4583_v37 }
 0xf11   :  { %v4642_v4 = vadd.f32 1e-05, %v4626_v17  ;;  %v4641_v21 = vadd.f32 1e-05, %v4625_v46 }
 0xf12   :  { %v4592_v34 = vpop.xlane.xlu1 %4591  ;;  %v4589_v53 = vpop.xlane.xlu0 %4588 }
 0xf13   :  { %7674 = vrsqrt.f32 %v4642_v4  ;;  %v4628_v2 = vmul.f32 0.03125, %v4592_v34  ;;  %v4627_v7 = vmul.f32 0.03125, %v4589_v53 }
 0xf14   :  { %7676 = vrsqrt.f32 %v4641_v21 }
 0xf15   :  { %v4644_v18 = vadd.f32 1e-05, %v4628_v2  ;;  %v4643_v28 = vadd.f32 1e-05, %v4627_v7 }
 0xf16   :  { %v4598_v40 = vpop.xlane.xlu1 %4597  ;;  %v4595_v56 = vpop.xlane.xlu0 %4594 }
 0xf17   :  { %7678 = vrsqrt.f32 %v4644_v18  ;;  %v4630_v20 = vmul.f32 0.03125, %v4598_v40  ;;  %v4629_v8 = vmul.f32 0.03125, %v4595_v56 }
 0xf18   :  { %7680 = vrsqrt.f32 %v4643_v28 }
 0xf19   :  { %v4646_v49 = vadd.f32 1e-05, %v4630_v20  ;;  %v4645_v3 = vadd.f32 1e-05, %v4629_v8 }
 0xf1a   :  { %v7671_v10 = vpop.eup %7670  ;;  %v4604_v48 = vpop.xlane.xlu1 %4603 }
 0xf1b   :  { %v4601_v5 = vpop.xlane.xlu0 %4600  ;;  %v4672_v47 = vmul.f32 %v7671_v10, %v10452_v23  ;;  %7682 = vrsqrt.f32 %v4646_v49  ;;  %v4632_v33 = vmul.f32 0.03125, %v4604_v48  ;;  %v10567_v23 = vld [vmem:[%s11119_s4 + $0x7] ss:$0 sm:$0xff] }
 0xf1c   :  { %v4631_v41 = vmul.f32 0.03125, %v4601_v5  ;;  %v7673_v32 = vpop.eup %7672  ;;  %7684 = vrsqrt.f32 %v4645_v3 }
 0xf1d   :  { %v4648_v15 = vadd.f32 1e-05, %v4632_v33  ;;  %v4671_v19 = vmul.f32 %v7673_v32, %v10455_v22  ;;  %v4692_v31 = vmul.f32 %v10559_v38, %v4672_v47 }
 0xf1e   :  { %v4647_v57 = vadd.f32 1e-05, %v4631_v41  ;;  %v4610_v60 = vpop.xlane.xlu1 %4609 }
 0xf1f   :  { %v4607_v16 = vpop.xlane.xlu0 %4606  ;;  %7686 = vrsqrt.f32 %v4648_v15  ;;  %v4634_v9 = vmul.f32 0.03125, %v4610_v60  ;;  %v4691_v17 = vmul.f32 %v10559_v38, %v4671_v19  ;;  %v4712_v18 = vadd.f32 %v10567_v23, %v4692_v31 }
 0xf20   :  { %v4633_v37 = vmul.f32 0.03125, %v4607_v16  ;;  %v7675_v46 = vpop.eup %7674  ;;  %7688 = vrsqrt.f32 %v4647_v57 }
 0xf21   :  { %v7677_v4 = vpop.eup %7676  ;;  %v4674_v21 = vmul.f32 %v7675_v46, %v10463_v59  ;;  %v4650_v22 = vadd.f32 1e-05, %v4634_v9  ;;  %v4711_v53 = vadd.f32 %v10567_v23, %v4691_v17 }
 0xf22   :  { %v4649_v34 = vadd.f32 1e-05, %v4633_v37  ;;  %v4616_v2 = vpop.xlane.xlu1 %4615  ;;  %v4673_v28 = vmul.f32 %v7677_v4, %v10466_v39 }
 0xf23   :  { %v4613_v7 = vpop.xlane.xlu0 %4612  ;;  %7690 = vrsqrt.f32 %v4650_v22  ;;  %v4636_v40 = vmul.f32 0.03125, %v4616_v2  ;;  %7205 = vmatprep.mubr.msk.f32.mxu1 %vm325_vm0, %v4711_v53  ;;  %v4694_v20 = vmul.f32 %v10559_v38, %v4674_v21 }
 0xf24   :  { %v4635_v56 = vmul.f32 0.03125, %v4613_v7  ;;  %v7679_v8 = vpop.eup %7678  ;;  %7692 = vrsqrt.f32 %v4649_v34  ;;  %7206 = vmatmul.mubr.msk.f32.vlgmr.msra.gmra.mxu1 %vm325_vm0, %v4712_v18  ;;  %v4693_v59 = vmul.f32 %v10559_v38, %v4673_v28 }
 0xf25   :  { %v7681_v49 = vpop.eup %7680  ;;  %v4676_v3 = vmul.f32 %v7679_v8, %v10474_v51  ;;  %v4652_v10 = vadd.f32 1e-05, %v4636_v40  ;;  %v4714_v39 = vadd.f32 %v10567_v23, %v4694_v20 }
 0xf26   :  { %v4651_v48 = vadd.f32 1e-05, %v4635_v56  ;;  %v4622_v5 = vpop.xlane.xlu1 %4621  ;;  %v4713_v33 = vadd.f32 %v10567_v23, %v4693_v59  ;;  %v4675_v41 = vmul.f32 %v7681_v49, %v10477_v61 }
 0xf27   :  { %v4619_v47 = vpop.xlane.xlu0 %4618  ;;  %7694 = vrsqrt.f32 %v4652_v10  ;;  %v4638_v32 = vmul.f32 0.03125, %v4622_v5  ;;  %v4696_v57 = vmul.f32 %v10559_v38, %v4676_v3 }
 0xf28   :  { %v4637_v15 = vmul.f32 0.03125, %v4619_v47  ;;  %v7683_v19 = vpop.eup %7682  ;;  %7696 = vrsqrt.f32 %v4651_v48  ;;  %7208 = vmatprep.mubr.msk.f32.mxu1 %vm325_vm0, %v4713_v33  ;;  %v4695_v51 = vmul.f32 %v10559_v38, %v4675_v41 }
 0xf29   :  { %v7685_v31 = vpop.eup %7684  ;;  %v4678_v60 = vmul.f32 %v7683_v19, %v10486_v62  ;;  %v4654_v16 = vadd.f32 1e-05, %v4638_v32  ;;  %7209 = vmatmul.mubr.msk.f32.gmra.mxu1 %vm325_vm0, %v4714_v39  ;;  %v4716_v61 = vadd.f32 %v10567_v23, %v4696_v57  ;;  %v5374_v19 = vld [vmem:[%s11123_s8 + $0x60] sm:$0xff] }
 0xf2a   :  { %v4653_v9 = vadd.f32 1e-05, %v4637_v15  ;;  %v4715_v37 = vadd.f32 %v10567_v23, %v4695_v51  ;;  %v4677_v17 = vmul.f32 %v7685_v31, %v10489_v30  ;;  %v5373_v51 = vld [vmem:[%s11123_s8 + $0x58] sm:$0xff]  ;;  %v5372_v31 = vld [vmem:[%s11123_s8 + $0x50] sm:$0xff] }
 0xf2b   :  { %7698 = vrsqrt.f32 %v4654_v16  ;;  %v4698_v46 = vmul.f32 %v10559_v38, %v4678_v60  ;;  %v5371_v60 = vld [vmem:[%s11123_s8 + $0x48] sm:$0xff]  ;;  %v5370_v16 = vld [vmem:[%s11123_s8 + $0x40] sm:$0xff] }
 0xf2c   :  { %v7687_v4 = vpop.eup %7686  ;;  %7700 = vrsqrt.f32 %v4653_v9  ;;  %7211 = vmatprep.mubr.msk.f32.mxu1 %vm325_vm0, %v4715_v37  ;;  %v4697_v21 = vmul.f32 %v10559_v38, %v4677_v17  ;;  %v5369_v9 = vld [vmem:[%s11123_s8 + $0x38] sm:$0xff]  ;;  %v5367_v37 = vld [vmem:[%s11123_s8 + $0x28] sm:$0xff]  ;;  %v5366_v17 = vld [vmem:[%s11123_s8 + $0x20] sm:$0xff] }
 0xf2d   :  { %v7689_v62 = vpop.eup %7688  ;;  %v4680_v22 = vmul.f32 %v7687_v4, %v10498_v35  ;;  %7212 = vmatmul.mubr.msk.f32.gmra.mxu1 %vm325_vm0, %v4716_v61  ;;  %v4718_v34 = vadd.f32 %v10567_v23, %v4698_v46  ;;  %v5368_v61 = vld [vmem:[%s11123_s8 + $0x30] sm:$0xff]  ;;  %v5365_v46 = vld [vmem:[%s11123_s8 + $0x18] sm:$0xff] }
 0xf2e   :  { %v4717_v53 = vadd.f32 %v10567_v23, %v4697_v21  ;;  %v4679_v30 = vmul.f32 %v7689_v62, %v10501_v0  ;;  %v5364_v4 = vld [vmem:[%s11123_s8 + $0x10] sm:$0xff]  ;;  %v5363_v21 = vld [vmem:[%s11123_s8 + $0x8] sm:$0xff]  ;;  %v5362_v62 = vld [vmem:[%s11123_s8] sm:$0xff] }
 0xf2f   :  { %v4700_v2 = vmul.f32 %v10559_v38, %v4680_v22  ;;  %v10681_v22 = vld [vmem:[%s11120_s5] ss:$0 sm:$0xff] }
 0xf30   :  { %v7691_v7 = vpop.eup %7690  ;;  %7214 = vmatprep.mubr.msk.f32.mxu1 %vm325_vm0, %v4717_v53  ;;  %v4699_v18 = vmul.f32 %v10559_v38, %v4679_v30 }
 0xf31   :  { %v7693_v28 = vpop.eup %7692  ;;  %v4682_v40 = vmul.f32 %v7691_v7, %v10510_v36  ;;  %7215 = vmatmul.mubr.msk.f32.gmra.mxu1 %vm325_vm0, %v4718_v34  ;;  %v4720_v35 = vadd.f32 %v10567_v23, %v4700_v2 }
 0xf32   :  { %v4719_v56 = vadd.f32 %v10567_v23, %v4699_v18  ;;  %v4681_v20 = vmul.f32 %v7693_v28, %v10513_v27 }
 0xf33   :  { %v4702_v0 = vmul.f32 %v10559_v38, %v4682_v40 }
 0xf34   :  { %v7695_v8 = vpop.eup %7694  ;;  %7217 = vmatprep.mubr.msk.f32.mxu1 %vm325_vm0, %v4719_v56  ;;  %v4701_v59 = vmul.f32 %v10559_v38, %v4681_v20 }
 0xf35   :  { %v7697_v49 = vpop.eup %7696  ;;  %v4684_v3 = vmul.f32 %v7695_v8, %v10522_v26  ;;  %7218 = vmatmul.mubr.msk.f32.gmra.mxu1 %vm325_vm0, %v4720_v35  ;;  %v4722_v36 = vadd.f32 %v10567_v23, %v4702_v0 }
 0xf36   :  { %v4721_v10 = vadd.f32 %v10567_v23, %v4701_v59  ;;  %v4683_v48 = vmul.f32 %v7697_v49, %v10525_v24 }
 0xf37   :  { %v4704_v27 = vmul.f32 %v10559_v38, %v4684_v3 }
 0xf38   :  { %v7699_v39 = vpop.eup %7698  ;;  %7220 = vmatprep.mubr.msk.f32.mxu1 %vm325_vm0, %v4721_v10  ;;  %v4703_v5 = vmul.f32 %v10559_v38, %v4683_v48 }
 0xf39   :  { %v7701_v47 = vpop.eup %7700  ;;  %v4686_v33 = vmul.f32 %v7699_v39, %v10534_v55  ;;  %7221 = vmatmul.mubr.msk.f32.gmra.mxu1 %vm325_vm0, %v4722_v36  ;;  %v4724_v26 = vadd.f32 %v10567_v23, %v4704_v27 }
 0xf3a   :  { %v4723_v41 = vadd.f32 %v10567_v23, %v4703_v5  ;;  %v4685_v32 = vmul.f32 %v7701_v47, %v10537_v13  ;;  %v5377_v13 = vld [vmem:[%s11123_s8 + $0x78] sm:$0xff] }
 0xf3b   :  { %v4706_v24 = vmul.f32 %v10559_v38, %v4686_v33  ;;  %7229 = vmatprep.subr.mxu0 %v5377_v13 }
 0xf3c   :  { %7223 = vmatprep.mubr.msk.f32.mxu1 %vm325_vm0, %v4723_v41  ;;  %v4705_v15 = vmul.f32 %v10559_v38, %v4685_v32  ;;  %7230 = vmatpush3.msra.mxu0 %v5377_v13  ;;  %v5376_v38 = vld [vmem:[%s11123_s8 + $0x70] sm:$0xff] }
 0xf3d   :  { %7224 = vmatmul.mubr.msk.f32.gmra.mxu1 %vm325_vm0, %v4724_v26  ;;  %v4726_v57 = vadd.f32 %v10567_v23, %v4706_v24  ;;  %7231 = vmatprep.subr.mxu0 %v5376_v38 }
 0xf3e   :  { %v4725_v55 = vadd.f32 %v10567_v23, %v4705_v15  ;;  %7232 = vmatpush3.msra.mxu0 %v5376_v38  ;;  %v5375_v23 = vld [vmem:[%s11123_s8 + $0x68] sm:$0xff] }
 0xf3f   :  { %7233 = vmatprep.subr.mxu0 %v5375_v23 }
 0xf40   :  { %7226 = vmatprep.mubr.msk.f32.mxu1 %vm325_vm0, %v4725_v55  ;;  %7234 = vmatpush3.msra.mxu0 %v5375_v23 }
 0xf41   :  { %7227 = vmatmul.mubr.msk.f32.gmra.mxu1 %vm325_vm0, %v4726_v57  ;;  %7235 = vmatprep.subr.mxu0 %v5374_v19 }
 0xf42   :  { %7236 = vmatpush3.msra.mxu0 %v5374_v19 }
 0xf43   :  { %7237 = vmatprep.subr.mxu0 %v5373_v51 }
 0xf44   :  { %7238 = vmatpush3.msra.mxu0 %v5373_v51 }
 0xf45   :  { %7239 = vmatprep.subr.mxu0 %v5372_v31 }
 0xf46   :  { %7240 = vmatpush3.msra.mxu0 %v5372_v31 }
 0xf47   :  { %7241 = vmatprep.subr.mxu0 %v5371_v60 }
 0xf48   :  { %7242 = vmatpush3.msra.mxu0 %v5371_v60 }
 0xf49   :  { %7243 = vmatprep.subr.mxu0 %v5370_v16 }
 0xf4a   :  { %7244 = vmatpush3.msra.mxu0 %v5370_v16 }
 0xf4b   :  { %7245 = vmatprep.subr.mxu0 %v5369_v9 }
 0xf4c   :  { %7246 = vmatpush3.msra.mxu0 %v5369_v9 }
 0xf4d   :  { %7247 = vmatprep.subr.mxu0 %v5368_v61 }
 0xf4e   :  { %7248 = vmatpush3.msra.mxu0 %v5368_v61 }
 0xf4f   :  { %7249 = vmatprep.subr.mxu0 %v5367_v37 }
 0xf50   :  { %7250 = vmatpush3.msra.mxu0 %v5367_v37 }
 0xf51   :  { %7251 = vmatprep.subr.mxu0 %v5366_v17 }
 0xf52   :  { %7252 = vmatpush3.msra.mxu0 %v5366_v17 }
 0xf53   :  { %7253 = vmatprep.subr.mxu0 %v5365_v46 }
 0xf54   :  { %7254 = vmatpush3.msra.mxu0 %v5365_v46 }
 0xf55   :  { %7255 = vmatprep.subr.mxu0 %v5364_v4 }
 0xf56   :  { %7256 = vmatpush3.msra.mxu0 %v5364_v4 }
 0xf57   :  { %7257 = vmatprep.subr.mxu0 %v5363_v21 }
 0xf58   :  { %7258 = vmatpush3.msra.mxu0 %v5363_v21 }
 0xf59   :  { %7259 = vmatprep.subr.mxu0 %v5362_v62 }
 0xf5a   :  { %7260 = vmatpush3.msra.mxu0 %v5362_v62 }
 0xfe4   :  { %v7207_v34 = vpop.f32.mrf.mxu1 }
 0xfe5   :  { %v4857_v53 = vadd.f32 %v7207_v34, %v10681_v22 }
 0xfe6   :  { %v4851_v30 = vpop.f32.mrf.mxu1 }
 0xfe7   :  { %v10684_v2 = vmul.f32 0.70710677, %v4857_v53  ;;  %v4852_v56 = vadd.f32 %v10681_v22, %v4851_v30  ;;  %v10723_v37 = vmul.f32 0.5, %v4857_v53 }
 0xfe9   :  { %v4963_v7 = vand.u32 2147483647, %v10684_v2  ;;  %v7210_v18 = vpop.f32.mrf.mxu1  ;;  %v10692_v3 = vmul.f32 0.70710677, %v4852_v56  ;;  %v10726_v62 = vmul.f32 0.5, %v4852_v56  ;;  %vm5283_vm2 = vcmp.lt.f32.partialorder %v10684_v2, 0.0 }
 0xfea   :  { %v4867_v28 = vadd.f32 %v7210_v18, %v10681_v22 }
 0xfeb   :  { %v4979_v40 = vmul.f32 0.3275911, %v4963_v7  ;;  %v4861_v35 = vpop.f32.mrf.mxu1  ;;  %v4962_v33 = vand.u32 2147483647, %v10692_v3  ;;  %v5187_v32 = vmul.f32 %v4963_v7, %v4963_v7  ;;  %vm5282_vm6 = vcmp.lt.f32.partialorder %v10692_v3, 0.0 }
 0xfec   :  { %v10689_v20 = vmul.f32 0.70710677, %v4867_v28  ;;  %v4862_v10 = vadd.f32 %v10681_v22, %v4861_v35  ;;  %v10728_v34 = vmul.f32 0.5, %v4867_v28 }
 0xfed   :  { %v4995_v0 = vadd.f32 1.0, %v4979_v40  ;;  %v7213_v8 = vpop.f32.mrf.mxu1  ;;  %v5186_v55 = vmul.f32 %v4962_v33, %v4962_v33  ;;  %v5203_v19 = vsub.f32 0.0, %v5187_v32  ;;  %v4978_v17 = vmul.f32 0.3275911, %v4962_v33 }
 0xfee   :  { %v4965_v59 = vand.u32 2147483647, %v10689_v20  ;;  %v10696_v48 = vadd.f32 %v7213_v8, %v10681_v22  ;;  %v10702_v26 = vmul.f32 0.70710677, %v4862_v10  ;;  %vm5285_vm3 = vcmp.lt.f32.partialorder %v10689_v20, 0.0 }
 0xfef   :  { %7702 = vrcp.f32 %v4995_v0  ;;  %v4871_v49 = vpop.f32.mrf.mxu1  ;;  %v5202_v46 = vsub.f32 0.0, %v5186_v55  ;;  %v5220_v7 = vmul.f32 1.442695, %v5203_v19 }
 0xff0   :  { %v4981_v36 = vmul.f32 0.3275911, %v4965_v59  ;;  %v10699_v5 = vmul.f32 0.70710677, %v10696_v48  ;;  %v4964_v38 = vand.u32 2147483647, %v10702_v26  ;;  %v5189_v51 = vmul.f32 %v4965_v59, %v4965_v59 }
 0xff1   :  { %v7216_v27 = vpop.f32.mrf.mxu1  ;;  %v10716_v16 = vadd.f32 %v10681_v22, %v4871_v49  ;;  %v4994_v49 = vadd.f32 1.0, %v4978_v17  ;;  %vm5284_vm7 = vcmp.lt.f32.partialorder %v10702_v26, 0.0 }
 0xff2   :  { %v4997_v39 = vadd.f32 1.0, %v4981_v36  ;;  %v4967_v41 = vand.u32 2147483647, %v10699_v5  ;;  %v10706_v24 = vadd.f32 %v7216_v27, %v10681_v22  ;;  %v5188_v30 = vmul.f32 %v4964_v38, %v4964_v38 }
 0xff3   :  { %v4881_v47 = vpop.f32.mrf.mxu1  ;;  %v5205_v18 = vsub.f32 0.0, %v5189_v51  ;;  %v4980_v40 = vmul.f32 0.3275911, %v4964_v38  ;;  %v10731_v59 = vmul.f32 0.70710677, %v10716_v16  ;;  %v10736_v27 = vmul.f32 0.5, %v4862_v10 }
 0xff4   :  { %7704 = vrcp.f32 %v4997_v39  ;;  %v4983_v57 = vmul.f32 0.3275911, %v4967_v41  ;;  %v10709_v13 = vmul.f32 0.70710677, %v10706_v24  ;;  %v5218_v36 = vmul.f32 1.442695, %v5202_v46 }
 0xff5   :  { %v7219_v15 = vpop.f32.mrf.mxu1  ;;  %v10739_v28 = vadd.f32 %v10681_v22, %v4881_v47  ;;  %v5204_v33 = vsub.f32 0.0, %v5188_v30  ;;  %v5191_v55 = vmul.f32 %v4967_v41, %v4967_v41  ;;  %v4966_v47 = vand.u32 2147483647, %v10731_v59 }
 0xff6   :  { %v4999_v23 = vadd.f32 1.0, %v4983_v57  ;;  %v4969_v31 = vand.u32 2147483647, %v10709_v13  ;;  %v10719_v9 = vadd.f32 %v7219_v15, %v10681_v22  ;;  %v5224_v57 = vmul.f32 1.442695, %v5205_v18 }
 0xff7   :  { %v10713_v60 = vpop.f32.mrf.mxu1  ;;  %v10751_v51 = vmul.f32 0.70710677, %v10739_v28  ;;  %v5207_v30 = vsub.f32 0.0, %v5191_v55  ;;  %v5190_v18 = vmul.f32 %v4966_v47, %v4966_v47  ;;  %v4982_v55 = vmul.f32 0.3275911, %v4966_v47 }
 0xff8   :  { %7706 = vrcp.f32 %v4999_v23  ;;  %v4985_v4 = vmul.f32 0.3275911, %v4969_v31  ;;  %v10734_v53 = vmul.f32 0.70710677, %v10719_v9  ;;  %v4996_v23 = vadd.f32 1.0, %v4980_v40 }
 0xff9   :  { %v7222_v0 = vpop.f32.mrf.mxu1  ;;  %v5193_v40 = vmul.f32 %v4969_v31, %v4969_v31  ;;  %v10775_v52 = vmul.f32 0.5, %v10716_v16  ;;  %vm5287_vm4 = vcmp.lt.f32.partialorder %v10699_v5, 0.0  ;;  %vm5289_vm5 = vcmp.lt.f32.partialorder %v10709_v13, 0.0 }
 0xffa   :  { %v5001_v35 = vadd.f32 1.0, %v4985_v4  ;;  %v10745_v32 = vadd.f32 %v7222_v0, %v10681_v22  ;;  %v4971_v38 = vand.u32 2147483647, %v10734_v53  ;;  %v5222_v4 = vmul.f32 1.442695, %v5204_v33 }
 0xffb   :  { %vm5286_vm8 = vcmp.lt.f32.partialorder %v10731_v59, 0.0  ;;  %vm5288_vm9 = vcmp.lt.f32.partialorder %v10751_v51, 0.0  ;;  %vm5291_vm11 = vcmp.lt.f32.partialorder %v10734_v53, 0.0 }
 0xffc   :  { %v10721_v61 = vpop.eup %7702  ;;  %7708 = vrcp.f32 %v5001_v35  ;;  %v4987_v17 = vmul.f32 0.3275911, %v4971_v38 }
 0xffd   :  { %v5043_v21 = vmul.f32 1.0614054, %v10721_v61  ;;  %7710 = vpow2.f32 %v5220_v7 }
 0xffe   :  { %7712 = vrcp.f32 %v4994_v49  ;;  %v5003_v7 = vadd.f32 1.0, %v4987_v17  ;;  %v5206_v17 = vsub.f32 0.0, %v5190_v18  ;;  %v4998_v18 = vadd.f32 1.0, %v4982_v55 }
 0xfff   :  { %v5059_v8 = vadd.f32 -1.4531521, %v5043_v21  ;;  %7714 = vpow2.f32 %v5218_v36  ;;  %v10755_v21 = vmul.f32 0.70710677, %v10745_v32  ;;  %v4968_v36 = vand.u32 2147483647, %v10751_v51 }
0x1000   :  { %7716 = vpow2.f32 %v5224_v57  ;;  %v5228_v57 = vmul.f32 1.442695, %v5207_v30  ;;  %v5195_v30 = vmul.f32 %v4971_v38, %v4971_v38 }
0x1001   :  { %v10741_v56 = vpop.eup %7704  ;;  %v5075_v39 = vmul.f32 %v10721_v61, %v5059_v8  ;;  %7718 = vrcp.f32 %v4996_v23  ;;  %v10759_v35 = vand.u32 2147483647, %v10755_v21  ;;  %v4901_v23 = vpop.f32.mrf.mxu1  ;;  %v5192_v12 = vmul.f32 %v4968_v36, %v4968_v36 }
0x1002   :  { %v5045_v15 = vmul.f32 1.0614054, %v10741_v56  ;;  %7720 = vrcp.f32 %v5003_v7  ;;  %v4984_v7 = vmul.f32 0.3275911, %v4968_v36  ;;  %vm5293_vm13 = vcmp.lt.f32.partialorder %v10755_v21, 0.0 }
0x1003   :  { %v5091_v10 = vadd.f32 1.4214138, %v5075_v39  ;;  %7722 = vpow2.f32 %v5222_v4  ;;  %v10765_v39 = vmul.f32 0.5, %v10696_v48  ;;  %v5197_v1 = vmul.f32 %v10759_v35, %v10759_v35 }
0x1004   :  { %v5061_v19 = vadd.f32 -1.4531521, %v5045_v15  ;;  %v4989_v15 = vmul.f32 0.3275911, %v10759_v35 }
0x1005   :  { %v5107_v46 = vmul.f32 %v10721_v61, %v5091_v10  ;;  %v10761_v0 = vpop.eup %7706  ;;  %v4892_v10 = vadd.f32 %v10681_v22, %v10713_v60 }
0x1006   :  { %v5077_v41 = vmul.f32 %v10741_v56, %v5061_v19  ;;  %v5047_v33 = vmul.f32 1.0614054, %v10761_v0 }
0x1007   :  { %v5123_v8 = vadd.f32 -0.28449672, %v5107_v46  ;;  %v5209_v46 = vsub.f32 0.0, %v5193_v40  ;;  %v10780_v40 = vmul.f32 0.70710677, %v4892_v10 }
0x1008   :  { %v5093_v49 = vadd.f32 1.4214138, %v5077_v41  ;;  %v5063_v19 = vadd.f32 -1.4531521, %v5047_v33  ;;  %v5005_v41 = vadd.f32 1.0, %v4989_v15  ;;  %v10784_v15 = vadd.f32 %v10681_v22, %v4901_v23 }
0x1009   :  { %v5139_v4 = vmul.f32 %v10721_v61, %v5123_v8  ;;  %v10777_v47 = vpop.eup %7708  ;;  %v5226_v33 = vmul.f32 1.442695, %v5206_v17  ;;  %v5232_v38 = vmul.f32 1.442695, %v5209_v46  ;;  %v10795_v23 = vmul.f32 0.5, %v10739_v28 }
0x100a   :  { %v5109_v31 = vmul.f32 %v10741_v56, %v5093_v49  ;;  %v5079_v25 = vmul.f32 %v10761_v0, %v5063_v19  ;;  %7724 = vrcp.f32 %v5005_v41  ;;  %v7225_v49 = vpop.f32.mrf.mxu1  ;;  %v5049_v36 = vmul.f32 1.0614054, %v10777_v47  ;;  %v7711_v16 = vpop.eup %7710 }
0x100b   :  { %7726 = vpow2.f32 %v5228_v57  ;;  %v5000_v19 = vadd.f32 1.0, %v4984_v7  ;;  %v5208_v41 = vsub.f32 0.0, %v5192_v12  ;;  %v10786_v44 = vpop.eup %7712  ;;  %v10790_v54 = vadd.f32 %v7225_v49, %v10681_v22 }
0x100c   :  { %v5125_v48 = vadd.f32 -0.28449672, %v5109_v31  ;;  %v5095_v8 = vadd.f32 1.4214138, %v5079_v25  ;;  %v5155_v31 = vadd.f32 0.2548296, %v5139_v4  ;;  %v10792_v25 = vpop.eup %7714  ;;  %7728 = vrcp.f32 %v4998_v18  ;;  %v4911_v28 = vpop.f32.mrf.mxu1 }
0x100d   :  { %v5065_v55 = vadd.f32 -1.4531521, %v5049_v36  ;;  %11485 = vst [vmem:[#allocation58_spill] sm:$0xff] %v10790_v54  ;;  %v4970_v46 = vand.u32 2147483647, %v10780_v40  ;;  %v7717_v4 = vpop.eup %7716  ;;  %7730 = vpow2.f32 %v5226_v33  ;;  %vm5290_vm10 = vcmp.lt.f32.partialorder %v10780_v40, 0.0 }
0x100e   :  { %v5141_v60 = vmul.f32 %v10741_v56, %v5125_v48  ;;  %v5111_v57 = vmul.f32 %v10761_v0, %v5095_v8  ;;  %v5211_v48 = vsub.f32 0.0, %v5195_v30  ;;  %v10800_v8 = vmul.f32 0.70710677, %v10784_v15  ;;  %v10802_v30 = vpop.eup %7718 }
0x100f   :  { %v5081_v7 = vmul.f32 %v10777_v47, %v5065_v55  ;;  %v5171_v49 = vmul.f32 %v10721_v61, %v5155_v31  ;;  %7732 = vpow2.f32 %v5232_v38  ;;  %v10806_v18 = vmul.f32 0.70710677, %v10790_v54  ;;  %v10808_v36 = vpop.eup %7720 }
0x1010   :  { %v5157_v17 = vadd.f32 0.2548296, %v5141_v60  ;;  %v5127_v12 = vadd.f32 -0.28449672, %v5111_v57  ;;  %v5230_v60 = vmul.f32 1.442695, %v5208_v41  ;;  %7734 = vrcp.f32 %v5000_v19  ;;  %v10811_v58 = vpop.eup %7722 }
0x1011   :  { %11486 = vst [vmem:[#allocation57_spill] sm:$0xff] %v10806_v18  ;;  %v5097_v33 = vadd.f32 1.4214138, %v5081_v7  ;;  %v5236_v55 = vmul.f32 1.442695, %v5211_v48  ;;  %v10815_v61 = vmul.f32 0.5, %v4892_v10  ;;  %v5251_v19 = vmul.f32 %v7711_v16, %v5171_v49 }
0x1012   :  { %v5143_v57 = vmul.f32 %v10761_v0, %v5127_v12  ;;  %v5173_v11 = vmul.f32 %v10741_v56, %v5157_v17  ;;  %v5051_v6 = vmul.f32 1.0614054, %v10808_v36  ;;  %v4986_v31 = vmul.f32 0.3275911, %v4970_v46 }
0x1013   :  { %v5113_v38 = vmul.f32 %v10777_v47, %v5097_v33  ;;  %v4972_v41 = vand.u32 2147483647, %v10800_v8  ;;  %v4975_v43 = vand.u32 2147483647, %v10806_v18  ;;  %v10821_v12 = vadd.f32 %v10681_v22, %v4911_v28 }
0x1014   :  { %v5159_v48 = vadd.f32 0.2548296, %v5143_v57  ;;  %7736 = vpow2.f32 %v5230_v60  ;;  %v5067_v7 = vadd.f32 -1.4531521, %v5051_v6  ;;  %v5194_v56 = vmul.f32 %v4970_v46, %v4970_v46  ;;  %v7228_v57 = vpop.f32.mrf.mxu1 }
0x1015   :  { %11487 = vst [vmem:[#allocation59_spill] sm:$0xff] %v10821_v12  ;;  %v5129_v63 = vadd.f32 -0.28449672, %v5113_v38  ;;  %7738 = vpow2.f32 %v5236_v55  ;;  %v4991_v17 = vmul.f32 0.3275911, %v4975_v43  ;;  %v5253_v14 = vmul.f32 %v7717_v4, %v5173_v11 }
0x1016   :  { %v5083_v33 = vmul.f32 %v10808_v36, %v5067_v7  ;;  %v5002_v29 = vadd.f32 1.0, %v4986_v31  ;;  %v4988_v49 = vmul.f32 0.3275911, %v4972_v41  ;;  %v10832_v46 = vmul.f32 0.70710677, %v10821_v12 }
0x1017   :  { %v10823_v10 = vpop.eup %7724  ;;  %v5145_v16 = vmul.f32 %v10777_v47, %v5129_v63  ;;  %v5267_v60 = vsub.f32 1.0, %v5251_v19  ;;  %v5175_v11 = vmul.f32 %v10761_v0, %v5159_v48  ;;  %v5007_v28 = vadd.f32 1.0, %v4991_v17 }
0x1018   :  { %v7727_v45 = vpop.eup %7726  ;;  %v5053_v6 = vmul.f32 1.0614054, %v10823_v10  ;;  %11488 = vst [vmem:[#allocation60_spill] sm:$0xff] %v10832_v46  ;;  %v5099_v4 = vadd.f32 1.4214138, %v5083_v33  ;;  %v5196_v31 = vmul.f32 %v4972_v41, %v4972_v41  ;;  %v5199_v38 = vmul.f32 %v4975_v43, %v4975_v43  ;;  %v4921_v43 = vpop.f32.mrf.mxu1 }
0x1019   :  { %v5161_v35 = vadd.f32 0.2548296, %v5145_v16  ;;  %v5269_v7 = vsub.f32 1.0, %v5253_v14  ;;  %v5210_v50 = vsub.f32 0.0, %v5194_v56  ;;  %7740 = vrcp.f32 %v5007_v28  ;;  %v10837_v42 = vpop.eup %7728 }
0x101a   :  { %v5069_v55 = vadd.f32 -1.4531521, %v5053_v6  ;;  %v5115_v63 = vmul.f32 %v10808_v36, %v5099_v4  ;;  %7742 = vrcp.f32 %v5002_v29  ;;  %v5004_v0 = vadd.f32 1.0, %v4988_v49  ;;  %v10841_v17 = vpop.eup %7730 }
0x101b   :  { %v4974_v48 = vand.u32 2147483647, %v10832_v46  ;;  %v5299_v33 = vsub.f32 0.0, %v5267_v60  ;;  %v5255_v16 = vmul.f32 %v7727_v45, %v5175_v11  ;;  %v5213_v41 = vsub.f32 0.0, %v5197_v1 }
0x101c   :  { %v5085_v19 = vmul.f32 %v10823_v10, %v5069_v55  ;;  %v5131_v6 = vadd.f32 -0.28449672, %v5115_v63  ;;  %v7733_v14 = vpop.eup %7732  ;;  %v5177_v4 = vmul.f32 %v10777_v47, %v5161_v35  ;;  %v5212_v28 = vsub.f32 0.0, %v5196_v31 }
0x101d   :  { %v5215_v54 = vsub.f32 0.0, %v5199_v38  ;;  %v10844_v12 = vpop.eup %7734  ;;  %v5301_v29 = vsub.f32 0.0, %v5269_v7  ;;  %v5234_v55 = vmul.f32 1.442695, %v5210_v50  ;;  %v10848_v46 = vadd.f32 %v7228_v57, %v10681_v22 }
0x101e   :  { %v5101_v56 = vadd.f32 1.4214138, %v5085_v19  ;;  %v5147_v49 = vmul.f32 %v10808_v36, %v5131_v6  ;;  %7744 = vrcp.f32 %v5004_v0  ;;  %v5198_v45 = vmul.f32 %v4974_v48, %v4974_v48 }
0x101f   :  { %11489 = vst [vmem:[#allocation61_spill] sm:$0xff] %v10848_v46  ;;  %v10853_v47 = vadd.f32 %v10681_v22, %v4921_v43  ;;  %v5315_v11 = vsel %vm5283_vm2, %v5299_v33, %v5267_v60  ;;  %v5271_v35 = vsub.f32 1.0, %v5255_v16  ;;  %v5240_v31 = vmul.f32 1.442695, %v5213_v41 }
0x1020   :  { %v5117_v1 = vmul.f32 %v10823_v10, %v5101_v56  ;;  %v10858_v38 = vmul.f32 0.70710677, %v10848_v46  ;;  %v5257_v57 = vmul.f32 %v7733_v14, %v5177_v4  ;;  %v5163_v63 = vadd.f32 0.2548296, %v5147_v49 }
0x1021   :  { %11490 = vst [vmem:[#allocation62_spill] sm:$0xff] %v10853_v47  ;;  %v10860_v50 = vpop.eup %7736  ;;  %v5238_v19 = vmul.f32 1.442695, %v5212_v28  ;;  %v5244_v6 = vmul.f32 1.442695, %v5215_v54  ;;  %v5317_v0 = vsel %vm5285_vm3, %v5301_v29, %v5269_v7  ;;  %7746 = vpow2.f32 %v5234_v55 }
0x1022   :  { %11491 = vst [vmem:[#allocation64_spill] sm:$0xff] %v10858_v38  ;;  %v7739_v56 = vpop.eup %7738  ;;  %v5133_v22 = vadd.f32 -0.28449672, %v5117_v1  ;;  %v4990_v43 = vmul.f32 0.3275911, %v4974_v48  ;;  %v5214_v60 = vsub.f32 0.0, %v5198_v45  ;;  %7748 = vpow2.f32 %v5240_v31 }
0x1023   :  { %v4977_v2 = vand.u32 2147483647, %v10858_v38  ;;  %v10866_v33 = vmul.f32 0.70710677, %v10853_v47  ;;  %v5042_v16 = vmul.f32 1.0614054, %v10786_v44  ;;  %v5179_v7 = vmul.f32 %v10808_v36, %v5163_v63 }
0x1024   :  { %v5331_v41 = vadd.f32 1.0, %v5315_v11  ;;  %v5303_v14 = vsub.f32 0.0, %v5271_v35  ;;  %v5333_v4 = vadd.f32 1.0, %v5317_v0  ;;  %v5273_v20 = vsub.f32 1.0, %v5257_v57 }
0x1025   :  { %11492 = vst [vmem:[#allocation40_spill] sm:$0xff] %v10866_v33  ;;  %v4993_v54 = vmul.f32 0.3275911, %v4977_v2  ;;  %7750 = vpow2.f32 %v5238_v19  ;;  %v5149_v48 = vmul.f32 %v10823_v10, %v5133_v22  ;;  %v5006_v28 = vadd.f32 1.0, %v4990_v43 }
0x1026   :  { %v5044_v49 = vmul.f32 1.0614054, %v10802_v30  ;;  %v10873_v55 = vpop.eup %7740  ;;  %7752 = vpow2.f32 %v5244_v6  ;;  %v5242_v1 = vmul.f32 1.442695, %v5214_v60  ;;  %v4976_v45 = vand.u32 2147483647, %v10866_v33 }
0x1027   :  { %v5009_v29 = vadd.f32 1.0, %v4993_v54  ;;  %v5058_v11 = vadd.f32 -1.4531521, %v5042_v16  ;;  %v10876_v31 = vpop.eup %7742  ;;  %v10879_v57 = vmul.f32 %v5331_v41, %v10723_v37  ;;  %v5319_v36 = vsel %vm5287_vm4, %v5303_v14, %v5271_v35 }
0x1028   :  { %v5055_v63 = vmul.f32 1.0614054, %v10873_v55  ;;  %v5305_v19 = vsub.f32 0.0, %v5273_v20  ;;  %v10884_v0 = vmul.f32 %v7739_v56, %v5179_v7  ;;  %v5201_v22 = vmul.f32 %v4977_v2, %v4977_v2 }
0x1029   :  { %7754 = vrcp.f32 %v5009_v29  ;;  %v5074_v6 = vmul.f32 %v10786_v44, %v5058_v11  ;;  %v5165_v43 = vadd.f32 0.2548296, %v5149_v48  ;;  %v5060_v16 = vadd.f32 -1.4531521, %v5044_v49 }
0x102a   :  { %v5071_v60 = vadd.f32 -1.4531521, %v5055_v63  ;;  %7756 = vrcp.f32 %v5006_v28  ;;  %v10888_v54 = vmul.f32 %v5333_v4, %v10728_v34  ;;  %v10890_v37 = vadd.f32 1.0, %v5319_v36 }
0x102b   :  { %7758 = vpow2.f32 %v5242_v1  ;;  %v4992_v5 = vmul.f32 0.3275911, %v4976_v45  ;;  %v10892_v35 = vpop.eup %7744  ;;  %v5090_v56 = vadd.f32 1.4214138, %v5074_v6  ;;  %v5076_v2 = vmul.f32 %v10802_v30, %v5060_v16 }
0x102c   :  { %v5087_v41 = vmul.f32 %v10873_v55, %v5071_v60  ;;  %v5046_v14 = vmul.f32 1.0614054, %v10837_v42  ;;  %v10899_v7 = vsel %vm5289_vm5, %v5305_v19, %v5273_v20  ;;  %v11237_v34 = vsub.f32 1.0, %v10884_v0 }
0x102d   :  { %v5217_v4 = vsub.f32 0.0, %v5201_v22  ;;  %v5048_v48 = vmul.f32 1.0614054, %v10844_v12  ;;  %v5181_v28 = vmul.f32 %v10823_v10, %v5165_v43  ;;  %v5106_v29 = vmul.f32 %v10786_v44, %v5090_v56 }
0x102e   :  { %v5092_v49 = vadd.f32 1.4214138, %v5076_v2  ;;  %v5062_v1 = vadd.f32 -1.4531521, %v5046_v14  ;;  %v10905_v11 = vmul.f32 %v4976_v45, %v4976_v45  ;;  %v5050_v63 = vmul.f32 1.0614054, %v10876_v31  ;;  %v10909_v20 = vpop.eup %7746 }
0x102f   :  { %v5064_v36 = vadd.f32 -1.4531521, %v5048_v48  ;;  %v5052_v13 = vmul.f32 1.0614054, %v10892_v35  ;;  %v5103_v19 = vadd.f32 1.4214138, %v5087_v41  ;;  %v7749_v16 = vpop.eup %7748 }
0x1030   :  { %v5008_v6 = vadd.f32 1.0, %v4992_v5  ;;  %v5122_v22 = vadd.f32 -0.28449672, %v5106_v29  ;;  %v5108_v60 = vmul.f32 %v10802_v30, %v5092_v49  ;;  %v5078_v10 = vmul.f32 %v10837_v42, %v5062_v1 }
0x1031   :  { %v5080_v43 = vmul.f32 %v10844_v12, %v5064_v36  ;;  %v5066_v56 = vadd.f32 -1.4531521, %v5050_v63  ;;  %v5068_v45 = vadd.f32 -1.4531521, %v5052_v13  ;;  %v10918_v14 = vsub.f32 0.0, %v11237_v34 }
0x1032   :  { %v10914_v2 = vpop.eup %7750  ;;  %v10920_v48 = vmul.f32 1.442695, %v5217_v4  ;;  %v5138_v5 = vmul.f32 %v10786_v44, %v5122_v22  ;;  %v5124_v41 = vadd.f32 -0.28449672, %v5108_v60  ;;  %v5094_v29 = vadd.f32 1.4214138, %v5078_v10 }
0x1033   :  { %v5096_v49 = vadd.f32 1.4214138, %v5080_v43  ;;  %v5082_v46 = vmul.f32 %v10876_v31, %v5066_v56  ;;  %v5084_v1 = vmul.f32 %v10892_v35, %v5068_v45  ;;  %v10925_v36 = vpop.eup %7752  ;;  %v5119_v63 = vmul.f32 %v10873_v55, %v5103_v19 }
0x1034   :  { %7760 = vrcp.f32 %v5008_v6  ;;  %v5154_v13 = vadd.f32 0.2548296, %v5138_v5  ;;  %v5140_v34 = vmul.f32 %v10802_v30, %v5124_v41  ;;  %v5110_v4 = vmul.f32 %v10837_v42, %v5094_v29 }
0x1035   :  { %v5112_v22 = vmul.f32 %v10844_v12, %v5096_v49  ;;  %v5098_v60 = vadd.f32 1.4214138, %v5082_v46  ;;  %v5100_v10 = vadd.f32 1.4214138, %v5084_v1  ;;  %v10934_v43 = vmul.f32 %v7749_v16, %v5181_v28 }
0x1036   :  { %v10929_v47 = vpop.eup %7754  ;;  %v5170_v19 = vmul.f32 %v10786_v44, %v5154_v13  ;;  %v5156_v6 = vadd.f32 0.2548296, %v5140_v34  ;;  %v5126_v5 = vadd.f32 -0.28449672, %v5110_v4  ;;  %v5135_v46 = vadd.f32 -0.28449672, %v5119_v63 }
0x1037   :  { %v5057_v56 = vmul.f32 1.0614054, %v10929_v47  ;;  %v10938_v45 = vpop.eup %7756  ;;  %v5128_v41 = vadd.f32 -0.28449672, %v5112_v22  ;;  %v5114_v33 = vmul.f32 %v10876_v31, %v5098_v60  ;;  %v5116_v29 = vmul.f32 %v10892_v35, %v5100_v10 }
0x1038   :  { %v10943_v49 = vpop.eup %7758  ;;  %v5250_v16 = vmul.f32 %v10792_v25, %v5170_v19  ;;  %v5172_v1 = vmul.f32 %v10802_v30, %v5156_v6  ;;  %v5142_v44 = vmul.f32 %v10837_v42, %v5126_v5  ;;  %v5216_v22 = vsub.f32 0.0, %v10905_v11 }
0x1039   :  { %v5073_v28 = vadd.f32 -1.4531521, %v5057_v56  ;;  %v5144_v34 = vmul.f32 %v10844_v12, %v5128_v41  ;;  %v5130_v13 = vadd.f32 -0.28449672, %v5114_v33  ;;  %v5132_v38 = vadd.f32 -0.28449672, %v5116_v29 }
0x103a   :  { %v5266_v60 = vsub.f32 1.0, %v5250_v16  ;;  %v5252_v10 = vmul.f32 %v10811_v58, %v5172_v1  ;;  %v5158_v18 = vadd.f32 0.2548296, %v5142_v44  ;;  %v5151_v30 = vmul.f32 %v10873_v55, %v5135_v46 }
0x103b   :  { %v5089_v4 = vmul.f32 %v10929_v47, %v5073_v28  ;;  %v5160_v63 = vadd.f32 0.2548296, %v5144_v34  ;;  %v5146_v56 = vmul.f32 %v10876_v31, %v5130_v13  ;;  %v5148_v25 = vmul.f32 %v10892_v35, %v5132_v38 }
0x103c   :  { %v5298_v33 = vsub.f32 0.0, %v5266_v60  ;;  %v5268_v6 = vsub.f32 1.0, %v5252_v10  ;;  %v5174_v11 = vmul.f32 %v10837_v42, %v5158_v18  ;;  %v5054_v16 = vmul.f32 1.0614054, %v10938_v45 }
0x103d   :  { %v5105_v19 = vadd.f32 1.4214138, %v5089_v4  ;;  %v5176_v5 = vmul.f32 %v10844_v12, %v5160_v63  ;;  %v5162_v58 = vadd.f32 0.2548296, %v5146_v56  ;;  %v5164_v41 = vadd.f32 0.2548296, %v5148_v25 }
0x103e   :  { %v5314_v38 = vsel %vm5282_vm6, %v5298_v33, %v5266_v60  ;;  %v5300_v28 = vsub.f32 0.0, %v5268_v6  ;;  %v5254_v1 = vmul.f32 %v10841_v17, %v5174_v11  ;;  %7762 = vpow2.f32 %v10920_v48 }
0x103f   :  { %v5121_v29 = vmul.f32 %v10929_v47, %v5105_v19  ;;  %v5330_v46 = vadd.f32 1.0, %v5314_v38  ;;  %v5256_v44 = vmul.f32 %v10860_v50, %v5176_v5  ;;  %v5178_v42 = vmul.f32 %v10876_v31, %v5162_v58 }
0x1040   :  { %v5316_v12 = vsel %vm5284_vm7, %v5300_v28, %v5268_v6  ;;  %v5180_v3 = vmul.f32 %v10892_v35, %v5164_v41  ;;  %v5167_v13 = vadd.f32 0.2548296, %v5151_v30  ;;  %v5270_v10 = vsub.f32 1.0, %v5254_v1 }
0x1041   :  { %v5137_v18 = vadd.f32 -0.28449672, %v5121_v29  ;;  %v10971_v34 = vpop.eup %7760  ;;  %v5346_v4 = vmul.f32 %v5330_v46, %v10726_v62  ;;  %v5332_v60 = vadd.f32 1.0, %v5316_v12  ;;  %v5272_v50 = vsub.f32 1.0, %v5256_v44 }
0x1042   :  { %v5258_v31 = vmul.f32 %v10909_v20, %v5178_v42  ;;  %v5260_v48 = vmul.f32 %v10914_v2, %v5180_v3  ;;  %v5277_v26 = vsub.f32 1.0, %v10934_v43  ;;  %v5302_v63 = vsub.f32 0.0, %v5270_v10 }
0x1043   :  { %v5153_v17 = vmul.f32 %v10929_v47, %v5137_v18  ;;  %7261 = vmatprep.mubr.f32.mxu0 %v5346_v4  ;;  %v5348_v35 = vmul.f32 %v5332_v60, %v10736_v27  ;;  %v5070_v56 = vadd.f32 -1.4531521, %v5054_v16  ;;  %v5246_v25 = vmul.f32 1.442695, %v5216_v22 }
0x1044   :  { %7262 = vmatmul.mubr.f32.vlgmr.msra.gmra.mxu0 %v10879_v57  ;;  %v5304_v62 = vsub.f32 0.0, %v5272_v50  ;;  %v5274_v30 = vsub.f32 1.0, %v5258_v31  ;;  %v5276_v19 = vsub.f32 1.0, %v5260_v48  ;;  %v5183_v33 = vmul.f32 %v10873_v55, %v5167_v13 }
0x1045   :  { %7264 = vmatprep.mubr.f32.mxu0 %v5348_v35  ;;  %v5318_v20 = vsel %vm5286_vm8, %v5302_v63, %v5270_v10  ;;  %v5086_v2 = vmul.f32 %v10938_v45, %v5070_v56  ;;  %v5056_v43 = vmul.f32 1.0614054, %v10971_v34  ;;  %v5169_v6 = vadd.f32 0.2548296, %v5153_v17  ;;  %v11494_v63 = vld [vmem:[#allocation57_spill] sm:$0xff] }
0x1046   :  { %v5334_v27 = vadd.f32 1.0, %v5318_v20  ;;  %v5320_v22 = vsel %vm5288_vm9, %v5304_v62, %v5272_v50  ;;  %v5306_v11 = vsub.f32 0.0, %v5274_v30  ;;  %v5308_v5 = vsub.f32 0.0, %v5276_v19 }
0x1047   :  { %v5336_v57 = vadd.f32 1.0, %v5320_v22  ;;  %v5102_v58 = vadd.f32 1.4214138, %v5086_v2  ;;  %v5072_v41 = vadd.f32 -1.4531521, %v5056_v43  ;;  %v5351_v55 = vmul.f32 %v10890_v37, %v10765_v39 }
0x1048   :  { %vm5292_vm12 = vcmp.lt.f32.partialorder %v10800_v8, 0.0  ;;  %7265 = vmatmul.mubr.f32.gmra.mxu0 %v10888_v54  ;;  %v5350_v59 = vmul.f32 %v5334_v27, %v10775_v52  ;;  %v5322_v29 = vsel %vm5290_vm10, %v5306_v11, %v5274_v30  ;;  %v5337_v51 = vadd.f32 1.0, %v10899_v7  ;;  %v11498_v11 = vld [vmem:[#allocation58_spill] sm:$0xff] }
0x1049   :  { %v5352_v38 = vmul.f32 %v5336_v57, %v10795_v23  ;;  %v5338_v28 = vadd.f32 1.0, %v5322_v29  ;;  %v5118_v16 = vmul.f32 %v10938_v45, %v5102_v58  ;;  %v5263_v46 = vmul.f32 %v10925_v36, %v5183_v33  ;;  %v11495_v33 = vld [vmem:[#allocation60_spill] sm:$0xff] }
0x104a   :  { %7764 = vpow2.f32 %v5246_v25  ;;  %7267 = vmatprep.mubr.f32.mxu0 %v5350_v59  ;;  %v5324_v39 = vsel %vm5292_vm12, %v5308_v5, %v5276_v19  ;;  %v5088_v8 = vmul.f32 %v10971_v34, %v5072_v41  ;;  %v11493_v54 = vsub.f32 1.0, %v10884_v0 }
0x104b   :  { %v5309_v40 = vsub.f32 0.0, %v5277_v26  ;;  %v5185_v37 = vmul.f32 %v10929_v47, %v5169_v6  ;;  %v5134_v23 = vadd.f32 -0.28449672, %v5118_v16  ;;  %v4937_v7 = vmul.f32 0.5, %v10706_v24  ;;  %v7763_v36 = vpop.eup %7762  ;;  %v11497_v6 = vld [vmem:[#allocation64_spill] sm:$0xff]  ;;  %v11501_v16 = vld [vmem:[#allocation61_spill] sm:$0xff] }
0x104c   :  { %v5323_v52 = vsel %vm5291_vm11, %v10918_v14, %v11493_v54  ;;  %7268 = vmatmul.mubr.f32.gmra.mxu0 %v5351_v55  ;;  %v5104_v1 = vadd.f32 1.4214138, %v5088_v8  ;;  %v5354_v44 = vmul.f32 %v5338_v28, %v10815_v61  ;;  %v5340_v42 = vadd.f32 1.0, %v5324_v39  ;;  %v11499_v55 = vld [vmem:[#allocation40_spill] sm:$0xff] }
0x104d   :  { %7270 = vmatprep.mubr.f32.mxu0 %v5352_v38  ;;  %v5150_v0 = vmul.f32 %v10938_v45, %v5134_v23  ;;  %v5353_v18 = vmul.f32 %v5337_v51, %v4937_v7  ;;  %v5339_v53 = vadd.f32 1.0, %v5323_v52  ;;  %v5279_v14 = vsub.f32 1.0, %v5263_v46  ;;  %v11500_v51 = vld [vmem:[#allocation62_spill] sm:$0xff]  ;;  %v119_v54 = vld [vmem:[#allocation4] sm:$0xff] }
0x104e   :  { %v5120_v12 = vmul.f32 %v10971_v34, %v5104_v1  ;;  %v5325_v47 = vsel %vm5293_vm13, %v5309_v40, %v5277_v26  ;;  %v4940_v3 = vmul.f32 0.5, %v10784_v15  ;;  %v5265_v24 = vmul.f32 %v7763_v36, %v5185_v37  ;;  %7317 = vmatprep.mubr.f32.mxu1 %v119_v54 }
0x104f   :  { %v5166_v13 = vadd.f32 0.2548296, %v5150_v0  ;;  %v4939_v4 = vmul.f32 0.5, %v10719_v9  ;;  %v5341_v17 = vadd.f32 1.0, %v5325_v47  ;;  %v5311_v50 = vsub.f32 0.0, %v5279_v14 }
0x1050   :  { %7271 = vmatmul.mubr.f32.gmra.mxu0 %v5353_v18  ;;  %v5136_v21 = vadd.f32 -0.28449672, %v5120_v12  ;;  %v5356_v60 = vmul.f32 %v5340_v42, %v4940_v3  ;;  %v5281_v48 = vsub.f32 1.0, %v5265_v24  ;;  %v4941_v15 = vmul.f32 0.5, %v10745_v32  ;;  %v11496_v32 = vld [vmem:[#allocation59_spill] sm:$0xff] }
0x1051   :  { %7273 = vmatprep.mubr.f32.mxu0 %v5354_v44  ;;  %v5182_v61 = vmul.f32 %v10938_v45, %v5166_v13  ;;  %v5355_v10 = vmul.f32 %v5339_v53, %v4939_v4  ;;  %vm5295_vm14 = vcmp.lt.f32.partialorder %v11494_v63, 0.0  ;;  %vm5294_vm15 = vcmp.lt.f32.partialorder %v11495_v33, 0.0  ;;  %v11502_v3 = vld [vmem:[#allocation83_spill] sm:$0xff]  ;;  %v5992_v13 = vld [vmem:[%s11119_s4 + $0x8] ss:$0 sm:$0xff]  ;;  %v11507_v63 = vld [vmem:[#allocation82_spill] sm:$0xff] }
0x1052   :  { %v5152_v31 = vmul.f32 %v10971_v34, %v5136_v21  ;;  %v5357_v56 = vmul.f32 %v5341_v17, %v4941_v15  ;;  %v5327_v25 = vsel %vm5295_vm14, %v5311_v50, %v5279_v14  ;;  %v5313_v30 = vsub.f32 0.0, %v5281_v48  ;;  %v11503_v21 = vld [vmem:[#allocation81_spill] sm:$0xff]  ;;  %v11505_v50 = vld [vmem:[#allocation84_spill] sm:$0xff] }
0x1053   :  { %v5262_v26 = vmul.f32 %v10943_v49, %v5182_v61  ;;  %v5343_v49 = vadd.f32 1.0, %v5327_v25  ;;  %v4942_v43 = vmul.f32 0.5, %v11496_v32  ;;  %vm5297_vm1 = vcmp.lt.f32.partialorder %v11497_v6, 0.0  ;;  %v11508_v25 = vld [vmem:[#allocation77_spill] sm:$0xff]  ;;  %v11511_v32 = vld [vmem:[#allocation78_spill] sm:$0xff] }
0x1054   :  { %7274 = vmatmul.mubr.f32.gmra.mxu0 %v5355_v10  ;;  %v5168_v35 = vadd.f32 0.2548296, %v5152_v31  ;;  %v4943_v57 = vmul.f32 0.5, %v11498_v11  ;;  %v5329_v5 = vsel %vm5297_vm1, %v5313_v30, %v5281_v48  ;;  %vm5296_vm2 = vcmp.lt.f32.partialorder %v11499_v55, 0.0  ;;  %v11504_v10 = vld [vmem:[#allocation56_spill] sm:$0xff] }
0x1055   :  { %7276 = vmatprep.mubr.f32.mxu0 %v5356_v60  ;;  %v5278_v9 = vsub.f32 1.0, %v5262_v26  ;;  %v5345_v59 = vadd.f32 1.0, %v5329_v5  ;;  %v4944_v38 = vmul.f32 0.5, %v11500_v51  ;;  %v4945_v46 = vmul.f32 0.5, %v11501_v16  ;;  %v11506_v26 = vld [vmem:[#allocation79_spill] sm:$0xff]  ;;  %v11509_v30 = vld [vmem:[#allocation80_spill] sm:$0xff] }
0x1056   :  { %v5184_v45 = vmul.f32 %v10971_v34, %v5168_v35  ;;  %v5359_v41 = vmul.f32 %v5343_v49, %v4943_v57  ;;  %v11513_v57 = vld [vmem:[#allocation76_spill] sm:$0xff] }
0x1057   :  { %v7765_v62 = vpop.eup %7764  ;;  %v5310_v19 = vsub.f32 0.0, %v5278_v9  ;;  %v5361_v8 = vmul.f32 %v5345_v59, %v4945_v46  ;;  %v11515_v59 = vld [vmem:[#allocation74_spill] sm:$0xff] }
0x1058   :  { %7277 = vmatmul.mubr.f32.gmra.mxu0 %v5357_v56  ;;  %v5264_v20 = vmul.f32 %v7765_v62, %v5184_v45  ;;  %v11517_v46 = vld [vmem:[#allocation54_spill] sm:$0xff] }
0x1059   :  { %v5326_v2 = vsel %vm5294_vm15, %v5310_v19, %v5278_v9 }
0x105a   :  { %v5342_v27 = vadd.f32 1.0, %v5326_v2  ;;  %v5280_v22 = vsub.f32 1.0, %v5264_v20  ;;  %v11510_v20 = vld [vmem:[#allocation75_spill] sm:$0xff] }
0x105c   :  { %v5358_v58 = vmul.f32 %v5342_v27, %v4942_v43  ;;  %v5312_v34 = vsub.f32 0.0, %v5280_v22  ;;  %v11512_v27 = vld [vmem:[#allocation73_spill] sm:$0xff] }
0x105e   :  { %7279 = vmatprep.mubr.f32.mxu0 %v5358_v58  ;;  %v5328_v29 = vsel %vm5296_vm2, %v5312_v34, %v5280_v22  ;;  %v11514_v34 = vld [vmem:[#allocation72_spill] sm:$0xff] }
0x105f   :  { %7280 = vmatmul.mubr.f32.gmra.mxu0 %v5359_v41  ;;  %v5344_v28 = vadd.f32 1.0, %v5328_v29 }
0x1061   :  { %v5360_v39 = vmul.f32 %v5344_v28, %v4944_v38  ;;  %v11516_v38 = vld [vmem:[#allocation53_spill] sm:$0xff] }
0x1063   :  { %7282 = vmatprep.mubr.f32.mxu0 %v5360_v39 }
0x1064   :  { %7283 = vmatmul.mubr.f32.gmra.mxu0 %v5361_v8 }
0x1104   :  { %v11026_v52 = vpop.f32.mrf.mxu0 }
0x1105   :  { %v5524_v28 = vadd.f32 %v11026_v52, %v11516_v38  ;;  %v122_v52 = vld [vmem:[#allocation4 + $0x18] sm:$0xff] }
0x1106   :  { %v11028_v40 = vpop.f32.mrf.mxu0 }
0x1107   :  { %v5523_v39 = vadd.f32 %v11028_v40, %v11517_v46  ;;  %v5544_v54 = vadd.f32 %v5992_v13, %v5524_v28  ;;  %v124_v40 = vld [vmem:[#allocation4 + $0x28] sm:$0xff] }
0x1108   :  { %v7266_v37 = vpop.f32.mrf.mxu0 }
0x1109   :  { %v5526_v41 = vadd.f32 %v7266_v37, %v11514_v34  ;;  %v5543_v37 = vadd.f32 %v5992_v13, %v5523_v39 }
0x110a   :  { %v5454_v23 = vpop.f32.mrf.mxu0 }
0x110b   :  { %v5525_v29 = vadd.f32 %v5454_v23, %v11515_v59  ;;  %v5546_v16 = vadd.f32 %v5992_v13, %v5526_v41  ;;  %v120_v23 = vld [vmem:[#allocation4 + $0x8] sm:$0xff] }
0x110c   :  { %v7269_v7 = vpop.f32.mrf.mxu0 }
0x110d   :  { %v5528_v22 = vadd.f32 %v7269_v7, %v11512_v27  ;;  %v5545_v8 = vadd.f32 %v5992_v13, %v5525_v29  ;;  %v121_v7 = vld [vmem:[#allocation4 + $0x10] sm:$0xff] }
0x110e   :  { %v5464_v1 = vpop.f32.mrf.mxu0 }
0x110f   :  { %v5527_v5 = vadd.f32 %v5464_v1, %v11513_v57  ;;  %v5548_v55 = vadd.f32 %v5992_v13, %v5528_v22  ;;  %v123_v1 = vld [vmem:[#allocation4 + $0x20] sm:$0xff] }
0x1110   :  { %v7272_v36 = vpop.f32.mrf.mxu0 }
0x1111   :  { %v5530_v49 = vadd.f32 %v7272_v36, %v11510_v20  ;;  %v5547_v51 = vadd.f32 %v5992_v13, %v5527_v5  ;;  %v125_v36 = vld [vmem:[#allocation4 + $0x30] sm:$0xff] }
0x1112   :  { %v5474_v44 = vpop.f32.mrf.mxu0 }
0x1113   :  { %v5529_v43 = vadd.f32 %v5474_v44, %v11511_v32  ;;  %v5550_v11 = vadd.f32 %v5992_v13, %v5530_v49  ;;  %v126_v44 = vld [vmem:[#allocation4 + $0x38] sm:$0xff] }
0x1114   :  { %v7275_v42 = vpop.f32.mrf.mxu0 }
0x1115   :  { %v5532_v45 = vadd.f32 %v7275_v42, %v11508_v25  ;;  %v5549_v58 = vadd.f32 %v5992_v13, %v5529_v43  ;;  %v127_v42 = vld [vmem:[#allocation4 + $0x40] sm:$0xff] }
0x1116   :  { %v5484_v0 = vpop.f32.mrf.mxu0 }
0x1117   :  { %v5531_v19 = vadd.f32 %v5484_v0, %v11509_v30  ;;  %v5552_v2 = vadd.f32 %v5992_v13, %v5532_v45  ;;  %v128_v0 = vld [vmem:[#allocation4 + $0x48] sm:$0xff] }
0x1118   :  { %v7278_v18 = vpop.f32.mrf.mxu0 }
0x1119   :  { %v5534_v15 = vadd.f32 %v7278_v18, %v11506_v26  ;;  %v5551_v6 = vadd.f32 %v5992_v13, %v5531_v19  ;;  %v129_v18 = vld [vmem:[#allocation4 + $0x50] sm:$0xff] }
0x111a   :  { %v5494_v53 = vpop.f32.mrf.mxu0 }
0x111b   :  { %v5533_v9 = vadd.f32 %v5494_v53, %v11507_v63  ;;  %v5554_v62 = vadd.f32 %v5992_v13, %v5534_v15  ;;  %v130_v53 = vld [vmem:[#allocation4 + $0x58] sm:$0xff] }
0x111d   :  { %v5553_v33 = vadd.f32 %v5992_v13, %v5533_v9 }
0x111f   :  { %v7281_v14 = vpop.f32.mrf.mxu0 }
0x1120   :  { %v5536_v60 = vadd.f32 %v7281_v14, %v11503_v21  ;;  %v131_v14 = vld [vmem:[#allocation4 + $0x60] sm:$0xff] }
0x1121   :  { %v5504_v12 = vpop.f32.mrf.mxu0 }
0x1122   :  { %v5535_v31 = vadd.f32 %v5504_v12, %v11505_v50  ;;  %v5556_v35 = vadd.f32 %v5992_v13, %v5536_v60  ;;  %v132_v12 = vld [vmem:[#allocation4 + $0x68] sm:$0xff] }
0x1124   :  { %v7284_v47 = vpop.f32.mrf.mxu0  ;;  %v5555_v56 = vadd.f32 %v5992_v13, %v5535_v31 }
0x1125   :  { %v5538_v24 = vadd.f32 %v7284_v47, %v11502_v3  ;;  %v133_v47 = vld [vmem:[#allocation4 + $0x70] sm:$0xff]  ;;  %v134_v3 = vld [vmem:[#allocation4 + $0x78] sm:$0xff] }
0x1126   :  { %v5514_v4 = vpop.f32.mrf.mxu0 }
0x1127   :  { %v5558_v61 = vadd.f32 %v5992_v13, %v5538_v24  ;;  %v5537_v17 = vadd.f32 %v5514_v4, %v11504_v10 }
0x1129   :  { %v5557_v48 = vadd.f32 %v5992_v13, %v5537_v17  ;;  %7285 = vmatprep.subr.mxu1 %v5558_v61 }
0x112a   :  { %7286 = vmatpush3.msra.mxu1 %v5558_v61 }
0x112b   :  { %7287 = vmatprep.subr.mxu1 %v5557_v48 }
0x112c   :  { %7288 = vmatpush3.msra.mxu1 %v5557_v48 }
0x112d   :  { %7289 = vmatprep.subr.mxu1 %v5556_v35 }
0x112e   :  { %7290 = vmatpush3.msra.mxu1 %v5556_v35 }
0x112f   :  { %7291 = vmatprep.subr.mxu1 %v5555_v56 }
0x1130   :  { %7292 = vmatpush3.msra.mxu1 %v5555_v56 }
0x1131   :  { %7293 = vmatprep.subr.mxu1 %v5554_v62 }
0x1132   :  { %7294 = vmatpush3.msra.mxu1 %v5554_v62 }
0x1133   :  { %7295 = vmatprep.subr.mxu1 %v5553_v33 }
0x1134   :  { %7296 = vmatpush3.msra.mxu1 %v5553_v33 }
0x1135   :  { %7297 = vmatprep.subr.mxu1 %v5552_v2 }
0x1136   :  { %7298 = vmatpush3.msra.mxu1 %v5552_v2 }
0x1137   :  { %7299 = vmatprep.subr.mxu1 %v5551_v6 }
0x1138   :  { %7300 = vmatpush3.msra.mxu1 %v5551_v6 }
0x1139   :  { %7301 = vmatprep.subr.mxu1 %v5550_v11 }
0x113a   :  { %7302 = vmatpush3.msra.mxu1 %v5550_v11 }
0x113b   :  { %7303 = vmatprep.subr.mxu1 %v5549_v58 }
0x113c   :  { %7304 = vmatpush3.msra.mxu1 %v5549_v58 }
0x113d   :  { %7305 = vmatprep.subr.mxu1 %v5548_v55 }
0x113e   :  { %7306 = vmatpush3.msra.mxu1 %v5548_v55 }
0x113f   :  { %7307 = vmatprep.subr.mxu1 %v5547_v51 }
0x1140   :  { %7308 = vmatpush3.msra.mxu1 %v5547_v51 }
0x1141   :  { %7309 = vmatprep.subr.mxu1 %v5546_v16 }
0x1142   :  { %7310 = vmatpush3.msra.mxu1 %v5546_v16 }
0x1143   :  { %7311 = vmatprep.subr.mxu1 %v5545_v8 }
0x1144   :  { %7312 = vmatpush3.msra.mxu1 %v5545_v8 }
0x1145   :  { %7313 = vmatprep.subr.mxu1 %v5544_v54 }
0x1146   :  { %7314 = vmatpush3.msra.mxu1 %v5544_v54 }
0x1147   :  { %7315 = vmatprep.subr.mxu1 %v5543_v37 }
0x1148   :  { %7316 = vmatpush3.msra.mxu1 %v5543_v37 }
0x1149   :  { %7318 = vmatmul.mubr.f32.vlgmr.msra.gmra.mxu1 %v120_v23 }
0x114a   :  { %7320 = vmatprep.mubr.f32.mxu1 %v121_v7 }
0x114d   :  { %7321 = vmatmul.mubr.f32.gmra.mxu1 %v122_v52 }
0x114e   :  { %7323 = vmatprep.mubr.f32.mxu1 %v123_v1 }
0x1151   :  { %7324 = vmatmul.mubr.f32.gmra.mxu1 %v124_v40 }
0x1152   :  { %7326 = vmatprep.mubr.f32.mxu1 %v125_v36 }
0x1155   :  { %7327 = vmatmul.mubr.f32.gmra.mxu1 %v126_v44 }
0x1156   :  { %7329 = vmatprep.mubr.f32.mxu1 %v127_v42 }
0x1159   :  { %7330 = vmatmul.mubr.f32.gmra.mxu1 %v128_v0 }
0x115a   :  { %7332 = vmatprep.mubr.f32.mxu1 %v129_v18 }
0x115d   :  { %7333 = vmatmul.mubr.f32.gmra.mxu1 %v130_v53 }
0x115e   :  { %7335 = vmatprep.mubr.f32.mxu1 %v131_v14 }
0x1161   :  { %7336 = vmatmul.mubr.f32.gmra.mxu1 %v132_v12 }
0x1162   :  { %7338 = vmatprep.mubr.f32.mxu1 %v133_v47 }
0x1165   :  { %7339 = vmatmul.mubr.f32.gmra.mxu1 %v134_v3 }
0x1209   :  { %v7319_v24 = vpop.f32.mrf.mxu1 }
0x120a   :  { %5705 = vst.msk [vmem:[%s11124_s9 + $0x8] sm:$0xff] %vm325_vm0, %v7319_v24 }
0x120b   :  { %v5625_v13 = vpop.f32.mrf.mxu1 }
0x120c   :  { %5704 = vst.msk [vmem:[%s11124_s9] sm:$0xff] %vm325_vm0, %v5625_v13 }
0x120d   :  { %v7322_v4 = vpop.f32.mrf.mxu1 }
0x120e   :  { %5707 = vst.msk [vmem:[%s11124_s9 + $0x18] sm:$0xff] %vm325_vm0, %v7322_v4 }
0x120f   :  { %v5635_v21 = vpop.f32.mrf.mxu1 }
0x1210   :  { %5706 = vst.msk [vmem:[%s11124_s9 + $0x10] sm:$0xff] %vm325_vm0, %v5635_v21 }
0x1211   :  { %v7325_v60 = vpop.f32.mrf.mxu1 }
0x1212   :  { %5709 = vst.msk [vmem:[%s11124_s9 + $0x28] sm:$0xff] %vm325_vm0, %v7325_v60 }
0x1213   :  { %v5645_v61 = vpop.f32.mrf.mxu1 }
0x1214   :  { %5708 = vst.msk [vmem:[%s11124_s9 + $0x20] sm:$0xff] %vm325_vm0, %v5645_v61 }
0x1215   :  { %v7328_v10 = vpop.f32.mrf.mxu1 }
0x1216   :  { %5711 = vst.msk [vmem:[%s11124_s9 + $0x38] sm:$0xff] %vm325_vm0, %v7328_v10 }
0x1217   :  { %v5655_v17 = vpop.f32.mrf.mxu1 }
0x1218   :  { %5710 = vst.msk [vmem:[%s11124_s9 + $0x30] sm:$0xff] %vm325_vm0, %v5655_v17 }
0x1219   :  { %v7331_v50 = vpop.f32.mrf.mxu1 }
0x121a   :  { %5713 = vst.msk [vmem:[%s11124_s9 + $0x48] sm:$0xff] %vm325_vm0, %v7331_v50 }
0x121b   :  { %v5665_v31 = vpop.f32.mrf.mxu1 }
0x121c   :  { %5712 = vst.msk [vmem:[%s11124_s9 + $0x40] sm:$0xff] %vm325_vm0, %v5665_v31 }
0x121d   :  { %v7334_v48 = vpop.f32.mrf.mxu1 }
0x121e   :  { %5715 = vst.msk [vmem:[%s11124_s9 + $0x58] sm:$0xff] %vm325_vm0, %v7334_v48 }
0x121f   :  { %v5675_v26 = vpop.f32.mrf.mxu1 }
0x1220   :  { %5714 = vst.msk [vmem:[%s11124_s9 + $0x50] sm:$0xff] %vm325_vm0, %v5675_v26 }
0x1221   :  { %v7337_v15 = vpop.f32.mrf.mxu1 }
0x1222   :  { %5717 = vst.msk [vmem:[%s11124_s9 + $0x68] sm:$0xff] %vm325_vm0, %v7337_v15 }
0x1223   :  { %v5685_v35 = vpop.f32.mrf.mxu1 }
0x1224   :  { %5716 = vst.msk [vmem:[%s11124_s9 + $0x60] sm:$0xff] %vm325_vm0, %v5685_v35 }
0x1225   :  { %v7340_v63 = vpop.f32.mrf.mxu1 }
0x1226   :  { %5719 = vst.msk [vmem:[%s11124_s9 + $0x78] sm:$0xff] %vm325_vm0, %v7340_v63 }
0x1227   :  { %v5695_v9 = vpop.f32.mrf.mxu1 }
0x1228   :  { %5718 = vst.msk [vmem:[%s11124_s9 + $0x70] sm:$0xff] %vm325_vm0, %v5695_v9 }
0x1229   :  { %5724 = vsyncpa [#allocation3], 1 }
0x122a   :  { %5725 = vsyncpa [#allocation5], 1 }
0x122b   :  { %5726 = vsyncpa [#allocation8], 1 }

</bundles_post_ra>
